<compile_context>
chip_gen: v5e
topology: v5e:2x2
jax: 0.10.0
libtpu: 0.0.40
codegen_flags: <defaults>
</compile_context>

<pallas_src>
import functools
from types import SimpleNamespace

import jax
import jax.numpy as jnp
from jax.experimental import pallas as pl
from jax.experimental.pallas import tpu as pltpu  # noqa: F401  (kept for TPU-specific extensions)

LEAKY_SLOPE = 0.01


# ----------------------------------------------------------------------------
# Small in-kernel math helpers
# ----------------------------------------------------------------------------
def _mm_bf16(a, w):
    """MXU matmul: bf16 operands, f32 accumulation."""
    return jnp.dot(a.astype(jnp.bfloat16), w.astype(jnp.bfloat16),
                   preferred_element_type=jnp.float32)


def _leaky(y):
    return jnp.where(y >= 0.0, y, LEAKY_SLOPE * y)


def _erf_poly(x):
    # Abramowitz & Stegun 7.1.26 polynomial (|err| < 1.5e-7) — exact-erf GELU
    # without relying on a lax.erf lowering inside Mosaic.
    a1, a2, a3, a4, a5 = 0.254829592, -0.284496736, 1.421413741, -1.453152027, 1.061405429
    p = 0.3275911
    ax = jnp.abs(x)
    t = 1.0 / (1.0 + p * ax)
    poly = ((((a5 * t + a4) * t + a3) * t + a2) * t + a1) * t
    y = 1.0 - poly * jnp.exp(-ax * ax)
    return jnp.where(x < 0.0, -y, y)


def _gelu_erf(x):
    return 0.5 * x * (1.0 + _erf_poly(x * 0.7071067811865476))


def _layer_norm(v, g, b, eps=1e-5):
    mu = jnp.mean(v, axis=-1, keepdims=True)
    var = jnp.mean((v - mu) ** 2, axis=-1, keepdims=True)
    return (v - mu) * jax.lax.rsqrt(var + eps) * g + b


# ----------------------------------------------------------------------------
# Pallas kernels
# ----------------------------------------------------------------------------
def _tf_stack_kernel(x_ref, g1_ref, be1_ref, wqkv_ref, wout_ref, bo_ref,
                     g2_ref, be2_ref, w1_ref, b1_ref, w2_ref, b2_ref, o_ref,
                     *, depth, heads, dim_head):
    """Whole pre-norm transformer encoder (all layers, all batches), one launch.

    Per-layer weights are stacked along a leading `depth` axis; the layer loop
    is statically unrolled inside the kernel so there is exactly ONE launch for
    the full encoder instead of one launch per layer.
    """
    B, N, C = x_ref.shape
    inner = heads * dim_head
    scale = dim_head ** -0.5
    x = x_ref[...].reshape(B * N, C)

    for d in range(depth):                              # static unroll over layers
        # --- attention sub-block (pre-norm) ---
        xn = _layer_norm(x, g1_ref[d], be1_ref[d])
        qkv = _mm_bf16(xn, wqkv_ref[d]).reshape(B, N, 3 * inner)
        heads_out = []
        for hd in range(heads):                         # static unroll over heads
            q = qkv[:, :, hd * dim_head:(hd + 1) * dim_head]
            k = qkv[:, :, inner + hd * dim_head: inner + (hd + 1) * dim_head]
            v = qkv[:, :, 2 * inner + hd * dim_head: 2 * inner + (hd + 1) * dim_head]
            s = jnp.einsum('bqd,bkd->bqk', q.astype(jnp.bfloat16), k.astype(jnp.bfloat16),
                           preferred_element_type=jnp.float32) * scale
            s = s - jnp.max(s, axis=-1, keepdims=True)
            p = jnp.exp(s)
            p = p * pl.reciprocal(jnp.sum(p, axis=-1, keepdims=True), approx=True)
            heads_out.append(jnp.einsum('bqk,bkd->bqd', p.astype(jnp.bfloat16),
                                        v.astype(jnp.bfloat16),
                                        preferred_element_type=jnp.float32))
        attn = jnp.concatenate(heads_out, axis=-1).reshape(B * N, inner)
        x = x + _mm_bf16(attn, wout_ref[d]) + bo_ref[d]

        # --- FFN sub-block (pre-norm, exact-erf GELU) ---
        xn2 = _layer_norm(x, g2_ref[d], be2_ref[d])
        h1 = _gelu_erf(_mm_bf16(xn2, w1_ref[d]) + b1_ref[d])
        x = x + _mm_bf16(h1, w2_ref[d]) + b2_ref[d]

    o_ref[...] = x.reshape(B, N, C)


def transformer(tfp, x, *, heads, dim_head):
    """Full encoder in ONE pallas_call (stacked per-layer weights)."""
    B, N, C = x.shape
    depth = tfp["wqkv"].shape[0]
    return pl.pallas_call(
        functools.partial(_tf_stack_kernel, depth=depth, heads=heads, dim_head=dim_head),
        out_shape=jax.ShapeDtypeStruct((B, N, C), jnp.float32),
    )(x,
      tfp["ln1_g"], tfp["ln1_b"], tfp["wqkv"], tfp["wout"], tfp["bout"],
      tfp["ln2_g"], tfp["ln2_b"], tfp["w1"], tfp["b1"], tfp["w2"], tfp["b2"])


def _heads_kernel(*refs, n_layers):
    """Whole DynamicFusion dense stack in one launch.

    Inputs : glb (GP, C), loc (2, LP, C), n_layers*(w,b) for glb MLP,
             n_layers*(w,b) for loc MLP, fused lane-dense heads
             (gh_w, gh_b, lh_w, lh_b, rel_w, rel_b).
    Outputs: gh (GP, 128) = [shape | pose6d | 0-pad],
             lh (2, LP, 128) = [root6d | cam | 0-pad],
             rel (LP, 128) = [rel | 0-pad].
    """
    glb_ref, loc_ref = refs[0], refs[1]
    widx = 2

    g = glb_ref[...]                                  # (GP, C)
    for _ in range(n_layers):
        w, b = refs[widx][...], refs[widx + 1][...]
        widx += 2
        g = _leaky(_mm_bf16(g, w) + b)

    l = loc_ref[...]                                  # (2, LP, C)
    S, P, C = l.shape
    l = l.reshape(S * P, C)
    for _ in range(n_layers):
        w, b = refs[widx][...], refs[widx + 1][...]
        widx += 2
        l = _leaky(_mm_bf16(l, w) + b)

    wgh, bgh = refs[widx][...], refs[widx + 1][...]
    wlh, blh = refs[widx + 2][...], refs[widx + 3][...]
    wrel, brel = refs[widx + 4][...], refs[widx + 5][...]
    gh_ref, lh_ref, rel_ref = refs[widx + 6], refs[widx + 7], refs[widx + 8]

    gh_ref[...] = _mm_bf16(g, wgh) + bgh                       # (GP, 128)

    lh = _mm_bf16(l, wlh) + blh                                # (S*P, 128)
    lh_ref[...] = lh.reshape(S, P, lh.shape[-1])

    feat = l.shape[-1]
    l3 = l.reshape(S, P, feat)
    lcat = jnp.concatenate([l3[0], l3[1]], axis=-1)            # '(s b) t c -> b t (s c)'
    rel_ref[...] = _mm_bf16(lcat, wrel) + brel                 # (P, 128)


def _rot6d2quat_kernel(x_ref, q_ref):
    """rot6d -> quaternion in lane-major layout: input (6, M), output (4, M)."""
    x = x_ref[...]
    a1x, a1y, a1z = x[0:1], x[1:2], x[2:3]
    a2x, a2y, a2z = x[3:4], x[4:5], x[5:6]

    inv1 = pl.reciprocal(jnp.maximum(jnp.sqrt(a1x * a1x + a1y * a1y + a1z * a1z), 1e-12),
                         approx=True)
    b1x, b1y, b1z = a1x * inv1, a1y * inv1, a1z * inv1
    d12 = b1x * a2x + b1y * a2y + b1z * a2z
    u2x, u2y, u2z = a2x - d12 * b1x, a2y - d12 * b1y, a2z - d12 * b1z
    inv2 = pl.reciprocal(jnp.maximum(jnp.sqrt(u2x * u2x + u2y * u2y + u2z * u2z), 1e-12),
                         approx=True)
    b2x, b2y, b2z = u2x * inv2, u2y * inv2, u2z * inv2
    b3x = b1y * b2z - b1z * b2y
    b3y = b1z * b2x - b1x * b2z
    b3z = b1x * b2y - b1y * b2x

    # rmat_t (= transpose of rot6d2mat result) has rows b1, b2, b3
    m00, m01, m02 = b1x, b1y, b1z
    m10, m11, m12 = b2x, b2y, b2z
    m20, m21, m22 = b3x, b3y, b3z

    eps = 1e-6
    d2 = (m22 < eps).astype(jnp.float32)
    d0d1 = (m00 > m11).astype(jnp.float32)
    d0nd1 = (m00 < -m11).astype(jnp.float32)
    t0 = 1.0 + m00 - m11 - m22
    t1 = 1.0 - m00 + m11 - m22
    t2 = 1.0 - m00 - m11 + m22
    t3 = 1.0 + m00 + m11 + m22
    c0 = d2 * d0d1
    c1 = d2 * (1.0 - d0d1)
    c2 = (1.0 - d2) * d0nd1
    c3 = (1.0 - d2) * (1.0 - d0nd1)
    qa = (m12 - m21) * c0 + (m20 - m02) * c1 + (m01 - m10) * c2 + t3 * c3
    qb = t0 * c0 + (m01 + m10) * c1 + (m20 + m02) * c2 + (m12 - m21) * c3
    qc = (m01 + m10) * c0 + t1 * c1 + (m12 + m21) * c2 + (m20 - m02) * c3
    qd = (m20 + m02) * c0 + (m12 + m21) * c1 + t2 * c2 + (m01 - m10) * c3
    denom = jnp.sqrt(t0 * c0 + t1 * c1 + t2 * c2 + t3 * c3)
    half_inv = 0.5 * pl.reciprocal(jnp.maximum(denom, 1e-12), approx=True)
    q_ref[...] = jnp.concatenate([qa, qb, qc, qd], axis=0) * half_inv


def rot6d2quat(x6):
    """x6: (M, 6) -> quaternion (M, 4) via a lane-dense (6, M)/(4, M) kernel."""
    m = x6.shape[0]
    qt = pl.pallas_call(
        _rot6d2quat_kernel,
        out_shape=jax.ShapeDtypeStruct((4, m), jnp.float32),
    )(x6.T)
    return qt.T


def _dense_kernel(x_ref, w_ref, b_ref, o_ref):
    o_ref[...] = _mm_bf16(x_ref[...], w_ref[...]) + b_ref[...]


def dense_block(x, w, b):
    """Single-launch, single-block dense: y = x @ w + b (rows padded to sublane multiple)."""
    n, _ = x.shape
    cout = w.shape[1]
    npad = 8 * pl.cdiv(n, 8)
    if npad != n:
        x = jnp.pad(x, ((0, npad - n), (0, 0)))
    out = pl.pallas_call(
        _dense_kernel,
        out_shape=jax.ShapeDtypeStruct((npad, cout), jnp.float32),
    )(x, w, b.reshape(1, cout))
    return out[:n]


# ----------------------------------------------------------------------------
# Plain-JAX glue (small elementwise math / projections)
# ----------------------------------------------------------------------------
def quat2aa(q):
    q1, q2, q3 = q[..., 1], q[..., 2], q[..., 3]
    sin_sq = q1 * q1 + q2 * q2 + q3 * q3
    sin_t = jnp.sqrt(sin_sq)
    cos_t = q[..., 0]
    two_theta = 2.0 * jnp.where(cos_t < 0.0,
                                jnp.arctan2(-sin_t, -cos_t),
                                jnp.arctan2(sin_t, cos_t))
    k_pos = two_theta / sin_t
    k_neg = 2.0 * jnp.ones_like(sin_t)
    k = jnp.where(sin_sq > 0.0, k_pos, k_neg)
    aa = jnp.stack([q1 * k, q2 * k, q3 * k], axis=-1)
    return jnp.where(jnp.isnan(aa), 0.0, aa)


def perspective_projection(points, translation, focal_length):
    # rotation=identity, camera_center=0 (as used in the module)
    pts = points + translation[:, None, :]
    proj = pts / pts[:, :, -1:]
    px = proj[..., 0] * focal_length[:, None, 0]
    py = proj[..., 1] * focal_length[:, None, 1]
    return jnp.stack([px, py], axis=-1)


# ----------------------------------------------------------------------------
# Model pieces
# ----------------------------------------------------------------------------
def mano_transform(mp, mano_pose, mano_shape):
    """Synthetic MANO: joint regressor folded into blend -> one lane-dense matmul."""
    n = mano_pose.shape[0]
    inp = jnp.concatenate([mano_pose, mano_shape], axis=-1)         # (N, 58)
    vj = dense_block(inp, mp["w_vj_pad"], mp["b_vj_pad"])           # (N, pad128(V*3 + J*3))
    V, J = mp["V"], mp["J"]
    verts = vj[:, :V * 3].reshape(n, V, 3)
    joints = vj[:, V * 3:V * 3 + J * 3].reshape(n, J, 3)
    return verts, joints


def dynamic_fusion(p, glb_feat, loc_feat, T, bs):
    B2, C = glb_feat.shape                       # B2 = 2*bs
    n_layers = len(p["glb_layers"])
    BT = bs * T

    # pad matmul row (M) dims to sublane multiples; padded rows are sliced away below
    GP = 8 * pl.cdiv(B2, 8)
    LP = 8 * pl.cdiv(BT, 8)
    glb_p = jnp.pad(glb_feat, ((0, GP - B2), (0, 0)))
    loc3 = loc_feat.reshape(2, BT, C)
    loc_p = jnp.pad(loc3, ((0, 0), (0, LP - BT), (0, 0)))

    args = [glb_p, loc_p]
    for (w, b) in p["glb_layers"]:
        args += [w, b.reshape(1, -1)]
    for (w, b) in p["loc_layers"]:
        args += [w, b.reshape(1, -1)]
    args += [p["gh_w"], p["gh_b"], p["lh_w"], p["lh_b"], p["rel_w_pad"], p["rel_b_pad"]]

    gh, lh, rel = pl.pallas_call(
        functools.partial(_heads_kernel, n_layers=n_layers),
        out_shape=(jax.ShapeDtypeStruct((GP, 128), jnp.float32),
                   jax.ShapeDtypeStruct((2, LP, 128), jnp.float32),
                   jax.ShapeDtypeStruct((LP, 128), jnp.float32)),
    )(*args)

    # slice the lane-dense head slabs back into the original head outputs
    pred_shape = gh[:B2, 0:10]                                   # (B2, 10)
    pred_pose6d = gh[:B2, 10:100]                                # (B2, 90)
    lh_v = lh[:, :BT, :]
    pred_root6d = lh_v[..., 0:6].reshape(B2 * T, 6)              # (B2*T, 6)
    pred_cam = lh_v[..., 6:9].reshape(B2 * T, 3)                 # (B2*T, 3)
    pred_rel = rel[:BT, 0:3]                                     # (bs*T, 3)

    pred_shape_rep = jnp.broadcast_to(pred_shape[:, None, :], (B2, T, 10)).reshape(B2 * T, 10)
    pred_pose6d_rep = jnp.broadcast_to(pred_pose6d[:, None, :], (B2, T, 90)).reshape(B2 * T, 90)
    pose6d_full = jnp.concatenate([pred_root6d, pred_pose6d_rep], axis=-1)   # (B2*T, 96)

    quat = rot6d2quat(pose6d_full.reshape(-1, 6))                # Pallas lane-dense kernel
    mano_pose = quat2aa(quat).reshape(B2 * T, 48)

    verts, joints = mano_transform(p["mano_model"], mano_pose, pred_shape_rep)

    half = (B2 * T) // 2
    res = {}
    for name, arr in [("verts3d", verts), ("joints3d", joints),
                      ("mano_shape", pred_shape_rep), ("mano_pose", mano_pose),
                      ("cam", pred_cam), ("mano_pose6d", pose6d_full)]:
        arr2 = arr.reshape((2, half) + arr.shape[1:])
        res[f"{name}_right"] = arr2[0]
        res[f"{name}_left"] = arr2[1]
    res["root_rel"] = pred_rel

    joints_r, joints_l = res["joints3d_right"], res["joints3d_left"]
    verts_r, verts_l = res["verts3d_right"], res["verts3d_left"]
    root_r = joints_r[:, 9:10, :]
    root_l = joints_l[:, 9:10, :]
    verts_w_r = verts_r - root_r
    verts_w_l = verts_l - root_l
    joints_w_r = joints_r - root_r
    joints_w_l = joints_l - root_l
    verts_w_l = verts_w_l.at[:, :, 0].multiply(-1.0)
    joints_w_l = joints_w_l.at[:, :, 0].multiply(-1.0)
    verts_w_l = verts_w_l + pred_rel[:, None, :]
    joints_w_l = joints_w_l + pred_rel[:, None, :]
    res["joints3d_world_right"] = joints_w_r
    res["verts3d_world_right"] = verts_w_r
    res["joints3d_world_left"] = joints_w_l
    res["verts3d_world_left"] = verts_w_l
    return res


def calc_glb_2d(cfg, batch, j3d_r, j3d_l, cam_r, cam_l, root_rel):
    j3d_l = j3d_l.at[..., 0].multiply(-1.0)
    cam_l = cam_l.at[..., 0].multiply(-1.0)
    root_r = j3d_r[:, 9, :]
    root_l = j3d_l[:, 9, :]
    trans_r2l = root_l - root_r
    trans_l2r = root_r - root_l
    cam_left_align = trans_l2r + cam_r + root_rel
    cam_right_align = trans_r2l + cam_l - root_rel
    f = cfg.EXTRA.FOCAL_LENGTH * jnp.ones((j3d_r.shape[0], 2), jnp.float32)
    img = cfg.MODEL.IMAGE_SIZE
    j2d_l = perspective_projection(j3d_l, cam_left_align, f / img)
    j2d_r = perspective_projection(j3d_r, cam_right_align, f / img)
    # bbox_l applied to j2d_r and bbox_r to j2d_l — faithful to the source code.
    bbox_r, bbox_l, bbox_f = batch["bbox_right"], batch["bbox_left"], batch["bbox_full"]
    j2d_r = (j2d_r + 0.5) * bbox_l[:, None, 2:4] + bbox_l[:, None, :2]
    j2d_l = (j2d_l + 0.5) * bbox_r[:, None, 2:4] + bbox_r[:, None, :2]
    j2d_r_glb = (j2d_r - bbox_f[:, None, :2]) / bbox_f[:, None, 2:4] - 0.5
    j2d_l_glb = (j2d_l - bbox_f[:, None, :2]) / bbox_f[:, None, 2:4] - 0.5
    return j2d_r_glb, j2d_l_glb


def solve_cam_t(params, cfg, pred, batch, train=True):
    cam_r = pred["cam_right"] + params["init_cam"]
    cam_l = pred["cam_left"] + params["init_cam"]
    B = cam_r.shape[0]
    img = cfg.MODEL.IMAGE_SIZE
    f = cfg.EXTRA.FOCAL_LENGTH * jnp.ones((B, 2), jnp.float32)

    cam_t_right = jnp.stack([cam_r[:, 1], cam_r[:, 2],
                             2.0 * f[:, 0] / (img * cam_r[:, 0] + 1e-9)], axis=-1)
    pred["pred_cam_t_right"] = cam_t_right
    j2d_r = perspective_projection(pred["joints3d_right"], cam_t_right, f / img)
    pred["joints2d_right"] = j2d_r

    cam_t_left = jnp.stack([cam_l[:, 1], cam_l[:, 2],
                            2.0 * f[:, 0] / (img * cam_l[:, 0] + 1e-9)], axis=-1)
    pred["pred_cam_t_right"] = cam_t_left      # (faithfully reproduces the source quirk)
    j2d_l = perspective_projection(pred["joints3d_left"], cam_t_left, f / img)
    pred["joints2d_left"] = j2d_l

    j2d_rg, j2d_lg = calc_glb_2d(cfg, batch, pred["joints3d_right"],
                                 pred["joints3d_left"], cam_t_right, cam_t_left,
                                 pred["root_rel"])
    pred["joints2d_glb_right"] = j2d_rg
    pred["joints2d_glb_left"] = j2d_lg
    # TODO(synk): train=False branch (cv2.solvePnPRansac alignment) not implemented.
    return pred


def aggregate_head_forward(params, cfg, hand_token, batch_seq, *, heads, dim_head, train=True):
    T = cfg.MODEL.SEQ_LEN
    C = hand_token.shape[1]
    bs = hand_token.shape[0] // (T * 2)
    batch = {k: v.reshape((-1,) + v.shape[2:]) for k, v in batch_seq.items()}

    # '(b t s) c -> (s b) t c'
    x = hand_token.reshape(bs, T, 2, C).transpose(2, 0, 1, 3).reshape(2 * bs, T, C)
    B2 = 2 * bs

    # to_token_embedding(ones) == emb_w[0] + emb_b (Linear applied to a constant 1)
    token_glb = jnp.broadcast_to((params["emb_w"][0] + params["emb_b"]).reshape(1, 1, C),
                                 (B2, 1, C))
    tok = jnp.concatenate([token_glb, x], axis=1)              # (B2, T+1, C)
    tok = transformer(params["tf"], tok, heads=heads, dim_head=dim_head)
    glb_feat = tok[:, 0]
    loc_feat = tok[:, 1:]

    pred = dynamic_fusion(params["mano"], glb_feat, loc_feat, T, bs)
    pred = solve_cam_t(params, cfg, pred, batch, train=train)
    return pred


# ----------------------------------------------------------------------------
# Deterministic parameter init (raw torch-style params -> fused Pallas layout)
# ----------------------------------------------------------------------------
def init_params(key, *, C, heads, dim_head, depth, mlp_dim, mano_neurons, V, J):
    keys = iter(jax.random.split(key, 128))

    def w(shape, scale=0.02):
        return scale * jax.random.normal(next(keys), shape, jnp.float32)

    inner = heads * dim_head
    params = {"emb_w": w((1, C)), "emb_b": jnp.zeros((C,), jnp.float32)}

    # per-layer raw params, then stacked along a leading depth axis so the
    # whole encoder is a single pallas_call with statically-unrolled layers.
    raw = []
    for _ in range(depth):
        raw.append(dict(
            ln1_g=jnp.ones((1, C), jnp.float32), ln1_b=jnp.zeros((1, C), jnp.float32),
            wqkv=w((C, 3 * inner)), wout=w((inner, C)), bout=jnp.zeros((1, C), jnp.float32),
            ln2_g=jnp.ones((1, C), jnp.float32), ln2_b=jnp.zeros((1, C), jnp.float32),
            w1=w((C, mlp_dim)), b1=jnp.zeros((1, mlp_dim), jnp.float32),
            w2=w((mlp_dim, C)), b2=jnp.zeros((1, C), jnp.float32)))
    params["tf"] = {k: jnp.stack([lp[k] for lp in raw]) for k in raw[0]}

    base = [C] + mano_neurons
    glb, loc = [], []
    for cin, cout in zip(base[:-1], base[1:]):
        glb.append((w((cin, cout)), jnp.zeros((cout,), jnp.float32)))
        loc.append((w((cin, cout)), jnp.zeros((cout,), jnp.float32)))
    feat = base[-1]
    id6 = jnp.array([1., 0., 0., 0., 1., 0.], jnp.float32)

    # raw head weights (as in the torch module) ...
    shape_w, shape_b = w((feat, 10)), jnp.zeros((10,), jnp.float32)
    pose_w, pose_b = w((feat, 90)), jnp.tile(id6, 15)
    root_w, root_b = w((feat, 6)), id6
    cam_w, cam_b = w((feat, 3)), jnp.zeros((3,), jnp.float32)
    rel_w, rel_b = w((2 * feat, 3)), jnp.zeros((3,), jnp.float32)

    # ... fused & zero-padded to 128 output lanes for lane-dense stores in the kernel
    def pad_cols(a, n=128):
        return jnp.pad(a, ((0, 0), (0, n - a.shape[1])))

    gh_w = pad_cols(jnp.concatenate([shape_w, pose_w], axis=1))              # (feat, 128)
    gh_b = jnp.pad(jnp.concatenate([shape_b, pose_b]), (0, 128 - 100)).reshape(1, 128)
    lh_w = pad_cols(jnp.concatenate([root_w, cam_w], axis=1))                # (feat, 128)
    lh_b = jnp.pad(jnp.concatenate([root_b, cam_b]), (0, 128 - 9)).reshape(1, 128)
    rel_w_pad = pad_cols(rel_w)                                              # (2*feat, 128)
    rel_b_pad = jnp.pad(rel_b, (0, 128 - 3)).reshape(1, 128)

    # synthetic MANO: linear blend + joint regressor, with the regressor folded
    # into the blend so verts AND joints come out of one matmul (58 -> V*3 + J*3),
    # output columns zero-padded to a multiple of 128 for lane-dense stores.
    blend_w = w((48 + 10, V * 3), 0.01)
    template = 0.1 * jax.random.normal(next(keys), (V * 3,), jnp.float32)
    jreg = jnp.abs(jax.random.normal(next(keys), (V, J), jnp.float32)) / V
    blend_j = jnp.einsum('ivc,vj->ijc', blend_w.reshape(-1, V, 3), jreg).reshape(-1, J * 3)
    template_j = jnp.einsum('vc,vj->jc', template.reshape(V, 3), jreg).reshape(J * 3)
    n_out = V * 3 + J * 3
    n_out_pad = 128 * pl.cdiv(n_out, 128)
    w_vj = jnp.concatenate([blend_w, blend_j], axis=1)                       # (58, V*3+J*3)
    b_vj = jnp.concatenate([template, template_j])                           # (V*3+J*3,)
    mano_model = dict(
        w_vj_pad=jnp.pad(w_vj, ((0, 0), (0, n_out_pad - n_out))),            # (58, pad128)
        b_vj_pad=jnp.pad(b_vj, (0, n_out_pad - n_out)),                      # (pad128,)
        V=V, J=J,
    )

    params["mano"] = dict(
        glb_layers=glb, loc_layers=loc,
        gh_w=gh_w, gh_b=gh_b, lh_w=lh_w, lh_b=lh_b,
        rel_w_pad=rel_w_pad, rel_b_pad=rel_b_pad,
        mano_model=mano_model,
    )
    params["init_cam"] = jnp.array([[0.9, 0.0, 0.0]], jnp.float32)
    return params


# ----------------------------------------------------------------------------
if __name__ == "__main__":
    cfg = SimpleNamespace(
        MODEL=SimpleNamespace(SEQ_LEN=7, IMAGE_SIZE=256),
        EXTRA=SimpleNamespace(FOCAL_LENGTH=5000.0),
    )
    C, heads, dim_head, depth, mlp_dim = 32, 4, 8, 2, 32
    bs, T = 2, cfg.MODEL.SEQ_LEN
    V, J = 24, 21

    key = jax.random.PRNGKey(0)
    kp, kx, kb = jax.random.split(key, 3)
    params = init_params(kp, C=C, heads=heads, dim_head=dim_head, depth=depth,
                         mlp_dim=mlp_dim, mano_neurons=[32, 32], V=V, J=J)

    hand_token = jax.random.normal(kx, (bs * T * 2, C), jnp.float32)

    kb1, kb2, kb3 = jax.random.split(kb, 3)

    def mk_bbox(k):
        xy = 20.0 + 80.0 * jax.random.uniform(k, (bs, T, 2), jnp.float32)
        wh = 60.0 + 40.0 * jax.random.uniform(jax.random.fold_in(k, 1), (bs, T, 2), jnp.float32)
        return jnp.concatenate([xy, wh], axis=-1)

    batch_seq = {
        "bbox_right": mk_bbox(kb1),
        "bbox_left": mk_bbox(kb2),
        "bbox_full": mk_bbox(kb3),
    }

    fwd = jax.jit(functools.partial(aggregate_head_forward, params, cfg,
                                    heads=heads, dim_head=dim_head, train=True))
    out = fwd(hand_token, batch_seq)
    for v in out.values():
        jax.block_until_ready(v)
    print("KERNEL_OK")
</pallas_src>

<mosaic_0001>
module attributes {stable_mosaic.version = 11 : i64} {
  func.func @_heads_kernel(%arg0: memref<8x32xf32, #tpu.memory_space<vmem>>, %arg1: memref<2x16x32xf32, #tpu.memory_space<vmem>>, %arg2: memref<32x32xf32, #tpu.memory_space<vmem>>, %arg3: memref<1x32xf32, #tpu.memory_space<vmem>>, %arg4: memref<32x32xf32, #tpu.memory_space<vmem>>, %arg5: memref<1x32xf32, #tpu.memory_space<vmem>>, %arg6: memref<32x32xf32, #tpu.memory_space<vmem>>, %arg7: memref<1x32xf32, #tpu.memory_space<vmem>>, %arg8: memref<32x32xf32, #tpu.memory_space<vmem>>, %arg9: memref<1x32xf32, #tpu.memory_space<vmem>>, %arg10: memref<32x128xf32, #tpu.memory_space<vmem>>, %arg11: memref<1x128xf32, #tpu.memory_space<vmem>>, %arg12: memref<32x128xf32, #tpu.memory_space<vmem>>, %arg13: memref<1x128xf32, #tpu.memory_space<vmem>>, %arg14: memref<64x128xf32, #tpu.memory_space<vmem>>, %arg15: memref<1x128xf32, #tpu.memory_space<vmem>>, %arg16: memref<8x128xf32, #tpu.memory_space<vmem>>, %arg17: memref<2x16x128xf32, #tpu.memory_space<vmem>>, %arg18: memref<16x128xf32, #tpu.memory_space<vmem>>) attributes {dimension_semantics = [], scalar_prefetch = 0 : i64, scratch_operands = 0 : i64, tpu.core_type = #tpu.core_type<tc>} {
    %c0 = arith.constant 0 : index
    %c0_0 = arith.constant 0 : index
    %0 = vector.load %arg0[%c0, %c0_0] : memref<8x32xf32, #tpu.memory_space<vmem>>, vector<8x32xf32>
    %c0_1 = arith.constant 0 : index
    %c0_2 = arith.constant 0 : index
    %1 = vector.load %arg2[%c0_1, %c0_2] : memref<32x32xf32, #tpu.memory_space<vmem>>, vector<32x32xf32>
    %c0_3 = arith.constant 0 : index
    %c0_4 = arith.constant 0 : index
    %2 = vector.load %arg3[%c0_3, %c0_4] : memref<1x32xf32, #tpu.memory_space<vmem>>, vector<1x32xf32>
    %3 = arith.truncf %0 : vector<8x32xf32> to vector<8x32xbf16>
    %4 = arith.truncf %1 : vector<32x32xf32> to vector<32x32xbf16>
    %cst = arith.constant dense<0.000000e+00> : vector<8x32xf32>
    %5 = tpu.matmul %3, %4, %cst {dimension_numbers = #tpu.dot_dimension_numbers<[1], [0], [0], [1], [0, 0, 1, 1], [], []>} : vector<8x32xbf16>, vector<32x32xbf16>, vector<8x32xf32> -> vector<8x32xf32>
    %6 = vector.broadcast %2 : vector<1x32xf32> to vector<8x32xf32>
    %7 = arith.addf %5, %6 : vector<8x32xf32>
    %cst_5 = arith.constant 0.000000e+00 : f32
    %8 = vector.broadcast %cst_5 : f32 to vector<8x32xf32>
    %9 = arith.cmpf oge, %7, %8 : vector<8x32xf32>
    %cst_6 = arith.constant 0.00999999977 : f32
    %10 = vector.broadcast %cst_6 : f32 to vector<8x32xf32>
    %11 = arith.mulf %10, %7 : vector<8x32xf32>
    %12 = arith.select %9, %7, %11 : vector<8x32xi1>, vector<8x32xf32>
    %c0_7 = arith.constant 0 : index
    %c0_8 = arith.constant 0 : index
    %13 = vector.load %arg4[%c0_7, %c0_8] : memref<32x32xf32, #tpu.memory_space<vmem>>, vector<32x32xf32>
    %c0_9 = arith.constant 0 : index
    %c0_10 = arith.constant 0 : index
    %14 = vector.load %arg5[%c0_9, %c0_10] : memref<1x32xf32, #tpu.memory_space<vmem>>, vector<1x32xf32>
    %15 = arith.truncf %12 : vector<8x32xf32> to vector<8x32xbf16>
    %16 = arith.truncf %13 : vector<32x32xf32> to vector<32x32xbf16>
    %cst_11 = arith.constant dense<0.000000e+00> : vector<8x32xf32>
    %17 = tpu.matmul %15, %16, %cst_11 {dimension_numbers = #tpu.dot_dimension_numbers<[1], [0], [0], [1], [0, 0, 1, 1], [], []>} : vector<8x32xbf16>, vector<32x32xbf16>, vector<8x32xf32> -> vector<8x32xf32>
    %18 = vector.broadcast %14 : vector<1x32xf32> to vector<8x32xf32>
    %19 = arith.addf %17, %18 : vector<8x32xf32>
    %cst_12 = arith.constant 0.000000e+00 : f32
    %20 = vector.broadcast %cst_12 : f32 to vector<8x32xf32>
    %21 = arith.cmpf oge, %19, %20 : vector<8x32xf32>
    %cst_13 = arith.constant 0.00999999977 : f32
    %22 = vector.broadcast %cst_13 : f32 to vector<8x32xf32>
    %23 = arith.mulf %22, %19 : vector<8x32xf32>
    %24 = arith.select %21, %19, %23 : vector<8x32xi1>, vector<8x32xf32>
    %c0_14 = arith.constant 0 : index
    %c0_15 = arith.constant 0 : index
    %c0_16 = arith.constant 0 : index
    %25 = vector.load %arg1[%c0_14, %c0_15, %c0_16] : memref<2x16x32xf32, #tpu.memory_space<vmem>>, vector<2x16x32xf32>
    %26 = vector.shape_cast %25 : vector<2x16x32xf32> to vector<32x32xf32>
    %c0_17 = arith.constant 0 : index
    %c0_18 = arith.constant 0 : index
    %27 = vector.load %arg6[%c0_17, %c0_18] : memref<32x32xf32, #tpu.memory_space<vmem>>, vector<32x32xf32>
    %c0_19 = arith.constant 0 : index
    %c0_20 = arith.constant 0 : index
    %28 = vector.load %arg7[%c0_19, %c0_20] : memref<1x32xf32, #tpu.memory_space<vmem>>, vector<1x32xf32>
    %29 = arith.truncf %26 : vector<32x32xf32> to vector<32x32xbf16>
    %30 = arith.truncf %27 : vector<32x32xf32> to vector<32x32xbf16>
    %cst_21 = arith.constant dense<0.000000e+00> : vector<32x32xf32>
    %31 = tpu.matmul %29, %30, %cst_21 {dimension_numbers = #tpu.dot_dimension_numbers<[1], [0], [0], [1], [0, 0, 1, 1], [], []>} : vector<32x32xbf16>, vector<32x32xbf16>, vector<32x32xf32> -> vector<32x32xf32>
    %32 = vector.broadcast %28 : vector<1x32xf32> to vector<32x32xf32>
    %33 = arith.addf %31, %32 : vector<32x32xf32>
    %cst_22 = arith.constant 0.000000e+00 : f32
    %34 = vector.broadcast %cst_22 : f32 to vector<32x32xf32>
    %35 = arith.cmpf oge, %33, %34 : vector<32x32xf32>
    %cst_23 = arith.constant 0.00999999977 : f32
    %36 = vector.broadcast %cst_23 : f32 to vector<32x32xf32>
    %37 = arith.mulf %36, %33 : vector<32x32xf32>
    %38 = arith.select %35, %33, %37 : vector<32x32xi1>, vector<32x32xf32>
    %c0_24 = arith.constant 0 : index
    %c0_25 = arith.constant 0 : index
    %39 = vector.load %arg8[%c0_24, %c0_25] : memref<32x32xf32, #tpu.memory_space<vmem>>, vector<32x32xf32>
    %c0_26 = arith.constant 0 : index
    %c0_27 = arith.constant 0 : index
    %40 = vector.load %arg9[%c0_26, %c0_27] : memref<1x32xf32, #tpu.memory_space<vmem>>, vector<1x32xf32>
    %41 = arith.truncf %38 : vector<32x32xf32> to vector<32x32xbf16>
    %42 = arith.truncf %39 : vector<32x32xf32> to vector<32x32xbf16>
    %cst_28 = arith.constant dense<0.000000e+00> : vector<32x32xf32>
    %43 = tpu.matmul %41, %42, %cst_28 {dimension_numbers = #tpu.dot_dimension_numbers<[1], [0], [0], [1], [0, 0, 1, 1], [], []>} : vector<32x32xbf16>, vector<32x32xbf16>, vector<32x32xf32> -> vector<32x32xf32>
    %44 = vector.broadcast %40 : vector<1x32xf32> to vector<32x32xf32>
    %45 = arith.addf %43, %44 : vector<32x32xf32>
    %cst_29 = arith.constant 0.000000e+00 : f32
    %46 = vector.broadcast %cst_29 : f32 to vector<32x32xf32>
    %47 = arith.cmpf oge, %45, %46 : vector<32x32xf32>
    %cst_30 = arith.constant 0.00999999977 : f32
    %48 = vector.broadcast %cst_30 : f32 to vector<32x32xf32>
    %49 = arith.mulf %48, %45 : vector<32x32xf32>
    %50 = arith.select %47, %45, %49 : vector<32x32xi1>, vector<32x32xf32>
    %c0_31 = arith.constant 0 : index
    %c0_32 = arith.constant 0 : index
    %51 = vector.load %arg10[%c0_31, %c0_32] : memref<32x128xf32, #tpu.memory_space<vmem>>, vector<32x128xf32>
    %c0_33 = arith.constant 0 : index
    %c0_34 = arith.constant 0 : index
    %52 = vector.load %arg11[%c0_33, %c0_34] : memref<1x128xf32, #tpu.memory_space<vmem>>, vector<1x128xf32>
    %c0_35 = arith.constant 0 : index
    %c0_36 = arith.constant 0 : index
    %53 = vector.load %arg12[%c0_35, %c0_36] : memref<32x128xf32, #tpu.memory_space<vmem>>, vector<32x128xf32>
    %c0_37 = arith.constant 0 : index
    %c0_38 = arith.constant 0 : index
    %54 = vector.load %arg13[%c0_37, %c0_38] : memref<1x128xf32, #tpu.memory_space<vmem>>, vector<1x128xf32>
    %c0_39 = arith.constant 0 : index
    %c0_40 = arith.constant 0 : index
    %55 = vector.load %arg14[%c0_39, %c0_40] : memref<64x128xf32, #tpu.memory_space<vmem>>, vector<64x128xf32>
    %c0_41 = arith.constant 0 : index
    %c0_42 = arith.constant 0 : index
    %56 = vector.load %arg15[%c0_41, %c0_42] : memref<1x128xf32, #tpu.memory_space<vmem>>, vector<1x128xf32>
    %57 = arith.truncf %24 : vector<8x32xf32> to vector<8x32xbf16>
    %58 = arith.truncf %51 : vector<32x128xf32> to vector<32x128xbf16>
    %cst_43 = arith.constant dense<0.000000e+00> : vector<8x128xf32>
    %59 = tpu.matmul %57, %58, %cst_43 {dimension_numbers = #tpu.dot_dimension_numbers<[1], [0], [0], [1], [0, 0, 1, 1], [], []>} : vector<8x32xbf16>, vector<32x128xbf16>, vector<8x128xf32> -> vector<8x128xf32>
    %60 = vector.broadcast %52 : vector<1x128xf32> to vector<8x128xf32>
    %61 = arith.addf %59, %60 : vector<8x128xf32>
    %c0_44 = arith.constant 0 : index
    %c0_45 = arith.constant 0 : index
    %62 = vector.load %arg16[%c0_44, %c0_45] : memref<8x128xf32, #tpu.memory_space<vmem>>, vector<8x128xf32>
    tpu.vector_store %arg16[%c0_44, %c0_45], %61 {strides = array<i32>} : memref<8x128xf32, #tpu.memory_space<vmem>>, vector<8x128xf32>,
    %63 = arith.truncf %50 : vector<32x32xf32> to vector<32x32xbf16>
    %64 = arith.truncf %53 : vector<32x128xf32> to vector<32x128xbf16>
    %cst_46 = arith.constant dense<0.000000e+00> : vector<32x128xf32>
    %65 = tpu.matmul %63, %64, %cst_46 {dimension_numbers = #tpu.dot_dimension_numbers<[1], [0], [0], [1], [0, 0, 1, 1], [], []>} : vector<32x32xbf16>, vector<32x128xbf16>, vector<32x128xf32> -> vector<32x128xf32>
    %66 = vector.broadcast %54 : vector<1x128xf32> to vector<32x128xf32>
    %67 = arith.addf %65, %66 : vector<32x128xf32>
    %68 = vector.shape_cast %67 : vector<32x128xf32> to vector<2x16x128xf32>
    %c0_47 = arith.constant 0 : index
    %c0_48 = arith.constant 0 : index
    %c0_49 = arith.constant 0 : index
    %69 = vector.load %arg17[%c0_47, %c0_48, %c0_49] : memref<2x16x128xf32, #tpu.memory_space<vmem>>, vector<2x16x128xf32>
    tpu.vector_store %arg17[%c0_47, %c0_48, %c0_49], %68 {strides = array<i32>} : memref<2x16x128xf32, #tpu.memory_space<vmem>>, vector<2x16x128xf32>,
    %70 = vector.shape_cast %50 : vector<32x32xf32> to vector<2x16x32xf32>
    %71 = vector.extract_strided_slice %70 {offsets = [0, 0, 0], sizes = [1, 16, 32], strides = [1, 1, 1]} : vector<2x16x32xf32> to vector<1x16x32xf32>
    %72 = vector.shape_cast %71 : vector<1x16x32xf32> to vector<16x32xf32>
    %73 = vector.extract_strided_slice %70 {offsets = [1, 0, 0], sizes = [1, 16, 32], strides = [1, 1, 1]} : vector<2x16x32xf32> to vector<1x16x32xf32>
    %74 = vector.shape_cast %73 : vector<1x16x32xf32> to vector<16x32xf32>
    %75 = tpu.concatenate %72, %74 in 1 : vector<16x32xf32>, vector<16x32xf32> -> vector<16x64xf32>
    %76 = arith.truncf %75 : vector<16x64xf32> to vector<16x64xbf16>
    %77 = arith.truncf %55 : vector<64x128xf32> to vector<64x128xbf16>
    %cst_50 = arith.constant dense<0.000000e+00> : vector<16x128xf32>
    %78 = tpu.matmul %76, %77, %cst_50 {dimension_numbers = #tpu.dot_dimension_numbers<[1], [0], [0], [1], [0, 0, 1, 1], [], []>} : vector<16x64xbf16>, vector<64x128xbf16>, vector<16x128xf32> -> vector<16x128xf32>
    %79 = vector.broadcast %56 : vector<1x128xf32> to vector<16x128xf32>
    %80 = arith.addf %78, %79 : vector<16x128xf32>
    %c0_51 = arith.constant 0 : index
    %c0_52 = arith.constant 0 : index
    %81 = vector.load %arg18[%c0_51, %c0_52] : memref<16x128xf32, #tpu.memory_space<vmem>>, vector<16x128xf32>
    tpu.vector_store %arg18[%c0_51, %c0_52], %80 {strides = array<i32>} : memref<16x128xf32, #tpu.memory_space<vmem>>, vector<16x128xf32>,
    return
  }
}

module attributes {stable_mosaic.version = 11 : i64} {
  func.func @_tf_stack_kernel(%arg0: memref<4x8x32xf32, #tpu.memory_space<vmem>>, %arg1: memref<2x1x32xf32, #tpu.memory_space<vmem>>, %arg2: memref<2x1x32xf32, #tpu.memory_space<vmem>>, %arg3: memref<2x32x96xf32, #tpu.memory_space<vmem>>, %arg4: memref<2x32x32xf32, #tpu.memory_space<vmem>>, %arg5: memref<2x1x32xf32, #tpu.memory_space<vmem>>, %arg6: memref<2x1x32xf32, #tpu.memory_space<vmem>>, %arg7: memref<2x1x32xf32, #tpu.memory_space<vmem>>, %arg8: memref<2x32x32xf32, #tpu.memory_space<vmem>>, %arg9: memref<2x1x32xf32, #tpu.memory_space<vmem>>, %arg10: memref<2x32x32xf32, #tpu.memory_space<vmem>>, %arg11: memref<2x1x32xf32, #tpu.memory_space<vmem>>, %arg12: memref<4x8x32xf32, #tpu.memory_space<vmem>>) attributes {dimension_semantics = [], scalar_prefetch = 0 : i64, scratch_operands = 0 : i64, tpu.core_type = #tpu.core_type<tc>} {
    %c0 = arith.constant 0 : index
    %c0_0 = arith.constant 0 : index
    %c0_1 = arith.constant 0 : index
    %0 = vector.load %arg0[%c0, %c0_0, %c0_1] : memref<4x8x32xf32, #tpu.memory_space<vmem>>, vector<4x8x32xf32>
    %1 = vector.shape_cast %0 : vector<4x8x32xf32> to vector<32x32xf32>
    %c0_2 = arith.constant 0 : index
    %c0_3 = arith.constant 0 : index
    %c0_4 = arith.constant 0 : index
    %2 = vector.load %arg1[%c0_2, %c0_3, %c0_4] : memref<2x1x32xf32, #tpu.memory_space<vmem>>, vector<1x1x32xf32>
    %3 = vector.shape_cast %2 : vector<1x1x32xf32> to vector<1x32xf32>
    %c0_5 = arith.constant 0 : index
    %c0_6 = arith.constant 0 : index
    %c0_7 = arith.constant 0 : index
    %4 = vector.load %arg2[%c0_5, %c0_6, %c0_7] : memref<2x1x32xf32, #tpu.memory_space<vmem>>, vector<1x1x32xf32>
    %5 = vector.shape_cast %4 : vector<1x1x32xf32> to vector<1x32xf32>
    %cst = arith.constant dense<0.000000e+00> : vector<32xf32>
    %6 = vector.multi_reduction <add>, %1, %cst [1] : vector<32x32xf32> to vector<32xf32>
    %7 = vector.shape_cast %6 : vector<32xf32> to vector<32x1xf32>
    %cst_8 = arith.constant 3.200000e+01 : f32
    %8 = vector.broadcast %cst_8 : f32 to vector<32x1xf32>
    %9 = arith.divf %7, %8 : vector<32x1xf32>
    %10 = vector.broadcast %9 : vector<32x1xf32> to vector<32x32xf32>
    %11 = arith.subf %1, %10 : vector<32x32xf32>
    %12 = arith.mulf %11, %11 : vector<32x32xf32>
    %cst_9 = arith.constant dense<0.000000e+00> : vector<32xf32>
    %13 = vector.multi_reduction <add>, %12, %cst_9 [1] : vector<32x32xf32> to vector<32xf32>
    %14 = vector.shape_cast %13 : vector<32xf32> to vector<32x1xf32>
    %cst_10 = arith.constant 3.200000e+01 : f32
    %15 = vector.broadcast %cst_10 : f32 to vector<32x1xf32>
    %16 = arith.divf %14, %15 : vector<32x1xf32>
    %17 = vector.broadcast %9 : vector<32x1xf32> to vector<32x32xf32>
    %18 = arith.subf %1, %17 : vector<32x32xf32>
    %cst_11 = arith.constant 9.99999974E-6 : f32
    %19 = vector.broadcast %cst_11 : f32 to vector<32x1xf32>
    %20 = arith.addf %16, %19 : vector<32x1xf32>
    %21 = math.rsqrt %20 : vector<32x1xf32>
    %22 = vector.broadcast %21 : vector<32x1xf32> to vector<32x32xf32>
    %23 = arith.mulf %18, %22 : vector<32x32xf32>
    %24 = vector.broadcast %3 : vector<1x32xf32> to vector<32x32xf32>
    %25 = arith.mulf %23, %24 : vector<32x32xf32>
    %26 = vector.broadcast %5 : vector<1x32xf32> to vector<32x32xf32>
    %27 = arith.addf %25, %26 : vector<32x32xf32>
    %c0_12 = arith.constant 0 : index
    %c0_13 = arith.constant 0 : index
    %c0_14 = arith.constant 0 : index
    %28 = vector.load %arg3[%c0_12, %c0_13, %c0_14] : memref<2x32x96xf32, #tpu.memory_space<vmem>>, vector<1x32x96xf32>
    %29 = vector.shape_cast %28 : vector<1x32x96xf32> to vector<32x96xf32>
    %30 = arith.truncf %27 : vector<32x32xf32> to vector<32x32xbf16>
    %31 = arith.truncf %29 : vector<32x96xf32> to vector<32x96xbf16>
    %cst_15 = arith.constant dense<0.000000e+00> : vector<32x96xf32>
    %32 = tpu.matmul %30, %31, %cst_15 {dimension_numbers = #tpu.dot_dimension_numbers<[1], [0], [0], [1], [0, 0, 1, 1], [], []>} : vector<32x32xbf16>, vector<32x96xbf16>, vector<32x96xf32> -> vector<32x96xf32>
    %33 = vector.shape_cast %32 : vector<32x96xf32> to vector<4x8x96xf32>
    %34 = vector.extract_strided_slice %33 {offsets = [0, 0, 0], sizes = [4, 8, 8], strides = [1, 1, 1]} : vector<4x8x96xf32> to vector<4x8x8xf32>
    %35 = vector.extract_strided_slice %33 {offsets = [0, 0, 32], sizes = [4, 8, 8], strides = [1, 1, 1]} : vector<4x8x96xf32> to vector<4x8x8xf32>
    %36 = vector.extract_strided_slice %33 {offsets = [0, 0, 64], sizes = [4, 8, 8], strides = [1, 1, 1]} : vector<4x8x96xf32> to vector<4x8x8xf32>
    %37 = arith.truncf %34 : vector<4x8x8xf32> to vector<4x8x8xbf16>
    %38 = arith.truncf %35 : vector<4x8x8xf32> to vector<4x8x8xbf16>
    "tpu.trace_start"() <{level = 10 : i32, message = "bqd,bkd->bqk"}> : () -> ()
    %cst_16 = arith.constant dense<0.000000e+00> : vector<4x8x8xf32>
    %39 = tpu.matmul %37, %38, %cst_16 {dimension_numbers = #tpu.dot_dimension_numbers<[2], [2], [1], [1], [0, 0, 0, 1, 1, 1], [0], [0]>} : vector<4x8x8xbf16>, vector<4x8x8xbf16>, vector<4x8x8xf32> -> vector<4x8x8xf32>
    "tpu.trace_stop"() : () -> ()
    %cst_17 = arith.constant 0.353553385 : f32
    %40 = vector.broadcast %cst_17 : f32 to vector<4x8x8xf32>
    %41 = arith.mulf %39, %40 : vector<4x8x8xf32>
    %cst_18 = arith.constant dense<0xFF800000> : vector<4x8xf32>
    %42 = vector.multi_reduction <maximumf>, %41, %cst_18 [2] : vector<4x8x8xf32> to vector<4x8xf32>
    %43 = vector.shape_cast %42 : vector<4x8xf32> to vector<4x8x1xf32>
    %44 = vector.broadcast %43 : vector<4x8x1xf32> to vector<4x8x8xf32>
    %45 = arith.subf %41, %44 : vector<4x8x8xf32>
    %46 = math.exp %45 : vector<4x8x8xf32>
    %cst_19 = arith.constant dense<0.000000e+00> : vector<4x8xf32>
    %47 = vector.multi_reduction <add>, %46, %cst_19 [2] : vector<4x8x8xf32> to vector<4x8xf32>
    %48 = vector.shape_cast %47 : vector<4x8xf32> to vector<4x8x1xf32>
    %49 = tpu.reciprocal %48 {approx = true} : vector<4x8x1xf32> -> vector<4x8x1xf32>
    %50 = vector.broadcast %49 : vector<4x8x1xf32> to vector<4x8x8xf32>
    %51 = arith.mulf %46, %50 : vector<4x8x8xf32>
    %52 = arith.truncf %51 : vector<4x8x8xf32> to vector<4x8x8xbf16>
    %53 = arith.truncf %36 : vector<4x8x8xf32> to vector<4x8x8xbf16>
    "tpu.trace_start"() <{level = 10 : i32, message = "bqk,bkd->bqd"}> : () -> ()
    %cst_20 = arith.constant dense<0.000000e+00> : vector<4x8x8xf32>
    %54 = tpu.matmul %52, %53, %cst_20 {dimension_numbers = #tpu.dot_dimension_numbers<[2], [1], [1], [2], [0, 0, 0, 1, 1, 2], [0], [0]>} : vector<4x8x8xbf16>, vector<4x8x8xbf16>, vector<4x8x8xf32> -> vector<4x8x8xf32>
    "tpu.trace_stop"() : () -> ()
    %55 = vector.extract_strided_slice %33 {offsets = [0, 0, 8], sizes = [4, 8, 8], strides = [1, 1, 1]} : vector<4x8x96xf32> to vector<4x8x8xf32>
    %56 = vector.extract_strided_slice %33 {offsets = [0, 0, 40], sizes = [4, 8, 8], strides = [1, 1, 1]} : vector<4x8x96xf32> to vector<4x8x8xf32>
    %57 = vector.extract_strided_slice %33 {offsets = [0, 0, 72], sizes = [4, 8, 8], strides = [1, 1, 1]} : vector<4x8x96xf32> to vector<4x8x8xf32>
    %58 = arith.truncf %55 : vector<4x8x8xf32> to vector<4x8x8xbf16>
    %59 = arith.truncf %56 : vector<4x8x8xf32> to vector<4x8x8xbf16>
    "tpu.trace_start"() <{level = 10 : i32, message = "bqd,bkd->bqk"}> : () -> ()
    %cst_21 = arith.constant dense<0.000000e+00> : vector<4x8x8xf32>
    %60 = tpu.matmul %58, %59, %cst_21 {dimension_numbers = #tpu.dot_dimension_numbers<[2], [2], [1], [1], [0, 0, 0, 1, 1, 1], [0], [0]>} : vector<4x8x8xbf16>, vector<4x8x8xbf16>, vector<4x8x8xf32> -> vector<4x8x8xf32>
    "tpu.trace_stop"() : () -> ()
    %cst_22 = arith.constant 0.353553385 : f32
    %61 = vector.broadcast %cst_22 : f32 to vector<4x8x8xf32>
    %62 = arith.mulf %60, %61 : vector<4x8x8xf32>
    %cst_23 = arith.constant dense<0xFF800000> : vector<4x8xf32>
    %63 = vector.multi_reduction <maximumf>, %62, %cst_23 [2] : vector<4x8x8xf32> to vector<4x8xf32>
    %64 = vector.shape_cast %63 : vector<4x8xf32> to vector<4x8x1xf32>
    %65 = vector.broadcast %64 : vector<4x8x1xf32> to vector<4x8x8xf32>
    %66 = arith.subf %62, %65 : vector<4x8x8xf32>
    %67 = math.exp %66 : vector<4x8x8xf32>
    %cst_24 = arith.constant dense<0.000000e+00> : vector<4x8xf32>
    %68 = vector.multi_reduction <add>, %67, %cst_24 [2] : vector<4x8x8xf32> to vector<4x8xf32>
    %69 = vector.shape_cast %68 : vector<4x8xf32> to vector<4x8x1xf32>
    %70 = tpu.reciprocal %69 {approx = true} : vector<4x8x1xf32> -> vector<4x8x1xf32>
    %71 = vector.broadcast %70 : vector<4x8x1xf32> to vector<4x8x8xf32>
    %72 = arith.mulf %67, %71 : vector<4x8x8xf32>
    %73 = arith.truncf %72 : vector<4x8x8xf32> to vector<4x8x8xbf16>
    %74 = arith.truncf %57 : vector<4x8x8xf32> to vector<4x8x8xbf16>
    "tpu.trace_start"() <{level = 10 : i32, message = "bqk,bkd->bqd"}> : () -> ()
    %cst_25 = arith.constant dense<0.000000e+00> : vector<4x8x8xf32>
    %75 = tpu.matmul %73, %74, %cst_25 {dimension_numbers = #tpu.dot_dimension_numbers<[2], [1], [1], [2], [0, 0, 0, 1, 1, 2], [0], [0]>} : vector<4x8x8xbf16>, vector<4x8x8xbf16>, vector<4x8x8xf32> -> vector<4x8x8xf32>
    "tpu.trace_stop"() : () -> ()
    %76 = vector.extract_strided_slice %33 {offsets = [0, 0, 16], sizes = [4, 8, 8], strides = [1, 1, 1]} : vector<4x8x96xf32> to vector<4x8x8xf32>
    %77 = vector.extract_strided_slice %33 {offsets = [0, 0, 48], sizes = [4, 8, 8], strides = [1, 1, 1]} : vector<4x8x96xf32> to vector<4x8x8xf32>
    %78 = vector.extract_strided_slice %33 {offsets = [0, 0, 80], sizes = [4, 8, 8], strides = [1, 1, 1]} : vector<4x8x96xf32> to vector<4x8x8xf32>
    %79 = arith.truncf %76 : vector<4x8x8xf32> to vector<4x8x8xbf16>
    %80 = arith.truncf %77 : vector<4x8x8xf32> to vector<4x8x8xbf16>
    "tpu.trace_start"() <{level = 10 : i32, message = "bqd,bkd->bqk"}> : () -> ()
    %cst_26 = arith.constant dense<0.000000e+00> : vector<4x8x8xf32>
    %81 = tpu.matmul %79, %80, %cst_26 {dimension_numbers = #tpu.dot_dimension_numbers<[2], [2], [1], [1], [0, 0, 0, 1, 1, 1], [0], [0]>} : vector<4x8x8xbf16>, vector<4x8x8xbf16>, vector<4x8x8xf32> -> vector<4x8x8xf32>
    "tpu.trace_stop"() : () -> ()
    %cst_27 = arith.constant 0.353553385 : f32
    %82 = vector.broadcast %cst_27 : f32 to vector<4x8x8xf32>
    %83 = arith.mulf %81, %82 : vector<4x8x8xf32>
    %cst_28 = arith.constant dense<0xFF800000> : vector<4x8xf32>
    %84 = vector.multi_reduction <maximumf>, %83, %cst_28 [2] : vector<4x8x8xf32> to vector<4x8xf32>
    %85 = vector.shape_cast %84 : vector<4x8xf32> to vector<4x8x1xf32>
    %86 = vector.broadcast %85 : vector<4x8x1xf32> to vector<4x8x8xf32>
    %87 = arith.subf %83, %86 : vector<4x8x8xf32>
    %88 = math.exp %87 : vector<4x8x8xf32>
    %cst_29 = arith.constant dense<0.000000e+00> : vector<4x8xf32>
    %89 = vector.multi_reduction <add>, %88, %cst_29 [2] : vector<4x8x8xf32> to vector<4x8xf32>
    %90 = vector.shape_cast %89 : vector<4x8xf32> to vector<4x8x1xf32>
    %91 = tpu.reciprocal %90 {approx = true} : vector<4x8x1xf32> -> vector<4x8x1xf32>
    %92 = vector.broadcast %91 : vector<4x8x1xf32> to vector<4x8x8xf32>
    %93 = arith.mulf %88, %92 : vector<4x8x8xf32>
    %94 = arith.truncf %93 : vector<4x8x8xf32> to vector<4x8x8xbf16>
    %95 = arith.truncf %78 : vector<4x8x8xf32> to vector<4x8x8xbf16>
    "tpu.trace_start"() <{level = 10 : i32, message = "bqk,bkd->bqd"}> : () -> ()
    %cst_30 = arith.constant dense<0.000000e+00> : vector<4x8x8xf32>
    %96 = tpu.matmul %94, %95, %cst_30 {dimension_numbers = #tpu.dot_dimension_numbers<[2], [1], [1], [2], [0, 0, 0, 1, 1, 2], [0], [0]>} : vector<4x8x8xbf16>, vector<4x8x8xbf16>, vector<4x8x8xf32> -> vector<4x8x8xf32>
    "tpu.trace_stop"() : () -> ()
    %97 = vector.extract_strided_slice %33 {offsets = [0, 0, 24], sizes = [4, 8, 8], strides = [1, 1, 1]} : vector<4x8x96xf32> to vector<4x8x8xf32>
    %98 = vector.extract_strided_slice %33 {offsets = [0, 0, 56], sizes = [4, 8, 8], strides = [1, 1, 1]} : vector<4x8x96xf32> to vector<4x8x8xf32>
    %99 = vector.extract_strided_slice %33 {offsets = [0, 0, 88], sizes = [4, 8, 8], strides = [1, 1, 1]} : vector<4x8x96xf32> to vector<4x8x8xf32>
    %100 = arith.truncf %97 : vector<4x8x8xf32> to vector<4x8x8xbf16>
    %101 = arith.truncf %98 : vector<4x8x8xf32> to vector<4x8x8xbf16>
    "tpu.trace_start"() <{level = 10 : i32, message = "bqd,bkd->bqk"}> : () -> ()
    %cst_31 = arith.constant dense<0.000000e+00> : vector<4x8x8xf32>
    %102 = tpu.matmul %100, %101, %cst_31 {dimension_numbers = #tpu.dot_dimension_numbers<[2], [2], [1], [1], [0, 0, 0, 1, 1, 1], [0], [0]>} : vector<4x8x8xbf16>, vector<4x8x8xbf16>, vector<4x8x8xf32> -> vector<4x8x8xf32>
    "tpu.trace_stop"() : () -> ()
    %cst_32 = arith.constant 0.353553385 : f32
    %103 = vector.broadcast %cst_32 : f32 to vector<4x8x8xf32>
    %104 = arith.mulf %102, %103 : vector<4x8x8xf32>
    %cst_33 = arith.constant dense<0xFF800000> : vector<4x8xf32>
    %105 = vector.multi_reduction <maximumf>, %104, %cst_33 [2] : vector<4x8x8xf32> to vector<4x8xf32>
    %106 = vector.shape_cast %105 : vector<4x8xf32> to vector<4x8x1xf32>
    %107 = vector.broadcast %106 : vector<4x8x1xf32> to vector<4x8x8xf32>
    %108 = arith.subf %104, %107 : vector<4x8x8xf32>
    %109 = math.exp %108 : vector<4x8x8xf32>
    %cst_34 = arith.constant dense<0.000000e+00> : vector<4x8xf32>
    %110 = vector.multi_reduction <add>, %109, %cst_34 [2] : vector<4x8x8xf32> to vector<4x8xf32>
    %111 = vector.shape_cast %110 : vector<4x8xf32> to vector<4x8x1xf32>
    %112 = tpu.reciprocal %111 {approx = true} : vector<4x8x1xf32> -> vector<4x8x1xf32>
    %113 = vector.broadcast %112 : vector<4x8x1xf32> to vector<4x8x8xf32>
    %114 = arith.mulf %109, %113 : vector<4x8x8xf32>
    %115 = arith.truncf %114 : vector<4x8x8xf32> to vector<4x8x8xbf16>
    %116 = arith.truncf %99 : vector<4x8x8xf32> to vector<4x8x8xbf16>
    "tpu.trace_start"() <{level = 10 : i32, message = "bqk,bkd->bqd"}> : () -> ()
    %cst_35 = arith.constant dense<0.000000e+00> : vector<4x8x8xf32>
    %117 = tpu.matmul %115, %116, %cst_35 {dimension_numbers = #tpu.dot_dimension_numbers<[2], [1], [1], [2], [0, 0, 0, 1, 1, 2], [0], [0]>} : vector<4x8x8xbf16>, vector<4x8x8xbf16>, vector<4x8x8xf32> -> vector<4x8x8xf32>
    "tpu.trace_stop"() : () -> ()
    %118 = tpu.concatenate %54, %75, %96, %117 in 2 : vector<4x8x8xf32>, vector<4x8x8xf32>, vector<4x8x8xf32>, vector<4x8x8xf32> -> vector<4x8x32xf32>
    %119 = vector.shape_cast %118 : vector<4x8x32xf32> to vector<32x32xf32>
    %c0_36 = arith.constant 0 : index
    %c0_37 = arith.constant 0 : index
    %c0_38 = arith.constant 0 : index
    %120 = vector.load %arg4[%c0_36, %c0_37, %c0_38] : memref<2x32x32xf32, #tpu.memory_space<vmem>>, vector<1x32x32xf32>
    %121 = vector.shape_cast %120 : vector<1x32x32xf32> to vector<32x32xf32>
    %122 = arith.truncf %119 : vector<32x32xf32> to vector<32x32xbf16>
    %123 = arith.truncf %121 : vector<32x32xf32> to vector<32x32xbf16>
    %cst_39 = arith.constant dense<0.000000e+00> : vector<32x32xf32>
    %124 = tpu.matmul %122, %123, %cst_39 {dimension_numbers = #tpu.dot_dimension_numbers<[1], [0], [0], [1], [0, 0, 1, 1], [], []>} : vector<32x32xbf16>, vector<32x32xbf16>, vector<32x32xf32> -> vector<32x32xf32>
    %125 = arith.addf %1, %124 : vector<32x32xf32>
    %c0_40 = arith.constant 0 : index
    %c0_41 = arith.constant 0 : index
    %c0_42 = arith.constant 0 : index
    %126 = vector.load %arg5[%c0_40, %c0_41, %c0_42] : memref<2x1x32xf32, #tpu.memory_space<vmem>>, vector<1x1x32xf32>
    %127 = vector.shape_cast %126 : vector<1x1x32xf32> to vector<1x32xf32>
    %128 = vector.broadcast %127 : vector<1x32xf32> to vector<32x32xf32>
    %129 = arith.addf %125, %128 : vector<32x32xf32>
    %c0_43 = arith.constant 0 : index
    %c0_44 = arith.constant 0 : index
    %c0_45 = arith.constant 0 : index
    %130 = vector.load %arg6[%c0_43, %c0_44, %c0_45] : memref<2x1x32xf32, #tpu.memory_space<vmem>>, vector<1x1x32xf32>
    %131 = vector.shape_cast %130 : vector<1x1x32xf32> to vector<1x32xf32>
    %c0_46 = arith.constant 0 : index
    %c0_47 = arith.constant 0 : index
    %c0_48 = arith.constant 0 : index
    %132 = vector.load %arg7[%c0_46, %c0_47, %c0_48] : memref<2x1x32xf32, #tpu.memory_space<vmem>>, vector<1x1x32xf32>
    %133 = vector.shape_cast %132 : vector<1x1x32xf32> to vector<1x32xf32>
    %cst_49 = arith.constant dense<0.000000e+00> : vector<32xf32>
    %134 = vector.multi_reduction <add>, %129, %cst_49 [1] : vector<32x32xf32> to vector<32xf32>
    %135 = vector.shape_cast %134 : vector<32xf32> to vector<32x1xf32>
    %cst_50 = arith.constant 3.200000e+01 : f32
    %136 = vector.broadcast %cst_50 : f32 to vector<32x1xf32>
    %137 = arith.divf %135, %136 : vector<32x1xf32>
    %138 = vector.broadcast %137 : vector<32x1xf32> to vector<32x32xf32>
    %139 = arith.subf %129, %138 : vector<32x32xf32>
    %140 = arith.mulf %139, %139 : vector<32x32xf32>
    %cst_51 = arith.constant dense<0.000000e+00> : vector<32xf32>
    %141 = vector.multi_reduction <add>, %140, %cst_51 [1] : vector<32x32xf32> to vector<32xf32>
    %142 = vector.shape_cast %141 : vector<32xf32> to vector<32x1xf32>
    %cst_52 = arith.constant 3.200000e+01 : f32
    %143 = vector.broadcast %cst_52 : f32 to vector<32x1xf32>
    %144 = arith.divf %142, %143 : vector<32x1xf32>
    %145 = vector.broadcast %137 : vector<32x1xf32> to vector<32x32xf32>
    %146 = arith.subf %129, %145 : vector<32x32xf32>
    %cst_53 = arith.constant 9.99999974E-6 : f32
    %147 = vector.broadcast %cst_53 : f32 to vector<32x1xf32>
    %148 = arith.addf %144, %147 : vector<32x1xf32>
    %149 = math.rsqrt %148 : vector<32x1xf32>
    %150 = vector.broadcast %149 : vector<32x1xf32> to vector<32x32xf32>
    %151 = arith.mulf %146, %150 : vector<32x32xf32>
    %152 = vector.broadcast %131 : vector<1x32xf32> to vector<32x32xf32>
    %153 = arith.mulf %151, %152 : vector<32x32xf32>
    %154 = vector.broadcast %133 : vector<1x32xf32> to vector<32x32xf32>
    %155 = arith.addf %153, %154 : vector<32x32xf32>
    %c0_54 = arith.constant 0 : index
    %c0_55 = arith.constant 0 : index
    %c0_56 = arith.constant 0 : index
    %156 = vector.load %arg8[%c0_54, %c0_55, %c0_56] : memref<2x32x32xf32, #tpu.memory_space<vmem>>, vector<1x32x32xf32>
    %157 = vector.shape_cast %156 : vector<1x32x32xf32> to vector<32x32xf32>
    %158 = arith.truncf %155 : vector<32x32xf32> to vector<32x32xbf16>
    %159 = arith.truncf %157 : vector<32x32xf32> to vector<32x32xbf16>
    %cst_57 = arith.constant dense<0.000000e+00> : vector<32x32xf32>
    %160 = tpu.matmul %158, %159, %cst_57 {dimension_numbers = #tpu.dot_dimension_numbers<[1], [0], [0], [1], [0, 0, 1, 1], [], []>} : vector<32x32xbf16>, vector<32x32xbf16>, vector<32x32xf32> -> vector<32x32xf32>
    %c0_58 = arith.constant 0 : index
    %c0_59 = arith.constant 0 : index
    %c0_60 = arith.constant 0 : index
    %161 = vector.load %arg9[%c0_58, %c0_59, %c0_60] : memref<2x1x32xf32, #tpu.memory_space<vmem>>, vector<1x1x32xf32>
    %162 = vector.shape_cast %161 : vector<1x1x32xf32> to vector<1x32xf32>
    %163 = vector.broadcast %162 : vector<1x32xf32> to vector<32x32xf32>
    %164 = arith.addf %160, %163 : vector<32x32xf32>
    %cst_61 = arith.constant 5.000000e-01 : f32
    %165 = vector.broadcast %cst_61 : f32 to vector<32x32xf32>
    %166 = arith.mulf %165, %164 : vector<32x32xf32>
    %cst_62 = arith.constant 0.707106769 : f32
    %167 = vector.broadcast %cst_62 : f32 to vector<32x32xf32>
    %168 = arith.mulf %164, %167 : vector<32x32xf32>
    %169 = math.absf %168 : vector<32x32xf32>
    %cst_63 = arith.constant 0.327591091 : f32
    %170 = vector.broadcast %cst_63 : f32 to vector<32x32xf32>
    %171 = arith.mulf %170, %169 : vector<32x32xf32>
    %cst_64 = arith.constant 1.000000e+00 : f32
    %172 = vector.broadcast %cst_64 : f32 to vector<32x32xf32>
    %173 = arith.addf %172, %171 : vector<32x32xf32>
    %cst_65 = arith.constant 1.000000e+00 : f32
    %174 = vector.broadcast %cst_65 : f32 to vector<32x32xf32>
    %175 = arith.divf %174, %173 : vector<32x32xf32>
    %cst_66 = arith.constant 1.06140542 : f32
    %176 = vector.broadcast %cst_66 : f32 to vector<32x32xf32>
    %177 = arith.mulf %176, %175 : vector<32x32xf32>
    %cst_67 = arith.constant -1.45315206 : f32
    %178 = vector.broadcast %cst_67 : f32 to vector<32x32xf32>
    %179 = arith.addf %177, %178 : vector<32x32xf32>
    %180 = arith.mulf %179, %175 : vector<32x32xf32>
    %cst_68 = arith.constant 1.42141378 : f32
    %181 = vector.broadcast %cst_68 : f32 to vector<32x32xf32>
    %182 = arith.addf %180, %181 : vector<32x32xf32>
    %183 = arith.mulf %182, %175 : vector<32x32xf32>
    %cst_69 = arith.constant -0.284496725 : f32
    %184 = vector.broadcast %cst_69 : f32 to vector<32x32xf32>
    %185 = arith.addf %183, %184 : vector<32x32xf32>
    %186 = arith.mulf %185, %175 : vector<32x32xf32>
    %cst_70 = arith.constant 0.254829586 : f32
    %187 = vector.broadcast %cst_70 : f32 to vector<32x32xf32>
    %188 = arith.addf %186, %187 : vector<32x32xf32>
    %189 = arith.mulf %188, %175 : vector<32x32xf32>
    %cst_71 = arith.constant 0.000000e+00 : f32
    %190 = vector.broadcast %cst_71 : f32 to vector<32x32xf32>
    %191 = arith.subf %190, %169 : vector<32x32xf32>
    %192 = arith.mulf %191, %169 : vector<32x32xf32>
    %193 = math.exp %192 : vector<32x32xf32>
    %194 = arith.mulf %189, %193 : vector<32x32xf32>
    %cst_72 = arith.constant 1.000000e+00 : f32
    %195 = vector.broadcast %cst_72 : f32 to vector<32x32xf32>
    %196 = arith.subf %195, %194 : vector<32x32xf32>
    %cst_73 = arith.constant 0.000000e+00 : f32
    %197 = vector.broadcast %cst_73 : f32 to vector<32x32xf32>
    %198 = arith.cmpf olt, %168, %197 : vector<32x32xf32>
    %cst_74 = arith.constant 0.000000e+00 : f32
    %199 = vector.broadcast %cst_74 : f32 to vector<32x32xf32>
    %200 = arith.subf %199, %196 : vector<32x32xf32>
    %201 = arith.select %198, %200, %196 : vector<32x32xi1>, vector<32x32xf32>
    %cst_75 = arith.constant 1.000000e+00 : f32
    %202 = vector.broadcast %cst_75 : f32 to vector<32x32xf32>
    %203 = arith.addf %202, %201 : vector<32x32xf32>
    %204 = arith.mulf %166, %203 : vector<32x32xf32>
    %c0_76 = arith.constant 0 : index
    %c0_77 = arith.constant 0 : index
    %c0_78 = arith.constant 0 : index
    %205 = vector.load %arg10[%c0_76, %c0_77, %c0_78] : memref<2x32x32xf32, #tpu.memory_space<vmem>>, vector<1x32x32xf32>
    %206 = vector.shape_cast %205 : vector<1x32x32xf32> to vector<32x32xf32>
    %207 = arith.truncf %204 : vector<32x32xf32> to vector<32x32xbf16>
    %208 = arith.truncf %206 : vector<32x32xf32> to vector<32x32xbf16>
    %cst_79 = arith.constant dense<0.000000e+00> : vector<32x32xf32>
    %209 = tpu.matmul %207, %208, %cst_79 {dimension_numbers = #tpu.dot_dimension_numbers<[1], [0], [0], [1], [0, 0, 1, 1], [], []>} : vector<32x32xbf16>, vector<32x32xbf16>, vector<32x32xf32> -> vector<32x32xf32>
    %210 = arith.addf %129, %209 : vector<32x32xf32>
    %c0_80 = arith.constant 0 : index
    %c0_81 = arith.constant 0 : index
    %c0_82 = arith.constant 0 : index
    %211 = vector.load %arg11[%c0_80, %c0_81, %c0_82] : memref<2x1x32xf32, #tpu.memory_space<vmem>>, vector<1x1x32xf32>
    %212 = vector.shape_cast %211 : vector<1x1x32xf32> to vector<1x32xf32>
    %213 = vector.broadcast %212 : vector<1x32xf32> to vector<32x32xf32>
    %214 = arith.addf %210, %213 : vector<32x32xf32>
    %c1 = arith.constant 1 : index
    %c0_83 = arith.constant 0 : index
    %c0_84 = arith.constant 0 : index
    %215 = vector.load %arg1[%c1, %c0_83, %c0_84] : memref<2x1x32xf32, #tpu.memory_space<vmem>>, vector<1x1x32xf32>
    %216 = vector.shape_cast %215 : vector<1x1x32xf32> to vector<1x32xf32>
    %c1_85 = arith.constant 1 : index
    %c0_86 = arith.constant 0 : index
    %c0_87 = arith.constant 0 : index
    %217 = vector.load %arg2[%c1_85, %c0_86, %c0_87] : memref<2x1x32xf32, #tpu.memory_space<vmem>>, vector<1x1x32xf32>
    %218 = vector.shape_cast %217 : vector<1x1x32xf32> to vector<1x32xf32>
    %cst_88 = arith.constant dense<0.000000e+00> : vector<32xf32>
    %219 = vector.multi_reduction <add>, %214, %cst_88 [1] : vector<32x32xf32> to vector<32xf32>
    %220 = vector.shape_cast %219 : vector<32xf32> to vector<32x1xf32>
    %cst_89 = arith.constant 3.200000e+01 : f32
    %221 = vector.broadcast %cst_89 : f32 to vector<32x1xf32>
    %222 = arith.divf %220, %221 : vector<32x1xf32>
    %223 = vector.broadcast %222 : vector<32x1xf32> to vector<32x32xf32>
    %224 = arith.subf %214, %223 : vector<32x32xf32>
    %225 = arith.mulf %224, %224 : vector<32x32xf32>
    %cst_90 = arith.constant dense<0.000000e+00> : vector<32xf32>
    %226 = vector.multi_reduction <add>, %225, %cst_90 [1] : vector<32x32xf32> to vector<32xf32>
    %227 = vector.shape_cast %226 : vector<32xf32> to vector<32x1xf32>
    %cst_91 = arith.constant 3.200000e+01 : f32
    %228 = vector.broadcast %cst_91 : f32 to vector<32x1xf32>
    %229 = arith.divf %227, %228 : vector<32x1xf32>
    %230 = vector.broadcast %222 : vector<32x1xf32> to vector<32x32xf32>
    %231 = arith.subf %214, %230 : vector<32x32xf32>
    %cst_92 = arith.constant 9.99999974E-6 : f32
    %232 = vector.broadcast %cst_92 : f32 to vector<32x1xf32>
    %233 = arith.addf %229, %232 : vector<32x1xf32>
    %234 = math.rsqrt %233 : vector<32x1xf32>
    %235 = vector.broadcast %234 : vector<32x1xf32> to vector<32x32xf32>
    %236 = arith.mulf %231, %235 : vector<32x32xf32>
    %237 = vector.broadcast %216 : vector<1x32xf32> to vector<32x32xf32>
    %238 = arith.mulf %236, %237 : vector<32x32xf32>
    %239 = vector.broadcast %218 : vector<1x32xf32> to vector<32x32xf32>
    %240 = arith.addf %238, %239 : vector<32x32xf32>
    %c1_93 = arith.constant 1 : index
    %c0_94 = arith.constant 0 : index
    %c0_95 = arith.constant 0 : index
    %241 = vector.load %arg3[%c1_93, %c0_94, %c0_95] : memref<2x32x96xf32, #tpu.memory_space<vmem>>, vector<1x32x96xf32>
    %242 = vector.shape_cast %241 : vector<1x32x96xf32> to vector<32x96xf32>
    %243 = arith.truncf %240 : vector<32x32xf32> to vector<32x32xbf16>
    %244 = arith.truncf %242 : vector<32x96xf32> to vector<32x96xbf16>
    %cst_96 = arith.constant dense<0.000000e+00> : vector<32x96xf32>
    %245 = tpu.matmul %243, %244, %cst_96 {dimension_numbers = #tpu.dot_dimension_numbers<[1], [0], [0], [1], [0, 0, 1, 1], [], []>} : vector<32x32xbf16>, vector<32x96xbf16>, vector<32x96xf32> -> vector<32x96xf32>
    %246 = vector.shape_cast %245 : vector<32x96xf32> to vector<4x8x96xf32>
    %247 = vector.extract_strided_slice %246 {offsets = [0, 0, 0], sizes = [4, 8, 8], strides = [1, 1, 1]} : vector<4x8x96xf32> to vector<4x8x8xf32>
    %248 = vector.extract_strided_slice %246 {offsets = [0, 0, 32], sizes = [4, 8, 8], strides = [1, 1, 1]} : vector<4x8x96xf32> to vector<4x8x8xf32>
    %249 = vector.extract_strided_slice %246 {offsets = [0, 0, 64], sizes = [4, 8, 8], strides = [1, 1, 1]} : vector<4x8x96xf32> to vector<4x8x8xf32>
    %250 = arith.truncf %247 : vector<4x8x8xf32> to vector<4x8x8xbf16>
    %251 = arith.truncf %248 : vector<4x8x8xf32> to vector<4x8x8xbf16>
    "tpu.trace_start"() <{level = 10 : i32, message = "bqd,bkd->bqk"}> : () -> ()
    %cst_97 = arith.constant dense<0.000000e+00> : vector<4x8x8xf32>
    %252 = tpu.matmul %250, %251, %cst_97 {dimension_numbers = #tpu.dot_dimension_numbers<[2], [2], [1], [1], [0, 0, 0, 1, 1, 1], [0], [0]>} : vector<4x8x8xbf16>, vector<4x8x8xbf16>, vector<4x8x8xf32> -> vector<4x8x8xf32>
    "tpu.trace_stop"() : () -> ()
    %cst_98 = arith.constant 0.353553385 : f32
    %253 = vector.broadcast %cst_98 : f32 to vector<4x8x8xf32>
    %254 = arith.mulf %252, %253 : vector<4x8x8xf32>
    %cst_99 = arith.constant dense<0xFF800000> : vector<4x8xf32>
    %255 = vector.multi_reduction <maximumf>, %254, %cst_99 [2] : vector<4x8x8xf32> to vector<4x8xf32>
    %256 = vector.shape_cast %255 : vector<4x8xf32> to vector<4x8x1xf32>
    %257 = vector.broadcast %256 : vector<4x8x1xf32> to vector<4x8x8xf32>
    %258 = arith.subf %254, %257 : vector<4x8x8xf32>
    %259 = math.exp %258 : vector<4x8x8xf32>
    %cst_100 = arith.constant dense<0.000000e+00> : vector<4x8xf32>
    %260 = vector.multi_reduction <add>, %259, %cst_100 [2] : vector<4x8x8xf32> to vector<4x8xf32>
    %261 = vector.shape_cast %260 : vector<4x8xf32> to vector<4x8x1xf32>
    %262 = tpu.reciprocal %261 {approx = true} : vector<4x8x1xf32> -> vector<4x8x1xf32>
    %263 = vector.broadcast %262 : vector<4x8x1xf32> to vector<4x8x8xf32>
    %264 = arith.mulf %259, %263 : vector<4x8x8xf32>
    %265 = arith.truncf %264 : vector<4x8x8xf32> to vector<4x8x8xbf16>
    %266 = arith.truncf %249 : vector<4x8x8xf32> to vector<4x8x8xbf16>
    "tpu.trace_start"() <{level = 10 : i32, message = "bqk,bkd->bqd"}> : () -> ()
    %cst_101 = arith.constant dense<0.000000e+00> : vector<4x8x8xf32>
    %267 = tpu.matmul %265, %266, %cst_101 {dimension_numbers = #tpu.dot_dimension_numbers<[2], [1], [1], [2], [0, 0, 0, 1, 1, 2], [0], [0]>} : vector<4x8x8xbf16>, vector<4x8x8xbf16>, vector<4x8x8xf32> -> vector<4x8x8xf32>
    "tpu.trace_stop"() : () -> ()
    %268 = vector.extract_strided_slice %246 {offsets = [0, 0, 8], sizes = [4, 8, 8], strides = [1, 1, 1]} : vector<4x8x96xf32> to vector<4x8x8xf32>
    %269 = vector.extract_strided_slice %246 {offsets = [0, 0, 40], sizes = [4, 8, 8], strides = [1, 1, 1]} : vector<4x8x96xf32> to vector<4x8x8xf32>
    %270 = vector.extract_strided_slice %246 {offsets = [0, 0, 72], sizes = [4, 8, 8], strides = [1, 1, 1]} : vector<4x8x96xf32> to vector<4x8x8xf32>
    %271 = arith.truncf %268 : vector<4x8x8xf32> to vector<4x8x8xbf16>
    %272 = arith.truncf %269 : vector<4x8x8xf32> to vector<4x8x8xbf16>
    "tpu.trace_start"() <{level = 10 : i32, message = "bqd,bkd->bqk"}> : () -> ()
    %cst_102 = arith.constant dense<0.000000e+00> : vector<4x8x8xf32>
    %273 = tpu.matmul %271, %272, %cst_102 {dimension_numbers = #tpu.dot_dimension_numbers<[2], [2], [1], [1], [0, 0, 0, 1, 1, 1], [0], [0]>} : vector<4x8x8xbf16>, vector<4x8x8xbf16>, vector<4x8x8xf32> -> vector<4x8x8xf32>
    "tpu.trace_stop"() : () -> ()
    %cst_103 = arith.constant 0.353553385 : f32
    %274 = vector.broadcast %cst_103 : f32 to vector<4x8x8xf32>
    %275 = arith.mulf %273, %274 : vector<4x8x8xf32>
    %cst_104 = arith.constant dense<0xFF800000> : vector<4x8xf32>
    %276 = vector.multi_reduction <maximumf>, %275, %cst_104 [2] : vector<4x8x8xf32> to vector<4x8xf32>
    %277 = vector.shape_cast %276 : vector<4x8xf32> to vector<4x8x1xf32>
    %278 = vector.broadcast %277 : vector<4x8x1xf32> to vector<4x8x8xf32>
    %279 = arith.subf %275, %278 : vector<4x8x8xf32>
    %280 = math.exp %279 : vector<4x8x8xf32>
    %cst_105 = arith.constant dense<0.000000e+00> : vector<4x8xf32>
    %281 = vector.multi_reduction <add>, %280, %cst_105 [2] : vector<4x8x8xf32> to vector<4x8xf32>
    %282 = vector.shape_cast %281 : vector<4x8xf32> to vector<4x8x1xf32>
    %283 = tpu.reciprocal %282 {approx = true} : vector<4x8x1xf32> -> vector<4x8x1xf32>
    %284 = vector.broadcast %283 : vector<4x8x1xf32> to vector<4x8x8xf32>
    %285 = arith.mulf %280, %284 : vector<4x8x8xf32>
    %286 = arith.truncf %285 : vector<4x8x8xf32> to vector<4x8x8xbf16>
    %287 = arith.truncf %270 : vector<4x8x8xf32> to vector<4x8x8xbf16>
    "tpu.trace_start"() <{level = 10 : i32, message = "bqk,bkd->bqd"}> : () -> ()
    %cst_106 = arith.constant dense<0.000000e+00> : vector<4x8x8xf32>
    %288 = tpu.matmul %286, %287, %cst_106 {dimension_numbers = #tpu.dot_dimension_numbers<[2], [1], [1], [2], [0, 0, 0, 1, 1, 2], [0], [0]>} : vector<4x8x8xbf16>, vector<4x8x8xbf16>, vector<4x8x8xf32> -> vector<4x8x8xf32>
    "tpu.trace_stop"() : () -> ()
    %289 = vector.extract_strided_slice %246 {offsets = [0, 0, 16], sizes = [4, 8, 8], strides = [1, 1, 1]} : vector<4x8x96xf32> to vector<4x8x8xf32>
    %290 = vector.extract_strided_slice %246 {offsets = [0, 0, 48], sizes = [4, 8, 8], strides = [1, 1, 1]} : vector<4x8x96xf32> to vector<4x8x8xf32>
    %291 = vector.extract_strided_slice %246 {offsets = [0, 0, 80], sizes = [4, 8, 8], strides = [1, 1, 1]} : vector<4x8x96xf32> to vector<4x8x8xf32>
    %292 = arith.truncf %289 : vector<4x8x8xf32> to vector<4x8x8xbf16>
    %293 = arith.truncf %290 : vector<4x8x8xf32> to vector<4x8x8xbf16>
    "tpu.trace_start"() <{level = 10 : i32, message = "bqd,bkd->bqk"}> : () -> ()
    %cst_107 = arith.constant dense<0.000000e+00> : vector<4x8x8xf32>
    %294 = tpu.matmul %292, %293, %cst_107 {dimension_numbers = #tpu.dot_dimension_numbers<[2], [2], [1], [1], [0, 0, 0, 1, 1, 1], [0], [0]>} : vector<4x8x8xbf16>, vector<4x8x8xbf16>, vector<4x8x8xf32> -> vector<4x8x8xf32>
    "tpu.trace_stop"() : () -> ()
    %cst_108 = arith.constant 0.353553385 : f32
    %295 = vector.broadcast %cst_108 : f32 to vector<4x8x8xf32>
    %296 = arith.mulf %294, %295 : vector<4x8x8xf32>
    %cst_109 = arith.constant dense<0xFF800000> : vector<4x8xf32>
    %297 = vector.multi_reduction <maximumf>, %296, %cst_109 [2] : vector<4x8x8xf32> to vector<4x8xf32>
    %298 = vector.shape_cast %297 : vector<4x8xf32> to vector<4x8x1xf32>
    %299 = vector.broadcast %298 : vector<4x8x1xf32> to vector<4x8x8xf32>
    %300 = arith.subf %296, %299 : vector<4x8x8xf32>
    %301 = math.exp %300 : vector<4x8x8xf32>
    %cst_110 = arith.constant dense<0.000000e+00> : vector<4x8xf32>
    %302 = vector.multi_reduction <add>, %301, %cst_110 [2] : vector<4x8x8xf32> to vector<4x8xf32>
    %303 = vector.shape_cast %302 : vector<4x8xf32> to vector<4x8x1xf32>
    %304 = tpu.reciprocal %303 {approx = true} : vector<4x8x1xf32> -> vector<4x8x1xf32>
    %305 = vector.broadcast %304 : vector<4x8x1xf32> to vector<4x8x8xf32>
    %306 = arith.mulf %301, %305 : vector<4x8x8xf32>
    %307 = arith.truncf %306 : vector<4x8x8xf32> to vector<4x8x8xbf16>
    %308 = arith.truncf %291 : vector<4x8x8xf32> to vector<4x8x8xbf16>
    "tpu.trace_start"() <{level = 10 : i32, message = "bqk,bkd->bqd"}> : () -> ()
    %cst_111 = arith.constant dense<0.000000e+00> : vector<4x8x8xf32>
    %309 = tpu.matmul %307, %308, %cst_111 {dimension_numbers = #tpu.dot_dimension_numbers<[2], [1], [1], [2], [0, 0, 0, 1, 1, 2], [0], [0]>} : vector<4x8x8xbf16>, vector<4x8x8xbf16>, vector<4x8x8xf32> -> vector<4x8x8xf32>
    "tpu.trace_stop"() : () -> ()
    %310 = vector.extract_strided_slice %246 {offsets = [0, 0, 24], sizes = [4, 8, 8], strides = [1, 1, 1]} : vector<4x8x96xf32> to vector<4x8x8xf32>
    %311 = vector.extract_strided_slice %246 {offsets = [0, 0, 56], sizes = [4, 8, 8], strides = [1, 1, 1]} : vector<4x8x96xf32> to vector<4x8x8xf32>
    %312 = vector.extract_strided_slice %246 {offsets = [0, 0, 88], sizes = [4, 8, 8], strides = [1, 1, 1]} : vector<4x8x96xf32> to vector<4x8x8xf32>
    %313 = arith.truncf %310 : vector<4x8x8xf32> to vector<4x8x8xbf16>
    %314 = arith.truncf %311 : vector<4x8x8xf32> to vector<4x8x8xbf16>
    "tpu.trace_start"() <{level = 10 : i32, message = "bqd,bkd->bqk"}> : () -> ()
    %cst_112 = arith.constant dense<0.000000e+00> : vector<4x8x8xf32>
    %315 = tpu.matmul %313, %314, %cst_112 {dimension_numbers = #tpu.dot_dimension_numbers<[2], [2], [1], [1], [0, 0, 0, 1, 1, 1], [0], [0]>} : vector<4x8x8xbf16>, vector<4x8x8xbf16>, vector<4x8x8xf32> -> vector<4x8x8xf32>
    "tpu.trace_stop"() : () -> ()
    %cst_113 = arith.constant 0.353553385 : f32
    %316 = vector.broadcast %cst_113 : f32 to vector<4x8x8xf32>
    %317 = arith.mulf %315, %316 : vector<4x8x8xf32>
    %cst_114 = arith.constant dense<0xFF800000> : vector<4x8xf32>
    %318 = vector.multi_reduction <maximumf>, %317, %cst_114 [2] : vector<4x8x8xf32> to vector<4x8xf32>
    %319 = vector.shape_cast %318 : vector<4x8xf32> to vector<4x8x1xf32>
    %320 = vector.broadcast %319 : vector<4x8x1xf32> to vector<4x8x8xf32>
    %321 = arith.subf %317, %320 : vector<4x8x8xf32>
    %322 = math.exp %321 : vector<4x8x8xf32>
    %cst_115 = arith.constant dense<0.000000e+00> : vector<4x8xf32>
    %323 = vector.multi_reduction <add>, %322, %cst_115 [2] : vector<4x8x8xf32> to vector<4x8xf32>
    %324 = vector.shape_cast %323 : vector<4x8xf32> to vector<4x8x1xf32>
    %325 = tpu.reciprocal %324 {approx = true} : vector<4x8x1xf32> -> vector<4x8x1xf32>
    %326 = vector.broadcast %325 : vector<4x8x1xf32> to vector<4x8x8xf32>
    %327 = arith.mulf %322, %326 : vector<4x8x8xf32>
    %328 = arith.truncf %327 : vector<4x8x8xf32> to vector<4x8x8xbf16>
    %329 = arith.truncf %312 : vector<4x8x8xf32> to vector<4x8x8xbf16>
    "tpu.trace_start"() <{level = 10 : i32, message = "bqk,bkd->bqd"}> : () -> ()
    %cst_116 = arith.constant dense<0.000000e+00> : vector<4x8x8xf32>
    %330 = tpu.matmul %328, %329, %cst_116 {dimension_numbers = #tpu.dot_dimension_numbers<[2], [1], [1], [2], [0, 0, 0, 1, 1, 2], [0], [0]>} : vector<4x8x8xbf16>, vector<4x8x8xbf16>, vector<4x8x8xf32> -> vector<4x8x8xf32>
    "tpu.trace_stop"() : () -> ()
    %331 = tpu.concatenate %267, %288, %309, %330 in 2 : vector<4x8x8xf32>, vector<4x8x8xf32>, vector<4x8x8xf32>, vector<4x8x8xf32> -> vector<4x8x32xf32>
    %332 = vector.shape_cast %331 : vector<4x8x32xf32> to vector<32x32xf32>
    %c1_117 = arith.constant 1 : index
    %c0_118 = arith.constant 0 : index
    %c0_119 = arith.constant 0 : index
    %333 = vector.load %arg4[%c1_117, %c0_118, %c0_119] : memref<2x32x32xf32, #tpu.memory_space<vmem>>, vector<1x32x32xf32>
    %334 = vector.shape_cast %333 : vector<1x32x32xf32> to vector<32x32xf32>
    %335 = arith.truncf %332 : vector<32x32xf32> to vector<32x32xbf16>
    %336 = arith.truncf %334 : vector<32x32xf32> to vector<32x32xbf16>
    %cst_120 = arith.constant dense<0.000000e+00> : vector<32x32xf32>
    %337 = tpu.matmul %335, %336, %cst_120 {dimension_numbers = #tpu.dot_dimension_numbers<[1], [0], [0], [1], [0, 0, 1, 1], [], []>} : vector<32x32xbf16>, vector<32x32xbf16>, vector<32x32xf32> -> vector<32x32xf32>
    %338 = arith.addf %214, %337 : vector<32x32xf32>
    %c1_121 = arith.constant 1 : index
    %c0_122 = arith.constant 0 : index
    %c0_123 = arith.constant 0 : index
    %339 = vector.load %arg5[%c1_121, %c0_122, %c0_123] : memref<2x1x32xf32, #tpu.memory_space<vmem>>, vector<1x1x32xf32>
    %340 = vector.shape_cast %339 : vector<1x1x32xf32> to vector<1x32xf32>
    %341 = vector.broadcast %340 : vector<1x32xf32> to vector<32x32xf32>
    %342 = arith.addf %338, %341 : vector<32x32xf32>
    %c1_124 = arith.constant 1 : index
    %c0_125 = arith.constant 0 : index
    %c0_126 = arith.constant 0 : index
    %343 = vector.load %arg6[%c1_124, %c0_125, %c0_126] : memref<2x1x32xf32, #tpu.memory_space<vmem>>, vector<1x1x32xf32>
    %344 = vector.shape_cast %343 : vector<1x1x32xf32> to vector<1x32xf32>
    %c1_127 = arith.constant 1 : index
    %c0_128 = arith.constant 0 : index
    %c0_129 = arith.constant 0 : index
    %345 = vector.load %arg7[%c1_127, %c0_128, %c0_129] : memref<2x1x32xf32, #tpu.memory_space<vmem>>, vector<1x1x32xf32>
    %346 = vector.shape_cast %345 : vector<1x1x32xf32> to vector<1x32xf32>
    %cst_130 = arith.constant dense<0.000000e+00> : vector<32xf32>
    %347 = vector.multi_reduction <add>, %342, %cst_130 [1] : vector<32x32xf32> to vector<32xf32>
    %348 = vector.shape_cast %347 : vector<32xf32> to vector<32x1xf32>
    %cst_131 = arith.constant 3.200000e+01 : f32
    %349 = vector.broadcast %cst_131 : f32 to vector<32x1xf32>
    %350 = arith.divf %348, %349 : vector<32x1xf32>
    %351 = vector.broadcast %350 : vector<32x1xf32> to vector<32x32xf32>
    %352 = arith.subf %342, %351 : vector<32x32xf32>
    %353 = arith.mulf %352, %352 : vector<32x32xf32>
    %cst_132 = arith.constant dense<0.000000e+00> : vector<32xf32>
    %354 = vector.multi_reduction <add>, %353, %cst_132 [1] : vector<32x32xf32> to vector<32xf32>
    %355 = vector.shape_cast %354 : vector<32xf32> to vector<32x1xf32>
    %cst_133 = arith.constant 3.200000e+01 : f32
    %356 = vector.broadcast %cst_133 : f32 to vector<32x1xf32>
    %357 = arith.divf %355, %356 : vector<32x1xf32>
    %358 = vector.broadcast %350 : vector<32x1xf32> to vector<32x32xf32>
    %359 = arith.subf %342, %358 : vector<32x32xf32>
    %cst_134 = arith.constant 9.99999974E-6 : f32
    %360 = vector.broadcast %cst_134 : f32 to vector<32x1xf32>
    %361 = arith.addf %357, %360 : vector<32x1xf32>
    %362 = math.rsqrt %361 : vector<32x1xf32>
    %363 = vector.broadcast %362 : vector<32x1xf32> to vector<32x32xf32>
    %364 = arith.mulf %359, %363 : vector<32x32xf32>
    %365 = vector.broadcast %344 : vector<1x32xf32> to vector<32x32xf32>
    %366 = arith.mulf %364, %365 : vector<32x32xf32>
    %367 = vector.broadcast %346 : vector<1x32xf32> to vector<32x32xf32>
    %368 = arith.addf %366, %367 : vector<32x32xf32>
    %c1_135 = arith.constant 1 : index
    %c0_136 = arith.constant 0 : index
    %c0_137 = arith.constant 0 : index
    %369 = vector.load %arg8[%c1_135, %c0_136, %c0_137] : memref<2x32x32xf32, #tpu.memory_space<vmem>>, vector<1x32x32xf32>
    %370 = vector.shape_cast %369 : vector<1x32x32xf32> to vector<32x32xf32>
    %371 = arith.truncf %368 : vector<32x32xf32> to vector<32x32xbf16>
    %372 = arith.truncf %370 : vector<32x32xf32> to vector<32x32xbf16>
    %cst_138 = arith.constant dense<0.000000e+00> : vector<32x32xf32>
    %373 = tpu.matmul %371, %372, %cst_138 {dimension_numbers = #tpu.dot_dimension_numbers<[1], [0], [0], [1], [0, 0, 1, 1], [], []>} : vector<32x32xbf16>, vector<32x32xbf16>, vector<32x32xf32> -> vector<32x32xf32>
    %c1_139 = arith.constant 1 : index
    %c0_140 = arith.constant 0 : index
    %c0_141 = arith.constant 0 : index
    %374 = vector.load %arg9[%c1_139, %c0_140, %c0_141] : memref<2x1x32xf32, #tpu.memory_space<vmem>>, vector<1x1x32xf32>
    %375 = vector.shape_cast %374 : vector<1x1x32xf32> to vector<1x32xf32>
    %376 = vector.broadcast %375 : vector<1x32xf32> to vector<32x32xf32>
    %377 = arith.addf %373, %376 : vector<32x32xf32>
    %cst_142 = arith.constant 5.000000e-01 : f32
    %378 = vector.broadcast %cst_142 : f32 to vector<32x32xf32>
    %379 = arith.mulf %378, %377 : vector<32x32xf32>
    %cst_143 = arith.constant 0.707106769 : f32
    %380 = vector.broadcast %cst_143 : f32 to vector<32x32xf32>
    %381 = arith.mulf %377, %380 : vector<32x32xf32>
    %382 = math.absf %381 : vector<32x32xf32>
    %cst_144 = arith.constant 0.327591091 : f32
    %383 = vector.broadcast %cst_144 : f32 to vector<32x32xf32>
    %384 = arith.mulf %383, %382 : vector<32x32xf32>
    %cst_145 = arith.constant 1.000000e+00 : f32
    %385 = vector.broadcast %cst_145 : f32 to vector<32x32xf32>
    %386 = arith.addf %385, %384 : vector<32x32xf32>
    %cst_146 = arith.constant 1.000000e+00 : f32
    %387 = vector.broadcast %cst_146 : f32 to vector<32x32xf32>
    %388 = arith.divf %387, %386 : vector<32x32xf32>
    %cst_147 = arith.constant 1.06140542 : f32
    %389 = vector.broadcast %cst_147 : f32 to vector<32x32xf32>
    %390 = arith.mulf %389, %388 : vector<32x32xf32>
    %cst_148 = arith.constant -1.45315206 : f32
    %391 = vector.broadcast %cst_148 : f32 to vector<32x32xf32>
    %392 = arith.addf %390, %391 : vector<32x32xf32>
    %393 = arith.mulf %392, %388 : vector<32x32xf32>
    %cst_149 = arith.constant 1.42141378 : f32
    %394 = vector.broadcast %cst_149 : f32 to vector<32x32xf32>
    %395 = arith.addf %393, %394 : vector<32x32xf32>
    %396 = arith.mulf %395, %388 : vector<32x32xf32>
    %cst_150 = arith.constant -0.284496725 : f32
    %397 = vector.broadcast %cst_150 : f32 to vector<32x32xf32>
    %398 = arith.addf %396, %397 : vector<32x32xf32>
    %399 = arith.mulf %398, %388 : vector<32x32xf32>
    %cst_151 = arith.constant 0.254829586 : f32
    %400 = vector.broadcast %cst_151 : f32 to vector<32x32xf32>
    %401 = arith.addf %399, %400 : vector<32x32xf32>
    %402 = arith.mulf %401, %388 : vector<32x32xf32>
    %cst_152 = arith.constant 0.000000e+00 : f32
    %403 = vector.broadcast %cst_152 : f32 to vector<32x32xf32>
    %404 = arith.subf %403, %382 : vector<32x32xf32>
    %405 = arith.mulf %404, %382 : vector<32x32xf32>
    %406 = math.exp %405 : vector<32x32xf32>
    %407 = arith.mulf %402, %406 : vector<32x32xf32>
    %cst_153 = arith.constant 1.000000e+00 : f32
    %408 = vector.broadcast %cst_153 : f32 to vector<32x32xf32>
    %409 = arith.subf %408, %407 : vector<32x32xf32>
    %cst_154 = arith.constant 0.000000e+00 : f32
    %410 = vector.broadcast %cst_154 : f32 to vector<32x32xf32>
    %411 = arith.cmpf olt, %381, %410 : vector<32x32xf32>
    %cst_155 = arith.constant 0.000000e+00 : f32
    %412 = vector.broadcast %cst_155 : f32 to vector<32x32xf32>
    %413 = arith.subf %412, %409 : vector<32x32xf32>
    %414 = arith.select %411, %413, %409 : vector<32x32xi1>, vector<32x32xf32>
    %cst_156 = arith.constant 1.000000e+00 : f32
    %415 = vector.broadcast %cst_156 : f32 to vector<32x32xf32>
    %416 = arith.addf %415, %414 : vector<32x32xf32>
    %417 = arith.mulf %379, %416 : vector<32x32xf32>
    %c1_157 = arith.constant 1 : index
    %c0_158 = arith.constant 0 : index
    %c0_159 = arith.constant 0 : index
    %418 = vector.load %arg10[%c1_157, %c0_158, %c0_159] : memref<2x32x32xf32, #tpu.memory_space<vmem>>, vector<1x32x32xf32>
    %419 = vector.shape_cast %418 : vector<1x32x32xf32> to vector<32x32xf32>
    %420 = arith.truncf %417 : vector<32x32xf32> to vector<32x32xbf16>
    %421 = arith.truncf %419 : vector<32x32xf32> to vector<32x32xbf16>
    %cst_160 = arith.constant dense<0.000000e+00> : vector<32x32xf32>
    %422 = tpu.matmul %420, %421, %cst_160 {dimension_numbers = #tpu.dot_dimension_numbers<[1], [0], [0], [1], [0, 0, 1, 1], [], []>} : vector<32x32xbf16>, vector<32x32xbf16>, vector<32x32xf32> -> vector<32x32xf32>
    %423 = arith.addf %342, %422 : vector<32x32xf32>
    %c1_161 = arith.constant 1 : index
    %c0_162 = arith.constant 0 : index
    %c0_163 = arith.constant 0 : index
    %424 = vector.load %arg11[%c1_161, %c0_162, %c0_163] : memref<2x1x32xf32, #tpu.memory_space<vmem>>, vector<1x1x32xf32>
    %425 = vector.shape_cast %424 : vector<1x1x32xf32> to vector<1x32xf32>
    %426 = vector.broadcast %425 : vector<1x32xf32> to vector<32x32xf32>
    %427 = arith.addf %423, %426 : vector<32x32xf32>
    %428 = vector.shape_cast %427 : vector<32x32xf32> to vector<4x8x32xf32>
    %c0_164 = arith.constant 0 : index
    %c0_165 = arith.constant 0 : index
    %c0_166 = arith.constant 0 : index
    %429 = vector.load %arg12[%c0_164, %c0_165, %c0_166] : memref<4x8x32xf32, #tpu.memory_space<vmem>>, vector<4x8x32xf32>
    tpu.vector_store %arg12[%c0_164, %c0_165, %c0_166], %428 {strides = array<i32>} : memref<4x8x32xf32, #tpu.memory_space<vmem>>, vector<4x8x32xf32>,
    return
  }
}

module attributes {stable_mosaic.version = 11 : i64} {
  func.func @_rot6d2quat_kernel(%arg0: memref<6x448xf32, #tpu.memory_space<vmem>>, %arg1: memref<4x448xf32, #tpu.memory_space<vmem>>) attributes {dimension_semantics = [], scalar_prefetch = 0 : i64, scratch_operands = 0 : i64, tpu.core_type = #tpu.core_type<tc>} {
    %c0 = arith.constant 0 : index
    %c0_0 = arith.constant 0 : index
    %0 = vector.load %arg0[%c0, %c0_0] : memref<6x448xf32, #tpu.memory_space<vmem>>, vector<6x448xf32>
    %1 = vector.extract_strided_slice %0 {offsets = [0, 0], sizes = [1, 448], strides = [1, 1]} : vector<6x448xf32> to vector<1x448xf32>
    %2 = vector.extract_strided_slice %0 {offsets = [1, 0], sizes = [1, 448], strides = [1, 1]} : vector<6x448xf32> to vector<1x448xf32>
    %3 = vector.extract_strided_slice %0 {offsets = [2, 0], sizes = [1, 448], strides = [1, 1]} : vector<6x448xf32> to vector<1x448xf32>
    %4 = vector.extract_strided_slice %0 {offsets = [3, 0], sizes = [1, 448], strides = [1, 1]} : vector<6x448xf32> to vector<1x448xf32>
    %5 = vector.extract_strided_slice %0 {offsets = [4, 0], sizes = [1, 448], strides = [1, 1]} : vector<6x448xf32> to vector<1x448xf32>
    %6 = vector.extract_strided_slice %0 {offsets = [5, 0], sizes = [1, 448], strides = [1, 1]} : vector<6x448xf32> to vector<1x448xf32>
    %7 = arith.mulf %1, %1 : vector<1x448xf32>
    %8 = arith.mulf %2, %2 : vector<1x448xf32>
    %9 = arith.addf %7, %8 : vector<1x448xf32>
    %10 = arith.mulf %3, %3 : vector<1x448xf32>
    %11 = arith.addf %9, %10 : vector<1x448xf32>
    %12 = math.sqrt %11 : vector<1x448xf32>
    %cst = arith.constant 9.99999996E-13 : f32
    %13 = vector.broadcast %cst : f32 to vector<1x448xf32>
    %14 = arith.maximumf %12, %13 : vector<1x448xf32>
    %15 = tpu.reciprocal %14 {approx = true} : vector<1x448xf32> -> vector<1x448xf32>
    %16 = arith.mulf %1, %15 : vector<1x448xf32>
    %17 = arith.mulf %2, %15 : vector<1x448xf32>
    %18 = arith.mulf %3, %15 : vector<1x448xf32>
    %19 = arith.mulf %16, %4 : vector<1x448xf32>
    %20 = arith.mulf %17, %5 : vector<1x448xf32>
    %21 = arith.addf %19, %20 : vector<1x448xf32>
    %22 = arith.mulf %18, %6 : vector<1x448xf32>
    %23 = arith.addf %21, %22 : vector<1x448xf32>
    %24 = arith.mulf %23, %16 : vector<1x448xf32>
    %25 = arith.subf %4, %24 : vector<1x448xf32>
    %26 = arith.mulf %23, %17 : vector<1x448xf32>
    %27 = arith.subf %5, %26 : vector<1x448xf32>
    %28 = arith.mulf %23, %18 : vector<1x448xf32>
    %29 = arith.subf %6, %28 : vector<1x448xf32>
    %30 = arith.mulf %25, %25 : vector<1x448xf32>
    %31 = arith.mulf %27, %27 : vector<1x448xf32>
    %32 = arith.addf %30, %31 : vector<1x448xf32>
    %33 = arith.mulf %29, %29 : vector<1x448xf32>
    %34 = arith.addf %32, %33 : vector<1x448xf32>
    %35 = math.sqrt %34 : vector<1x448xf32>
    %cst_1 = arith.constant 9.99999996E-13 : f32
    %36 = vector.broadcast %cst_1 : f32 to vector<1x448xf32>
    %37 = arith.maximumf %35, %36 : vector<1x448xf32>
    %38 = tpu.reciprocal %37 {approx = true} : vector<1x448xf32> -> vector<1x448xf32>
    %39 = arith.mulf %25, %38 : vector<1x448xf32>
    %40 = arith.mulf %27, %38 : vector<1x448xf32>
    %41 = arith.mulf %29, %38 : vector<1x448xf32>
    %42 = arith.mulf %17, %41 : vector<1x448xf32>
    %43 = arith.mulf %18, %40 : vector<1x448xf32>
    %44 = arith.subf %42, %43 : vector<1x448xf32>
    %45 = arith.mulf %18, %39 : vector<1x448xf32>
    %46 = arith.mulf %16, %41 : vector<1x448xf32>
    %47 = arith.subf %45, %46 : vector<1x448xf32>
    %48 = arith.mulf %16, %40 : vector<1x448xf32>
    %49 = arith.mulf %17, %39 : vector<1x448xf32>
    %50 = arith.subf %48, %49 : vector<1x448xf32>
    %cst_2 = arith.constant 9.99999997E-7 : f32
    %51 = vector.broadcast %cst_2 : f32 to vector<1x448xf32>
    %52 = arith.cmpf olt, %50, %51 : vector<1x448xf32>
    %53 = arith.extui %52 : vector<1x448xi1> to vector<1x448xi32>
    %54 = arith.sitofp %53 : vector<1x448xi32> to vector<1x448xf32>
    %55 = arith.cmpf ogt, %16, %40 : vector<1x448xf32>
    %56 = arith.extui %55 : vector<1x448xi1> to vector<1x448xi32>
    %57 = arith.sitofp %56 : vector<1x448xi32> to vector<1x448xf32>
    %cst_3 = arith.constant 0.000000e+00 : f32
    %58 = vector.broadcast %cst_3 : f32 to vector<1x448xf32>
    %59 = arith.subf %58, %40 : vector<1x448xf32>
    %60 = arith.cmpf olt, %16, %59 : vector<1x448xf32>
    %61 = arith.extui %60 : vector<1x448xi1> to vector<1x448xi32>
    %62 = arith.sitofp %61 : vector<1x448xi32> to vector<1x448xf32>
    %cst_4 = arith.constant 1.000000e+00 : f32
    %63 = vector.broadcast %cst_4 : f32 to vector<1x448xf32>
    %64 = arith.addf %63, %16 : vector<1x448xf32>
    %65 = arith.subf %64, %40 : vector<1x448xf32>
    %66 = arith.subf %65, %50 : vector<1x448xf32>
    %cst_5 = arith.constant 1.000000e+00 : f32
    %67 = vector.broadcast %cst_5 : f32 to vector<1x448xf32>
    %68 = arith.subf %67, %16 : vector<1x448xf32>
    %69 = arith.addf %68, %40 : vector<1x448xf32>
    %70 = arith.subf %69, %50 : vector<1x448xf32>
    %cst_6 = arith.constant 1.000000e+00 : f32
    %71 = vector.broadcast %cst_6 : f32 to vector<1x448xf32>
    %72 = arith.subf %71, %16 : vector<1x448xf32>
    %73 = arith.subf %72, %40 : vector<1x448xf32>
    %74 = arith.addf %73, %50 : vector<1x448xf32>
    %cst_7 = arith.constant 1.000000e+00 : f32
    %75 = vector.broadcast %cst_7 : f32 to vector<1x448xf32>
    %76 = arith.addf %75, %16 : vector<1x448xf32>
    %77 = arith.addf %76, %40 : vector<1x448xf32>
    %78 = arith.addf %77, %50 : vector<1x448xf32>
    %79 = arith.mulf %54, %57 : vector<1x448xf32>
    %cst_8 = arith.constant 1.000000e+00 : f32
    %80 = vector.broadcast %cst_8 : f32 to vector<1x448xf32>
    %81 = arith.subf %80, %57 : vector<1x448xf32>
    %82 = arith.mulf %54, %81 : vector<1x448xf32>
    %cst_9 = arith.constant 1.000000e+00 : f32
    %83 = vector.broadcast %cst_9 : f32 to vector<1x448xf32>
    %84 = arith.subf %83, %54 : vector<1x448xf32>
    %85 = arith.mulf %84, %62 : vector<1x448xf32>
    %cst_10 = arith.constant 1.000000e+00 : f32
    %86 = vector.broadcast %cst_10 : f32 to vector<1x448xf32>
    %87 = arith.subf %86, %54 : vector<1x448xf32>
    %cst_11 = arith.constant 1.000000e+00 : f32
    %88 = vector.broadcast %cst_11 : f32 to vector<1x448xf32>
    %89 = arith.subf %88, %62 : vector<1x448xf32>
    %90 = arith.mulf %87, %89 : vector<1x448xf32>
    %91 = arith.subf %41, %47 : vector<1x448xf32>
    %92 = arith.mulf %91, %79 : vector<1x448xf32>
    %93 = arith.subf %44, %18 : vector<1x448xf32>
    %94 = arith.mulf %93, %82 : vector<1x448xf32>
    %95 = arith.addf %92, %94 : vector<1x448xf32>
    %96 = arith.subf %17, %39 : vector<1x448xf32>
    %97 = arith.mulf %96, %85 : vector<1x448xf32>
    %98 = arith.addf %95, %97 : vector<1x448xf32>
    %99 = arith.mulf %78, %90 : vector<1x448xf32>
    %100 = arith.addf %98, %99 : vector<1x448xf32>
    %101 = arith.mulf %66, %79 : vector<1x448xf32>
    %102 = arith.addf %17, %39 : vector<1x448xf32>
    %103 = arith.mulf %102, %82 : vector<1x448xf32>
    %104 = arith.addf %101, %103 : vector<1x448xf32>
    %105 = arith.addf %44, %18 : vector<1x448xf32>
    %106 = arith.mulf %105, %85 : vector<1x448xf32>
    %107 = arith.addf %104, %106 : vector<1x448xf32>
    %108 = arith.subf %41, %47 : vector<1x448xf32>
    %109 = arith.mulf %108, %90 : vector<1x448xf32>
    %110 = arith.addf %107, %109 : vector<1x448xf32>
    %111 = arith.addf %17, %39 : vector<1x448xf32>
    %112 = arith.mulf %111, %79 : vector<1x448xf32>
    %113 = arith.mulf %70, %82 : vector<1x448xf32>
    %114 = arith.addf %112, %113 : vector<1x448xf32>
    %115 = arith.addf %41, %47 : vector<1x448xf32>
    %116 = arith.mulf %115, %85 : vector<1x448xf32>
    %117 = arith.addf %114, %116 : vector<1x448xf32>
    %118 = arith.subf %44, %18 : vector<1x448xf32>
    %119 = arith.mulf %118, %90 : vector<1x448xf32>
    %120 = arith.addf %117, %119 : vector<1x448xf32>
    %121 = arith.addf %44, %18 : vector<1x448xf32>
    %122 = arith.mulf %121, %79 : vector<1x448xf32>
    %123 = arith.addf %41, %47 : vector<1x448xf32>
    %124 = arith.mulf %123, %82 : vector<1x448xf32>
    %125 = arith.addf %122, %124 : vector<1x448xf32>
    %126 = arith.mulf %74, %85 : vector<1x448xf32>
    %127 = arith.addf %125, %126 : vector<1x448xf32>
    %128 = arith.subf %17, %39 : vector<1x448xf32>
    %129 = arith.mulf %128, %90 : vector<1x448xf32>
    %130 = arith.addf %127, %129 : vector<1x448xf32>
    %131 = arith.mulf %66, %79 : vector<1x448xf32>
    %132 = arith.mulf %70, %82 : vector<1x448xf32>
    %133 = arith.addf %131, %132 : vector<1x448xf32>
    %134 = arith.mulf %74, %85 : vector<1x448xf32>
    %135 = arith.addf %133, %134 : vector<1x448xf32>
    %136 = arith.mulf %78, %90 : vector<1x448xf32>
    %137 = arith.addf %135, %136 : vector<1x448xf32>
    %138 = math.sqrt %137 : vector<1x448xf32>
    %cst_12 = arith.constant 9.99999996E-13 : f32
    %139 = vector.broadcast %cst_12 : f32 to vector<1x448xf32>
    %140 = arith.maximumf %138, %139 : vector<1x448xf32>
    %141 = tpu.reciprocal %140 {approx = true} : vector<1x448xf32> -> vector<1x448xf32>
    %cst_13 = arith.constant 5.000000e-01 : f32
    %142 = vector.broadcast %cst_13 : f32 to vector<1x448xf32>
    %143 = arith.mulf %142, %141 : vector<1x448xf32>
    %144 = tpu.concatenate %100, %110, %120, %130 in 0 : vector<1x448xf32>, vector<1x448xf32>, vector<1x448xf32>, vector<1x448xf32> -> vector<4x448xf32>
    %145 = vector.broadcast %143 : vector<1x448xf32> to vector<4x448xf32>
    %146 = arith.mulf %144, %145 : vector<4x448xf32>
    %c0_14 = arith.constant 0 : index
    %c0_15 = arith.constant 0 : index
    %147 = vector.load %arg1[%c0_14, %c0_15] : memref<4x448xf32, #tpu.memory_space<vmem>>, vector<4x448xf32>
    tpu.vector_store %arg1[%c0_14, %c0_15], %146 {strides = array<i32>} : memref<4x448xf32, #tpu.memory_space<vmem>>, vector<4x448xf32>,
    return
  }
}

module attributes {stable_mosaic.version = 11 : i64} {
  func.func @_dense_kernel(%arg0: memref<32x58xf32, #tpu.memory_space<vmem>>, %arg1: memref<58x256xf32, #tpu.memory_space<vmem>>, %arg2: memref<1x256xf32, #tpu.memory_space<vmem>>, %arg3: memref<32x256xf32, #tpu.memory_space<vmem>>) attributes {dimension_semantics = [], scalar_prefetch = 0 : i64, scratch_operands = 0 : i64, tpu.core_type = #tpu.core_type<tc>} {
    %c0 = arith.constant 0 : index
    %c0_0 = arith.constant 0 : index
    %0 = vector.load %arg0[%c0, %c0_0] : memref<32x58xf32, #tpu.memory_space<vmem>>, vector<32x58xf32>
    %c0_1 = arith.constant 0 : index
    %c0_2 = arith.constant 0 : index
    %1 = vector.load %arg1[%c0_1, %c0_2] : memref<58x256xf32, #tpu.memory_space<vmem>>, vector<58x256xf32>
    %2 = arith.truncf %0 : vector<32x58xf32> to vector<32x58xbf16>
    %3 = arith.truncf %1 : vector<58x256xf32> to vector<58x256xbf16>
    %cst = arith.constant dense<0.000000e+00> : vector<32x256xf32>
    %4 = tpu.matmul %2, %3, %cst {dimension_numbers = #tpu.dot_dimension_numbers<[1], [0], [0], [1], [0, 0, 1, 1], [], []>} : vector<32x58xbf16>, vector<58x256xbf16>, vector<32x256xf32> -> vector<32x256xf32>
    %c0_3 = arith.constant 0 : index
    %c0_4 = arith.constant 0 : index
    %5 = vector.load %arg2[%c0_3, %c0_4] : memref<1x256xf32, #tpu.memory_space<vmem>>, vector<1x256xf32>
    %6 = vector.broadcast %5 : vector<1x256xf32> to vector<32x256xf32>
    %7 = arith.addf %4, %6 : vector<32x256xf32>
    %c0_5 = arith.constant 0 : index
    %c0_6 = arith.constant 0 : index
    %8 = vector.load %arg3[%c0_5, %c0_6] : memref<32x256xf32, #tpu.memory_space<vmem>>, vector<32x256xf32>
    tpu.vector_store %arg3[%c0_5, %c0_6], %7 {strides = array<i32>} : memref<32x256xf32, #tpu.memory_space<vmem>>, vector<32x256xf32>,
    return
  }
}

</mosaic_0001>

<bundles_post_ra>
// kernel: squeeze.38
= control target key start
LH: loop header
LB: loop body
LE: loop exit
PB: predicated region body
PF: predicated region fallthrough
CT: control target
= control target key end

     0   :  { %2 = vsyncpa [#allocation1], 0  ;;  %vm4_vm0 = vcmask 80896   ;;  %s71_s0 = inlined_call_operand.vmem [shape: f32[2,7,10], index: 0, kind: input, shape index: {}]   ;;  %s72_s1 = inlined_call_operand.hbm [shape: f32[14,10], index: 1, kind: output, shape index: {}]  }
   0x1   :  { %v3_v0 = vld [vmem:[%s71_s0] sm:$0x7f]   ;;  %v23_v1 = vld [vmem:[%s71_s0 + $0x8] sm:$0x7f]   ;;  %s51_s0 = smov [#allocation0]   ;;  %s16_s1 = sshll.u32 %s72_s1, 4  ;;  %s17_s1 = int_to_ptr.hbm [resolvable:$true] %s16_s1 }
   0x2   :  { %5 = vst.msk [vmem:[#allocation0] sm:$0x7f] %vm4_vm0, %v3_v0   ;;  %s14_s10 = sshll.u32 %s51_s0, 4  ;;  %s15_s10 = int_to_ptr.vmem [resolvable:$true] %s14_s10 }
   0x3   :  { %10 = vst.msk [vmem:[#allocation0 + $0x7] sm:$0x7f] %vm4_vm0, %v23_v1  }
   0x4   :  { %19 = dma.vmem_to_hbm [thread:$0]  %s15_s10, 256, %s17_s1, [#allocation1]  }
   0x5   :  { %49 = dma.done.wait [#allocation1], 256  }
   0x6   :  { %50 = vsyncadd [#allocation1], 4294967040 }
   0x7   :  { %22 = vsyncpa [#allocation1], 1 }

// kernel: aggregate_head_forward.5
= control target key start
LH: loop header
LB: loop body
LE: loop exit
PB: predicated region body
PF: predicated region fallthrough
CT: control target
= control target key end

     0   :  { %vm69_vm0 = vcmask 261120   ;;  %vm317_vm11 = vcmask 523264   ;;  %s640_s6 = inlined_call_operand.vmem [shape: f32[32,32], index: 6, kind: input, shape index: {}]   ;;  %s641_s1 = inlined_call_operand.vmem [shape: f32[2,16,32], index: 1, kind: input, shape index: {}]   ;;  %s642_s2 = inlined_call_operand.vmem [shape: f32[32,32], index: 2, kind: input, shape index: {}]   ;;  %s643_s7 = inlined_call_operand.vmem [shape: f32[1,32], index: 7, kind: input, shape index: {}, may-alias: {3,5,7,9}]   ;;  %s644_s3 = inlined_call_operand.vmem [shape: f32[1,32], index: 3, kind: input, shape index: {}, may-alias: {3,5,7,9}]   ;;  %s645_s0 = inlined_call_operand.vmem [shape: f32[8,32], index: 0, kind: input, shape index: {}]   ;;  %s646_s8 = inlined_call_operand.vmem [shape: f32[32,32], index: 8, kind: input, shape index: {}]   ;;  %s647_s9 = inlined_call_operand.vmem [shape: f32[1,32], index: 9, kind: input, shape index: {}, may-alias: {3,5,7,9}]   ;;  %s648_s5 = inlined_call_operand.vmem [shape: f32[1,32], index: 5, kind: input, shape index: {}, may-alias: {3,5,7,9}]   ;;  %s649_s4 = inlined_call_operand.vmem [shape: f32[32,32], index: 4, kind: input, shape index: {}]   ;;  %s650_s13 = inlined_call_operand.vmem [shape: f32[1,128], index: 13, kind: input, shape index: {}]   ;;  %s651_s12 = inlined_call_operand.vmem [shape: f32[32,128], index: 12, kind: input, shape index: {}]   ;;  %s652_s11 = inlined_call_operand.vmem [shape: f32[1,128], index: 11, kind: input, shape index: {}]   ;;  %s653_s10 = inlined_call_operand.vmem [shape: f32[32,128], index: 10, kind: input, shape index: {}]   ;;  %s654_s14 = inlined_call_operand.vmem [shape: f32[64,128], index: 14, kind: input, shape index: {}]   ;;  %s655_s15 = inlined_call_operand.vmem [shape: f32[1,128], index: 15, kind: input, shape index: {}]   ;;  %s656_s17 = inlined_call_operand.vmem [shape: f32[2,16,128], index: 17, kind: output, shape index: {1}]   ;;  %s657_s16 = inlined_call_operand.vmem [shape: f32[8,128], index: 16, kind: output, shape index: {0}]   ;;  %s658_s18 = inlined_call_operand.vmem [shape: f32[16,128], index: 18, kind: output, shape index: {2}]  }
   0x1   :  { %662 = sst [smem:[#allocation2_spill]] %s640_s6  ;;  %v57_v18 = vld [vmem:[%s645_s0] sm:$0xff]  ;;  %v174_v20 = vld [vmem:[%s646_s8 + $0x10] sm:$0xff]  ;;  %v175_v21 = vld [vmem:[%s646_s8 + $0x18] sm:$0xff] }
   0x2   :  { %663 = sst [smem:[#allocation3_spill]] %s641_s1  ;;  %v63_v19 = vpack.c.bf16 %v57_v18, %v57_v18  ;;  %v180_v22 = vpack.c.bf16 %v175_v21, %v174_v20  ;;  %v172_v23 = vld [vmem:[%s646_s8] sm:$0xff]  ;;  %v173_v24 = vld [vmem:[%s646_s8 + $0x8] sm:$0xff]  ;;  %v91_v45 = vld [vmem:[%s649_s4 + $0x10] sm:$0xff] }
   0x3   :  { %664 = sst [smem:[#allocation4_spill]] %s642_s2  ;;  %v179_v25 = vpack.c.bf16 %v173_v24, %v172_v23  ;;  %v365_v27 = vld [vmem:[%s643_s7] ss:$0 sm:$0xff]  ;;  %v92_v46 = vld [vmem:[%s649_s4 + $0x18] sm:$0xff]  ;;  %v90_v49 = vld [vmem:[%s649_s4 + $0x8] sm:$0xff] }
   0x4   :  { %s665_s29 = sld [smem:[#allocation2_spill]]  ;;  %196 = vmatpush.bf16.msra.mxu3 %v180_v22  ;;  %v89_v47 = vld [vmem:[%s649_s4] sm:$0xff]  ;;  %v96_v48 = vpack.c.bf16 %v92_v46, %v91_v45  ;;  %v228_v58 = vld [vmem:[%s651_s12 + $0x10] sm:$0xff]  ;;  %v229_v59 = vld [vmem:[%s651_s12 + $0x18] sm:$0xff] }
   0x5   :  { %s666_s23 = sld [smem:[#allocation3_spill]]  ;;  %v95_v50 = vpack.c.bf16 %v90_v49, %v89_v47  ;;  %v366_v51 = vld [vmem:[%s644_s3] ss:$0 sm:$0xff]  ;;  %v266_v60 = vpack.c.bf16 %v229_v59, %v228_v58  ;;  %v227_v62 = vld [vmem:[%s651_s12 + $0x8] sm:$0xff]  ;;  %v223_v20 = vld [vmem:[%s653_s10 + $0x10] sm:$0xff] }
   0x6   :  { %s667_s26 = sld [smem:[#allocation4_spill]]  ;;  %109 = vmatpush.bf16.msra.mxu1 %v96_v48  ;;  %v226_v61 = vld [vmem:[%s651_s12] sm:$0xff]  ;;  %v224_v21 = vld [vmem:[%s653_s10 + $0x18] sm:$0xff]  ;;  %v222_v24 = vld [vmem:[%s653_s10 + $0x8] sm:$0xff] }
   0x7   :  { %v265_v63 = vpack.c.bf16 %v227_v62, %v226_v61  ;;  %v221_v22 = vld [vmem:[%s653_s10] sm:$0xff]  ;;  %v242_v23 = vpack.c.bf16 %v224_v21, %v223_v20 }
   0x8   :  { %197 = vmatpush.bf16.msra.mxu3 %v179_v25  ;;  %v237_v25 = vld [vmem:[%s654_s14 + $0x30] sm:$0xff]  ;;  %v369_v45 = vld [vmem:[%s650_s13] ss:$0 sm:$0xff] }
   0xa   :  { %v125_v0 = vld [vmem:[%s665_s29 + $0x10] sm:$0xff]  ;;  %v126_v1 = vld [vmem:[%s665_s29 + $0x18] sm:$0xff]  ;;  %v123_v2 = vld [vmem:[%s665_s29] sm:$0xff]  ;;  %110 = vmatpush.bf16.msra.mxu1 %v95_v50 }
   0xb   :  { %v131_v3 = vpack.c.bf16 %v126_v1, %v125_v0  ;;  %v124_v4 = vld [vmem:[%s665_s29 + $0x8] sm:$0xff]  ;;  %v119_v5 = vld [vmem:[%s666_s23] sm:$0xff]  ;;  %v121_v12 = vld [vmem:[%s666_s23 + $0x10] sm:$0xff] }
   0xc   :  { %v60_v6 = vld [vmem:[%s667_s26 + $0x10] sm:$0xff]  ;;  %v130_v7 = vpack.c.bf16 %v124_v4, %v123_v2  ;;  %v120_v8 = vld [vmem:[%s666_s23 + $0x8] sm:$0xff]  ;;  %v61_v9 = vld [vmem:[%s667_s26 + $0x18] sm:$0xff] }
   0xd   :  { %147 = vmatpush.bf16.msra.mxu2 %v131_v3  ;;  %v65_v10 = vpack.c.bf16 %v61_v9, %v60_v6  ;;  %v128_v11 = vpack.c.bf16 %v120_v8, %v119_v5  ;;  %v122_v13 = vld [vmem:[%s666_s23 + $0x18] sm:$0xff]  ;;  %v58_v15 = vld [vmem:[%s667_s26] sm:$0xff]  ;;  %v59_v16 = vld [vmem:[%s667_s26 + $0x8] sm:$0xff] }
   0xe   :  { %v129_v14 = vpack.c.bf16 %v122_v13, %v121_v12  ;;  %v64_v17 = vpack.c.bf16 %v59_v16, %v58_v15  ;;  %282 = vmatpush.bf16.msrb.mxu1 %v266_v60  ;;  %v367_v1 = vld [vmem:[%s647_s9] ss:$0 sm:$0xff]  ;;  %s372_s9 = smov 32  }
   0xf   :  { %79 = vmatpush.bf16.msra.mxu0 %v65_v10  ;;  %v370_v60 = vld [vmem:[%s652_s11] ss:$0 sm:$0xff] }
  0x11   :  { %148 = vmatpush.bf16.msra.mxu2 %v130_v7 }
  0x12   :  { %283 = vmatpush.bf16.msrb.mxu1 %v265_v63 }
  0x13   :  { %80 = vmatpush.bf16.msra.mxu0 %v64_v17 }
  0x14   :  { %351 = vmatmul.msk.bf16.vlgmr.msra.gmra.mxu2 %vm69_vm0, %v128_v11 }
  0x16   :  { %349 = vmatmul.msk.bf16.vlgmr.msra.gmra.mxu0 %vm69_vm0, %v63_v19 }
  0x17   :  { %255 = vmatpush.bf16.msrb.mxu0 %v242_v23 }
  0x24   :  { %352 = vmatmul.msk.bf16.gmra.mxu2 %vm69_vm0, %v129_v14 }
  0x93   :  { %v82_v52 = vpop.f32.mrf.mxu0 }
  0x94   :  { %v83_v53 = vadd.f32 %v366_v51, %v82_v52 }
  0x96   :  { %vm86_vm5 = vcmp.ge.f32.partialorder %v83_v53, 0.0  ;;  %v87_v54 = vmul.f32 0.01, %v83_v53 }
  0x97   :  { %v150_v26 = vpop.f32.mrf.mxu2 }
  0x98   :  { %v151_v28 = vadd.f32 %v365_v27, %v150_v26  ;;  %v88_v55 = vsel %vm86_vm5, %v83_v53, %v87_v54  ;;  %v238_v26 = vld [vmem:[%s654_s14 + $0x38] sm:$0xff] }
  0x99   :  { %v94_v56 = vpack.c.bf16 %v88_v55, %v88_v55 }
  0x9a   :  { %v164_v30 = vmul.f32 0.01, %v151_v28  ;;  %vm160_vm1 = vcmp.ge.f32.partialorder %v151_v28, 0.0 }
  0x9b   :  { %350 = vmatmul.msk.bf16.vlgmr.msra.gmra.mxu1 %vm69_vm0, %v94_v56  ;;  %v84_v57 = vpop.f32.mrf.mxu0 }
  0x9c   :  { %v168_v33 = vsel %vm160_vm1, %v151_v28, %v164_v30  ;;  %v313_v28 = vpack.c.bf16 %v238_v26, %v237_v25  ;;  %v236_v30 = vld [vmem:[%s654_s14 + $0x28] sm:$0xff] }
  0x9f   :  { %v152_v29 = vpop.f32.mrf.mxu2 }
  0xa0   :  { %v153_v31 = vadd.f32 %v365_v27, %v152_v29  ;;  %v235_v29 = vld [vmem:[%s654_s14 + $0x20] sm:$0xff] }
  0xa2   :  { %vm161_vm2 = vcmp.ge.f32.partialorder %v153_v31, 0.0  ;;  %v165_v32 = vmul.f32 0.01, %v153_v31 }
  0xa4   :  { %v169_v34 = vsel %vm161_vm2, %v153_v31, %v165_v32  ;;  %v312_v31 = vpack.c.bf16 %v236_v30, %v235_v29  ;;  %v368_v32 = vld [vmem:[%s648_s5] ss:$0 sm:$0xff] }
  0xa5   :  { %v177_v35 = vpack.c.bf16 %v169_v34, %v168_v33 }
  0xa7   :  { %v155_v36 = vpop.f32.mrf.mxu2  ;;  %353 = vmatmul.msk.bf16.vlgmr.msra.gmra.mxu3 %vm69_vm0, %v177_v35 }
  0xa8   :  { %v156_v37 = vadd.f32 %v365_v27, %v155_v36 }
  0xaa   :  { %v166_v39 = vmul.f32 0.01, %v156_v37  ;;  %vm162_vm3 = vcmp.ge.f32.partialorder %v156_v37, 0.0 }
  0xac   :  { %v170_v42 = vsel %vm162_vm3, %v156_v37, %v166_v39  ;;  %v233_v39 = vld [vmem:[%s654_s14 + $0x10] sm:$0xff] }
  0xaf   :  { %v157_v38 = vpop.f32.mrf.mxu2 }
  0xb0   :  { %v158_v40 = vadd.f32 %v365_v27, %v157_v38  ;;  %v241_v27 = vpack.c.bf16 %v222_v24, %v221_v22 }
  0xb2   :  { %vm163_vm4 = vcmp.ge.f32.partialorder %v158_v40, 0.0  ;;  %v167_v41 = vmul.f32 0.01, %v158_v40  ;;  %256 = vmatpush.bf16.msrb.mxu0 %v241_v27 }
  0xb4   :  { %v171_v43 = vsel %vm163_vm4, %v158_v40, %v167_v41  ;;  %v234_v40 = vld [vmem:[%s654_s14 + $0x18] sm:$0xff] }
  0xb5   :  { %v178_v44 = vpack.c.bf16 %v171_v43, %v170_v42  ;;  %v311_v41 = vpack.c.bf16 %v234_v40, %v233_v39  ;;  %v231_v42 = vld [vmem:[%s654_s14] sm:$0xff]  ;;  %v232_v43 = vld [vmem:[%s654_s14 + $0x8] sm:$0xff] }
  0xb6   :  { %325 = vmatpush.bf16.msra.mxu0 %v313_v28 }
  0xb7   :  { %354 = vmatmul.msk.bf16.gmra.mxu3 %vm69_vm0, %v178_v44  ;;  %v310_v44 = vpack.c.bf16 %v232_v43, %v231_v42 }
  0xba   :  { %326 = vmatpush.bf16.msra.mxu0 %v312_v31 }
  0xbe   :  { %327 = vmatpush.bf16.msra.mxu0 %v311_v41 }
  0xc2   :  { %328 = vmatpush.bf16.msra.mxu0 %v310_v44 }
 0x118   :  { %v112_v33 = vpop.f32.mrf.mxu1 }
 0x119   :  { %v113_v34 = vadd.f32 %v368_v32, %v112_v33 }
 0x11b   :  { %vm116_vm10 = vcmp.ge.f32.partialorder %v113_v34, 0.0  ;;  %v117_v35 = vmul.f32 0.01, %v113_v34 }
 0x11d   :  { %v118_v36 = vsel %vm116_vm10, %v113_v34, %v117_v35 }
 0x11e   :  { %v240_v37 = vpack.c.bf16 %v118_v36, %v118_v36 }
 0x120   :  { %355 = vmatmul.msk.bf16.vlgmr.msrb.gmra.mxu0 %vm69_vm0, %v240_v37  ;;  %v114_v38 = vpop.f32.mrf.mxu1 }
 0x12a   :  { %v199_v0 = vpop.f32.mrf.mxu3 }
 0x12b   :  { %v200_v2 = vadd.f32 %v367_v1, %v199_v0  ;;  %v371_v0 = vld [vmem:[%s655_s15] ss:$0 sm:$0xff] }
 0x12d   :  { %v213_v4 = vmul.f32 0.01, %v200_v2  ;;  %vm209_vm6 = vcmp.ge.f32.partialorder %v200_v2, 0.0 }
 0x12f   :  { %v558_v7 = vsel %vm209_vm6, %v200_v2, %v213_v4 }
 0x132   :  { %v201_v3 = vpop.f32.mrf.mxu3 }
 0x133   :  { %v202_v5 = vadd.f32 %v367_v1, %v201_v3 }
 0x135   :  { %vm210_vm7 = vcmp.ge.f32.partialorder %v202_v5, 0.0  ;;  %v214_v6 = vmul.f32 0.01, %v202_v5 }
 0x137   :  { %v560_v8 = vsel %vm210_vm7, %v202_v5, %v214_v6 }
 0x138   :  { %v263_v9 = vpack.c.bf16 %v560_v8, %v558_v7 }
 0x13a   :  { %v204_v10 = vpop.f32.mrf.mxu3  ;;  %356 = vmatmul.msk.bf16.vlgmr.msrb.gmra.mxu1 %vm69_vm0, %v263_v9 }
 0x13b   :  { %v205_v11 = vadd.f32 %v367_v1, %v204_v10 }
 0x13d   :  { %v215_v13 = vmul.f32 0.01, %v205_v11  ;;  %vm211_vm8 = vcmp.ge.f32.partialorder %v205_v11, 0.0 }
 0x13f   :  { %v219_v16 = vsel %vm211_vm8, %v205_v11, %v215_v13 }
 0x142   :  { %v206_v12 = vpop.f32.mrf.mxu3 }
 0x143   :  { %v207_v14 = vadd.f32 %v367_v1, %v206_v12 }
 0x145   :  { %v216_v15 = vmul.f32 0.01, %v207_v14  ;;  %vm212_vm9 = vcmp.ge.f32.partialorder %v207_v14, 0.0 }
 0x147   :  { %v220_v17 = vsel %vm212_vm9, %v207_v14, %v216_v15 }
 0x148   :  { %v360_v18 = vpack.i.bf16 %v220_v17, %v219_v16  ;;  %v264_v19 = vpack.c.bf16 %v220_v17, %v219_v16 }
 0x14a   :  { %361 = vrot.lane.b32.xlu0 %v360_v18, %s372_s9  ;;  %357 = vmatmul.msk.bf16.gmra.mxu1 %vm69_vm0, %v264_v19 }
 0x19d   :  { %v258_v61 = vpop.f32.mrf.mxu0 }
 0x19e   :  { %v259_v62 = vadd.f32 %v370_v60, %v258_v61 }
 0x1a0   :  { %262 = vst [vmem:[%s657_s16] sm:$0xff] %v259_v62 }
 0x1a5   :  { %v260_v63 = vpop.f32.mrf.mxu0 }
 0x1b7   :  { %v285_v46 = vpop.f32.mrf.mxu1 }
 0x1b8   :  { %v286_v47 = vadd.f32 %v369_v45, %v285_v46 }
 0x1ba   :  { %295 = vst [vmem:[%s656_s17] sm:$0xff] %v286_v47 }
 0x1bc   :  { %v362_v48 = vpop.permute.xlu0 %361 }
 0x1bd   :  { %v364_v49 = vunpack.i.h.bf16 %v362_v48  ;;  %v363_v50 = vunpack.i.l.bf16 %v362_v48 }
 0x1bf   :  { %v307_v51 = vsel %vm69_vm0, %v558_v7, %v363_v50  ;;  %v308_v52 = vsel %vm69_vm0, %v560_v8, %v364_v49  ;;  %v287_v53 = vpop.f32.mrf.mxu1 }
 0x1c0   :  { %v309_v54 = vpack.c.bf16 %v308_v52, %v307_v51  ;;  %v288_v55 = vadd.f32 %v369_v45, %v287_v53 }
 0x1c2   :  { %296 = vst [vmem:[%s656_s17 + $0x8] sm:$0xff] %v288_v55  ;;  %358 = vmatmul.msk.bf16.vlgmr.msra.gmra.mxu0 %vm317_vm11, %v309_v54 }
 0x1c7   :  { %v290_v56 = vpop.f32.mrf.mxu1 }
 0x1c8   :  { %v291_v57 = vadd.f32 %v369_v45, %v290_v56 }
 0x1ca   :  { %297 = vst [vmem:[%s656_s17 + $0x10] sm:$0xff] %v291_v57 }
 0x1cf   :  { %v292_v58 = vpop.f32.mrf.mxu1 }
 0x1d0   :  { %v293_v59 = vadd.f32 %v369_v45, %v292_v58 }
 0x1d2   :  { %298 = vst [vmem:[%s656_s17 + $0x18] sm:$0xff] %v293_v59 }
 0x23f   :  { %v330_v1 = vpop.f32.mrf.mxu0 }
 0x240   :  { %v331_v2 = vadd.f32 %v371_v0, %v330_v1 }
 0x242   :  { %335 = vst [vmem:[%s658_s18] sm:$0xff] %v331_v2 }
 0x247   :  { %v332_v3 = vpop.f32.mrf.mxu0 }
 0x248   :  { %v333_v4 = vadd.f32 %v371_v0, %v332_v3 }
 0x24a   :  { %336 = vst [vmem:[%s658_s18 + $0x8] sm:$0xff] %v333_v4 }

// kernel: squeeze.40
= control target key start
LH: loop header
LB: loop body
LE: loop exit
PB: predicated region body
PF: predicated region fallthrough
CT: control target
= control target key end

     0   :  { %vm7_vm0 = vcmask 1043458   ;;  %vm11_vm1 = vcmask 1045508   ;;  %vm15_vm2 = vcmask 1047558   ;;  %s36_s6 = smov 3  ;;  %s39_s7 = smov 12  ;;  %s1252_s0 = inlined_call_operand.vmem [shape: f32[224,3], index: 0, kind: input, shape index: {}]   ;;  %s1253_s1 = inlined_call_operand.hbm [shape: f32[14,48], index: 1, kind: output, shape index: {}]  }
   0x1   :  { %v650_v0 = vld [vmem:[%s1252_s0 + $0xf] ss:$16 sm:%s36_s6]   ;;  %s44_s12 = smov 48  ;;  %s49_s13 = smov 192 }
   0x2   :  { %v651_v1 = vld [vmem:[%s1252_s0 + $0xf] ss:$16 sm:%s39_s7]   ;;  %s76_s18 = smov 3  ;;  %s79_s21 = smov 12 }
   0x3   :  { %v42_v2 = vsel %vm7_vm0, %v651_v1, %v650_v0  ;;  %v652_v3 = vld [vmem:[%s1252_s0 + $0xf] ss:$16 sm:%s44_s12]   ;;  %v657_v6 = vld [vmem:[%s1252_s0 + $0xe] ss:$16 sm:%s76_s18]   ;;  %s84_s22 = smov 48 }
   0x4   :  { %v653_v4 = vld [vmem:[%s1252_s0 + $0xf] ss:$16 sm:%s49_s13]   ;;  %v47_v5 = vsel %vm11_vm1, %v652_v3, %v42_v2 }
   0x5   :  { %2 = vsyncpa [#allocation1], 0  ;;  %v52_v7 = vsel %vm15_vm2, %v653_v4, %v47_v5  ;;  %v658_v8 = vld [vmem:[%s1252_s0 + $0xe] ss:$16 sm:%s79_s21]   ;;  %s89_s27 = smov 192  ;;  %s797_s28 = smov 45  }
   0x6   :  { %v659_v9 = vld [vmem:[%s1252_s0 + $0xe] ss:$16 sm:%s84_s22]   ;;  %53 = vrot.lane.b32.xlu0 %v52_v7, %s797_s28  ;;  %v82_v10 = vsel %vm7_vm0, %v658_v8, %v657_v6  ;;  %s58_s2 = smov 3  ;;  %s61_s3 = smov 12  ;;  %vm17_vm3 = vcmask 23552   ;;  %vm55_vm4 = vcmask 392552  }
   0x7   :  { %v660_v11 = vld [vmem:[%s1252_s0 + $0xe] ss:$16 sm:%s89_s27]   ;;  %v87_v12 = vsel %vm11_vm1, %v659_v9, %v82_v10  ;;  %v654_v13 = vld [vmem:[%s1252_s0 + $0x8f] ss:$16 sm:%s58_s2]   ;;  %s66_s8 = smov 48  ;;  %s98_s9 = smov 3 }
   0x8   :  { %v655_v14 = vld [vmem:[%s1252_s0 + $0x8f] ss:$16 sm:%s61_s3]   ;;  %v92_v15 = vsel %vm15_vm2, %v660_v11, %v87_v12  ;;  %v661_v18 = vld [vmem:[%s1252_s0 + $0x8e] ss:$16 sm:%s98_s9]   ;;  %s101_s14 = smov 12  ;;  %s106_s15 = smov 48 }
   0x9   :  { %v64_v16 = vsel %vm7_vm0, %v655_v14, %v654_v13  ;;  %v656_v17 = vld [vmem:[%s1252_s0 + $0x8f] ss:$16 sm:%s66_s8]   ;;  %s798_s16 = smov 42   ;;  %v662_v19 = vld [vmem:[%s1252_s0 + $0x8e] ss:$16 sm:%s101_s14]   ;;  %s156_s19 = smov 3 }
   0xa   :  { %93 = vrot.lane.b32.xlu1 %v92_v15, %s798_s16  ;;  %s159_s20 = smov 12  ;;  %v671_v20 = vld [vmem:[%s1252_s0 + $0xc] ss:$16 sm:%s156_s19]   ;;  %s164_s23 = smov 48  ;;  %v69_v21 = vsel %vm11_vm1, %v656_v17, %v64_v16  ;;  %v104_v22 = vsel %vm7_vm0, %v662_v19, %v661_v18  ;;  %vm95_vm5 = vcmask 367952   ;;  %vm135_vm6 = vcmask 343352  }
   0xb   :  { %v663_v23 = vld [vmem:[%s1252_s0 + $0x8e] ss:$16 sm:%s106_s15]   ;;  %v672_v24 = vld [vmem:[%s1252_s0 + $0xc] ss:$16 sm:%s159_s20]   ;;  %s169_s29 = smov 192  ;;  %s178_s30 = smov 3 }
   0xc   :  { %s181_s2 = smov 12  ;;  %v162_v25 = vsel %vm7_vm0, %v672_v24, %v671_v20  ;;  %v673_v26 = vld [vmem:[%s1252_s0 + $0xc] ss:$16 sm:%s164_s23]   ;;  %v109_v27 = vsel %vm11_vm1, %v663_v23, %v104_v22  ;;  %s186_s6 = smov 48  ;;  %vm175_vm7 = vcmask 318752   ;;  %vm215_vm8 = vcmask 294152  }
   0xd   :  { %v674_v28 = vld [vmem:[%s1252_s0 + $0xc] ss:$16 sm:%s169_s29]   ;;  %s218_s7 = smov 3  ;;  %s116_s12 = smov 3  ;;  %v167_v31 = vsel %vm11_vm1, %v673_v26, %v162_v25  ;;  %vm255_vm9 = vcmask 269552   ;;  %vm295_vm10 = vcmask 244952  }
   0xe   :  { %70 = vrot.lane.b32.xlu0 %v69_v21, %s797_s28  ;;  %v675_v29 = vld [vmem:[%s1252_s0 + $0x8c] ss:$16 sm:%s178_s30]   ;;  %s119_s13 = smov 12  ;;  %s124_s19 = smov 48  ;;  %v172_v38 = vsel %vm15_vm2, %v674_v28, %v167_v31  ;;  %vm335_vm11 = vcmask 220352   ;;  %vm375_vm12 = vcmask 195752  }
   0xf   :  { %v676_v30 = vld [vmem:[%s1252_s0 + $0x8c] ss:$16 sm:%s181_s2]   ;;  %v664_v32 = vld [vmem:[%s1252_s0 + $0xd] ss:$16 sm:%s116_s12]   ;;  %s129_s20 = smov 192  ;;  %s236_s25 = smov 3 }
  0x10   :  { %v665_v33 = vld [vmem:[%s1252_s0 + $0xd] ss:$16 sm:%s119_s13]   ;;  %s239_s26 = smov 12  ;;  %v184_v39 = vsel %vm7_vm0, %v676_v30, %v675_v29  ;;  %v677_v40 = vld [vmem:[%s1252_s0 + $0x8c] ss:$16 sm:%s186_s6]   ;;  %s226_s3 = smov 48 }
  0x11   :  { %v122_v34 = vsel %vm7_vm0, %v665_v33, %v664_v32  ;;  %v666_v35 = vld [vmem:[%s1252_s0 + $0xd] ss:$16 sm:%s124_s19]   ;;  %v682_v41 = vld [vmem:[%s1252_s0 + $0x8b] ss:$16 sm:%s218_s7]   ;;  %s799_s5 = smov 39   ;;  %s244_s6 = smov 48  ;;  %v189_v46 = vsel %vm11_vm1, %v677_v40, %v184_v39 }
  0x12   :  { %110 = vrot.lane.b32.xlu1 %v109_v27, %s798_s16  ;;  %s221_s16 = smov 12  ;;  %v127_v36 = vsel %vm11_vm1, %v666_v35, %v122_v34  ;;  %v667_v37 = vld [vmem:[%s1252_s0 + $0xd] ss:$16 sm:%s129_s20]   ;;  %s276_s11 = smov 3  ;;  %vm415_vm13 = vcmask 171152   ;;  %vm455_vm14 = vcmask 146552  }
  0x13   :  { %v132_v42 = vsel %vm15_vm2, %v667_v37, %v127_v36  ;;  %v683_v43 = vld [vmem:[%s1252_s0 + $0x8b] ss:$16 sm:%s221_s16]   ;;  %v685_v44 = vld [vmem:[%s1252_s0 + $0xa] ss:$16 sm:%s236_s25]   ;;  %s800_s12 = smov 36   ;;  %s279_s15 = smov 12 }
  0x14   :  { %133 = vrot.lane.b32.xlu2 %v132_v42, %s799_s5  ;;  %v686_v45 = vld [vmem:[%s1252_s0 + $0xa] ss:$16 sm:%s239_s26]   ;;  %s138_s17 = smov 3  ;;  %s141_s21 = smov 12  ;;  %v224_v50 = vsel %vm7_vm0, %v683_v43, %v682_v41  ;;  %vm495_vm15 = vcmask 121952  }
  0x15   :  { %v684_v47 = vld [vmem:[%s1252_s0 + $0x8b] ss:$16 sm:%s226_s3]   ;;  %v687_v48 = vld [vmem:[%s1252_s0 + $0xa] ss:$16 sm:%s244_s6]   ;;  %s146_s22 = smov 48  ;;  %v242_v51 = vsel %vm7_vm0, %v686_v45, %v685_v44  ;;  %s249_s23 = smov 192 }
  0x16   :  { %173 = vrot.lane.b32.xlu0 %v172_v38, %s800_s12  ;;  %v668_v49 = vld [vmem:[%s1252_s0 + $0x8d] ss:$16 sm:%s138_s17]   ;;  %s284_s29 = smov 48  ;;  %s289_s28 = smov 192  ;;  %v229_v58 = vsel %vm11_vm1, %v684_v47, %v224_v50  ;;  %v247_v59 = vsel %vm11_vm1, %v687_v48, %v242_v51 }
  0x17   :  { %v669_v52 = vld [vmem:[%s1252_s0 + $0x8d] ss:$16 sm:%s141_s21]   ;;  %v692_v55 = vld [vmem:[%s1252_s0 + $0x9] ss:$16 sm:%s276_s11]   ;;  %s298_s8 = smov 3  ;;  %s196_s9 = smov 3 }
  0x18   :  { %v670_v53 = vld [vmem:[%s1252_s0 + $0x8d] ss:$16 sm:%s146_s22]   ;;  %v144_v54 = vsel %vm7_vm0, %v669_v52, %v668_v49  ;;  %v693_v56 = vld [vmem:[%s1252_s0 + $0x9] ss:$16 sm:%s279_s15]   ;;  %s301_s13 = smov 12  ;;  %s209_s19 = smov 192 }
  0x19   :  { %v149_v57 = vsel %vm11_vm1, %v670_v53, %v144_v54  ;;  %v688_v60 = vld [vmem:[%s1252_s0 + $0xa] ss:$16 sm:%s249_s23]   ;;  %v694_v61 = vld [vmem:[%s1252_s0 + $0x9] ss:$16 sm:%s284_s29]   ;;  %v282_v62 = vsel %vm7_vm0, %v693_v56, %v692_v55  ;;  %s801_s20 = smov 33   ;;  %s306_s24 = smov 48 }
  0x1a   :  { %190 = vrot.lane.b32.xlu1 %v189_v46, %s800_s12  ;;  %s204_s12 = smov 48  ;;  %v678_v63 = vld [vmem:[%s1252_s0 + $0xb] ss:$16 sm:%s196_s9]   ;;  %v252_v1 = vsel %vm15_vm2, %v688_v60, %v247_v59  ;;  %s338_s25 = smov 3  ;;  %v287_v7 = vsel %vm11_vm1, %v694_v61, %v282_v62 }
  0x1b   :  { %v680_v3 = vld [vmem:[%s1252_s0 + $0xb] ss:$16 sm:%s204_s12]   ;;  %v695_v4 = vld [vmem:[%s1252_s0 + $0x9] ss:$16 sm:%s289_s28]   ;;  %s341_s4 = smov 12  ;;  %s356_s28 = smov 3 }
  0x1c   :  { %150 = vrot.lane.b32.xlu2 %v149_v57, %s799_s5  ;;  %s199_s5 = smov 12  ;;  %v681_v6 = vld [vmem:[%s1252_s0 + $0xb] ss:$16 sm:%s209_s19]   ;;  %s802_s6 = smov 30   ;;  %v292_v12 = vsel %vm15_vm2, %v695_v4, %v287_v7 }
  0x1d   :  { %v679_v0 = vld [vmem:[%s1252_s0 + $0xb] ss:$16 sm:%s199_s5]   ;;  %v696_v8 = vld [vmem:[%s1252_s0 + $0x89] ss:$16 sm:%s298_s8]   ;;  %s359_s9 = smov 12  ;;  %s258_s10 = smov 3 }
  0x1e   :  { %230 = vrot.lane.b32.xlu0 %v229_v58, %s801_s20  ;;  %v202_v2 = vsel %vm7_vm0, %v679_v0, %v678_v63  ;;  %v697_v9 = vld [vmem:[%s1252_s0 + $0x89] ss:$16 sm:%s301_s13]   ;;  %s261_s17 = smov 12  ;;  %s266_s18 = smov 48 }
  0x1f   :  { %v207_v5 = vsel %vm11_vm1, %v680_v3, %v202_v2  ;;  %v698_v11 = vld [vmem:[%s1252_s0 + $0x89] ss:$16 sm:%s306_s24]   ;;  %v304_v13 = vsel %vm7_vm0, %v697_v9, %v696_v8  ;;  %v703_v14 = vld [vmem:[%s1252_s0 + $0x88] ss:$16 sm:%s338_s25]   ;;  %s346_s19 = smov 48  ;;  %s364_s23 = smov 48 }
  0x20   :  { %v212_v10 = vsel %vm15_vm2, %v681_v6, %v207_v5  ;;  %v704_v15 = vld [vmem:[%s1252_s0 + $0x88] ss:$16 sm:%s341_s4]   ;;  %v706_v16 = vld [vmem:[%s1252_s0 + $0x7] ss:$16 sm:%s356_s28]   ;;  %s396_s24 = smov 3  ;;  %s803_s27 = smov 27   ;;  %v309_v20 = vsel %vm11_vm1, %v698_v11, %v304_v13 }
  0x21   :  { %v689_v17 = vld [vmem:[%s1252_s0 + $0x8a] ss:$16 sm:%s258_s10]   ;;  %v707_v18 = vld [vmem:[%s1252_s0 + $0x7] ss:$16 sm:%s359_s9]   ;;  %s399_s29 = smov 12  ;;  %s369_s28 = smov 192  ;;  %v344_v24 = vsel %vm7_vm0, %v704_v15, %v703_v14 }
  0x22   :  { %253 = vrot.lane.b32.xlu1 %v252_v1, %s802_s6  ;;  %v690_v19 = vld [vmem:[%s1252_s0 + $0x8a] ss:$16 sm:%s261_s17]   ;;  %s316_s7 = smov 3  ;;  %v362_v25 = vsel %vm7_vm0, %v707_v18, %v706_v16  ;;  %s319_s5 = smov 12 }
  0x23   :  { %v264_v21 = vsel %vm7_vm0, %v690_v19, %v689_v17  ;;  %v691_v22 = vld [vmem:[%s1252_s0 + $0x8a] ss:$16 sm:%s266_s18]   ;;  %v705_v23 = vld [vmem:[%s1252_s0 + $0x88] ss:$16 sm:%s346_s19]   ;;  %s324_s12 = smov 48  ;;  %s404_s15 = smov 48 }
  0x24   :  { %213 = vrot.lane.b32.xlu2 %v212_v10, %s801_s20  ;;  %v708_v26 = vld [vmem:[%s1252_s0 + $0x7] ss:$16 sm:%s364_s23]   ;;  %v269_v29 = vsel %vm11_vm1, %v691_v22, %v264_v21  ;;  %v349_v32 = vsel %vm11_vm1, %v705_v23, %v344_v24  ;;  %s409_s25 = smov 192  ;;  %s804_s30 = smov 24  }
  0x25   :  { %v713_v27 = vld [vmem:[%s1252_s0 + $0x6] ss:$16 sm:%s396_s24]   ;;  %v699_v30 = vld [vmem:[%s1252_s0 + $0x8] ss:$16 sm:%s316_s7]   ;;  %v367_v33 = vsel %vm11_vm1, %v708_v26, %v362_v25  ;;  %s329_s24 = smov 192  ;;  %s426_s7 = smov 48 }
  0x26   :  { %293 = vrot.lane.b32.xlu0 %v292_v12, %s803_s27  ;;  %v714_v28 = vld [vmem:[%s1252_s0 + $0x6] ss:$16 sm:%s399_s29]   ;;  %s421_s29 = smov 12  ;;  %s458_s8 = smov 3 }
  0x27   :  { %v700_v31 = vld [vmem:[%s1252_s0 + $0x8] ss:$16 sm:%s319_s5]   ;;  %v709_v34 = vld [vmem:[%s1252_s0 + $0x7] ss:$16 sm:%s369_s28]   ;;  %v402_v37 = vsel %vm7_vm0, %v714_v28, %v713_v27  ;;  %s381_s13 = smov 12  ;;  %s805_s14 = smov 21  }
  0x28   :  { %v322_v35 = vsel %vm7_vm0, %v700_v31, %v699_v30  ;;  %v701_v36 = vld [vmem:[%s1252_s0 + $0x8] ss:$16 sm:%s324_s12]   ;;  %v715_v38 = vld [vmem:[%s1252_s0 + $0x6] ss:$16 sm:%s404_s15]   ;;  %v372_v39 = vsel %vm15_vm2, %v709_v34, %v367_v33  ;;  %s378_s12 = smov 3  ;;  %s461_s15 = smov 12 }
  0x29   :  { %v327_v40 = vsel %vm11_vm1, %v701_v36, %v322_v35  ;;  %v702_v41 = vld [vmem:[%s1252_s0 + $0x8] ss:$16 sm:%s329_s24]   ;;  %v716_v42 = vld [vmem:[%s1252_s0 + $0x6] ss:$16 sm:%s409_s25]   ;;  %v407_v43 = vsel %vm11_vm1, %v715_v38, %v402_v37  ;;  %s476_s19 = smov 3  ;;  %s479_s20 = smov 12 }
  0x2a   :  { %310 = vrot.lane.b32.xlu1 %v309_v20, %s803_s27  ;;  %s418_s27 = smov 3  ;;  %v718_v45 = vld [vmem:[%s1252_s0 + $0x86] ss:$16 sm:%s421_s29]   ;;  %v332_v46 = vsel %vm15_vm2, %v702_v41, %v327_v40  ;;  %v412_v48 = vsel %vm15_vm2, %v716_v42, %v407_v43  ;;  %s466_s29 = smov 48 }
  0x2b   :  { %v717_v44 = vld [vmem:[%s1252_s0 + $0x86] ss:$16 sm:%s418_s27]   ;;  %v724_v50 = vld [vmem:[%s1252_s0 + $0x85] ss:$16 sm:%s458_s8]   ;;  %s439_s8 = smov 12  ;;  %s806_s9 = smov 18  }
  0x2c   :  { %270 = vrot.lane.b32.xlu2 %v269_v29, %s802_s6  ;;  %v719_v47 = vld [vmem:[%s1252_s0 + $0x86] ss:$16 sm:%s426_s7]   ;;  %v424_v49 = vsel %vm7_vm0, %v718_v45, %v717_v44  ;;  %s386_s6 = smov 48  ;;  %s436_s7 = smov 3 }
  0x2d   :  { %v710_v51 = vld [vmem:[%s1252_s0 + $0x87] ss:$16 sm:%s378_s12]   ;;  %v725_v53 = vld [vmem:[%s1252_s0 + $0x85] ss:$16 sm:%s461_s15]   ;;  %v429_v56 = vsel %vm11_vm1, %v719_v47, %v424_v49  ;;  %s516_s17 = smov 3  ;;  %s519_s18 = smov 12 }
  0x2e   :  { %350 = vrot.lane.b32.xlu0 %v349_v32, %s804_s30  ;;  %v711_v52 = vld [vmem:[%s1252_s0 + $0x87] ss:$16 sm:%s381_s13]   ;;  %v464_v61 = vsel %vm7_vm0, %v725_v53, %v724_v50  ;;  %s444_s23 = smov 48  ;;  %s524_s27 = smov 48 }
  0x2f   :  { %v727_v54 = vld [vmem:[%s1252_s0 + $0x4] ss:$16 sm:%s476_s19]   ;;  %v384_v57 = vsel %vm7_vm0, %v711_v52, %v710_v51  ;;  %v712_v58 = vld [vmem:[%s1252_s0 + $0x87] ss:$16 sm:%s386_s6]   ;;  %s489_s19 = smov 192  ;;  %s449_s4 = smov 192 }
  0x30   :  { %v728_v55 = vld [vmem:[%s1252_s0 + $0x4] ss:$16 sm:%s479_s20]   ;;  %v726_v59 = vld [vmem:[%s1252_s0 + $0x85] ss:$16 sm:%s466_s29]   ;;  %v389_v1 = vsel %vm11_vm1, %v712_v58, %v384_v57  ;;  %s529_s28 = smov 192  ;;  %s807_s10 = smov 15  }
  0x31   :  { %v482_v62 = vsel %vm7_vm0, %v728_v55, %v727_v54  ;;  %v720_v63 = vld [vmem:[%s1252_s0 + $0x5] ss:$16 sm:%s436_s7]   ;;  %v734_v2 = vld [vmem:[%s1252_s0 + $0x3] ss:$16 sm:%s516_s17]   ;;  %v469_v4 = vsel %vm11_vm1, %v726_v59, %v464_v61  ;;  %s546_s15 = smov 48  ;;  %s578_s17 = smov 3 }
  0x32   :  { %373 = vrot.lane.b32.xlu1 %v372_v39, %s805_s14  ;;  %v721_v0 = vld [vmem:[%s1252_s0 + $0x5] ss:$16 sm:%s439_s8]   ;;  %s538_s8 = smov 3  ;;  %s498_s21 = smov 3 }
  0x33   :  { %v735_v3 = vld [vmem:[%s1252_s0 + $0x3] ss:$16 sm:%s519_s18]   ;;  %v730_v6 = vld [vmem:[%s1252_s0 + $0x4] ss:$16 sm:%s489_s19]   ;;  %v442_v7 = vsel %vm7_vm0, %v721_v0, %v720_v63  ;;  %s501_s22 = smov 12  ;;  %s581_s24 = smov 12 }
  0x34   :  { %333 = vrot.lane.b32.xlu2 %v332_v46, %s804_s30  ;;  %s484_s30 = smov 48  ;;  %v722_v8 = vld [vmem:[%s1252_s0 + $0x5] ss:$16 sm:%s444_s23]   ;;  %v522_v9 = vsel %vm7_vm0, %v735_v3, %v734_v2  ;;  %s808_s23 = smov 12  }
  0x35   :  { %v729_v60 = vld [vmem:[%s1252_s0 + $0x4] ss:$16 sm:%s484_s30]   ;;  %v736_v10 = vld [vmem:[%s1252_s0 + $0x3] ss:$16 sm:%s524_s27]   ;;  %v447_v12 = vsel %vm11_vm1, %v722_v8, %v442_v7  ;;  %s596_s26 = smov 3  ;;  %s599_s27 = smov 12 }
  0x36   :  { %413 = vrot.lane.b32.xlu0 %v412_v48, %s806_s9  ;;  %v487_v5 = vsel %vm11_vm1, %v729_v60, %v482_v62  ;;  %v723_v13 = vld [vmem:[%s1252_s0 + $0x5] ss:$16 sm:%s449_s4]   ;;  %v527_v15 = vsel %vm11_vm1, %v736_v10, %v522_v9  ;;  %s809_s18 = smov 9   ;;  %s609_s25 = smov 192 }
  0x37   :  { %v492_v11 = vsel %vm15_vm2, %v730_v6, %v487_v5  ;;  %v737_v14 = vld [vmem:[%s1252_s0 + $0x3] ss:$16 sm:%s529_s28]   ;;  %v452_v18 = vsel %vm15_vm2, %v723_v13, %v447_v12  ;;  %v745_v22 = vld [vmem:[%s1252_s0 + $0x82] ss:$16 sm:%s578_s17]   ;;  %s559_s17 = smov 12  ;;  %s564_s30 = smov 48 }
  0x38   :  { %v738_v16 = vld [vmem:[%s1252_s0 + $0x83] ss:$16 sm:%s538_s8]   ;;  %v532_v20 = vsel %vm15_vm2, %v737_v14, %v527_v15  ;;  %v731_v23 = vld [vmem:[%s1252_s0 + $0x84] ss:$16 sm:%s498_s21]   ;;  %s811_s11 = smov 3   ;;  %s626_s5 = smov 48 }
  0x39   :  { %v740_v19 = vld [vmem:[%s1252_s0 + $0x83] ss:$16 sm:%s546_s15]   ;;  %v732_v24 = vld [vmem:[%s1252_s0 + $0x84] ss:$16 sm:%s501_s22]   ;;  %s556_s15 = smov 3  ;;  %s9_s12 = smov 48 }
  0x3a   :  { %430 = vrot.lane.b32.xlu1 %v429_v56, %s806_s9  ;;  %s541_s9 = smov 12  ;;  %v746_v25 = vld [vmem:[%s1252_s0 + $0x82] ss:$16 sm:%s581_s24]   ;;  %v504_v29 = vsel %vm7_vm0, %v732_v24, %v731_v23  ;;  %s13_s13 = smov 192 }
  0x3b   :  { %v739_v17 = vld [vmem:[%s1252_s0 + $0x83] ss:$16 sm:%s541_s9]   ;;  %s586_s9 = smov 48  ;;  %v748_v26 = vld [vmem:[%s1252_s0 + $0x1] ss:$16 sm:%s596_s26]   ;;  %v584_v33 = vsel %vm7_vm0, %v746_v25, %v745_v22  ;;  %s3_s20 = smov 3 }
  0x3c   :  { %390 = vrot.lane.b32.xlu2 %v389_v1, %s805_s14  ;;  %v544_v21 = vsel %vm7_vm0, %v739_v17, %v738_v16  ;;  %s506_s14 = smov 48  ;;  %v749_v27 = vld [vmem:[%s1252_s0 + $0x1] ss:$16 sm:%s599_s27]   ;;  %s5_s16 = smov 12 }
  0x3d   :  { %v549_v28 = vsel %vm11_vm1, %v740_v19, %v544_v21  ;;  %v733_v30 = vld [vmem:[%s1252_s0 + $0x84] ss:$16 sm:%s506_s14]   ;;  %v747_v31 = vld [vmem:[%s1252_s0 + $0x82] ss:$16 sm:%s586_s9]   ;;  %v602_v34 = vsel %vm7_vm0, %v749_v27, %v748_v26  ;;  %s569_s14 = smov 192  ;;  %s618_s9 = smov 3 }
  0x3e   :  { %470 = vrot.lane.b32.xlu0 %v469_v4, %s807_s10  ;;  %v741_v35 = vld [vmem:[%s1252_s0 + $0x2] ss:$16 sm:%s556_s15]   ;;  %v509_v37 = vsel %vm11_vm1, %v733_v30, %v504_v29  ;;  %v589_v38 = vsel %vm11_vm1, %v747_v31, %v584_v33  ;;  %s20_s3 = smov 3  ;;  %s23_s4 = smov 12 }
  0x3f   :  { %v742_v36 = vld [vmem:[%s1252_s0 + $0x2] ss:$16 sm:%s559_s17]   ;;  %v751_v40 = vld [vmem:[%s1252_s0 + $0x1] ss:$16 sm:%s609_s25]   ;;  %s28_s28 = smov 48  ;;  %s640_s1 = sshll.u32 %s1253_s1, 4  ;;  %s641_s1 = int_to_ptr.hbm [resolvable:$true] %s640_s1 }
  0x40   :  { %v562_v41 = vsel %vm7_vm0, %v742_v36, %v741_v35  ;;  %v743_v42 = vld [vmem:[%s1252_s0 + $0x2] ss:$16 sm:%s564_s30]   ;;  %v752_v47 = vld [vmem:[%s1252_s0 + $0x81] ss:$16 sm:%s618_s9]  }
  0x41   :  { %v567_v44 = vsel %vm11_vm1, %v743_v42, %v562_v41  ;;  %v744_v45 = vld [vmem:[%s1252_s0 + $0x2] ss:$16 sm:%s569_s14]   ;;  %v754_v49 = vld [vmem:[%s1252_s0 + $0x81] ss:$16 sm:%s626_s5]  }
  0x42   :  { %493 = vrot.lane.b32.xlu1 %v492_v11, %s808_s23  ;;  %v572_v46 = vsel %vm15_vm2, %v744_v45, %v567_v44  ;;  %v10_v50 = vld [vmem:[%s1252_s0] ss:$16 sm:%s9_s12]  }
  0x43   :  { %v14_v51 = vld [vmem:[%s1252_s0] ss:$16 sm:%s13_s13]  }
  0x44   :  { %453 = vrot.lane.b32.xlu2 %v452_v18, %s807_s10  ;;  %s604_s10 = smov 48  ;;  %v4_v53 = vld [vmem:[%s1252_s0] ss:$16 sm:%s3_s20]  }
  0x45   :  { %v750_v32 = vld [vmem:[%s1252_s0 + $0x1] ss:$16 sm:%s604_s10]   ;;  %s621_s10 = smov 12  ;;  %v6_v54 = vld [vmem:[%s1252_s0] ss:$16 sm:%s5_s16]  }
  0x46   :  { %533 = vrot.lane.b32.xlu0 %v532_v20, %s809_s18  ;;  %v607_v39 = vsel %vm11_vm1, %v750_v32, %v602_v34  ;;  %v753_v48 = vld [vmem:[%s1252_s0 + $0x81] ss:$16 sm:%s621_s10]   ;;  %v8_v55 = vsel %vm7_vm0, %v6_v54, %v4_v53 }
  0x47   :  { %v612_v43 = vsel %vm15_vm2, %v751_v40, %v607_v39  ;;  %v624_v52 = vsel %vm7_vm0, %v753_v48, %v752_v47  ;;  %v12_v56 = vsel %vm11_vm1, %v10_v50, %v8_v55  ;;  %v647_v59 = vld [vmem:[%s1252_s0 + $0x80] ss:$16 sm:%s20_s3]  }
  0x48   :  { %v629_v57 = vsel %vm11_vm1, %v754_v49, %v624_v52  ;;  %v16_v58 = vsel %vm15_vm2, %v14_v51, %v12_v56  ;;  %v648_v60 = vld [vmem:[%s1252_s0 + $0x80] ss:$16 sm:%s23_s4]   ;;  %vm615_vm2 = vcmask 48152  }
  0x49   :  { %18 = vst.msk [vmem:[#allocation0] sm:$0xff] %vm17_vm3, %v16_v58   ;;  %v649_v61 = vld [vmem:[%s1252_s0 + $0x80] ss:$16 sm:%s28_s28]   ;;  %v26_v62 = vsel %vm7_vm0, %v648_v60, %v647_v59  ;;  %vm535_vm0 = vcmask 97352   ;;  %s812_s0 = smov [#allocation0]  }
  0x4a   :  { %550 = vrot.lane.b32.xlu1 %v549_v28, %s809_s18  ;;  %v31_v63 = vsel %vm11_vm1, %v649_v61, %v26_v62  ;;  %vm575_vm1 = vcmask 72752  }
  0x4b   :  { %34 = vst.msk [vmem:[#allocation0 + $0x8] sm:$0x3f] %vm17_vm3, %v31_v63  }
  0x4c   :  { %510 = vrot.lane.b32.xlu2 %v509_v37, %s808_s23  ;;  %s810_s23 = smov 6  }
  0x4e   :  { %590 = vrot.lane.b32.xlu0 %v589_v38, %s810_s23 }
  0x52   :  { %613 = vrot.lane.b32.xlu1 %v612_v43, %s811_s11 }
  0x54   :  { %573 = vrot.lane.b32.xlu2 %v572_v46, %s810_s23 }
  0x5c   :  { %630 = vrot.lane.b32.xlu2 %v629_v57, %s811_s11  ;;  %s638_s11 = sshll.u32 %s812_s0, 4  ;;  %s639_s11 = int_to_ptr.vmem [resolvable:$true] %s638_s11 }
  0x6e   :  { %v134_v0 = vpop.permute.xlu2 %133  }
  0x76   :  { %v151_v1 = vpop.permute.xlu2 %150  }
  0x78   :  { %v54_v2 = vpop.permute.xlu0 %53  }
  0x79   :  { %56 = vst.msk [vmem:[#allocation0] sm:$0xff] %vm55_vm4, %v54_v2  }
  0x7c   :  { %v94_v3 = vpop.permute.xlu1 %93  }
  0x7d   :  { %96 = vst.msk [vmem:[#allocation0] sm:$0xff] %vm95_vm5, %v94_v3  }
  0x7e   :  { %136 = vst.msk [vmem:[#allocation0] sm:$0xff] %vm135_vm6, %v134_v0   ;;  %v214_v4 = vpop.permute.xlu2 %213  }
  0x80   :  { %v71_v5 = vpop.permute.xlu0 %70  }
  0x81   :  { %74 = vst.msk [vmem:[#allocation0 + $0x8] sm:$0x3f] %vm55_vm4, %v71_v5  }
  0x84   :  { %v111_v6 = vpop.permute.xlu1 %110  }
  0x85   :  { %114 = vst.msk [vmem:[#allocation0 + $0x8] sm:$0x3f] %vm95_vm5, %v111_v6  }
  0x86   :  { %154 = vst.msk [vmem:[#allocation0 + $0x8] sm:$0x3f] %vm135_vm6, %v151_v1   ;;  %v271_v7 = vpop.permute.xlu2 %270  }
  0x88   :  { %v174_v8 = vpop.permute.xlu0 %173  }
  0x89   :  { %176 = vst.msk [vmem:[#allocation0] sm:$0xff] %vm175_vm7, %v174_v8  }
  0x8a   :  { %216 = vst.msk [vmem:[#allocation0] sm:$0xff] %vm215_vm8, %v214_v4  }
  0x8c   :  { %v191_v9 = vpop.permute.xlu1 %190  }
  0x8d   :  { %194 = vst.msk [vmem:[#allocation0 + $0x8] sm:$0x3f] %vm175_vm7, %v191_v9  }
  0x8e   :  { %v334_v10 = vpop.permute.xlu2 %333  }
  0x90   :  { %v231_v11 = vpop.permute.xlu0 %230  }
  0x91   :  { %234 = vst.msk [vmem:[#allocation0 + $0x8] sm:$0x3f] %vm215_vm8, %v231_v11  }
  0x92   :  { %274 = vst.msk [vmem:[#allocation0 + $0x8] sm:$0x3f] %vm255_vm9, %v271_v7  }
  0x94   :  { %v254_v12 = vpop.permute.xlu1 %253  }
  0x95   :  { %256 = vst.msk [vmem:[#allocation0] sm:$0xff] %vm255_vm9, %v254_v12  }
  0x96   :  { %v391_v13 = vpop.permute.xlu2 %390  }
  0x98   :  { %v294_v14 = vpop.permute.xlu0 %293  }
  0x99   :  { %296 = vst.msk [vmem:[#allocation0] sm:$0xff] %vm295_vm10, %v294_v14  }
  0x9a   :  { %336 = vst.msk [vmem:[#allocation0] sm:$0xff] %vm335_vm11, %v334_v10  }
  0x9c   :  { %v311_v15 = vpop.permute.xlu1 %310  }
  0x9d   :  { %314 = vst.msk [vmem:[#allocation0 + $0x8] sm:$0x3f] %vm295_vm10, %v311_v15  }
  0x9e   :  { %v454_v16 = vpop.permute.xlu2 %453  }
  0xa0   :  { %v351_v17 = vpop.permute.xlu0 %350  }
  0xa1   :  { %354 = vst.msk [vmem:[#allocation0 + $0x8] sm:$0x3f] %vm335_vm11, %v351_v17  }
  0xa2   :  { %394 = vst.msk [vmem:[#allocation0 + $0x8] sm:$0x3f] %vm375_vm12, %v391_v13  }
  0xa4   :  { %v374_v18 = vpop.permute.xlu1 %373  }
  0xa5   :  { %376 = vst.msk [vmem:[#allocation0] sm:$0xff] %vm375_vm12, %v374_v18  }
  0xa6   :  { %v511_v19 = vpop.permute.xlu2 %510  }
  0xa8   :  { %v414_v20 = vpop.permute.xlu0 %413  }
  0xa9   :  { %416 = vst.msk [vmem:[#allocation0] sm:$0xff] %vm415_vm13, %v414_v20  }
  0xaa   :  { %456 = vst.msk [vmem:[#allocation0] sm:$0xff] %vm455_vm14, %v454_v16  }
  0xac   :  { %v431_v21 = vpop.permute.xlu1 %430  }
  0xad   :  { %434 = vst.msk [vmem:[#allocation0 + $0x8] sm:$0x3f] %vm415_vm13, %v431_v21  }
  0xae   :  { %v574_v22 = vpop.permute.xlu2 %573  }
  0xb0   :  { %v471_v23 = vpop.permute.xlu0 %470  }
  0xb1   :  { %474 = vst.msk [vmem:[#allocation0 + $0x8] sm:$0x3f] %vm455_vm14, %v471_v23  }
  0xb2   :  { %514 = vst.msk [vmem:[#allocation0 + $0x8] sm:$0x3f] %vm495_vm15, %v511_v19  }
  0xb4   :  { %v494_v24 = vpop.permute.xlu1 %493  }
  0xb5   :  { %496 = vst.msk [vmem:[#allocation0] sm:$0xff] %vm495_vm15, %v494_v24  }
  0xb6   :  { %v631_v25 = vpop.permute.xlu2 %630  }
  0xb8   :  { %v534_v26 = vpop.permute.xlu0 %533  }
  0xb9   :  { %536 = vst.msk [vmem:[#allocation0] sm:$0xff] %vm535_vm0, %v534_v26  }
  0xba   :  { %576 = vst.msk [vmem:[#allocation0] sm:$0xff] %vm575_vm1, %v574_v22  }
  0xbc   :  { %v551_v27 = vpop.permute.xlu1 %550  }
  0xbd   :  { %554 = vst.msk [vmem:[#allocation0 + $0x8] sm:$0x3f] %vm535_vm0, %v551_v27  }
  0xc0   :  { %v591_v28 = vpop.permute.xlu0 %590  }
  0xc1   :  { %594 = vst.msk [vmem:[#allocation0 + $0x8] sm:$0x3f] %vm575_vm1, %v591_v28  }
  0xc2   :  { %634 = vst.msk [vmem:[#allocation0 + $0x8] sm:$0x3f] %vm615_vm2, %v631_v25  }
  0xc4   :  { %v614_v29 = vpop.permute.xlu1 %613  }
  0xc5   :  { %616 = vst.msk [vmem:[#allocation0] sm:$0xff] %vm615_vm2, %v614_v29  }
  0xc6   :  { %643 = dma.vmem_to_hbm [thread:$0]  %s639_s11, 256, %s641_s1, [#allocation1]  }
  0xc7   :  { %795 = dma.done.wait [#allocation1], 256  }
  0xc8   :  { %796 = vsyncadd [#allocation1], 4294967040 }
  0xc9   :  { %646 = vsyncpa [#allocation1], 1 }

// kernel: aggregate_head_forward.4
= control target key start
LH: loop header
LB: loop body
LE: loop exit
PB: predicated region body
PF: predicated region fallthrough
CT: control target
= control target key end

     0   :  { %17 = vsyncpa [#allocation3], 0  ;;  %s3526_s24 = smov [#allocation2]   ;;  %s3527_s26 = smov 128   ;;  %s4549_s0 = inlined_call_operand.vmem [shape: f32[4,8,32], index: 0, kind: input, shape index: {}]   ;;  %s4550_s1 = inlined_call_operand.vmem [shape: f32[2,1,32], index: 1, kind: input, shape index: {}, may-alias: {1,6}]   ;;  %s4551_s2 = inlined_call_operand.vmem [shape: f32[2,1,32], index: 2, kind: input, shape index: {}, may-alias: {2,5,7,9,11}]   ;;  %s4552_s3 = inlined_call_operand.hbm [shape: f32[2,32,96], index: 3, kind: input, shape index: {}]   ;;  %s4553_s4 = inlined_call_operand.vmem [shape: f32[2,32,32], index: 4, kind: input, shape index: {}]   ;;  %s4554_s5 = inlined_call_operand.vmem [shape: f32[2,1,32], index: 5, kind: input, shape index: {}, may-alias: {2,5,7,9,11}]   ;;  %s4555_s6 = inlined_call_operand.vmem [shape: f32[2,1,32], index: 6, kind: input, shape index: {}, may-alias: {1,6}]   ;;  %s4556_s7 = inlined_call_operand.vmem [shape: f32[2,1,32], index: 7, kind: input, shape index: {}, may-alias: {2,5,7,9,11}]   ;;  %s4557_s8 = inlined_call_operand.vmem [shape: f32[2,32,32], index: 8, kind: input, shape index: {}]   ;;  %s4558_s9 = inlined_call_operand.vmem [shape: f32[2,1,32], index: 9, kind: input, shape index: {}, may-alias: {2,5,7,9,11}]   ;;  %s4559_s10 = inlined_call_operand.vmem [shape: f32[2,32,32], index: 10, kind: input, shape index: {}]   ;;  %s4560_s11 = inlined_call_operand.vmem [shape: f32[2,1,32], index: 11, kind: input, shape index: {}, may-alias: {2,5,7,9,11}]   ;;  %s4561_s12 = inlined_call_operand.vmem [shape: f32[4,8,32], index: 12, kind: output, shape index: {}]  }
   0x1   :  { %s28_s23 = sshll.u32 %s4552_s3, 4  ;;  %s30_s25 = sshll.u32 %s3526_s24, 4  ;;  %s29_s23 = int_to_ptr.hbm [resolvable:$true] %s28_s23  ;;  %s31_s25 = int_to_ptr.vmem [resolvable:$true] %s30_s25 }
   0x2   :  { %s4562_s27 = smov 8  }
   0x3   :  { %36 = dma.hbm_to_vmem [thread:$0]  %s29_s23, 1024, %s31_s25, [#allocation3], %s3527_s26, %s3527_s26, %s4562_s27  }
   0x4   :  { %3524 = dma.done.wait [#allocation3], 1024  }
   0x5   :  { %3525 = vsyncadd [#allocation3], 4294966272  ;;  %vm64_vm0 = vcmask 261120   ;;  %v60_v0 = vld [vmem:[%s4549_s0 + $0x10] sm:$0xff]  ;;  %v58_v1 = vld [vmem:[%s4549_s0] sm:$0xff]  ;;  %v3529_v8 = vmov 32.0  }
   0x6   :  { %v71_v2 = vsel %vm64_vm0, %v60_v0, 0.0  ;;  %v65_v3 = vsel %vm64_vm0, %v58_v1, 0.0  ;;  %v59_v4 = vld [vmem:[%s4549_s0 + $0x8] sm:$0xff]  ;;  %v61_v5 = vld [vmem:[%s4549_s0 + $0x18] sm:$0xff]  ;;  %3302 = vrcp.f32 %v3529_v8  ;;  %v176_v35 = vld [vmem:[#allocation2 + $0x10] sm:$0xff]  ;;  %s3530_s21 = smov 96  }
   0x7   :  { %72 = vadd.xlane.f32.xlu2 %v71_v2  ;;  %66 = vadd.xlane.f32.xlu0 %v65_v3  ;;  %v68_v6 = vsel %vm64_vm0, %v59_v4, 0.0  ;;  %v74_v7 = vsel %vm64_vm0, %v61_v5, 0.0  ;;  %v177_v36 = vld [vmem:[#allocation2 + $0x18] sm:$0xff]  ;;  %v174_v42 = vld [vmem:[#allocation2] sm:$0xff]  ;;  %v175_v43 = vld [vmem:[#allocation2 + $0x8] sm:$0xff]  ;;  %s3531_s22 = smov 64  }
   0x8   :  { %v181_v37 = vpack.c.bf16 %v177_v36, %v176_v35  ;;  %v180_v46 = vpack.c.bf16 %v175_v43, %v174_v42  ;;  %v3288_v8 = vld [vmem:[%s4550_s1] ss:$0 sm:$0xff]  ;;  %vm216_vm14 = vcmask 64512   ;;  %vm365_vm15 = vcmask 1043456   ;;  %s3532_s23 = smov 88   ;;  %s3533_s24 = smov 120  }
   0x9   :  { %s3534_s25 = smov 56   ;;  %s3535_s26 = smov 80  }
   0xa   :  { %194 = vmatpush.bf16.msra.mxu0 %v181_v37  ;;  %3209 = vmatpush.bf16.msra.mxu1 %v181_v37  ;;  %s3536_s28 = smov 112   ;;  %s3537_s29 = smov 48  }
   0xb   :  { %s3538_s30 = smov 104   ;;  %s3539_s13 = smov 72  }
   0xc   :  { %v3303_v9 = vpop.eup %3302  ;;  %s4566_s3 = smov 40   ;;  %s4564_s14 = smov 16  }
   0xd   :  { %v78_v10 = vmul.f32 32.0, %v3303_v9  ;;  %vm82_vm1 = vweird.f32 %v3303_v9  ;;  %s3542_s15 = smov 24  }
   0xe   :  { %195 = vmatpush.bf16.msra.mxu0 %v180_v46  ;;  %3210 = vmatpush.bf16.msra.mxu1 %v180_v46 }
   0xf   :  { %69 = vadd.xlane.f32.xlu0 %v68_v6  ;;  %75 = vadd.xlane.f32.xlu2 %v74_v7  ;;  %v79_v11 = vsub.f32 1.0, %v78_v10 }
  0x11   :  { %v80_v12 = vmul.f32 %v3303_v9, %v79_v11 }
  0x13   :  { %v81_v13 = vadd.f32 %v3303_v9, %v80_v12 }
  0x15   :  { %v3628_v14 = vsel %vm82_vm1, %v3303_v9, %v81_v13  ;;  %vm1181_vm1 = vcmask 130048  }
  0x7a   :  { %v73_v15 = vpop.xlane.xlu2 %72  ;;  %v67_v16 = vpop.xlane.xlu0 %66 }
  0x7b   :  { %v86_v17 = vmul.f32 %v3628_v14, %v73_v15  ;;  %v84_v18 = vmul.f32 %v3628_v14, %v67_v16 }
  0x7d   :  { %v3632_v19 = vsub.f32 %v60_v0, %v86_v17  ;;  %v3634_v20 = vsub.f32 %v58_v1, %v84_v18  ;;  %v3289_v18 = vld [vmem:[%s4551_s2] ss:$0 sm:$0xff] }
  0x7f   :  { %v94_v21 = vmul.f32 %v3632_v19, %v3632_v19  ;;  %v92_v22 = vmul.f32 %v3634_v20, %v3634_v20 }
  0x81   :  { %v102_v23 = vsel %vm64_vm0, %v94_v21, 0.0  ;;  %v96_v24 = vsel %vm64_vm0, %v92_v22, 0.0 }
  0x82   :  { %103 = vadd.xlane.f32.xlu0 %v102_v23  ;;  %97 = vadd.xlane.f32.xlu1 %v96_v24  ;;  %v70_v25 = vpop.xlane.xlu0 %69  ;;  %v76_v26 = vpop.xlane.xlu2 %75 }
  0x83   :  { %v85_v27 = vmul.f32 %v3628_v14, %v70_v25  ;;  %v87_v28 = vmul.f32 %v3628_v14, %v76_v26 }
  0x85   :  { %v3644_v29 = vsub.f32 %v59_v4, %v85_v27  ;;  %v3646_v30 = vsub.f32 %v61_v5, %v87_v28 }
  0x87   :  { %v93_v31 = vmul.f32 %v3644_v29, %v3644_v29  ;;  %v95_v33 = vmul.f32 %v3646_v30, %v3646_v30 }
  0x89   :  { %v99_v32 = vsel %vm64_vm0, %v93_v31, 0.0  ;;  %v105_v34 = vsel %vm64_vm0, %v95_v33, 0.0 }
  0x8a   :  { %100 = vadd.xlane.f32.xlu1 %v99_v32 }
  0x92   :  { %106 = vadd.xlane.f32.xlu1 %v105_v34 }
  0xf5   :  { %v98_v38 = vpop.xlane.xlu1 %97  ;;  %v104_v39 = vpop.xlane.xlu0 %103 }
  0xf6   :  { %v108_v40 = vmul.f32 %v98_v38, %v3628_v14  ;;  %v110_v41 = vmul.f32 %v104_v39, %v3628_v14 }
  0xf8   :  { %v112_v44 = vadd.f32 1e-05, %v108_v40  ;;  %v114_v45 = vadd.f32 1e-05, %v110_v41 }
  0xfa   :  { %3304 = vrsqrt.f32 %v112_v44  ;;  %vm122_vm3 = vweird.f32 %v112_v44  ;;  %vm142_vm5 = vweird.f32 %v114_v45 }
  0xfb   :  { %3306 = vrsqrt.f32 %v114_v45 }
  0xfd   :  { %v101_v47 = vpop.xlane.xlu1 %100 }
  0xfe   :  { %v109_v48 = vmul.f32 %v101_v47, %v3628_v14 }
 0x100   :  { %v3305_v49 = vpop.eup %3304  ;;  %v113_v50 = vadd.f32 1e-05, %v109_v48 }
 0x101   :  { %v3307_v51 = vpop.eup %3306  ;;  %v117_v52 = vmul.f32 %v3305_v49, %v112_v44  ;;  %vm123_vm2 = vweird.f32 %v3305_v49 }
 0x102   :  { %v137_v53 = vmul.f32 %v3307_v51, %v114_v45  ;;  %3308 = vrsqrt.f32 %v113_v50  ;;  %vm124_vm4 = vmor %vm122_vm3, %vm123_vm2  ;;  %vm143_vm6 = vweird.f32 %v3307_v51  ;;  %vm132_vm9 = vweird.f32 %v113_v50 }
 0x103   :  { %v118_v54 = vmul.f32 %v3305_v49, %v117_v52  ;;  %vm3662_vm8 = vmor %vm142_vm5, %vm143_vm6  ;;  %vm1186_vm2 = vcmask 195584  }
 0x104   :  { %v138_v56 = vmul.f32 %v3307_v51, %v137_v53 }
 0x105   :  { %v119_v55 = vmul.f32 0.5, %v118_v54  ;;  %v107_v57 = vpop.xlane.xlu1 %106 }
 0x106   :  { %v111_v58 = vmul.f32 %v107_v57, %v3628_v14  ;;  %v139_v63 = vmul.f32 0.5, %v138_v56 }
 0x107   :  { %v120_v59 = vsub.f32 1.5, %v119_v55 }
 0x108   :  { %v3309_v60 = vpop.eup %3308  ;;  %v115_v61 = vadd.f32 1e-05, %v111_v58  ;;  %v140_v3 = vsub.f32 1.5, %v139_v63 }
 0x109   :  { %v121_v62 = vmul.f32 %v3305_v49, %v120_v59  ;;  %v127_v0 = vmul.f32 %v3309_v60, %v113_v50  ;;  %vm133_vm7 = vweird.f32 %v3309_v60 }
 0x10a   :  { %3310 = vrsqrt.f32 %v115_v61  ;;  %v141_v9 = vmul.f32 %v3307_v51, %v140_v3  ;;  %vm134_vm10 = vmor %vm132_vm9, %vm133_vm7  ;;  %vm152_vm11 = vweird.f32 %v115_v61 }
 0x10b   :  { %v128_v1 = vmul.f32 %v3309_v60, %v127_v0  ;;  %v125_v2 = vsel %vm124_vm4, %v3305_v49, %v121_v62 }
 0x10c   :  { %v156_v7 = vmul.f32 %v125_v2, %v3634_v20  ;;  %v145_v20 = vsel %vm3662_vm8, %v3307_v51, %v141_v9 }
 0x10d   :  { %v129_v4 = vmul.f32 0.5, %v128_v1  ;;  %v158_v26 = vmul.f32 %v145_v20, %v3632_v19 }
 0x10e   :  { %v163_v17 = vmul.f32 %v3288_v8, %v156_v7 }
 0x10f   :  { %v130_v5 = vsub.f32 1.5, %v129_v4  ;;  %v165_v32 = vmul.f32 %v3288_v8, %v158_v26 }
 0x110   :  { %v3311_v6 = vpop.eup %3310  ;;  %v170_v24 = vadd.f32 %v3289_v18, %v163_v17 }
 0x111   :  { %v131_v11 = vmul.f32 %v3309_v60, %v130_v5  ;;  %v147_v12 = vmul.f32 %v3311_v6, %v115_v61  ;;  %vm153_vm12 = vweird.f32 %v3311_v6  ;;  %v172_v34 = vadd.f32 %v3289_v18, %v165_v32 }
 0x112   :  { %vm154_vm13 = vmor %vm152_vm11, %vm153_vm12 }
 0x113   :  { %v135_v13 = vsel %vm134_vm10, %v3309_v60, %v131_v11  ;;  %v148_v15 = vmul.f32 %v3311_v6, %v147_v12 }
 0x114   :  { %v157_v16 = vmul.f32 %v135_v13, %v3644_v29 }
 0x115   :  { %v149_v21 = vmul.f32 0.5, %v148_v15 }
 0x116   :  { %v164_v22 = vmul.f32 %v3288_v8, %v157_v16 }
 0x117   :  { %v150_v23 = vsub.f32 1.5, %v149_v21 }
 0x118   :  { %v171_v25 = vadd.f32 %v3289_v18, %v164_v22 }
 0x119   :  { %v151_v27 = vmul.f32 %v3311_v6, %v150_v23 }
 0x11a   :  { %v178_v28 = vpack.c.bf16 %v171_v25, %v170_v24 }
 0x11b   :  { %v155_v29 = vsel %vm154_vm13, %v3311_v6, %v151_v27 }
 0x11c   :  { %3110 = vmatmul.msk.bf16.vlgmr.msra.gmra.mxu0 %vm64_vm0, %v178_v28  ;;  %v159_v31 = vmul.f32 %v155_v29, %v3646_v30 }
 0x11e   :  { %v166_v33 = vmul.f32 %v3288_v8, %v159_v31 }
 0x120   :  { %v173_v35 = vadd.f32 %v3289_v18, %v166_v33 }
 0x122   :  { %v179_v36 = vpack.c.bf16 %v173_v35, %v172_v34 }
 0x124   :  { %3111 = vmatmul.msk.bf16.vlgmr.msra.gmra.mxu1 %vm64_vm0, %v179_v36 }
 0x199   :  { %v197_v37 = vpop.f32.mrf.mxu0 }
 0x19a   :  { %v207_v38 = vpack.c.bf16 %v197_v37, %v197_v37 }
 0x19c   :  { %v212_v39 = vunpack.c.l.b16 %v207_v38 }
 0x19e   :  { %v3676_v40 = vpack.c.b16 %v212_v39, %v212_v39 }
 0x1a0   :  { %214 = vrot.lane.b32.xlu0 %v3676_v40, %s3530_s21 }
 0x1a1   :  { %v199_v19 = vpop.f32.mrf.mxu0  ;;  %v202_v41 = vpop.f32.mrf.mxu1 }
 0x1a2   :  { %v208_v42 = vpack.c.bf16 %v199_v19, %v199_v19  ;;  %v209_v30 = vpack.c.bf16 %v202_v41, %v202_v41 }
 0x1a4   :  { %v237_v43 = vunpack.c.l.b16 %v208_v42  ;;  %v261_v44 = vunpack.c.l.b16 %v209_v30 }
 0x1a6   :  { %v3680_v45 = vpack.c.b16 %v237_v43, %v237_v43  ;;  %v3682_v46 = vpack.c.b16 %v261_v44, %v261_v44 }
 0x1a8   :  { %239 = vrot.lane.b32.xlu2 %v3680_v45, %s3530_s21  ;;  %263 = vrot.lane.b32.xlu1 %v3682_v46, %s3530_s21 }
 0x1a9   :  { %v204_v47 = vpop.f32.mrf.mxu1 }
 0x1aa   :  { %v210_v48 = vpack.c.bf16 %v204_v47, %v204_v47 }
 0x1ac   :  { %v285_v49 = vunpack.c.l.b16 %v210_v48 }
 0x1ae   :  { %v3688_v50 = vpack.c.b16 %v285_v49, %v285_v49 }
 0x1b0   :  { %382 = vrot.lane.b32.xlu1 %v3680_v45, %s3531_s22  ;;  %287 = vrot.lane.b32.xlu2 %v3688_v50, %s3530_s21 }
 0x202   :  { %v240_v51 = vpop.permute.xlu2 %239 }
 0x203   :  { %v245_v52 = vsel %vm216_vm14, %v240_v51, 0 }
 0x204   :  { %254 = vmatpush.bf16.xpose.msra.mxu2 %v245_v52 }
 0x20a   :  { %v288_v53 = vpop.permute.xlu2 %287 }
 0x20b   :  { %3113 = vmatmul.msk.bf16.vlgmr.msra.gmra.mxu2 %vm216_vm14, %v208_v42  ;;  %v293_v56 = vsel %vm216_vm14, %v288_v53, 0 }
 0x212   :  { %v215_v54 = vpop.permute.xlu0 %214 }
 0x213   :  { %v221_v55 = vsel %vm216_vm14, %v215_v54, 0 }
 0x214   :  { %230 = vmatpush.bf16.xpose.msrb.mxu1 %v221_v55 }
 0x21a   :  { %v264_v57 = vpop.permute.xlu1 %263 }
 0x21b   :  { %3112 = vmatmul.msk.bf16.vlgmr.msrb.gmra.mxu1 %vm216_vm14, %v207_v38  ;;  %v269_v58 = vsel %vm216_vm14, %v264_v57, 0 }
 0x21c   :  { %302 = vmatpush.bf16.xpose.msra.mxu1 %v293_v56  ;;  %278 = vmatpush.bf16.xpose.msra.mxu3 %v269_v58 }
 0x222   :  { %v383_v59 = vpop.permute.xlu1 %382 }
 0x223   :  { %3114 = vmatmul.msk.bf16.vlgmr.msra.gmra.mxu3 %vm216_vm14, %v209_v30  ;;  %v388_v60 = vsel %vm365_vm15, %v383_v59, 0 }
 0x224   :  { %397 = vmatpush.bf16.msrb.mxu3 %v388_v60 }
 0x22b   :  { %3115 = vmatmul.msk.bf16.vlgmr.msra.gmra.mxu1 %vm216_vm14, %v210_v48 }
 0x28e   :  { %v256_v61 = vpop.f32.mrf.mxu2 }
 0x28f   :  { %v309_v62 = vmul.f32 0.35355338, %v256_v61 }
 0x291   :  { %v315_v63 = vsel %vm216_vm14, %v309_v62, -inf }
 0x292   :  { %316 = vmax.xlane.f32.xlu2 %v315_v63 }
 0x296   :  { %v258_v0 = vpop.f32.mrf.mxu2 }
 0x298   :  { %v232_v1 = vpop.f32.mrf.mxu1 }
 0x299   :  { %v308_v2 = vmul.f32 0.35355338, %v232_v1 }
 0x29b   :  { %v312_v3 = vsel %vm216_vm14, %v308_v2, -inf }
 0x29c   :  { %313 = vmax.xlane.f32.xlu0 %v312_v3 }
 0x2a0   :  { %v234_v4 = vpop.f32.mrf.mxu1 }
 0x2a6   :  { %v280_v5 = vpop.f32.mrf.mxu3 }
 0x2a7   :  { %v310_v6 = vmul.f32 0.35355338, %v280_v5 }
 0x2a8   :  { %v304_v7 = vpop.f32.mrf.mxu1 }
 0x2a9   :  { %v318_v8 = vsel %vm216_vm14, %v310_v6, -inf  ;;  %v311_v9 = vmul.f32 0.35355338, %v304_v7 }
 0x2aa   :  { %360 = vrot.lane.b32.xlu2 %v3676_v40, %s3531_s22  ;;  %319 = vmax.xlane.f32.xlu0 %v318_v8 }
 0x2ab   :  { %v321_v12 = vsel %vm216_vm14, %v311_v9, -inf }
 0x2ae   :  { %v282_v10 = vpop.f32.mrf.mxu3 }
 0x2b0   :  { %v306_v11 = vpop.f32.mrf.mxu1 }
 0x2b2   :  { %470 = vrot.lane.b32.xlu2 %v3680_v45, %s3532_s23  ;;  %322 = vmax.xlane.f32.xlu0 %v321_v12 }
 0x2ba   :  { %468 = vrot.lane.b32.xlu2 %v3680_v45, %s3533_s24 }
 0x305   :  { %v317_v13 = vpop.xlane.xlu2 %316 }
 0x306   :  { %v325_v15 = vsub.f32 %v309_v62, %v317_v13 }
 0x308   :  { %v330_v16 = vmul.f32 1.442695, %v325_v15 }
 0x30a   :  { %3312 = vpow2.f32 %v330_v16 }
 0x30d   :  { %v361_v17 = vpop.permute.xlu2 %360 }
 0x30e   :  { %v367_v18 = vsel %vm365_vm15, %v361_v17, 0 }
 0x30f   :  { %376 = vmatpush.bf16.msrb.mxu2 %v367_v18  ;;  %v314_v20 = vpop.xlane.xlu0 %313 }
 0x310   :  { %v3313_v21 = vpop.eup %3312  ;;  %v324_v22 = vsub.f32 %v308_v2, %v314_v20 }
 0x311   :  { %v339_v23 = vsel %vm216_vm14, %v3313_v21, 0.0 }
 0x312   :  { %v328_v24 = vmul.f32 1.442695, %v324_v22  ;;  %340 = vadd.xlane.f32.xlu0 %v339_v23 }
 0x314   :  { %3314 = vpow2.f32 %v328_v24 }
 0x315   :  { %v471_v25 = vpop.permute.xlu2 %470 }
 0x316   :  { %v476_v26 = vsel %vm216_vm14, %v471_v25, 0 }
 0x317   :  { %485 = vmatpush.bf16.xpose.msra.mxu3 %v476_v26 }
 0x31a   :  { %v3315_v27 = vpop.eup %3314 }
 0x31b   :  { %v336_v28 = vsel %vm216_vm14, %v3315_v27, 0.0 }
 0x31c   :  { %337 = vadd.xlane.f32.xlu1 %v336_v28 }
 0x31d   :  { %v320_v29 = vpop.xlane.xlu0 %319  ;;  %v469_v52 = vpop.permute.xlu2 %468 }
 0x31e   :  { %v326_v36 = vsub.f32 %v310_v6, %v320_v29 }
 0x320   :  { %v332_v37 = vmul.f32 1.442695, %v326_v36 }
 0x325   :  { %v323_v31 = vpop.xlane.xlu0 %322 }
 0x326   :  { %v327_v32 = vsub.f32 %v311_v9, %v323_v31  ;;  %447 = vrot.lane.b32.xlu0 %v3676_v40, %s3532_s23 }
 0x328   :  { %v334_v33 = vmul.f32 1.442695, %v327_v32 }
 0x32a   :  { %3316 = vpow2.f32 %v334_v33 }
 0x32b   :  { %3318 = vpow2.f32 %v332_v37 }
 0x32e   :  { %403 = vrot.lane.b32.xlu0 %v3682_v46, %s3531_s22 }
 0x330   :  { %v3317_v34 = vpop.eup %3316 }
 0x331   :  { %v345_v35 = vsel %vm216_vm14, %v3317_v34, 0.0  ;;  %v3319_v38 = vpop.eup %3318 }
 0x332   :  { %346 = vadd.xlane.f32.xlu2 %v345_v35  ;;  %v342_v39 = vsel %vm216_vm14, %v3319_v38, 0.0 }
 0x335   :  { %445 = vrot.lane.b32.xlu1 %v3676_v40, %s3533_s24 }
 0x336   :  { %424 = vrot.lane.b32.xlu0 %v3688_v50, %s3531_s22 }
 0x33e   :  { %493 = vrot.lane.b32.xlu0 %v3682_v46, %s3532_s23 }
 0x346   :  { %516 = vrot.lane.b32.xlu0 %v3688_v50, %s3532_s23 }
 0x34a   :  { %610 = vrot.lane.b32.xlu2 %v3680_v45, %s3534_s25 }
 0x34e   :  { %491 = vrot.lane.b32.xlu0 %v3682_v46, %s3533_s24 }
 0x352   :  { %675 = vrot.lane.b32.xlu2 %v3676_v40, %s3535_s26 }
 0x35f   :  { %343 = vadd.xlane.f32.xlu1 %v342_v39 }
 0x378   :  { %514 = vrot.lane.b32.xlu1 %v3688_v50, %s3533_s24 }
 0x380   :  { %589 = vrot.lane.b32.xlu1 %v3676_v40, %s3534_s25 }
 0x385   :  { %v341_v19 = vpop.xlane.xlu0 %340 }
 0x386   :  { %3320 = vrcp.f32 %v341_v19 }
 0x38c   :  { %v3321_v41 = vpop.eup %3320 }
 0x38d   :  { %v353_v42 = vmul.f32 %v3321_v41, %v3313_v21 }
 0x38f   :  { %v338_v30 = vpop.xlane.xlu1 %337  ;;  %v357_v43 = vpack.c.bf16 %v353_v42, %v353_v42 }
 0x390   :  { %3322 = vrcp.f32 %v338_v30 }
 0x391   :  { %3117 = vmatmul.msk.bf16.vlgmr.msrb.gmra.mxu3 %vm216_vm14, %v357_v43 }
 0x396   :  { %v3323_v44 = vpop.eup %3322 }
 0x397   :  { %v352_v47 = vmul.f32 %v3323_v44, %v3315_v27 }
 0x398   :  { %v448_v48 = vpop.permute.xlu0 %447 }
 0x399   :  { %v453_v49 = vsel %vm216_vm14, %v448_v48, 0  ;;  %v356_v51 = vpack.c.bf16 %v352_v47, %v352_v47 }
 0x39a   :  { %462 = vmatpush.bf16.xpose.msra.mxu2 %v453_v49 }
 0x39b   :  { %3116 = vmatmul.msk.bf16.vlgmr.msrb.gmra.mxu2 %vm216_vm14, %v356_v51 }
 0x3a0   :  { %v404_v53 = vpop.permute.xlu0 %403 }
 0x3a1   :  { %3121 = vmatmul.msk.bf16.vlgmr.msra.gmra.mxu3 %vm216_vm14, %v469_v52  ;;  %v409_v54 = vsel %vm365_vm15, %v404_v53, 0 }
 0x3a2   :  { %418 = vmatpush.bf16.msrb.mxu0 %v409_v54 }
 0x3a5   :  { %v347_v55 = vpop.xlane.xlu2 %346 }
 0x3a6   :  { %3324 = vrcp.f32 %v347_v55 }
 0x3a7   :  { %v446_v58 = vpop.permute.xlu1 %445 }
 0x3a8   :  { %v425_v56 = vpop.permute.xlu0 %424 }
 0x3a9   :  { %v430_v57 = vsel %vm365_vm15, %v425_v56, 0 }
 0x3aa   :  { %439 = vmatpush.bf16.msrb.mxu1 %v430_v57 }
 0x3ab   :  { %3120 = vmatmul.msk.bf16.vlgmr.msra.gmra.mxu2 %vm216_vm14, %v446_v58 }
 0x3ac   :  { %v3325_v59 = vpop.eup %3324 }
 0x3ad   :  { %v355_v60 = vmul.f32 %v3325_v59, %v3317_v34  ;;  %v611_v61 = vpop.permute.xlu2 %610 }
 0x3ae   :  { %v616_v62 = vsel %vm365_vm15, %v611_v61, 0 }
 0x3af   :  { %v359_v63 = vpack.c.bf16 %v355_v60, %v355_v60  ;;  %625 = vmatpush.bf16.msrb.mxu3 %v616_v62 }
 0x3b0   :  { %v494_v0 = vpop.permute.xlu0 %493 }
 0x3b1   :  { %v499_v1 = vsel %vm216_vm14, %v494_v0, 0  ;;  %3119 = vmatmul.msk.bf16.vlgmr.msrb.gmra.mxu1 %vm216_vm14, %v359_v63 }
 0x3b2   :  { %508 = vmatpush.bf16.xpose.msra.mxu0 %v499_v1 }
 0x3b5   :  { %v676_v10 = vpop.permute.xlu2 %675 }
 0x3b6   :  { %v681_v13 = vsel %vm216_vm14, %v676_v10, 0 }
 0x3b8   :  { %v517_v2 = vpop.permute.xlu0 %516 }
 0x3b9   :  { %v522_v3 = vsel %vm216_vm14, %v517_v2, 0 }
 0x3ba   :  { %531 = vmatpush.bf16.xpose.msra.mxu1 %v522_v3 }
 0x3c0   :  { %v492_v9 = vpop.permute.xlu0 %491 }
 0x3d2   :  { %v344_v4 = vpop.xlane.xlu1 %343 }
 0x3d3   :  { %3326 = vrcp.f32 %v344_v4 }
 0x3d9   :  { %v3327_v5 = vpop.eup %3326 }
 0x3da   :  { %v354_v6 = vmul.f32 %v3327_v5, %v3319_v38 }
 0x3dc   :  { %v358_v7 = vpack.c.bf16 %v354_v6, %v354_v6 }
 0x3de   :  { %3118 = vmatmul.msk.bf16.vlgmr.msrb.gmra.mxu0 %vm216_vm14, %v358_v7 }
 0x3ea   :  { %v515_v8 = vpop.permute.xlu1 %514 }
 0x3eb   :  { %3123 = vmatmul.msk.bf16.vlgmr.msra.gmra.mxu1 %vm216_vm14, %v515_v8 }
 0x3ee   :  { %3122 = vmatmul.msk.bf16.vlgmr.msra.gmra.mxu0 %vm216_vm14, %v492_v9 }
 0x3f2   :  { %v590_v11 = vpop.permute.xlu1 %589 }
 0x3f3   :  { %v595_v12 = vsel %vm365_vm15, %v590_v11, 0 }
 0x3f4   :  { %604 = vmatpush.bf16.msrb.mxu2 %v595_v12 }
 0x3f8   :  { %690 = vmatpush.bf16.xpose.msra.mxu2 %v681_v13 }
 0x414   :  { %v3757_v15 = vpop.f32.mrf.mxu3 }
 0x41c   :  { %v401_v16 = vpop.f32.mrf.mxu3 }
 0x41e   :  { %v3759_v17 = vpop.f32.mrf.mxu2 }
 0x424   :  { %v487_v18 = vpop.f32.mrf.mxu3 }
 0x425   :  { %v538_v20 = vmul.f32 0.35355338, %v487_v18 }
 0x426   :  { %v380_v21 = vpop.f32.mrf.mxu2 }
 0x427   :  { %v544_v22 = vsel %vm216_vm14, %v538_v20, -inf }
 0x428   :  { %545 = vmax.xlane.f32.xlu2 %v544_v22 }
 0x42c   :  { %v489_v23 = vpop.f32.mrf.mxu3 }
 0x42e   :  { %v3762_v24 = vpop.f32.mrf.mxu1  ;;  %v464_v25 = vpop.f32.mrf.mxu2 }
 0x42f   :  { %v537_v26 = vmul.f32 0.35355338, %v464_v25 }
 0x431   :  { %v541_v27 = vsel %vm216_vm14, %v537_v26, -inf }
 0x432   :  { %542 = vmax.xlane.f32.xlu0 %v541_v27 }
 0x436   :  { %v443_v28 = vpop.f32.mrf.mxu1  ;;  %v466_v29 = vpop.f32.mrf.mxu2 }
 0x440   :  { %673 = vrot.lane.b32.xlu2 %v3676_v40, %s3536_s28 }
 0x45b   :  { %v3767_v31 = vpop.f32.mrf.mxu0 }
 0x463   :  { %v422_v32 = vpop.f32.mrf.mxu0 }
 0x468   :  { %v533_v33 = vpop.f32.mrf.mxu1 }
 0x469   :  { %v540_v34 = vmul.f32 0.35355338, %v533_v33 }
 0x46b   :  { %v510_v35 = vpop.f32.mrf.mxu0  ;;  %v550_v36 = vsel %vm216_vm14, %v540_v34, -inf }
 0x46c   :  { %v539_v37 = vmul.f32 0.35355338, %v510_v35  ;;  %551 = vmax.xlane.f32.xlu0 %v550_v36 }
 0x46e   :  { %v547_v38 = vsel %vm216_vm14, %v539_v37, -inf }
 0x46f   :  { %548 = vmax.xlane.f32.xlu1 %v547_v38 }
 0x470   :  { %v535_v39 = vpop.f32.mrf.mxu1 }
 0x473   :  { %v512_v19 = vpop.f32.mrf.mxu0 }
 0x480   :  { %698 = vrot.lane.b32.xlu0 %v3680_v45, %s3535_s26 }
 0x49b   :  { %v546_v41 = vpop.xlane.xlu2 %545 }
 0x49c   :  { %v554_v43 = vsub.f32 %v538_v20, %v546_v41 }
 0x49e   :  { %v559_v47 = vmul.f32 1.442695, %v554_v43 }
 0x4a3   :  { %v674_v1 = vpop.permute.xlu2 %673 }
 0x4a5   :  { %v543_v42 = vpop.xlane.xlu0 %542 }
 0x4a6   :  { %v553_v30 = vsub.f32 %v537_v26, %v543_v42 }
 0x4a8   :  { %v557_v44 = vmul.f32 1.442695, %v553_v30 }
 0x4aa   :  { %3328 = vpow2.f32 %v557_v44 }
 0x4ab   :  { %3330 = vpow2.f32 %v559_v47 }
 0x4b0   :  { %v3329_v48 = vpop.eup %3328 }
 0x4b1   :  { %v565_v49 = vsel %vm216_vm14, %v3329_v48, 0.0  ;;  %v3331_v51 = vpop.eup %3330 }
 0x4b2   :  { %566 = vadd.xlane.f32.xlu2 %v565_v49  ;;  %v568_v52 = vsel %vm216_vm14, %v3331_v51, 0.0 }
 0x4ba   :  { %569 = vadd.xlane.f32.xlu2 %v568_v52 }
 0x4d2   :  { %696 = vrot.lane.b32.xlu2 %v3680_v45, %s3536_s28 }
 0x4da   :  { %631 = vrot.lane.b32.xlu2 %v3682_v46, %s3534_s25 }
 0x4df   :  { %v552_v53 = vpop.xlane.xlu0 %551 }
 0x4e0   :  { %v556_v54 = vsub.f32 %v540_v34, %v552_v53 }
 0x4e2   :  { %v563_v55 = vmul.f32 1.442695, %v556_v54  ;;  %v549_v56 = vpop.xlane.xlu1 %548  ;;  %721 = vrot.lane.b32.xlu2 %v3682_v46, %s3535_s26 }
 0x4e3   :  { %v555_v57 = vsub.f32 %v539_v37, %v549_v56 }
 0x4e4   :  { %3332 = vpow2.f32 %v563_v55 }
 0x4e5   :  { %v561_v58 = vmul.f32 1.442695, %v555_v57 }
 0x4e7   :  { %3334 = vpow2.f32 %v561_v58 }
 0x4ea   :  { %v3333_v59 = vpop.eup %3332  ;;  %744 = vrot.lane.b32.xlu2 %v3688_v50, %s3535_s26 }
 0x4eb   :  { %v574_v60 = vsel %vm216_vm14, %v3333_v59, 0.0 }
 0x4ec   :  { %575 = vadd.xlane.f32.xlu1 %v574_v60 }
 0x4ed   :  { %v3335_v61 = vpop.eup %3334 }
 0x4ee   :  { %v571_v62 = vsel %vm216_vm14, %v3335_v61, 0.0 }
 0x4ef   :  { %572 = vadd.xlane.f32.xlu0 %v571_v62 }
 0x4f2   :  { %719 = vrot.lane.b32.xlu2 %v3682_v46, %s3536_s28  ;;  %v699_v63 = vpop.permute.xlu0 %698 }
 0x4f3   :  { %v704_v0 = vsel %vm216_vm14, %v699_v63, 0 }
 0x4f4   :  { %713 = vmatpush.bf16.xpose.msra.mxu3 %v704_v0 }
 0x505   :  { %652 = vrot.lane.b32.xlu1 %v3688_v50, %s3534_s25 }
 0x50d   :  { %742 = vrot.lane.b32.xlu1 %v3688_v50, %s3536_s28 }
 0x525   :  { %v567_v2 = vpop.xlane.xlu2 %566 }
 0x526   :  { %3336 = vrcp.f32 %v567_v2 }
 0x52c   :  { %v3337_v3 = vpop.eup %3336 }
 0x52d   :  { %v581_v4 = vmul.f32 %v3337_v3, %v3329_v48  ;;  %v570_v5 = vpop.xlane.xlu2 %569 }
 0x52e   :  { %3338 = vrcp.f32 %v570_v5 }
 0x52f   :  { %v585_v6 = vpack.c.bf16 %v581_v4, %v581_v4 }
 0x531   :  { %3124 = vmatmul.msk.bf16.vlgmr.msrb.gmra.mxu2 %vm216_vm14, %v585_v6 }
 0x534   :  { %v3339_v7 = vpop.eup %3338 }
 0x535   :  { %v582_v8 = vmul.f32 %v3339_v7, %v3331_v51  ;;  %v697_v9 = vpop.permute.xlu2 %696 }
 0x537   :  { %v586_v10 = vpack.c.bf16 %v582_v8, %v582_v8 }
 0x539   :  { %3125 = vmatmul.msk.bf16.vlgmr.msrb.gmra.mxu3 %vm216_vm14, %v586_v10 }
 0x53d   :  { %v632_v11 = vpop.permute.xlu2 %631 }
 0x53e   :  { %v637_v12 = vsel %vm365_vm15, %v632_v11, 0 }
 0x53f   :  { %646 = vmatpush.bf16.msrb.mxu0 %v637_v12 }
 0x541   :  { %3128 = vmatmul.msk.bf16.vlgmr.msra.gmra.mxu2 %vm216_vm14, %v674_v1 }
 0x545   :  { %v722_v13 = vpop.permute.xlu2 %721 }
 0x546   :  { %v727_v16 = vsel %vm216_vm14, %v722_v13, 0 }
 0x547   :  { %736 = vmatpush.bf16.xpose.msra.mxu0 %v727_v16 }
 0x549   :  { %3129 = vmatmul.msk.bf16.vlgmr.msra.gmra.mxu3 %vm216_vm14, %v697_v9 }
 0x54d   :  { %v745_v26 = vpop.permute.xlu2 %744 }
 0x54e   :  { %v750_v32 = vsel %vm216_vm14, %v745_v26, 0 }
 0x555   :  { %v720_v34 = vpop.permute.xlu2 %719 }
 0x55f   :  { %v576_v21 = vpop.xlane.xlu1 %575 }
 0x562   :  { %v573_v18 = vpop.xlane.xlu0 %572 }
 0x563   :  { %3340 = vrcp.f32 %v573_v18 }
 0x564   :  { %3342 = vrcp.f32 %v576_v21 }
 0x569   :  { %v3341_v20 = vpop.eup %3340 }
 0x56a   :  { %v583_v22 = vmul.f32 %v3341_v20, %v3335_v61  ;;  %v3343_v25 = vpop.eup %3342 }
 0x56b   :  { %v584_v27 = vmul.f32 %v3343_v25, %v3333_v59 }
 0x56c   :  { %v587_v23 = vpack.c.bf16 %v583_v22, %v583_v22 }
 0x56d   :  { %v588_v33 = vpack.c.bf16 %v584_v27, %v584_v27 }
 0x56e   :  { %3126 = vmatmul.msk.bf16.vlgmr.msrb.gmra.mxu0 %vm216_vm14, %v587_v23 }
 0x577   :  { %v653_v28 = vpop.permute.xlu1 %652 }
 0x578   :  { %v658_v29 = vsel %vm365_vm15, %v653_v28, 0 }
 0x579   :  { %667 = vmatpush.bf16.msrb.mxu1 %v658_v29 }
 0x57c   :  { %3127 = vmatmul.msk.bf16.vlgmr.msrb.gmra.mxu1 %vm216_vm14, %v588_v33 }
 0x57d   :  { %759 = vmatpush.bf16.xpose.msra.mxu1 %v750_v32 }
 0x57e   :  { %3130 = vmatmul.msk.bf16.vlgmr.msra.gmra.mxu0 %vm216_vm14, %v720_v34 }
 0x57f   :  { %v743_v35 = vpop.permute.xlu1 %742 }
 0x58c   :  { %3131 = vmatmul.msk.bf16.vlgmr.msra.gmra.mxu1 %vm216_vm14, %v743_v35 }
 0x5b4   :  { %v3804_v36 = vpop.f32.mrf.mxu2 }
 0x5bc   :  { %v608_v37 = vpop.f32.mrf.mxu2  ;;  %v3806_v38 = vpop.f32.mrf.mxu3 }
 0x5bd   :  { %v3228_v39 = vpack.i.bf16 %v3806_v38, %v3804_v36 }
 0x5c4   :  { %v629_v19 = vpop.f32.mrf.mxu3  ;;  %v692_v41 = vpop.f32.mrf.mxu2 }
 0x5c5   :  { %v765_v42 = vmul.f32 0.35355338, %v692_v41 }
 0x5c7   :  { %v769_v30 = vsel %vm216_vm14, %v765_v42, -inf }
 0x5c8   :  { %770 = vmax.xlane.f32.xlu2 %v769_v30 }
 0x5cc   :  { %v694_v43 = vpop.f32.mrf.mxu2  ;;  %v715_v44 = vpop.f32.mrf.mxu3 }
 0x5cd   :  { %v766_v1 = vmul.f32 0.35355338, %v715_v44 }
 0x5cf   :  { %v772_v4 = vsel %vm216_vm14, %v766_v1, -inf }
 0x5d4   :  { %v717_v47 = vpop.f32.mrf.mxu3 }
 0x5e0   :  { %838 = vrot.lane.b32.xlu2 %v3680_v45, %s3537_s29 }
 0x5e8   :  { %901 = vrot.lane.b32.xlu2 %v3676_v40, %s3538_s30 }
 0x5eb   :  { %v3815_v48 = vpop.f32.mrf.mxu0 }
 0x5f3   :  { %v650_v49 = vpop.f32.mrf.mxu0 }
 0x5f9   :  { %v3817_v51 = vpop.f32.mrf.mxu1 }
 0x5fa   :  { %v3243_v52 = vpack.i.bf16 %v3817_v51, %v3815_v48 }
 0x5fb   :  { %v738_v53 = vpop.f32.mrf.mxu0 }
 0x5fc   :  { %v767_v54 = vmul.f32 0.35355338, %v738_v53 }
 0x5fe   :  { %v775_v55 = vsel %vm216_vm14, %v767_v54, -inf }
 0x5ff   :  { %776 = vmax.xlane.f32.xlu0 %v775_v55 }
 0x601   :  { %v671_v56 = vpop.f32.mrf.mxu1 }
 0x603   :  { %v740_v57 = vpop.f32.mrf.mxu0 }
 0x609   :  { %v761_v58 = vpop.f32.mrf.mxu1 }
 0x60a   :  { %v768_v60 = vmul.f32 0.35355338, %v761_v58 }
 0x60c   :  { %v778_v63 = vsel %vm216_vm14, %v768_v60, -inf }
 0x611   :  { %v763_v59 = vpop.f32.mrf.mxu1 }
 0x613   :  { %817 = vrot.lane.b32.xlu0 %v3676_v40, %s3537_s29 }
 0x63b   :  { %v771_v61 = vpop.xlane.xlu2 %770 }
 0x63c   :  { %v781_v62 = vsub.f32 %v765_v42, %v771_v61 }
 0x63d   :  { %779 = vmax.xlane.f32.xlu0 %v778_v63 }
 0x63e   :  { %v785_v0 = vmul.f32 1.442695, %v781_v62 }
 0x640   :  { %3344 = vpow2.f32 %v785_v0 }
 0x643   :  { %v839_v2 = vpop.permute.xlu2 %838 }
 0x644   :  { %v844_v3 = vsel %vm365_vm15, %v839_v2, 0 }
 0x645   :  { %853 = vmatpush.bf16.msrb.mxu3 %v844_v3  ;;  %773 = vmax.xlane.f32.xlu0 %v772_v4 }
 0x646   :  { %v3345_v5 = vpop.eup %3344 }
 0x647   :  { %v793_v6 = vsel %vm216_vm14, %v3345_v5, 0.0 }
 0x648   :  { %794 = vadd.xlane.f32.xlu1 %v793_v6 }
 0x64b   :  { %v902_v42 = vpop.permute.xlu2 %901 }
 0x659   :  { %926 = vrot.lane.b32.xlu0 %v3680_v45, %s3539_s13 }
 0x661   :  { %903 = vrot.lane.b32.xlu1 %v3676_v40, %s3539_s13 }
 0x672   :  { %v777_v7 = vpop.xlane.xlu0 %776 }
 0x673   :  { %v783_v8 = vsub.f32 %v767_v54, %v777_v7 }
 0x675   :  { %v789_v9 = vmul.f32 1.442695, %v783_v8 }
 0x677   :  { %3346 = vpow2.f32 %v789_v9 }
 0x67d   :  { %v3347_v10 = vpop.eup %3346 }
 0x67e   :  { %v799_v11 = vsel %vm216_vm14, %v3347_v10, 0.0 }
 0x67f   :  { %800 = vadd.xlane.f32.xlu2 %v799_v11 }
 0x685   :  { %v818_v12 = vpop.permute.xlu0 %817 }
 0x686   :  { %v823_v13 = vsel %vm365_vm15, %v818_v12, 0 }
 0x687   :  { %832 = vmatpush.bf16.msrb.mxu2 %v823_v13 }
 0x697   :  { %970 = vrot.lane.b32.xlu2 %v3688_v50, %s3538_s30 }
 0x6b0   :  { %v780_v16 = vpop.xlane.xlu0 %779 }
 0x6b1   :  { %v784_v18 = vsub.f32 %v768_v60, %v780_v16 }
 0x6b3   :  { %v791_v20 = vmul.f32 1.442695, %v784_v18 }
 0x6b5   :  { %3348 = vpow2.f32 %v791_v20 }
 0x6b8   :  { %v774_v21 = vpop.xlane.xlu0 %773 }
 0x6b9   :  { %v782_v22 = vsub.f32 %v766_v1, %v774_v21 }
 0x6bb   :  { %v3349_v23 = vpop.eup %3348  ;;  %v787_v25 = vmul.f32 1.442695, %v782_v22  ;;  %v795_v26 = vpop.xlane.xlu1 %794 }
 0x6bc   :  { %3350 = vrcp.f32 %v795_v26  ;;  %v802_v27 = vsel %vm216_vm14, %v3349_v23, 0.0 }
 0x6bd   :  { %3352 = vpow2.f32 %v787_v25  ;;  %803 = vadd.xlane.f32.xlu1 %v802_v27 }
 0x6c2   :  { %v3351_v28 = vpop.eup %3350 }
 0x6c3   :  { %v3353_v29 = vpop.eup %3352  ;;  %v809_v32 = vmul.f32 %v3351_v28, %v3345_v5 }
 0x6c4   :  { %v796_v33 = vsel %vm216_vm14, %v3353_v29, 0.0 }
 0x6c5   :  { %v813_v34 = vpack.c.bf16 %v809_v32, %v809_v32  ;;  %797 = vadd.xlane.f32.xlu0 %v796_v33 }
 0x6c7   :  { %3132 = vmatmul.msk.bf16.vlgmr.msrb.gmra.mxu2 %vm216_vm14, %v813_v34 }
 0x6cb   :  { %v927_v35 = vpop.permute.xlu0 %926 }
 0x6cc   :  { %v932_v37 = vsel %vm216_vm14, %v927_v35, 0 }
 0x6cd   :  { %941 = vmatpush.bf16.xpose.msra.mxu3 %v932_v37 }
 0x6d3   :  { %v904_v19 = vpop.permute.xlu1 %903 }
 0x6d4   :  { %v909_v41 = vsel %vm216_vm14, %v904_v19, 0 }
 0x6d5   :  { %918 = vmatpush.bf16.xpose.msra.mxu2 %v909_v41 }
 0x6d9   :  { %924 = vrot.lane.b32.xlu0 %v3680_v45, %s3538_s30 }
 0x6dc   :  { %3136 = vmatmul.msk.bf16.vlgmr.msra.gmra.mxu2 %vm216_vm14, %v902_v42 }
 0x6e1   :  { %859 = vrot.lane.b32.xlu0 %v3682_v46, %s3537_s29 }
 0x6e9   :  { %880 = vrot.lane.b32.xlu0 %v3688_v50, %s3537_s29 }
 0x6f1   :  { %949 = vrot.lane.b32.xlu0 %v3682_v46, %s3539_s13 }
 0x6f2   :  { %v801_v49 = vpop.xlane.xlu2 %800 }
 0x6f9   :  { %972 = vrot.lane.b32.xlu0 %v3688_v50, %s3539_s13 }
 0x6fa   :  { %v971_v11 = vpop.permute.xlu2 %970 }
 0x701   :  { %947 = vrot.lane.b32.xlu0 %v3682_v46, %s3538_s30 }
 0x730   :  { %v804_v55 = vpop.xlane.xlu1 %803 }
 0x738   :  { %v798_v30 = vpop.xlane.xlu0 %797 }
 0x739   :  { %3354 = vrcp.f32 %v798_v30 }
 0x73a   :  { %3356 = vrcp.f32 %v801_v49 }
 0x73b   :  { %3358 = vrcp.f32 %v804_v55 }
 0x73f   :  { %v3355_v43 = vpop.eup %3354 }
 0x740   :  { %v810_v44 = vmul.f32 %v3355_v43, %v3353_v29  ;;  %v3357_v56 = vpop.eup %3356 }
 0x741   :  { %v811_v57 = vmul.f32 %v3357_v56, %v3347_v10  ;;  %v3359_v62 = vpop.eup %3358 }
 0x742   :  { %v814_v47 = vpack.c.bf16 %v810_v44, %v810_v44  ;;  %v812_v63 = vmul.f32 %v3359_v62, %v3349_v23 }
 0x743   :  { %v815_v61 = vpack.c.bf16 %v811_v57, %v811_v57 }
 0x744   :  { %3133 = vmatmul.msk.bf16.vlgmr.msrb.gmra.mxu3 %vm216_vm14, %v814_v47  ;;  %v816_v2 = vpack.c.bf16 %v812_v63, %v812_v63 }
 0x74a   :  { %v3855_v53 = vpop.f32.mrf.mxu2 }
 0x74b   :  { %v925_v54 = vpop.permute.xlu0 %924 }
 0x752   :  { %v836_v58 = vpop.f32.mrf.mxu2 }
 0x753   :  { %v860_v59 = vpop.permute.xlu0 %859 }
 0x754   :  { %v865_v60 = vsel %vm365_vm15, %v860_v59, 0  ;;  %3137 = vmatmul.msk.bf16.vlgmr.msra.gmra.mxu3 %vm216_vm14, %v925_v54 }
 0x755   :  { %874 = vmatpush.bf16.msrb.mxu0 %v865_v60 }
 0x758   :  { %3134 = vmatmul.msk.bf16.vlgmr.msrb.gmra.mxu0 %vm216_vm14, %v815_v61 }
 0x75b   :  { %v881_v0 = vpop.permute.xlu0 %880 }
 0x75c   :  { %v886_v1 = vsel %vm365_vm15, %v881_v0, 0 }
 0x75d   :  { %895 = vmatpush.bf16.msrb.mxu1 %v886_v1 }
 0x75f   :  { %v920_v3 = vpop.f32.mrf.mxu2 }
 0x760   :  { %v993_v4 = vmul.f32 0.35355338, %v920_v3  ;;  %3135 = vmatmul.msk.bf16.vlgmr.msrb.gmra.mxu1 %vm216_vm14, %v816_v2 }
 0x762   :  { %v997_v5 = vsel %vm216_vm14, %v993_v4, -inf }
 0x763   :  { %998 = vmax.xlane.f32.xlu0 %v997_v5  ;;  %v950_v6 = vpop.permute.xlu0 %949 }
 0x764   :  { %v955_v7 = vsel %vm216_vm14, %v950_v6, 0 }
 0x765   :  { %964 = vmatpush.bf16.xpose.msra.mxu0 %v955_v7 }
 0x767   :  { %v922_v8 = vpop.f32.mrf.mxu2 }
 0x76b   :  { %v973_v9 = vpop.permute.xlu0 %972 }
 0x76c   :  { %v978_v10 = vsel %vm216_vm14, %v973_v9, 0 }
 0x76d   :  { %987 = vmatpush.bf16.xpose.msra.mxu1 %v978_v10 }
 0x773   :  { %v948_v12 = vpop.permute.xlu0 %947 }
 0x774   :  { %3138 = vmatmul.msk.bf16.vlgmr.msra.gmra.mxu0 %vm216_vm14, %v948_v12  ;;  %3139 = vmatmul.msk.bf16.vlgmr.msra.gmra.mxu1 %vm216_vm14, %v971_v11 }
 0x777   :  { %1066 = vrot.lane.b32.xlu0 %v3680_v45, %s4566_s3 }
 0x7c7   :  { %v3869_v13 = vpop.f32.mrf.mxu3 }
 0x7cf   :  { %v857_v16 = vpop.f32.mrf.mxu3 }
 0x7d5   :  { %v3871_v18 = vpop.f32.mrf.mxu0 }
 0x7d6   :  { %v999_v20 = vpop.xlane.xlu0 %998 }
 0x7d7   :  { %v1009_v21 = vsub.f32 %v993_v4, %v999_v20  ;;  %v943_v22 = vpop.f32.mrf.mxu3 }
 0x7d8   :  { %v994_v23 = vmul.f32 0.35355338, %v943_v22 }
 0x7d9   :  { %v1013_v25 = vmul.f32 1.442695, %v1009_v21 }
 0x7da   :  { %v1000_v26 = vsel %vm216_vm14, %v994_v23, -inf }
 0x7db   :  { %3360 = vpow2.f32 %v1013_v25  ;;  %1001 = vmax.xlane.f32.xlu1 %v1000_v26 }
 0x7dd   :  { %v878_v27 = vpop.f32.mrf.mxu0  ;;  %v3874_v28 = vpop.f32.mrf.mxu1 }
 0x7de   :  { %v3248_v45 = vpack.i.bf16 %v3874_v28, %v3871_v18  ;;  %v1191_v18 = vld [vmem:[%s4553_s4] sm:$0xff]  ;;  %v1192_v28 = vld [vmem:[%s4553_s4 + $0x8] sm:$0xff] }
 0x7df   :  { %v945_v29 = vpop.f32.mrf.mxu3 }
 0x7e1   :  { %v3361_v32 = vpop.eup %3360 }
 0x7e2   :  { %v1021_v33 = vsel %vm216_vm14, %v3361_v32, 0.0 }
 0x7e3   :  { %1022 = vadd.xlane.f32.xlu2 %v1021_v33 }
 0x7e5   :  { %v899_v34 = vpop.f32.mrf.mxu1 }
 0x7e6   :  { %v1193_v34 = vld [vmem:[%s4553_s4 + $0x10] sm:$0xff] }
 0x7e9   :  { %v1067_v35 = vpop.permute.xlu0 %1066 }
 0x7ea   :  { %v1072_v37 = vsel %vm365_vm15, %v1067_v35, 0  ;;  %v1194_v35 = vld [vmem:[%s4553_s4 + $0x18] sm:$0xff] }
 0x7eb   :  { %1081 = vmatpush.bf16.msrb.mxu3 %v1072_v37  ;;  %v1198_v37 = vpack.c.bf16 %v1194_v35, %v1193_v34 }
 0x7f1   :  { %v966_v19 = vpop.f32.mrf.mxu0  ;;  %v989_v41 = vpop.f32.mrf.mxu1 }
 0x7f2   :  { %v995_v42 = vmul.f32 0.35355338, %v966_v19  ;;  %v996_v43 = vmul.f32 0.35355338, %v989_v41 }
 0x7f4   :  { %v1003_v30 = vsel %vm216_vm14, %v995_v42, -inf  ;;  %v1006_v49 = vsel %vm216_vm14, %v996_v43, -inf }
 0x7f5   :  { %1004 = vmax.xlane.f32.xlu1 %v1003_v30 }
 0x7f9   :  { %v968_v44 = vpop.f32.mrf.mxu0  ;;  %v991_v47 = vpop.f32.mrf.mxu1 }
 0x7fb   :  { %1087 = vrot.lane.b32.xlu2 %v3682_v46, %s4566_s3 }
 0x7fd   :  { %1007 = vmax.xlane.f32.xlu1 %v1006_v49 }
 0x803   :  { %1108 = vrot.lane.b32.xlu2 %v3688_v50, %s4566_s3 }
 0x80b   :  { %3229 = vrot.lane.b32.xlu2 %v3228_v39, %s4562_s27 }
 0x84e   :  { %v1002_v54 = vpop.xlane.xlu1 %1001 }
 0x84f   :  { %v1010_v55 = vsub.f32 %v994_v23, %v1002_v54 }
 0x851   :  { %v1015_v56 = vmul.f32 1.442695, %v1010_v55 }
 0x853   :  { %3362 = vpow2.f32 %v1015_v56 }
 0x856   :  { %v1023_v57 = vpop.xlane.xlu2 %1022 }
 0x859   :  { %v3363_v58 = vpop.eup %3362 }
 0x85a   :  { %v1024_v59 = vsel %vm216_vm14, %v3363_v58, 0.0 }
 0x85b   :  { %1025 = vadd.xlane.f32.xlu1 %v1024_v59 }
 0x85e   :  { %v1088_v46 = vpop.permute.xlu2 %1087 }
 0x85f   :  { %v1093_v60 = vsel %vm365_vm15, %v1088_v46, 0 }
 0x860   :  { %1102 = vmatpush.bf16.msrb.mxu0 %v1093_v60 }
 0x866   :  { %v1109_v61 = vpop.permute.xlu2 %1108 }
 0x867   :  { %v1114_v50 = vsel %vm365_vm15, %v1109_v61, 0 }
 0x868   :  { %v1005_v62 = vpop.xlane.xlu1 %1004  ;;  %1123 = vmatpush.bf16.msrb.mxu1 %v1114_v50 }
 0x869   :  { %v1011_v1 = vsub.f32 %v995_v42, %v1005_v62 }
 0x86b   :  { %v1017_v2 = vmul.f32 1.442695, %v1011_v1 }
 0x86e   :  { %v3230_v30 = vpop.permute.xlu2 %3229 }
 0x86f   :  { %v3232_v44 = vunpack.i.h.bf16 %v3230_v30  ;;  %v3231_v47 = vunpack.i.l.bf16 %v3230_v30 }
 0x870   :  { %v1008_v36 = vpop.xlane.xlu1 %1007 }
 0x871   :  { %v1012_v38 = vsub.f32 %v996_v43, %v1008_v36  ;;  %v1178_v56 = vsel %vm216_vm14, %v3757_v15, %v3232_v44 }
 0x873   :  { %v1019_v39 = vmul.f32 1.442695, %v1012_v38 }
 0x874   :  { %1045 = vrot.lane.b32.xlu1 %v3676_v40, %s4566_s3  ;;  %v3233_v40 = vpack.i.bf16 %v3869_v13, %v3855_v53 }
 0x875   :  { %3364 = vpow2.f32 %v1019_v39 }
 0x876   :  { %3366 = vpow2.f32 %v1017_v2 }
 0x87b   :  { %v3365_v63 = vpop.eup %3364 }
 0x87c   :  { %v1030_v0 = vsel %vm216_vm14, %v3365_v63, 0.0  ;;  %v3367_v3 = vpop.eup %3366 }
 0x87d   :  { %1031 = vadd.xlane.f32.xlu0 %v1030_v0  ;;  %v1027_v4 = vsel %vm216_vm14, %v3367_v3, 0.0 }
 0x891   :  { %3244 = vrot.lane.b32.xlu0 %v3243_v52, %s4562_s27 }
 0x89e   :  { %1028 = vadd.xlane.f32.xlu1 %v1027_v4 }
 0x8b7   :  { %3234 = vrot.lane.b32.xlu1 %v3233_v40, %s4564_s14 }
 0x8ce   :  { %v1026_v5 = vpop.xlane.xlu1 %1025 }
 0x8cf   :  { %3368 = vrcp.f32 %v1026_v5 }
 0x8d0   :  { %3370 = vrcp.f32 %v1023_v57  ;;  %v1177_v57 = vsel %vm216_vm14, %v3759_v17, %v3231_v47 }
 0x8d5   :  { %v3369_v6 = vpop.eup %3368 }
 0x8d6   :  { %v1038_v7 = vmul.f32 %v3369_v6, %v3363_v58  ;;  %v3371_v48 = vpop.eup %3370 }
 0x8d7   :  { %v1037_v51 = vmul.f32 %v3371_v48, %v3361_v32 }
 0x8d8   :  { %v1042_v8 = vpack.c.bf16 %v1038_v7, %v1038_v7 }
 0x8d9   :  { %v1041_v10 = vpack.c.bf16 %v1037_v51, %v1037_v51 }
 0x8da   :  { %3141 = vmatmul.msk.bf16.vlgmr.msrb.gmra.mxu3 %vm216_vm14, %v1042_v8 }
 0x8e6   :  { %v1046_v52 = vpop.permute.xlu1 %1045 }
 0x8e7   :  { %v1051_v9 = vsel %vm365_vm15, %v1046_v52, 0 }
 0x8e8   :  { %1060 = vmatpush.bf16.msrb.mxu2 %v1051_v9 }
 0x8eb   :  { %3140 = vmatmul.msk.bf16.vlgmr.msrb.gmra.mxu2 %vm216_vm14, %v1041_v10 }
 0x8ec   :  { %1211 = vmatpush.bf16.msra.mxu2 %v1198_v37 }
 0x8f0   :  { %v1032_v53 = vpop.xlane.xlu0 %1031 }
 0x8f1   :  { %3372 = vrcp.f32 %v1032_v53  ;;  %v3497_v53 = vld [vmem:[%s4549_s0 + $0x8] sm:$0xff] }
 0x8f7   :  { %v3373_v11 = vpop.eup %3372 }
 0x8f8   :  { %v1040_v12 = vmul.f32 %v3373_v11, %v3365_v63 }
 0x8fa   :  { %v1044_v13 = vpack.c.bf16 %v1040_v12, %v1040_v12 }
 0x8fc   :  { %3143 = vmatmul.msk.bf16.vlgmr.msrb.gmra.mxu1 %vm216_vm14, %v1044_v13 }
 0x903   :  { %v3245_v38 = vpop.permute.xlu0 %3244 }
 0x904   :  { %v3247_v39 = vunpack.i.h.bf16 %v3245_v38  ;;  %v3246_v15 = vunpack.i.l.bf16 %v3245_v38 }
 0x906   :  { %v1180_v1 = vsel %vm216_vm14, %v3762_v24, %v3247_v39  ;;  %v1179_v2 = vsel %vm216_vm14, %v3767_v31, %v3246_v15  ;;  %v3290_v24 = vld [vmem:[%s4554_s5] ss:$0 sm:$0xff] }
 0x907   :  { %v3496_v31 = vld [vmem:[%s4549_s0] sm:$0xff] }
 0x911   :  { %v1029_v16 = vpop.xlane.xlu1 %1028 }
 0x912   :  { %3374 = vrcp.f32 %v1029_v16 }
 0x918   :  { %v3375_v20 = vpop.eup %3374 }
 0x919   :  { %v1039_v21 = vmul.f32 %v3375_v20, %v3367_v3  ;;  %v3498_v20 = vld [vmem:[%s4549_s0 + $0x10] sm:$0xff] }
 0x91b   :  { %v1043_v22 = vpack.c.bf16 %v1039_v21, %v1039_v21 }
 0x91d   :  { %3142 = vmatmul.msk.bf16.vlgmr.msrb.gmra.mxu0 %vm216_vm14, %v1043_v22 }
 0x929   :  { %v3235_v43 = vpop.permute.xlu1 %3234 }
 0x92a   :  { %v3237_v49 = vunpack.i.h.bf16 %v3235_v43  ;;  %v3236_v54 = vunpack.i.l.bf16 %v3235_v43 }
 0x92c   :  { %v1183_v46 = vsel %vm1181_vm1, %v1178_v56, %v3237_v49  ;;  %v1182_v60 = vsel %vm1181_vm1, %v1177_v57, %v3236_v54 }
 0x95d   :  { %v1083_v23 = vpop.f32.mrf.mxu3 }
 0x965   :  { %v1085_v25 = vpop.f32.mrf.mxu3 }
 0x96e   :  { %v1062_v26 = vpop.f32.mrf.mxu2 }
 0x96f   :  { %v3238_v27 = vpack.i.bf16 %v1083_v23, %v1062_v26  ;;  %v3499_v26 = vld [vmem:[%s4549_s0 + $0x18] sm:$0xff] }
 0x971   :  { %3239 = vrot.lane.b32.xlu2 %v3238_v27, %s3542_s15 }
 0x976   :  { %v1064_v29 = vpop.f32.mrf.mxu2 }
 0x979   :  { %3249 = vrot.lane.b32.xlu2 %v3248_v45, %s4564_s14  ;;  %v1125_v32 = vpop.f32.mrf.mxu1  ;;  %v1197_v45 = vpack.c.bf16 %v1192_v28, %v1191_v18 }
 0x97b   :  { %1212 = vmatpush.bf16.msra.mxu2 %v1197_v45 }
 0x981   :  { %v1127_v33 = vpop.f32.mrf.mxu1 }
 0x99a   :  { %v1104_v19 = vpop.f32.mrf.mxu0 }
 0x99b   :  { %v3253_v41 = vpack.i.bf16 %v1125_v32, %v1104_v19 }
 0x99d   :  { %3254 = vrot.lane.b32.xlu2 %v3253_v41, %s3542_s15 }
 0x9a2   :  { %v1106_v42 = vpop.f32.mrf.mxu0 }
 0x9cb   :  { %v3240_v55 = vpop.permute.xlu2 %3239 }
 0x9cc   :  { %v3242_v58 = vunpack.i.h.bf16 %v3240_v55  ;;  %v3241_v59 = vunpack.i.l.bf16 %v3240_v55 }
 0x9ce   :  { %v1187_v61 = vsel %vm1186_vm2, %v1182_v60, %v3241_v59  ;;  %v1188_v50 = vsel %vm1186_vm2, %v1183_v46, %v3242_v58  ;;  %v1342_v59 = vld [vmem:[%s4557_s8 + $0x10] sm:$0xff]  ;;  %v1343_v46 = vld [vmem:[%s4557_s8 + $0x18] sm:$0xff] }
 0x9cf   :  { %v1195_v62 = vpack.c.bf16 %v1188_v50, %v1187_v61  ;;  %v1347_v60 = vpack.c.bf16 %v1343_v46, %v1342_v59 }
 0x9d1   :  { %3144 = vmatmul.msk.bf16.vlgmr.msra.gmra.mxu2 %vm64_vm0, %v1195_v62  ;;  %1364 = vmatpush.bf16.msra.mxu3 %v1347_v60  ;;  %v1340_v62 = vld [vmem:[%s4557_s8] sm:$0xff] }
 0x9d3   :  { %v3250_v36 = vpop.permute.xlu2 %3249 }
 0x9d4   :  { %v3252_v63 = vunpack.i.h.bf16 %v3250_v36  ;;  %v3251_v0 = vunpack.i.l.bf16 %v3250_v36  ;;  %v1341_v36 = vld [vmem:[%s4557_s8 + $0x8] sm:$0xff] }
 0x9d5   :  { %v1346_v39 = vpack.c.bf16 %v1341_v36, %v1340_v62  ;;  %v4025_v62 = vld [vmem:[%s4558_s9] ss:$0 sm:$0xff] }
 0x9d6   :  { %v1185_v40 = vsel %vm1181_vm1, %v1180_v1, %v3252_v63  ;;  %v1184_v5 = vsel %vm1181_vm1, %v1179_v2, %v3251_v0 }
 0x9d7   :  { %1365 = vmatpush.bf16.msra.mxu3 %v1346_v39 }
 0x9f7   :  { %v3255_v17 = vpop.permute.xlu2 %3254 }
 0x9f8   :  { %v3257_v3 = vunpack.i.h.bf16 %v3255_v17  ;;  %v3256_v4 = vunpack.i.l.bf16 %v3255_v17 }
 0x9fa   :  { %v1189_v6 = vsel %vm1186_vm2, %v1184_v5, %v3256_v4  ;;  %v1190_v7 = vsel %vm1186_vm2, %v1185_v40, %v3257_v3 }
 0x9fb   :  { %v1196_v8 = vpack.c.bf16 %v1190_v7, %v1189_v6 }
 0x9fd   :  { %3145 = vmatmul.msk.bf16.gmra.mxu2 %vm64_vm0, %v1196_v8 }
 0xa54   :  { %v1214_v48 = vpop.f32.mrf.mxu2 }
 0xa55   :  { %v1224_v51 = vadd.f32 %v3496_v31, %v1214_v48  ;;  %v3291_v31 = vld [vmem:[%s4555_s6] ss:$0 sm:$0xff] }
 0xa57   :  { %v3951_v52 = vadd.f32 %v3290_v24, %v1224_v51 }
 0xa59   :  { %v1238_v9 = vsel %vm64_vm0, %v3951_v52, 0.0 }
 0xa5a   :  { %1239 = vadd.xlane.f32.xlu0 %v1238_v9 }
 0xa5c   :  { %v1216_v10 = vpop.f32.mrf.mxu2 }
 0xa5d   :  { %v1225_v11 = vadd.f32 %v3497_v53, %v1216_v10  ;;  %v3292_v53 = vld [vmem:[%s4556_s7] ss:$0 sm:$0xff] }
 0xa5f   :  { %v3958_v12 = vadd.f32 %v3290_v24, %v1225_v11 }
 0xa61   :  { %v1241_v13 = vsel %vm64_vm0, %v3958_v12, 0.0 }
 0xa62   :  { %1242 = vadd.xlane.f32.xlu1 %v1241_v13 }
 0xa80   :  { %v1219_v16 = vpop.f32.mrf.mxu2 }
 0xa81   :  { %v1226_v21 = vadd.f32 %v3498_v20, %v1219_v16 }
 0xa83   :  { %v3965_v22 = vadd.f32 %v3290_v24, %v1226_v21 }
 0xa85   :  { %v1244_v23 = vsel %vm64_vm0, %v3965_v22, 0.0 }
 0xa86   :  { %1245 = vadd.xlane.f32.xlu2 %v1244_v23 }
 0xa88   :  { %v1221_v25 = vpop.f32.mrf.mxu2 }
 0xa89   :  { %v1227_v27 = vadd.f32 %v3499_v26, %v1221_v25 }
 0xa8b   :  { %v3972_v29 = vadd.f32 %v3290_v24, %v1227_v27 }
 0xa8d   :  { %v1247_v32 = vsel %vm64_vm0, %v3972_v29, 0.0 }
 0xa8e   :  { %1248 = vadd.xlane.f32.xlu0 %v1247_v32 }
 0xacd   :  { %v1240_v33 = vpop.xlane.xlu0 %1239 }
 0xace   :  { %v1250_v34 = vmul.f32 %v1240_v33, %v3628_v14 }
 0xad0   :  { %v1254_v35 = vsub.f32 %v3951_v52, %v1250_v34 }
 0xad2   :  { %v1258_v37 = vmul.f32 %v1254_v35, %v1254_v35 }
 0xad4   :  { %v1262_v19 = vsel %vm64_vm0, %v1258_v37, 0.0 }
 0xad5   :  { %1263 = vadd.xlane.f32.xlu1 %v1262_v19  ;;  %v1243_v41 = vpop.xlane.xlu1 %1242 }
 0xad6   :  { %v1251_v42 = vmul.f32 %v1243_v41, %v3628_v14 }
 0xad8   :  { %v1255_v18 = vsub.f32 %v3958_v12, %v1251_v42 }
 0xada   :  { %v1259_v28 = vmul.f32 %v1255_v18, %v1255_v18 }
 0xadc   :  { %v1265_v45 = vsel %vm64_vm0, %v1259_v28, 0.0 }
 0xadd   :  { %1266 = vadd.xlane.f32.xlu2 %v1265_v45 }
 0xaf9   :  { %v1246_v30 = vpop.xlane.xlu2 %1245 }
 0xafa   :  { %v1252_v43 = vmul.f32 %v1246_v30, %v3628_v14 }
 0xafc   :  { %v3984_v44 = vsub.f32 %v3965_v22, %v1252_v43 }
 0xafe   :  { %v1260_v47 = vmul.f32 %v3984_v44, %v3984_v44 }
 0xb00   :  { %v1268_v49 = vsel %vm64_vm0, %v1260_v47, 0.0 }
 0xb01   :  { %1269 = vadd.xlane.f32.xlu0 %v1268_v49  ;;  %v1249_v54 = vpop.xlane.xlu0 %1248 }
 0xb02   :  { %v1253_v55 = vmul.f32 %v1249_v54, %v3628_v14 }
 0xb04   :  { %v3991_v56 = vsub.f32 %v3972_v29, %v1253_v55 }
 0xb06   :  { %v1261_v57 = vmul.f32 %v3991_v56, %v3991_v56 }
 0xb08   :  { %v1271_v58 = vsel %vm64_vm0, %v1261_v57, 0.0 }
 0xb09   :  { %1272 = vadd.xlane.f32.xlu1 %v1271_v58 }
 0xb48   :  { %v1264_v61 = vpop.xlane.xlu1 %1263 }
 0xb49   :  { %v1274_v50 = vmul.f32 %v1264_v61, %v3628_v14 }
 0xb4b   :  { %v1278_v38 = vadd.f32 1e-05, %v1274_v50 }
 0xb4d   :  { %3376 = vrsqrt.f32 %v1278_v38  ;;  %vm1288_vm4 = vweird.f32 %v1278_v38 }
 0xb50   :  { %v1267_v15 = vpop.xlane.xlu2 %1266 }
 0xb51   :  { %v1275_v63 = vmul.f32 %v1267_v15, %v3628_v14 }
 0xb53   :  { %v3377_v0 = vpop.eup %3376  ;;  %v1279_v17 = vadd.f32 1e-05, %v1275_v63 }
 0xb54   :  { %v1283_v1 = vmul.f32 %v3377_v0, %v1278_v38  ;;  %vm1289_vm3 = vweird.f32 %v3377_v0 }
 0xb55   :  { %3378 = vrsqrt.f32 %v1279_v17  ;;  %vm1290_vm5 = vmor %vm1288_vm4, %vm1289_vm3  ;;  %vm1298_vm7 = vweird.f32 %v1279_v17 }
 0xb56   :  { %v1284_v2 = vmul.f32 %v3377_v0, %v1283_v1 }
 0xb58   :  { %v1285_v3 = vmul.f32 0.5, %v1284_v2 }
 0xb5a   :  { %v1286_v4 = vsub.f32 1.5, %v1285_v3 }
 0xb5b   :  { %v3379_v40 = vpop.eup %3378 }
 0xb5c   :  { %v1287_v5 = vmul.f32 %v3377_v0, %v1286_v4  ;;  %v1293_v6 = vmul.f32 %v3379_v40, %v1279_v17  ;;  %vm1299_vm6 = vweird.f32 %v3379_v40 }
 0xb5d   :  { %vm1300_vm8 = vmor %vm1298_vm7, %vm1299_vm6 }
 0xb5e   :  { %v1294_v7 = vmul.f32 %v3379_v40, %v1293_v6  ;;  %v1291_v8 = vsel %vm1290_vm5, %v3377_v0, %v1287_v5 }
 0xb5f   :  { %v1322_v51 = vmul.f32 %v1291_v8, %v1254_v35 }
 0xb60   :  { %v1295_v24 = vmul.f32 0.5, %v1294_v7 }
 0xb61   :  { %v1329_v11 = vmul.f32 %v3291_v31, %v1322_v51 }
 0xb62   :  { %v1296_v48 = vsub.f32 1.5, %v1295_v24 }
 0xb63   :  { %v1336_v20 = vadd.f32 %v3292_v53, %v1329_v11 }
 0xb64   :  { %v1297_v9 = vmul.f32 %v3379_v40, %v1296_v48 }
 0xb66   :  { %v1301_v10 = vsel %vm1300_vm8, %v3379_v40, %v1297_v9 }
 0xb67   :  { %v1323_v13 = vmul.f32 %v1301_v10, %v1255_v18 }
 0xb69   :  { %v1330_v16 = vmul.f32 %v3291_v31, %v1323_v13  ;;  %v1539_v13 = vld [vmem:[%s4559_s10 + $0x10] sm:$0xff] }
 0xb6b   :  { %v1337_v21 = vadd.f32 %v3292_v53, %v1330_v16  ;;  %v1540_v16 = vld [vmem:[%s4559_s10 + $0x18] sm:$0xff] }
 0xb6d   :  { %v1344_v23 = vpack.c.bf16 %v1337_v21, %v1336_v20  ;;  %v1544_v21 = vpack.c.bf16 %v1540_v16, %v1539_v13 }
 0xb6f   :  { %3146 = vmatmul.msk.bf16.vlgmr.msra.gmra.mxu3 %vm64_vm0, %v1344_v23  ;;  %1557 = vmatpush.bf16.msra.mxu0 %v1544_v21 }
 0xb74   :  { %v1270_v25 = vpop.xlane.xlu0 %1269 }
 0xb75   :  { %v1276_v26 = vmul.f32 %v1270_v25, %v3628_v14 }
 0xb77   :  { %v1280_v27 = vadd.f32 1e-05, %v1276_v26 }
 0xb79   :  { %3380 = vrsqrt.f32 %v1280_v27  ;;  %vm1308_vm10 = vweird.f32 %v1280_v27 }
 0xb7c   :  { %v1273_v32 = vpop.xlane.xlu1 %1272 }
 0xb7d   :  { %v1277_v33 = vmul.f32 %v1273_v32, %v3628_v14 }
 0xb7f   :  { %v3381_v34 = vpop.eup %3380  ;;  %v1281_v35 = vadd.f32 1e-05, %v1277_v33 }
 0xb80   :  { %v1303_v37 = vmul.f32 %v3381_v34, %v1280_v27  ;;  %vm1309_vm9 = vweird.f32 %v3381_v34 }
 0xb81   :  { %3382 = vrsqrt.f32 %v1281_v35  ;;  %vm1310_vm11 = vmor %vm1308_vm10, %vm1309_vm9  ;;  %vm1318_vm13 = vweird.f32 %v1281_v35 }
 0xb82   :  { %v1304_v19 = vmul.f32 %v3381_v34, %v1303_v37 }
 0xb84   :  { %v1305_v41 = vmul.f32 0.5, %v1304_v19 }
 0xb86   :  { %v1306_v42 = vsub.f32 1.5, %v1305_v41 }
 0xb87   :  { %v3383_v18 = vpop.eup %3382 }
 0xb88   :  { %v1307_v28 = vmul.f32 %v3381_v34, %v1306_v42  ;;  %v1313_v45 = vmul.f32 %v3383_v18, %v1281_v35  ;;  %vm1319_vm12 = vweird.f32 %v3383_v18  ;;  %v1538_v35 = vld [vmem:[%s4559_s10 + $0x8] sm:$0xff] }
 0xb89   :  { %vm1320_vm3 = vmor %vm1318_vm13, %vm1319_vm12 }
 0xb8a   :  { %v1314_v30 = vmul.f32 %v3383_v18, %v1313_v45  ;;  %v1311_v43 = vsel %vm1310_vm11, %v3381_v34, %v1307_v28  ;;  %v1537_v34 = vld [vmem:[%s4559_s10] sm:$0xff] }
 0xb8b   :  { %v1324_v54 = vmul.f32 %v1311_v43, %v3984_v44  ;;  %v1543_v19 = vpack.c.bf16 %v1538_v35, %v1537_v34 }
 0xb8c   :  { %v1315_v47 = vmul.f32 0.5, %v1314_v30 }
 0xb8d   :  { %v1331_v59 = vmul.f32 %v3291_v31, %v1324_v54  ;;  %1558 = vmatpush.bf16.msra.mxu0 %v1543_v19 }
 0xb8e   :  { %v1316_v49 = vsub.f32 1.5, %v1315_v47 }
 0xb8f   :  { %v1338_v60 = vadd.f32 %v3292_v53, %v1331_v59 }
 0xb90   :  { %v1317_v55 = vmul.f32 %v3383_v18, %v1316_v49 }
 0xb92   :  { %v1321_v57 = vsel %vm1320_vm3, %v3383_v18, %v1317_v55 }
 0xb93   :  { %v1325_v58 = vmul.f32 %v1321_v57, %v3991_v56 }
 0xb95   :  { %v1332_v46 = vmul.f32 %v3291_v31, %v1325_v58 }
 0xb97   :  { %v1339_v61 = vadd.f32 %v3292_v53, %v1332_v46 }
 0xb99   :  { %v1345_v50 = vpack.c.bf16 %v1339_v61, %v1338_v60 }
 0xb9b   :  { %3147 = vmatmul.msk.bf16.gmra.mxu3 %vm64_vm0, %v1345_v50 }
 0xbf2   :  { %v1367_v36 = vpop.f32.mrf.mxu3 }
 0xbf3   :  { %v4028_v44 = vadd.f32 %v4025_v62, %v1367_v36 }
 0xbf5   :  { %v4031_v38 = vmul.f32 0.70710677, %v4028_v44 }
 0xbf7   :  { %v1385_v56 = vand.u32 2147483647, %v4031_v38  ;;  %vm1517_vm12 = vcmp.lt.f32.partialorder %v4031_v38, 0.0 }
 0xbf9   :  { %v1389_v39 = vmul.f32 0.3275911, %v1385_v56  ;;  %v1493_v10 = vsub.f32 0.0, %v1385_v56 }
 0xbfa   :  { %v1369_v15 = vpop.f32.mrf.mxu3 }
 0xbfb   :  { %v1393_v63 = vadd.f32 1.0, %v1389_v39  ;;  %v4035_v0 = vadd.f32 %v4025_v62, %v1369_v15  ;;  %v1497_v26 = vmul.f32 %v1493_v10, %v1385_v56 }
 0xbfd   :  { %3384 = vrcp.f32 %v1393_v63  ;;  %v4038_v17 = vmul.f32 0.70710677, %v4035_v0  ;;  %v1408_v6 = vand.u32 2147483648, %v1393_v63  ;;  %v1406_v8 = vand.u32 2147483647, %v1393_v63 }
 0xbfe   :  { %vm1402_vm5 = vweird.f32 %v1393_v63  ;;  %v1501_v18 = vmul.f32 1.442695, %v1497_v26 }
 0xbff   :  { %v1386_v1 = vand.u32 2147483647, %v4038_v17  ;;  %v1409_v48 = vor.u32 1.1754944e-38, %v1408_v6  ;;  %vm1407_vm7 = vcmp.eq.f32.partialorder %v1406_v8, 8.507059e+37  ;;  %vm1518_vm13 = vcmp.lt.f32.partialorder %v4038_v17, 0.0 }
 0xc01   :  { %v1390_v2 = vmul.f32 0.3275911, %v1386_v1  ;;  %v1494_v43 = vsub.f32 0.0, %v1386_v1 }
 0xc03   :  { %v3385_v3 = vpop.eup %3384  ;;  %v1394_v40 = vadd.f32 1.0, %v1390_v2  ;;  %v1498_v57 = vmul.f32 %v1494_v43, %v1386_v1 }
 0xc04   :  { %v1398_v4 = vmul.f32 %v3385_v3, %v1393_v63  ;;  %vm1403_vm4 = vweird.f32 %v3385_v3 }
 0xc05   :  { %3386 = vrcp.f32 %v1394_v40  ;;  %vm1404_vm6 = vmor %vm1402_vm5, %vm1403_vm4  ;;  %v1423_v25 = vand.u32 2147483648, %v1394_v40  ;;  %v1421_v32 = vand.u32 2147483647, %v1394_v40  ;;  %vm1417_vm9 = vweird.f32 %v1394_v40 }
 0xc06   :  { %v1399_v5 = vsub.f32 1.0, %v1398_v4  ;;  %3388 = vpow2.f32 %v1501_v18  ;;  %v1503_v61 = vmul.f32 1.442695, %v1498_v57 }
 0xc07   :  { %v1424_v42 = vor.u32 1.1754944e-38, %v1423_v25  ;;  %vm1422_vm11 = vcmp.eq.f32.partialorder %v1421_v32, 8.507059e+37  ;;  %v1378_v25 = vmul.f32 0.5, %v4035_v0 }
 0xc08   :  { %v1400_v7 = vmul.f32 %v3385_v3, %v1399_v5  ;;  %3390 = vpow2.f32 %v1503_v61 }
 0xc0a   :  { %v1401_v24 = vadd.f32 %v3385_v3, %v1400_v7 }
 0xc0b   :  { %v3387_v31 = vpop.eup %3386 }
 0xc0c   :  { %v1405_v51 = vsel %vm1404_vm6, %v3385_v3, %v1401_v24  ;;  %v1413_v53 = vmul.f32 %v3387_v31, %v1394_v40  ;;  %vm1418_vm8 = vweird.f32 %v3387_v31  ;;  %v3389_v36 = vpop.eup %3388 }
 0xc0d   :  { %v1410_v9 = vsel %vm1407_vm7, %v1409_v48, %v1405_v51  ;;  %vm1419_vm10 = vmor %vm1417_vm9, %vm1418_vm8 }
 0xc0e   :  { %v1457_v11 = vmul.f32 1.0614054, %v1410_v9  ;;  %v1414_v20 = vsub.f32 1.0, %v1413_v53  ;;  %v3391_v48 = vpop.eup %3390 }
 0xc10   :  { %v1461_v23 = vadd.f32 -1.4531521, %v1457_v11  ;;  %v1415_v27 = vmul.f32 %v3387_v31, %v1414_v20 }
 0xc12   :  { %v1465_v33 = vmul.f32 %v1461_v23, %v1410_v9  ;;  %v1416_v37 = vadd.f32 %v3387_v31, %v1415_v27 }
 0xc14   :  { %v1469_v41 = vadd.f32 1.4214138, %v1465_v33  ;;  %v1420_v28 = vsel %vm1419_vm10, %v3387_v31, %v1416_v37 }
 0xc15   :  { %v1425_v30 = vsel %vm1422_vm11, %v1424_v42, %v1420_v28 }
 0xc16   :  { %v1473_v45 = vmul.f32 %v1469_v41, %v1410_v9  ;;  %v1458_v47 = vmul.f32 1.0614054, %v1425_v30 }
 0xc18   :  { %v1477_v49 = vadd.f32 -0.28449672, %v1473_v45  ;;  %v1462_v54 = vadd.f32 -1.4531521, %v1458_v47 }
 0xc1a   :  { %v1481_v55 = vmul.f32 %v1477_v49, %v1410_v9  ;;  %v1466_v58 = vmul.f32 %v1462_v54, %v1425_v30 }
 0xc1c   :  { %v1485_v59 = vadd.f32 0.2548296, %v1481_v55  ;;  %v1470_v46 = vadd.f32 1.4214138, %v1466_v58 }
 0xc1e   :  { %v1489_v60 = vmul.f32 %v1485_v59, %v1410_v9  ;;  %v1372_v50 = vpop.f32.mrf.mxu3  ;;  %v1474_v56 = vmul.f32 %v1470_v46, %v1425_v30 }
 0xc1f   :  { %v4054_v39 = vadd.f32 %v4025_v62, %v1372_v50 }
 0xc20   :  { %v1509_v15 = vmul.f32 %v3389_v36, %v1489_v60  ;;  %v1478_v63 = vadd.f32 -0.28449672, %v1474_v56 }
 0xc21   :  { %v4057_v2 = vmul.f32 0.70710677, %v4054_v39 }
 0xc22   :  { %v1513_v3 = vsub.f32 1.0, %v1509_v15  ;;  %v1482_v4 = vmul.f32 %v1478_v63, %v1425_v30 }
 0xc23   :  { %v1387_v1 = vand.u32 2147483647, %v4057_v2  ;;  %vm1519_vm11 = vcmp.lt.f32.partialorder %v4057_v2, 0.0  ;;  %v3294_v2 = vld [vmem:[%s4560_s11] ss:$0 sm:$0xff] }
 0xc24   :  { %v1486_v40 = vadd.f32 0.2548296, %v1482_v4  ;;  %v1521_v7 = vsub.f32 0.0, %v1513_v3 }
 0xc25   :  { %v1391_v5 = vmul.f32 0.3275911, %v1387_v1  ;;  %v1495_v28 = vsub.f32 0.0, %v1387_v1 }
 0xc26   :  { %v1374_v6 = vpop.f32.mrf.mxu3  ;;  %v1490_v8 = vmul.f32 %v1486_v40, %v1425_v30  ;;  %v1525_v9 = vsel %vm1517_vm12, %v1521_v7, %v1513_v3 }
 0xc27   :  { %v1395_v24 = vadd.f32 1.0, %v1391_v5  ;;  %v4061_v31 = vadd.f32 %v4025_v62, %v1374_v6  ;;  %v1529_v16 = vadd.f32 1.0, %v1525_v9  ;;  %v1377_v62 = vmul.f32 0.5, %v4028_v44 }
 0xc28   :  { %v1510_v51 = vmul.f32 %v3391_v48, %v1490_v8  ;;  %v1499_v49 = vmul.f32 %v1495_v28, %v1387_v1 }
 0xc29   :  { %3392 = vrcp.f32 %v1395_v24  ;;  %v4065_v53 = vmul.f32 0.70710677, %v4061_v31  ;;  %v1533_v32 = vmul.f32 %v1529_v16, %v1377_v62  ;;  %v1438_v35 = vand.u32 2147483648, %v1395_v24 }
 0xc2a   :  { %v1514_v10 = vsub.f32 1.0, %v1510_v51  ;;  %v1436_v41 = vand.u32 2147483647, %v1395_v24  ;;  %vm1432_vm4 = vweird.f32 %v1395_v24  ;;  %v1505_v60 = vmul.f32 1.442695, %v1499_v49 }
 0xc2b   :  { %v1388_v13 = vand.u32 2147483647, %v4065_v53  ;;  %v1439_v44 = vor.u32 1.1754944e-38, %v1438_v35  ;;  %vm1520_vm12 = vcmp.lt.f32.partialorder %v4065_v53, 0.0 }
 0xc2c   :  { %v1522_v11 = vsub.f32 0.0, %v1514_v10  ;;  %vm1437_vm6 = vcmp.eq.f32.partialorder %v1436_v41, 8.507059e+37 }
 0xc2d   :  { %v1392_v23 = vmul.f32 0.3275911, %v1388_v13  ;;  %v1496_v15 = vsub.f32 0.0, %v1388_v13 }
 0xc2e   :  { %v1526_v21 = vsel %vm1518_vm13, %v1522_v11, %v1514_v10 }
 0xc2f   :  { %v3393_v20 = vpop.eup %3392  ;;  %v1530_v26 = vadd.f32 1.0, %v1526_v21  ;;  %v1396_v27 = vadd.f32 1.0, %v1392_v23  ;;  %v1500_v40 = vmul.f32 %v1496_v15, %v1388_v13 }
 0xc30   :  { %v1428_v38 = vmul.f32 %v3393_v20, %v1395_v24  ;;  %vm1433_vm3 = vweird.f32 %v3393_v20 }
 0xc31   :  { %v1534_v33 = vmul.f32 %v1530_v26, %v1378_v25  ;;  %3394 = vrcp.f32 %v1396_v27  ;;  %vm1434_vm5 = vmor %vm1432_vm4, %vm1433_vm3  ;;  %v1453_v54 = vand.u32 2147483648, %v1396_v27  ;;  %v1451_v58 = vand.u32 2147483647, %v1396_v27 }
 0xc32   :  { %v1429_v34 = vsub.f32 1.0, %v1428_v38  ;;  %vm1447_vm8 = vweird.f32 %v1396_v27  ;;  %3396 = vpow2.f32 %v1505_v60  ;;  %v1507_v48 = vmul.f32 1.442695, %v1500_v40 }
 0xc33   :  { %v1541_v37 = vpack.c.bf16 %v1534_v33, %v1533_v32  ;;  %v1454_v61 = vor.u32 1.1754944e-38, %v1453_v54  ;;  %vm1452_vm10 = vcmp.eq.f32.partialorder %v1451_v58, 8.507059e+37  ;;  %v1379_v33 = vmul.f32 0.5, %v4054_v39 }
 0xc34   :  { %v1430_v19 = vmul.f32 %v3393_v20, %v1429_v34  ;;  %3398 = vpow2.f32 %v1507_v48  ;;  %v1380_v34 = vmul.f32 0.5, %v4061_v31 }
 0xc35   :  { %3148 = vmatmul.msk.bf16.vlgmr.msra.gmra.mxu0 %vm64_vm0, %v1541_v37 }
 0xc36   :  { %v1431_v17 = vadd.f32 %v3393_v20, %v1430_v19 }
 0xc37   :  { %v3395_v0 = vpop.eup %3394 }
 0xc38   :  { %v1435_v42 = vsel %vm1434_vm5, %v3393_v20, %v1431_v17  ;;  %v1443_v30 = vmul.f32 %v3395_v0, %v1396_v27  ;;  %vm1448_vm7 = vweird.f32 %v3395_v0  ;;  %v3397_v24 = vpop.eup %3396 }
 0xc39   :  { %v1440_v18 = vsel %vm1437_vm6, %v1439_v44, %v1435_v42  ;;  %vm1449_vm9 = vmor %vm1447_vm8, %vm1448_vm7 }
 0xc3a   :  { %v1459_v45 = vmul.f32 1.0614054, %v1440_v18  ;;  %v1444_v47 = vsub.f32 1.0, %v1443_v30  ;;  %v3399_v62 = vpop.eup %3398 }
 0xc3c   :  { %v1463_v43 = vadd.f32 -1.4531521, %v1459_v45  ;;  %v1445_v57 = vmul.f32 %v3395_v0, %v1444_v47 }
 0xc3e   :  { %v1467_v55 = vmul.f32 %v1463_v43, %v1440_v18  ;;  %v1446_v46 = vadd.f32 %v3395_v0, %v1445_v57 }
 0xc40   :  { %v1471_v59 = vadd.f32 1.4214138, %v1467_v55  ;;  %v1450_v36 = vsel %vm1449_vm9, %v3395_v0, %v1446_v46 }
 0xc41   :  { %v1455_v56 = vsel %vm1452_vm10, %v1454_v61, %v1450_v36 }
 0xc42   :  { %v1475_v50 = vmul.f32 %v1471_v59, %v1440_v18  ;;  %v1460_v3 = vmul.f32 1.0614054, %v1455_v56 }
 0xc44   :  { %v1479_v63 = vadd.f32 -0.28449672, %v1475_v50  ;;  %v1464_v1 = vadd.f32 -1.4531521, %v1460_v3 }
 0xc46   :  { %v1483_v4 = vmul.f32 %v1479_v63, %v1440_v18  ;;  %v1468_v6 = vmul.f32 %v1464_v1, %v1455_v56 }
 0xc48   :  { %v1487_v5 = vadd.f32 0.2548296, %v1483_v4  ;;  %v1472_v8 = vadd.f32 1.4214138, %v1468_v6  ;;  %v1691_v6 = vld [vmem:[#allocation2 + $0x30] sm:$0xff] }
 0xc4a   :  { %v1491_v7 = vmul.f32 %v1487_v5, %v1440_v18  ;;  %v1476_v9 = vmul.f32 %v1472_v8, %v1455_v56 }
 0xc4c   :  { %v1511_v51 = vmul.f32 %v3397_v24, %v1491_v7  ;;  %v1480_v10 = vadd.f32 -0.28449672, %v1476_v9  ;;  %v1692_v7 = vld [vmem:[#allocation2 + $0x38] sm:$0xff]  ;;  %v1689_v9 = vld [vmem:[#allocation2 + $0x20] sm:$0xff] }
 0xc4d   :  { %v1696_v24 = vpack.c.bf16 %v1692_v7, %v1691_v6 }
 0xc4e   :  { %v1515_v11 = vsub.f32 1.0, %v1511_v51  ;;  %v1484_v16 = vmul.f32 %v1480_v10, %v1455_v56  ;;  %v1690_v10 = vld [vmem:[#allocation2 + $0x28] sm:$0xff] }
 0xc4f   :  { %1709 = vmatpush.bf16.msra.mxu1 %v1696_v24 }
 0xc50   :  { %v1488_v20 = vadd.f32 0.2548296, %v1484_v16  ;;  %v1523_v21 = vsub.f32 0.0, %v1515_v11 }
 0xc52   :  { %v1492_v23 = vmul.f32 %v1488_v20, %v1455_v56  ;;  %v1527_v13 = vsel %vm1519_vm11, %v1523_v21, %v1515_v11  ;;  %v1695_v11 = vpack.c.bf16 %v1690_v10, %v1689_v9 }
 0xc53   :  { %v1531_v27 = vadd.f32 1.0, %v1527_v13 }
 0xc54   :  { %v1512_v25 = vmul.f32 %v3399_v62, %v1492_v23  ;;  %1710 = vmatpush.bf16.msra.mxu1 %v1695_v11 }
 0xc55   :  { %v1535_v37 = vmul.f32 %v1531_v27, %v1379_v33 }
 0xc56   :  { %v1516_v26 = vsub.f32 1.0, %v1512_v25 }
 0xc58   :  { %v1524_v38 = vsub.f32 0.0, %v1516_v26 }
 0xc5a   :  { %v1528_v32 = vsel %vm1520_vm12, %v1524_v38, %v1516_v26 }
 0xc5b   :  { %v1532_v35 = vadd.f32 1.0, %v1528_v32 }
 0xc5d   :  { %v1536_v19 = vmul.f32 %v1532_v35, %v1380_v34 }
 0xc5f   :  { %v1542_v41 = vpack.c.bf16 %v1536_v19, %v1535_v37  ;;  %v3295_v19 = vld [vmem:[%s4550_s1 + $0x1] ss:$0 sm:$0xff]  ;;  %s4570_s1 = smov 40  }
 0xc61   :  { %3149 = vmatmul.msk.bf16.gmra.mxu0 %vm64_vm0, %v1542_v41 }
 0xcb2   :  { %v1560_v17 = vpop.f32.mrf.mxu0 }
 0xcb3   :  { %v1570_v44 = vadd.f32 %v1560_v17, %v3951_v52 }
 0xcb5   :  { %v4081_v42 = vadd.f32 %v3294_v2, %v1570_v44  ;;  %v3296_v44 = vld [vmem:[%s4551_s2 + $0x1] ss:$0 sm:$0xff]  ;;  %s4571_s2 = smov 8  }
 0xcb7   :  { %v1586_v39 = vsel %vm64_vm0, %v4081_v42, 0.0 }
 0xcb8   :  { %1587 = vadd.xlane.f32.xlu2 %v1586_v39 }
 0xcba   :  { %v1562_v31 = vpop.f32.mrf.mxu0 }
 0xcbb   :  { %v1571_v53 = vadd.f32 %v1562_v31, %v3958_v12 }
 0xcbd   :  { %v4086_v0 = vadd.f32 %v3294_v2, %v1571_v53 }
 0xcbf   :  { %v1589_v18 = vsel %vm64_vm0, %v4086_v0, 0.0 }
 0xcc0   :  { %1590 = vadd.xlane.f32.xlu0 %v1589_v18 }
 0xcde   :  { %v1565_v28 = vpop.f32.mrf.mxu0 }
 0xcdf   :  { %v1572_v45 = vadd.f32 %v1565_v28, %v3965_v22 }
 0xce1   :  { %v4091_v30 = vadd.f32 %v3294_v2, %v1572_v45 }
 0xce3   :  { %v1592_v52 = vsel %vm64_vm0, %v4091_v30, 0.0 }
 0xce4   :  { %1593 = vadd.xlane.f32.xlu1 %v1592_v52 }
 0xce6   :  { %v1567_v43 = vpop.f32.mrf.mxu0 }
 0xce7   :  { %v1573_v47 = vadd.f32 %v1567_v43, %v3972_v29 }
 0xce9   :  { %v4096_v49 = vadd.f32 %v3294_v2, %v1573_v47 }
 0xceb   :  { %v1595_v12 = vsel %vm64_vm0, %v4096_v49, 0.0 }
 0xcec   :  { %1596 = vadd.xlane.f32.xlu2 %v1595_v12 }
 0xd2b   :  { %v1588_v54 = vpop.xlane.xlu2 %1587 }
 0xd2c   :  { %v1598_v55 = vmul.f32 %v1588_v54, %v3628_v14 }
 0xd2e   :  { %v1602_v22 = vsub.f32 %v4081_v42, %v1598_v55 }
 0xd30   :  { %v1606_v57 = vmul.f32 %v1602_v22, %v1602_v22 }
 0xd32   :  { %v1610_v58 = vsel %vm64_vm0, %v1606_v57, 0.0 }
 0xd33   :  { %1611 = vadd.xlane.f32.xlu0 %v1610_v58  ;;  %v1591_v59 = vpop.xlane.xlu0 %1590 }
 0xd34   :  { %v1599_v46 = vmul.f32 %v1591_v59, %v3628_v14 }
 0xd36   :  { %v1603_v29 = vsub.f32 %v4086_v0, %v1599_v46 }
 0xd38   :  { %v1607_v60 = vmul.f32 %v1603_v29, %v1603_v29 }
 0xd3a   :  { %v1613_v61 = vsel %vm64_vm0, %v1607_v60, 0.0 }
 0xd3b   :  { %1614 = vadd.xlane.f32.xlu1 %v1613_v61 }
 0xd57   :  { %v1594_v50 = vpop.xlane.xlu1 %1593 }
 0xd58   :  { %v1600_v36 = vmul.f32 %v1594_v50, %v3628_v14 }
 0xd5a   :  { %v4108_v56 = vsub.f32 %v4091_v30, %v1600_v36 }
 0xd5c   :  { %v1608_v15 = vmul.f32 %v4108_v56, %v4108_v56 }
 0xd5e   :  { %v1616_v63 = vsel %vm64_vm0, %v1608_v15, 0.0 }
 0xd5f   :  { %1617 = vadd.xlane.f32.xlu2 %v1616_v63  ;;  %v1597_v3 = vpop.xlane.xlu2 %1596 }
 0xd60   :  { %v1601_v4 = vmul.f32 %v1597_v3, %v3628_v14 }
 0xd62   :  { %v4115_v1 = vsub.f32 %v4096_v49, %v1601_v4 }
 0xd64   :  { %v1609_v40 = vmul.f32 %v4115_v1, %v4115_v1 }
 0xd66   :  { %v1619_v5 = vsel %vm64_vm0, %v1609_v40, 0.0 }
 0xd67   :  { %1620 = vadd.xlane.f32.xlu0 %v1619_v5 }
 0xda6   :  { %v1612_v8 = vpop.xlane.xlu0 %1611 }
 0xda7   :  { %v1622_v48 = vmul.f32 %v1612_v8, %v3628_v14 }
 0xda9   :  { %v1626_v51 = vadd.f32 1e-05, %v1622_v48 }
 0xdab   :  { %3400 = vrsqrt.f32 %v1626_v51  ;;  %vm1636_vm3 = vweird.f32 %v1626_v51 }
 0xdae   :  { %v1615_v16 = vpop.xlane.xlu1 %1614 }
 0xdaf   :  { %v1623_v20 = vmul.f32 %v1615_v16, %v3628_v14 }
 0xdb1   :  { %v3401_v21 = vpop.eup %3400  ;;  %v1627_v23 = vadd.f32 1e-05, %v1623_v20 }
 0xdb2   :  { %v1631_v62 = vmul.f32 %v3401_v21, %v1626_v51  ;;  %vm1637_vm13 = vweird.f32 %v3401_v21 }
 0xdb3   :  { %3402 = vrsqrt.f32 %v1627_v23  ;;  %vm1638_vm4 = vmor %vm1636_vm3, %vm1637_vm13  ;;  %vm1646_vm6 = vweird.f32 %v1627_v23 }
 0xdb4   :  { %v1632_v25 = vmul.f32 %v3401_v21, %v1631_v62 }
 0xdb6   :  { %v1633_v13 = vmul.f32 0.5, %v1632_v25 }
 0xdb8   :  { %v1634_v26 = vsub.f32 1.5, %v1633_v13 }
 0xdb9   :  { %v3403_v38 = vpop.eup %3402 }
 0xdba   :  { %v1635_v27 = vmul.f32 %v3401_v21, %v1634_v26  ;;  %v1641_v32 = vmul.f32 %v3403_v38, %v1627_v23  ;;  %vm1647_vm5 = vweird.f32 %v3403_v38 }
 0xdbb   :  { %vm1648_vm7 = vmor %vm1646_vm6, %vm1647_vm5 }
 0xdbc   :  { %v1642_v33 = vmul.f32 %v3403_v38, %v1641_v32  ;;  %v1639_v34 = vsel %vm1638_vm4, %v3401_v21, %v1635_v27 }
 0xdbd   :  { %v1670_v41 = vmul.f32 %v1639_v34, %v1602_v22 }
 0xdbe   :  { %v1643_v35 = vmul.f32 0.5, %v1642_v33 }
 0xdbf   :  { %v1677_v39 = vmul.f32 %v3295_v19, %v1670_v41 }
 0xdc0   :  { %v1644_v37 = vsub.f32 1.5, %v1643_v35 }
 0xdc1   :  { %v1684_v18 = vadd.f32 %v3296_v44, %v1677_v39 }
 0xdc2   :  { %v1645_v2 = vmul.f32 %v3403_v38, %v1644_v37 }
 0xdc4   :  { %v1649_v17 = vsel %vm1648_vm7, %v3403_v38, %v1645_v2 }
 0xdc5   :  { %v1671_v31 = vmul.f32 %v1649_v17, %v1603_v29 }
 0xdc7   :  { %v1678_v53 = vmul.f32 %v3295_v19, %v1671_v31 }
 0xdc9   :  { %v1685_v28 = vadd.f32 %v3296_v44, %v1678_v53 }
 0xdcb   :  { %v1693_v45 = vpack.c.bf16 %v1685_v28, %v1684_v18 }
 0xdcd   :  { %3152 = vmatmul.msk.bf16.vlgmr.msra.gmra.mxu1 %vm64_vm0, %v1693_v45 }
 0xdd2   :  { %v1618_v52 = vpop.xlane.xlu2 %1617 }
 0xdd3   :  { %v1624_v43 = vmul.f32 %v1618_v52, %v3628_v14 }
 0xdd5   :  { %v1628_v47 = vadd.f32 1e-05, %v1624_v43 }
 0xdd7   :  { %3404 = vrsqrt.f32 %v1628_v47  ;;  %vm1656_vm9 = vweird.f32 %v1628_v47 }
 0xdda   :  { %v1621_v12 = vpop.xlane.xlu0 %1620 }
 0xddb   :  { %v1625_v54 = vmul.f32 %v1621_v12, %v3628_v14 }
 0xddd   :  { %v3405_v55 = vpop.eup %3404  ;;  %v1629_v22 = vadd.f32 1e-05, %v1625_v54 }
 0xdde   :  { %v1651_v57 = vmul.f32 %v3405_v55, %v1628_v47  ;;  %vm1657_vm8 = vweird.f32 %v3405_v55 }
 0xddf   :  { %3406 = vrsqrt.f32 %v1629_v22  ;;  %vm1658_vm10 = vmor %vm1656_vm9, %vm1657_vm8  ;;  %vm1666_vm12 = vweird.f32 %v1629_v22 }
 0xde0   :  { %v1652_v58 = vmul.f32 %v3405_v55, %v1651_v57 }
 0xde2   :  { %v1653_v59 = vmul.f32 0.5, %v1652_v58 }
 0xde4   :  { %v1654_v46 = vsub.f32 1.5, %v1653_v59 }
 0xde5   :  { %v3407_v29 = vpop.eup %3406 }
 0xde6   :  { %v1655_v60 = vmul.f32 %v3405_v55, %v1654_v46  ;;  %v1661_v61 = vmul.f32 %v3407_v29, %v1629_v22  ;;  %vm1667_vm11 = vweird.f32 %v3407_v29 }
 0xde7   :  { %vm1668_vm13 = vmor %vm1666_vm12, %vm1667_vm11 }
 0xde8   :  { %v1662_v50 = vmul.f32 %v3407_v29, %v1661_v61  ;;  %v1659_v36 = vsel %vm1658_vm10, %v3405_v55, %v1655_v60 }
 0xde9   :  { %v1672_v3 = vmul.f32 %v1659_v36, %v4108_v56 }
 0xdea   :  { %v1663_v15 = vmul.f32 0.5, %v1662_v50 }
 0xdeb   :  { %v1679_v6 = vmul.f32 %v3295_v19, %v1672_v3 }
 0xdec   :  { %v1664_v63 = vsub.f32 1.5, %v1663_v15 }
 0xded   :  { %v1686_v8 = vadd.f32 %v3296_v44, %v1679_v6 }
 0xdee   :  { %v1665_v4 = vmul.f32 %v3407_v29, %v1664_v63 }
 0xdf0   :  { %v1669_v40 = vsel %vm1668_vm13, %v3407_v29, %v1665_v4 }
 0xdf1   :  { %v1673_v5 = vmul.f32 %v1669_v40, %v4115_v1 }
 0xdf3   :  { %v1680_v7 = vmul.f32 %v3295_v19, %v1673_v5 }
 0xdf5   :  { %v1687_v24 = vadd.f32 %v3296_v44, %v1680_v7 }
 0xdf7   :  { %v1694_v48 = vpack.c.bf16 %v1687_v24, %v1686_v8 }
 0xdf9   :  { %3153 = vmatmul.msk.bf16.gmra.mxu1 %vm64_vm0, %v1694_v48 }
 0xe4a   :  { %v1712_v51 = vpop.f32.mrf.mxu1 }
 0xe4b   :  { %v1722_v9 = vpack.c.bf16 %v1712_v51, %v1712_v51 }
 0xe4d   :  { %v1727_v10 = vunpack.c.l.b16 %v1722_v9 }
 0xe4f   :  { %v4134_v11 = vpack.c.b16 %v1727_v10, %v1727_v10 }
 0xe51   :  { %1729 = vrot.lane.b32.xlu1 %v4134_v11, %s3530_s21 }
 0xe52   :  { %v1714_v56 = vpop.f32.mrf.mxu1 }
 0xe53   :  { %v1723_v16 = vpack.c.bf16 %v1714_v56, %v1714_v56 }
 0xe55   :  { %v1751_v20 = vunpack.c.l.b16 %v1723_v16 }
 0xe57   :  { %v4138_v21 = vpack.c.b16 %v1751_v20, %v1751_v20 }
 0xe59   :  { %1753 = vrot.lane.b32.xlu2 %v4138_v21, %s3530_s21 }
 0xe76   :  { %v1717_v1 = vpop.f32.mrf.mxu1 }
 0xe77   :  { %v1724_v23 = vpack.c.bf16 %v1717_v1, %v1717_v1 }
 0xe79   :  { %v1775_v62 = vunpack.c.l.b16 %v1724_v23 }
 0xe7b   :  { %v4142_v25 = vpack.c.b16 %v1775_v62, %v1775_v62 }
 0xe7d   :  { %1777 = vrot.lane.b32.xlu0 %v4142_v25, %s3530_s21 }
 0xe7e   :  { %v1719_v13 = vpop.f32.mrf.mxu1 }
 0xe7f   :  { %v1725_v26 = vpack.c.bf16 %v1719_v13, %v1719_v13 }
 0xe81   :  { %v1799_v38 = vunpack.c.l.b16 %v1725_v26 }
 0xe83   :  { %v4146_v27 = vpack.c.b16 %v1799_v38, %v1799_v38 }
 0xe85   :  { %1801 = vrot.lane.b32.xlu1 %v4146_v27, %s3530_s21  ;;  %s4572_s21 = smov 16  }
 0xe8d   :  { %1874 = vrot.lane.b32.xlu1 %v4134_v11, %s3531_s22 }
 0xeb3   :  { %v1754_v32 = vpop.permute.xlu2 %1753 }
 0xeb4   :  { %v1759_v33 = vsel %vm216_vm14, %v1754_v32, 0 }
 0xeb5   :  { %1768 = vmatpush.bf16.xpose.msrb.mxu3 %v1759_v33 }
 0xebc   :  { %3155 = vmatmul.msk.bf16.vlgmr.msrb.gmra.mxu3 %vm216_vm14, %v1723_v16 }
 0xec3   :  { %v1730_v34 = vpop.permute.xlu1 %1729 }
 0xec4   :  { %v1735_v35 = vsel %vm216_vm14, %v1730_v34, 0 }
 0xec5   :  { %1744 = vmatpush.bf16.xpose.msrb.mxu2 %v1735_v35 }
 0xecc   :  { %3154 = vmatmul.msk.bf16.vlgmr.msrb.gmra.mxu2 %vm216_vm14, %v1722_v9 }
 0xeef   :  { %v1778_v37 = vpop.permute.xlu0 %1777 }
 0xef0   :  { %v1783_v19 = vsel %vm216_vm14, %v1778_v37, 0 }
 0xef1   :  { %1792 = vmatpush.bf16.xpose.msrb.mxu0 %v1783_v19 }
 0xef7   :  { %v1802_v41 = vpop.permute.xlu1 %1801 }
 0xef8   :  { %v1807_v2 = vsel %vm216_vm14, %v1802_v41, 0  ;;  %3156 = vmatmul.msk.bf16.vlgmr.msrb.gmra.mxu0 %vm216_vm14, %v1724_v23 }
 0xef9   :  { %1816 = vmatpush.bf16.xpose.msrb.mxu1 %v1807_v2 }
 0xeff   :  { %v1875_v17 = vpop.permute.xlu1 %1874 }
 0xf00   :  { %v1880_v44 = vsel %vm365_vm15, %v1875_v17, 0  ;;  %3157 = vmatmul.msk.bf16.vlgmr.msrb.gmra.mxu1 %vm216_vm14, %v1725_v26 }
 0xf01   :  { %1889 = vmatpush.bf16.msra.mxu2 %v1880_v44 }
 0xf3f   :  { %v1770_v39 = vpop.f32.mrf.mxu3 }
 0xf40   :  { %v1823_v31 = vmul.f32 0.35355338, %v1770_v39 }
 0xf42   :  { %v1829_v53 = vsel %vm216_vm14, %v1823_v31, -inf }
 0xf43   :  { %1830 = vmax.xlane.f32.xlu0 %v1829_v53 }
 0xf47   :  { %v1772_v18 = vpop.f32.mrf.mxu3 }
 0xf4f   :  { %v1746_v28 = vpop.f32.mrf.mxu2 }
 0xf50   :  { %v1822_v45 = vmul.f32 0.35355338, %v1746_v28 }
 0xf52   :  { %v1826_v52 = vsel %vm216_vm14, %v1822_v45, -inf }
 0xf53   :  { %1827 = vmax.xlane.f32.xlu2 %v1826_v52 }
 0xf57   :  { %v1748_v43 = vpop.f32.mrf.mxu2  ;;  %1895 = vrot.lane.b32.xlu0 %v4138_v21, %s3531_s22 }
 0xf75   :  { %v1794_v47 = vpop.f32.mrf.mxu0 }
 0xf76   :  { %v1824_v12 = vmul.f32 0.35355338, %v1794_v47 }
 0xf78   :  { %v1832_v54 = vsel %vm216_vm14, %v1824_v12, -inf }
 0xf79   :  { %1833 = vmax.xlane.f32.xlu1 %v1832_v54 }
 0xf7d   :  { %v1796_v55 = vpop.f32.mrf.mxu0  ;;  %v1818_v22 = vpop.f32.mrf.mxu1 }
 0xf7e   :  { %v1825_v57 = vmul.f32 0.35355338, %v1818_v22 }
 0xf80   :  { %v1835_v58 = vsel %vm216_vm14, %v1825_v57, -inf }
 0xf81   :  { %1836 = vmax.xlane.f32.xlu2 %v1835_v58 }
 0xf85   :  { %v1820_v59 = vpop.f32.mrf.mxu1 }
 0xf92   :  { %1958 = vrot.lane.b32.xlu1 %v4134_v11, %s3533_s24 }
 0xfb6   :  { %v1831_v46 = vpop.xlane.xlu0 %1830 }
 0xfb7   :  { %v1839_v29 = vsub.f32 %v1823_v31, %v1831_v46 }
 0xfb9   :  { %v1844_v60 = vmul.f32 1.442695, %v1839_v29 }
 0xfbb   :  { %3408 = vpow2.f32 %v1844_v60 }
 0xfc1   :  { %v3409_v61 = vpop.eup %3408 }
 0xfc2   :  { %v1853_v50 = vsel %vm216_vm14, %v3409_v61, 0.0 }
 0xfc3   :  { %1854 = vadd.xlane.f32.xlu2 %v1853_v50 }
 0xfc6   :  { %v1828_v36 = vpop.xlane.xlu2 %1827 }
 0xfc7   :  { %v1838_v15 = vsub.f32 %v1822_v45, %v1828_v36 }
 0xfc9   :  { %v1842_v63 = vmul.f32 1.442695, %v1838_v15  ;;  %v1896_v3 = vpop.permute.xlu0 %1895 }
 0xfca   :  { %v1901_v4 = vsel %vm365_vm15, %v1896_v3, 0 }
 0xfcb   :  { %3410 = vpow2.f32 %v1842_v63  ;;  %1910 = vmatpush.bf16.msra.mxu3 %v1901_v4 }
 0xfd1   :  { %v3411_v40 = vpop.eup %3410 }
 0xfd2   :  { %v1850_v5 = vsel %vm216_vm14, %v3411_v40, 0.0 }
 0xfd3   :  { %1851 = vadd.xlane.f32.xlu0 %v1850_v5 }
 0xfdb   :  { %1960 = vrot.lane.b32.xlu2 %v4134_v11, %s3532_s23 }
 0xfe7   :  { %1983 = vrot.lane.b32.xlu0 %v4138_v21, %s3532_s23 }
 0xfec   :  { %v1834_v6 = vpop.xlane.xlu1 %1833 }
 0xfed   :  { %v1840_v7 = vsub.f32 %v1824_v12, %v1834_v6 }
 0xfef   :  { %1981 = vrot.lane.b32.xlu0 %v4138_v21, %s3533_s24  ;;  %v1846_v8 = vmul.f32 1.442695, %v1840_v7 }
 0xff1   :  { %3412 = vpow2.f32 %v1846_v8 }
 0xff4   :  { %v1837_v24 = vpop.xlane.xlu2 %1836 }
 0xff5   :  { %v1841_v48 = vsub.f32 %v1825_v57, %v1837_v24 }
 0xff7   :  { %1916 = vrot.lane.b32.xlu0 %v4142_v25, %s3531_s22  ;;  %v1848_v51 = vmul.f32 1.442695, %v1841_v48  ;;  %v3413_v9 = vpop.eup %3412 }
 0xff8   :  { %v1856_v16 = vsel %vm216_vm14, %v3413_v9, 0.0 }
 0xff9   :  { %3414 = vpow2.f32 %v1848_v51 }
 0xfff   :  { %1937 = vrot.lane.b32.xlu0 %v4146_v27, %s3531_s22  ;;  %v3415_v10 = vpop.eup %3414 }
0x1000   :  { %v1859_v56 = vsel %vm216_vm14, %v3415_v10, 0.0 }
0x1001   :  { %1860 = vadd.xlane.f32.xlu1 %v1859_v56 }
0x1004   :  { %1857 = vadd.xlane.f32.xlu2 %v1856_v16  ;;  %v1959_v19 = vpop.permute.xlu1 %1958 }
0x1007   :  { %2006 = vrot.lane.b32.xlu0 %v4142_v25, %s3532_s23 }
0x100f   :  { %2029 = vrot.lane.b32.xlu0 %v4146_v27, %s3532_s23 }
0x1017   :  { %2004 = vrot.lane.b32.xlu0 %v4142_v25, %s3533_s24 }
0x101c   :  { %2027 = vrot.lane.b32.xlu2 %v4146_v27, %s3533_s24 }
0x1024   :  { %2211 = vrot.lane.b32.xlu2 %v4138_v21, %s3535_s26 }
0x1036   :  { %v1855_v20 = vpop.xlane.xlu2 %1854 }
0x1037   :  { %3416 = vrcp.f32 %v1855_v20 }
0x103d   :  { %v3417_v1 = vpop.eup %3416 }
0x103e   :  { %v1867_v23 = vmul.f32 %v3417_v1, %v3409_v61  ;;  %v1961_v62 = vpop.permute.xlu2 %1960 }
0x103f   :  { %v1966_v13 = vsel %vm216_vm14, %v1961_v62, 0 }
0x1040   :  { %v1871_v26 = vpack.c.bf16 %v1867_v23, %v1867_v23  ;;  %1975 = vmatpush.bf16.xpose.msrb.mxu2 %v1966_v13 }
0x1042   :  { %3159 = vmatmul.msk.bf16.vlgmr.msra.gmra.mxu3 %vm216_vm14, %v1871_v26 }
0x1046   :  { %v1852_v38 = vpop.xlane.xlu0 %1851 }
0x1047   :  { %3418 = vrcp.f32 %v1852_v38 }
0x104d   :  { %v3419_v32 = vpop.eup %3418 }
0x104e   :  { %v1866_v33 = vmul.f32 %v3419_v32, %v3411_v40 }
0x1050   :  { %v1870_v34 = vpack.c.bf16 %v1866_v33, %v1866_v33 }
0x1052   :  { %3158 = vmatmul.msk.bf16.vlgmr.msra.gmra.mxu2 %vm216_vm14, %v1870_v34 }
0x1059   :  { %v1984_v35 = vpop.permute.xlu0 %1983 }
0x105a   :  { %v1989_v37 = vsel %vm216_vm14, %v1984_v35, 0 }
0x105b   :  { %1998 = vmatpush.bf16.xpose.msrb.mxu3 %v1989_v37 }
0x1061   :  { %v1982_v41 = vpop.permute.xlu0 %1981 }
0x1062   :  { %3162 = vmatmul.msk.bf16.vlgmr.msrb.gmra.mxu2 %vm216_vm14, %v1959_v19  ;;  %3163 = vmatmul.msk.bf16.vlgmr.msrb.gmra.mxu3 %vm216_vm14, %v1982_v41 }
0x1069   :  { %v1917_v2 = vpop.permute.xlu0 %1916 }
0x106a   :  { %v1922_v17 = vsel %vm365_vm15, %v1917_v2, 0 }
0x106b   :  { %1931 = vmatpush.bf16.msra.mxu0 %v1922_v17 }
0x1071   :  { %v1938_v44 = vpop.permute.xlu0 %1937 }
0x1072   :  { %v1943_v39 = vsel %vm365_vm15, %v1938_v44, 0 }
0x1073   :  { %1952 = vmatpush.bf16.msra.mxu1 %v1943_v39 }
0x1074   :  { %v1861_v31 = vpop.xlane.xlu1 %1860 }
0x1075   :  { %3420 = vrcp.f32 %v1861_v31 }
0x1077   :  { %v1858_v53 = vpop.xlane.xlu2 %1857 }
0x1078   :  { %3422 = vrcp.f32 %v1858_v53 }
0x1079   :  { %v2007_v18 = vpop.permute.xlu0 %2006 }
0x107a   :  { %v2012_v28 = vsel %vm216_vm14, %v2007_v18, 0 }
0x107b   :  { %2021 = vmatpush.bf16.xpose.msrb.mxu0 %v2012_v28  ;;  %v3421_v45 = vpop.eup %3420 }
0x107c   :  { %v1869_v52 = vmul.f32 %v3421_v45, %v3415_v10 }
0x107e   :  { %v3423_v43 = vpop.eup %3422  ;;  %v1873_v47 = vpack.c.bf16 %v1869_v52, %v1869_v52 }
0x107f   :  { %v1868_v12 = vmul.f32 %v3423_v43, %v3413_v9  ;;  %v2028_v57 = vpop.permute.xlu2 %2027 }
0x1080   :  { %3161 = vmatmul.msk.bf16.vlgmr.msra.gmra.mxu1 %vm216_vm14, %v1873_v47 }
0x1081   :  { %v1872_v54 = vpack.c.bf16 %v1868_v12, %v1868_v12  ;;  %v2030_v55 = vpop.permute.xlu0 %2029 }
0x1082   :  { %v2035_v22 = vsel %vm216_vm14, %v2030_v55, 0 }
0x1083   :  { %3160 = vmatmul.msk.bf16.vlgmr.msra.gmra.mxu0 %vm216_vm14, %v1872_v54  ;;  %2044 = vmatpush.bf16.xpose.msrb.mxu1 %v2035_v22 }
0x1087   :  { %v2212_v37 = vpop.permute.xlu2 %2211 }
0x1088   :  { %v2217_v2 = vsel %vm216_vm14, %v2212_v37, 0 }
0x1089   :  { %v2005_v58 = vpop.permute.xlu0 %2004 }
0x1090   :  { %3165 = vmatmul.msk.bf16.vlgmr.msrb.gmra.mxu1 %vm216_vm14, %v2028_v57 }
0x1093   :  { %3164 = vmatmul.msk.bf16.vlgmr.msrb.gmra.mxu0 %vm216_vm14, %v2005_v58 }
0x10c5   :  { %v4208_v59 = vpop.f32.mrf.mxu3 }
0x10cd   :  { %v1914_v46 = vpop.f32.mrf.mxu3 }
0x10d5   :  { %v4210_v29 = vpop.f32.mrf.mxu2 }
0x10dd   :  { %v1893_v60 = vpop.f32.mrf.mxu2 }
0x10e5   :  { %v1977_v61 = vpop.f32.mrf.mxu2  ;;  %v2000_v50 = vpop.f32.mrf.mxu3 }
0x10e6   :  { %v2050_v36 = vmul.f32 0.35355338, %v1977_v61  ;;  %v2051_v15 = vmul.f32 0.35355338, %v2000_v50 }
0x10e8   :  { %v2057_v63 = vsel %vm216_vm14, %v2051_v15, -inf  ;;  %v2054_v3 = vsel %vm216_vm14, %v2050_v36, -inf }
0x10e9   :  { %2058 = vmax.xlane.f32.xlu0 %v2057_v63  ;;  %2055 = vmax.xlane.f32.xlu1 %v2054_v3 }
0x10ed   :  { %v1979_v4 = vpop.f32.mrf.mxu2  ;;  %v2002_v40 = vpop.f32.mrf.mxu3 }
0x10fd   :  { %2123 = vrot.lane.b32.xlu0 %v4138_v21, %s3534_s25  ;;  %v4216_v5 = vpop.f32.mrf.mxu1 }
0x1100   :  { %v4218_v6 = vpop.f32.mrf.mxu0 }
0x1105   :  { %2186 = vrot.lane.b32.xlu0 %v4134_v11, %s3536_s28  ;;  %v1956_v7 = vpop.f32.mrf.mxu1 }
0x1108   :  { %v1935_v8 = vpop.f32.mrf.mxu0 }
0x110d   :  { %v2046_v24 = vpop.f32.mrf.mxu1 }
0x110e   :  { %v2053_v16 = vmul.f32 0.35355338, %v2046_v24 }
0x1110   :  { %v2023_v48 = vpop.f32.mrf.mxu0  ;;  %v2063_v13 = vsel %vm216_vm14, %v2053_v16, -inf }
0x1111   :  { %v2052_v51 = vmul.f32 0.35355338, %v2023_v48 }
0x1113   :  { %v2060_v9 = vsel %vm216_vm14, %v2052_v51, -inf }
0x1114   :  { %2061 = vmax.xlane.f32.xlu1 %v2060_v9 }
0x1115   :  { %v2048_v10 = vpop.f32.mrf.mxu1 }
0x1118   :  { %v2025_v56 = vpop.f32.mrf.mxu0 }
0x112d   :  { %2102 = vrot.lane.b32.xlu1 %v4134_v11, %s3534_s25 }
0x1135   :  { %2188 = vrot.lane.b32.xlu1 %v4134_v11, %s3535_s26 }
0x115c   :  { %v2059_v20 = vpop.xlane.xlu0 %2058  ;;  %v2056_v1 = vpop.xlane.xlu1 %2055 }
0x115d   :  { %v2067_v23 = vsub.f32 %v2051_v15, %v2059_v20  ;;  %v2066_v62 = vsub.f32 %v2050_v36, %v2056_v1 }
0x115f   :  { %v2072_v26 = vmul.f32 1.442695, %v2067_v23  ;;  %v2070_v38 = vmul.f32 1.442695, %v2066_v62  ;;  %2064 = vmax.xlane.f32.xlu1 %v2063_v13 }
0x1161   :  { %3424 = vpow2.f32 %v2072_v26 }
0x1162   :  { %3426 = vpow2.f32 %v2070_v38 }
0x1167   :  { %v3425_v32 = vpop.eup %3424 }
0x1168   :  { %v3427_v33 = vpop.eup %3426  ;;  %v2081_v34 = vsel %vm216_vm14, %v3425_v32, 0.0 }
0x1169   :  { %2082 = vadd.xlane.f32.xlu1 %v2081_v34  ;;  %v2078_v35 = vsel %vm216_vm14, %v3427_v33, 0.0 }
0x116a   :  { %2079 = vadd.xlane.f32.xlu2 %v2078_v35 }
0x116f   :  { %v2124_v19 = vpop.permute.xlu0 %2123 }
0x1170   :  { %v2129_v41 = vsel %vm365_vm15, %v2124_v19, 0 }
0x1171   :  { %2138 = vmatpush.bf16.msra.mxu3 %v2129_v41 }
0x1175   :  { %2226 = vmatpush.bf16.xpose.msrb.mxu3 %v2217_v2 }
0x1177   :  { %v2187_v24 = vpop.permute.xlu0 %2186 }
0x1182   :  { %2144 = vrot.lane.b32.xlu2 %v4142_v25, %s3534_s25  ;;  %2209 = vrot.lane.b32.xlu1 %v4138_v21, %s3536_s28 }
0x1187   :  { %v2062_v17 = vpop.xlane.xlu1 %2061 }
0x1188   :  { %v2068_v44 = vsub.f32 %v2052_v51, %v2062_v17 }
0x118a   :  { %v2074_v39 = vmul.f32 1.442695, %v2068_v44  ;;  %2165 = vrot.lane.b32.xlu2 %v4146_v27, %s3534_s25 }
0x118c   :  { %3428 = vpow2.f32 %v2074_v39 }
0x1192   :  { %v3429_v31 = vpop.eup %3428  ;;  %2234 = vrot.lane.b32.xlu2 %v4142_v25, %s3535_s26 }
0x1193   :  { %v2084_v53 = vsel %vm216_vm14, %v3429_v31, 0.0 }
0x1194   :  { %2085 = vadd.xlane.f32.xlu0 %v2084_v53 }
0x119a   :  { %2257 = vrot.lane.b32.xlu2 %v4146_v27, %s3535_s26 }
0x119f   :  { %v2103_v18 = vpop.permute.xlu1 %2102 }
0x11a0   :  { %v2108_v28 = vsel %vm365_vm15, %v2103_v18, 0 }
0x11a1   :  { %2117 = vmatpush.bf16.msra.mxu2 %v2108_v28 }
0x11a2   :  { %2416 = vrot.lane.b32.xlu2 %v4134_v11, %s3539_s13 }
0x11a7   :  { %v2189_v45 = vpop.permute.xlu1 %2188 }
0x11a8   :  { %v2194_v52 = vsel %vm216_vm14, %v2189_v45, 0  ;;  %2232 = vrot.lane.b32.xlu0 %v4142_v25, %s3536_s28 }
0x11a9   :  { %2203 = vmatpush.bf16.xpose.msrb.mxu2 %v2194_v52 }
0x11b0   :  { %2330 = vrot.lane.b32.xlu0 %v4134_v11, %s3537_s29 }
0x11d2   :  { %v2065_v43 = vpop.xlane.xlu1 %2064 }
0x11d3   :  { %v2069_v47 = vsub.f32 %v2053_v16, %v2065_v43 }
0x11d5   :  { %v2076_v12 = vmul.f32 1.442695, %v2069_v47 }
0x11d7   :  { %3430 = vpow2.f32 %v2076_v12 }
0x11dc   :  { %v2083_v54 = vpop.xlane.xlu1 %2082 }
0x11dd   :  { %v3431_v55 = vpop.eup %3430  ;;  %v2080_v22 = vpop.xlane.xlu2 %2079  ;;  %3432 = vrcp.f32 %v2083_v54 }
0x11de   :  { %3434 = vrcp.f32 %v2080_v22  ;;  %v2087_v57 = vsel %vm216_vm14, %v3431_v55, 0.0 }
0x11df   :  { %2088 = vadd.xlane.f32.xlu1 %v2087_v57 }
0x11e3   :  { %v3433_v58 = vpop.eup %3432 }
0x11e4   :  { %v3435_v46 = vpop.eup %3434  ;;  %v2095_v60 = vmul.f32 %v3433_v58, %v3425_v32 }
0x11e5   :  { %v2094_v61 = vmul.f32 %v3435_v46, %v3427_v33  ;;  %v2145_v50 = vpop.permute.xlu2 %2144 }
0x11e6   :  { %v2099_v36 = vpack.c.bf16 %v2095_v60, %v2095_v60  ;;  %v2150_v15 = vsel %vm365_vm15, %v2145_v50, 0 }
0x11e7   :  { %v2098_v63 = vpack.c.bf16 %v2094_v61, %v2094_v61  ;;  %2159 = vmatpush.bf16.msra.mxu0 %v2150_v15 }
0x11e8   :  { %3167 = vmatmul.msk.bf16.vlgmr.msra.gmra.mxu3 %vm216_vm14, %v2099_v36 }
0x11e9   :  { %3166 = vmatmul.msk.bf16.vlgmr.msra.gmra.mxu2 %vm216_vm14, %v2098_v63 }
0x11ed   :  { %v2166_v3 = vpop.permute.xlu2 %2165 }
0x11ee   :  { %v2171_v4 = vsel %vm365_vm15, %v2166_v3, 0 }
0x11ef   :  { %2180 = vmatpush.bf16.msra.mxu1 %v2171_v4 }
0x11f4   :  { %v2210_v8 = vpop.permute.xlu1 %2209 }
0x11f5   :  { %v2235_v40 = vpop.permute.xlu2 %2234 }
0x11f6   :  { %v2240_v7 = vsel %vm216_vm14, %v2235_v40, 0 }
0x11f7   :  { %2249 = vmatpush.bf16.xpose.msrb.mxu0 %v2240_v7 }
0x11f8   :  { %2255 = vrot.lane.b32.xlu1 %v4146_v27, %s3536_s28  ;;  %3171 = vmatmul.msk.bf16.vlgmr.msrb.gmra.mxu3 %vm216_vm14, %v2210_v8 }
0x11f9   :  { %3170 = vmatmul.msk.bf16.vlgmr.msrb.gmra.mxu2 %vm216_vm14, %v2187_v24 }
0x11fd   :  { %v2258_v48 = vpop.permute.xlu2 %2257 }
0x11fe   :  { %v2263_v51 = vsel %vm216_vm14, %v2258_v48, 0 }
0x11ff   :  { %2272 = vmatpush.bf16.xpose.msrb.mxu1 %v2263_v51 }
0x1205   :  { %v2417_v1 = vpop.permute.xlu2 %2416 }
0x1206   :  { %v2422_v13 = vsel %vm216_vm14, %v2417_v1, 0 }
0x1207   :  { %v2086_v9 = vpop.xlane.xlu0 %2085 }
0x1208   :  { %3436 = vrcp.f32 %v2086_v9 }
0x120e   :  { %v3437_v10 = vpop.eup %3436 }
0x120f   :  { %v2096_v56 = vmul.f32 %v3437_v10, %v3429_v31 }
0x1211   :  { %v2100_v16 = vpack.c.bf16 %v2096_v56, %v2096_v56 }
0x1213   :  { %3168 = vmatmul.msk.bf16.vlgmr.msra.gmra.mxu0 %vm216_vm14, %v2100_v16 }
0x121a   :  { %v2233_v20 = vpop.permute.xlu0 %2232 }
0x1222   :  { %v2331_v23 = vpop.permute.xlu0 %2330 }
0x1223   :  { %v2336_v62 = vsel %vm365_vm15, %v2331_v23, 0  ;;  %3172 = vmatmul.msk.bf16.vlgmr.msrb.gmra.mxu0 %vm216_vm14, %v2233_v20 }
0x1224   :  { %2345 = vmatpush.bf16.msra.mxu2 %v2336_v62 }
0x1228   :  { %2431 = vmatpush.bf16.xpose.msrb.mxu2 %v2422_v13 }
0x1252   :  { %v2089_v26 = vpop.xlane.xlu1 %2088 }
0x1253   :  { %3438 = vrcp.f32 %v2089_v26 }
0x1259   :  { %v3439_v38 = vpop.eup %3438 }
0x125a   :  { %v2097_v32 = vmul.f32 %v3439_v38, %v3431_v55 }
0x125c   :  { %v2101_v33 = vpack.c.bf16 %v2097_v32, %v2097_v32 }
0x125e   :  { %3169 = vmatmul.msk.bf16.vlgmr.msra.gmra.mxu1 %vm216_vm14, %v2101_v33 }
0x126a   :  { %v2256_v37 = vpop.permute.xlu1 %2255 }
0x126b   :  { %v4267_v34 = vpop.f32.mrf.mxu3 }
0x126c   :  { %v4269_v35 = vpop.f32.mrf.mxu2 }
0x126d   :  { %v3258_v19 = vpack.i.bf16 %v4267_v34, %v4269_v35 }
0x126e   :  { %3173 = vmatmul.msk.bf16.vlgmr.msrb.gmra.mxu1 %vm216_vm14, %v2256_v37 }
0x1273   :  { %v2142_v41 = vpop.f32.mrf.mxu3 }
0x1274   :  { %v2121_v2 = vpop.f32.mrf.mxu2 }
0x127b   :  { %v2228_v17 = vpop.f32.mrf.mxu3 }
0x127c   :  { %v2205_v44 = vpop.f32.mrf.mxu2  ;;  %v2279_v39 = vmul.f32 0.35355338, %v2228_v17 }
0x127d   :  { %v2278_v31 = vmul.f32 0.35355338, %v2205_v44 }
0x127e   :  { %v2285_v53 = vsel %vm216_vm14, %v2279_v39, -inf }
0x127f   :  { %v2282_v18 = vsel %vm216_vm14, %v2278_v31, -inf  ;;  %2286 = vmax.xlane.f32.xlu0 %v2285_v53 }
0x1280   :  { %2283 = vmax.xlane.f32.xlu2 %v2282_v18 }
0x1283   :  { %v2230_v28 = vpop.f32.mrf.mxu3 }
0x1284   :  { %v2207_v45 = vpop.f32.mrf.mxu2 }
0x1290   :  { %v4276_v52 = vpop.f32.mrf.mxu0 }
0x1293   :  { %2439 = vrot.lane.b32.xlu0 %v4138_v21, %s3539_s13 }
0x1298   :  { %v2163_v43 = vpop.f32.mrf.mxu0 }
0x12a0   :  { %v2251_v47 = vpop.f32.mrf.mxu0 }
0x12a1   :  { %v2280_v12 = vmul.f32 0.35355338, %v2251_v47 }
0x12a3   :  { %v2288_v54 = vsel %vm216_vm14, %v2280_v12, -inf }
0x12a4   :  { %2289 = vmax.xlane.f32.xlu1 %v2288_v54 }
0x12a8   :  { %v2253_v55 = vpop.f32.mrf.mxu0 }
0x12bd   :  { %2351 = vrot.lane.b32.xlu1 %v4138_v21, %s3537_s29 }
0x12db   :  { %v4283_v22 = vpop.f32.mrf.mxu1 }
0x12e3   :  { %v2184_v57 = vpop.f32.mrf.mxu1 }
0x12eb   :  { %v2274_v58 = vpop.f32.mrf.mxu1 }
0x12ec   :  { %v2281_v46 = vmul.f32 0.35355338, %v2274_v58 }
0x12ee   :  { %v2291_v60 = vsel %vm216_vm14, %v2281_v46, -inf }
0x12ef   :  { %2292 = vmax.xlane.f32.xlu2 %v2291_v60 }
0x12f2   :  { %v2287_v4 = vpop.xlane.xlu0 %2286 }
0x12f3   :  { %v2276_v61 = vpop.f32.mrf.mxu1  ;;  %v2284_v40 = vpop.xlane.xlu2 %2283  ;;  %v2295_v10 = vsub.f32 %v2279_v39, %v2287_v4 }
0x12f4   :  { %v2294_v7 = vsub.f32 %v2278_v31, %v2284_v40 }
0x12f5   :  { %v2300_v56 = vmul.f32 1.442695, %v2295_v10 }
0x12f6   :  { %v2298_v9 = vmul.f32 1.442695, %v2294_v7 }
0x1305   :  { %v2440_v8 = vpop.permute.xlu0 %2439 }
0x1306   :  { %v2445_v51 = vsel %vm216_vm14, %v2440_v8, 0 }
0x1307   :  { %2414 = vrot.lane.b32.xlu2 %v4134_v11, %s3538_s30 }
0x130f   :  { %2437 = vrot.lane.b32.xlu2 %v4138_v21, %s3538_s30 }
0x1317   :  { %2372 = vrot.lane.b32.xlu2 %v4142_v25, %s3537_s29  ;;  %v2290_v50 = vpop.xlane.xlu1 %2289 }
0x1318   :  { %v2296_v36 = vsub.f32 %v2280_v12, %v2290_v50 }
0x131a   :  { %v2302_v15 = vmul.f32 1.442695, %v2296_v36 }
0x131c   :  { %3440 = vpow2.f32 %v2302_v15 }
0x131d   :  { %3442 = vpow2.f32 %v2298_v9 }
0x131e   :  { %3444 = vpow2.f32 %v2300_v56 }
0x1322   :  { %v3441_v63 = vpop.eup %3440 }
0x1323   :  { %v2312_v3 = vsel %vm216_vm14, %v3441_v63, 0.0  ;;  %v3443_v16 = vpop.eup %3442 }
0x1324   :  { %2313 = vadd.xlane.f32.xlu0 %v2312_v3  ;;  %v2306_v20 = vsel %vm216_vm14, %v3443_v16, 0.0  ;;  %v3445_v1 = vpop.eup %3444 }
0x1325   :  { %v2309_v23 = vsel %vm216_vm14, %v3445_v1, 0.0 }
0x132f   :  { %v2352_v24 = vpop.permute.xlu1 %2351 }
0x1330   :  { %v2357_v48 = vsel %vm365_vm15, %v2352_v24, 0 }
0x1331   :  { %2366 = vmatpush.bf16.msra.mxu3 %v2357_v48 }
0x1335   :  { %2454 = vmatpush.bf16.xpose.msrb.mxu3 %v2445_v51 }
0x1338   :  { %2485 = vrot.lane.b32.xlu0 %v4146_v27, %s3539_s13 }
0x1340   :  { %2307 = vadd.xlane.f32.xlu2 %v2306_v20 }
0x1348   :  { %2310 = vadd.xlane.f32.xlu2 %v2309_v23 }
0x1360   :  { %2393 = vrot.lane.b32.xlu2 %v4146_v27, %s3537_s29 }
0x1362   :  { %v2293_v62 = vpop.xlane.xlu2 %2292 }
0x1363   :  { %v2297_v13 = vsub.f32 %v2281_v46, %v2293_v62 }
0x1365   :  { %v2304_v26 = vmul.f32 1.442695, %v2297_v13 }
0x1367   :  { %3446 = vpow2.f32 %v2304_v26 }
0x1368   :  { %2462 = vrot.lane.b32.xlu2 %v4142_v25, %s3539_s13 }
0x136a   :  { %v2415_v38 = vpop.permute.xlu2 %2414 }
0x136d   :  { %v3447_v32 = vpop.eup %3446 }
0x136e   :  { %v2315_v33 = vsel %vm216_vm14, %v3447_v32, 0.0 }
0x136f   :  { %2316 = vadd.xlane.f32.xlu1 %v2315_v33 }
0x1370   :  { %2460 = vrot.lane.b32.xlu2 %v4142_v25, %s3538_s30 }
0x1372   :  { %v2438_v37 = vpop.permute.xlu2 %2437 }
0x137a   :  { %v2373_v41 = vpop.permute.xlu2 %2372 }
0x137b   :  { %v2378_v2 = vsel %vm365_vm15, %v2373_v41, 0 }
0x137c   :  { %2387 = vmatpush.bf16.msra.mxu0 %v2378_v2 }
0x1388   :  { %2483 = vrot.lane.b32.xlu1 %v4146_v27, %s3538_s30 }
0x1397   :  { %v2314_v17 = vpop.xlane.xlu0 %2313 }
0x1398   :  { %3448 = vrcp.f32 %v2314_v17 }
0x139e   :  { %v3449_v44 = vpop.eup %3448 }
0x139f   :  { %v2324_v39 = vmul.f32 %v3449_v44, %v3441_v63 }
0x13a1   :  { %v2328_v31 = vpack.c.bf16 %v2324_v39, %v2324_v39 }
0x13a3   :  { %3176 = vmatmul.msk.bf16.vlgmr.msra.gmra.mxu0 %vm216_vm14, %v2328_v31 }
0x13aa   :  { %v2486_v12 = vpop.permute.xlu0 %2485 }
0x13ab   :  { %v2491_v58 = vsel %vm216_vm14, %v2486_v12, 0 }
0x13b3   :  { %v2308_v53 = vpop.xlane.xlu2 %2307 }
0x13b4   :  { %3450 = vrcp.f32 %v2308_v53 }
0x13ba   :  { %v3451_v18 = vpop.eup %3450 }
0x13bb   :  { %v2322_v28 = vmul.f32 %v3451_v18, %v3443_v16  ;;  %v2311_v45 = vpop.xlane.xlu2 %2310 }
0x13bc   :  { %3452 = vrcp.f32 %v2311_v45 }
0x13bd   :  { %v2326_v43 = vpack.c.bf16 %v2322_v28, %v2322_v28 }
0x13bf   :  { %3174 = vmatmul.msk.bf16.vlgmr.msra.gmra.mxu2 %vm216_vm14, %v2326_v43 }
0x13c2   :  { %v3453_v47 = vpop.eup %3452 }
0x13c3   :  { %v2323_v54 = vmul.f32 %v3453_v47, %v3445_v1  ;;  %v2394_v55 = vpop.permute.xlu2 %2393 }
0x13c4   :  { %v2399_v57 = vsel %vm365_vm15, %v2394_v55, 0 }
0x13c5   :  { %v2327_v46 = vpack.c.bf16 %v2323_v54, %v2323_v54  ;;  %2408 = vmatpush.bf16.msra.mxu1 %v2399_v57 }
0x13c7   :  { %3175 = vmatmul.msk.bf16.vlgmr.msra.gmra.mxu3 %vm216_vm14, %v2327_v46 }
0x13c9   :  { %2500 = vmatpush.bf16.xpose.msrb.mxu1 %v2491_v58 }
0x13cb   :  { %v2463_v60 = vpop.permute.xlu2 %2462 }
0x13cc   :  { %v2468_v61 = vsel %vm216_vm14, %v2463_v60, 0 }
0x13cd   :  { %2477 = vmatpush.bf16.xpose.msrb.mxu0 %v2468_v61 }
0x13cf   :  { %3178 = vmatmul.msk.bf16.vlgmr.msrb.gmra.mxu2 %vm216_vm14, %v2415_v38 }
0x13d3   :  { %v2461_v50 = vpop.permute.xlu2 %2460 }
0x13d4   :  { %3180 = vmatmul.msk.bf16.vlgmr.msrb.gmra.mxu0 %vm216_vm14, %v2461_v50  ;;  %v3273_v50 = vpack.i.bf16 %v4283_v22, %v4276_v52 }
0x13d7   :  { %3179 = vmatmul.msk.bf16.vlgmr.msrb.gmra.mxu3 %vm216_vm14, %v2438_v37 }
0x13e2   :  { %v2317_v36 = vpop.xlane.xlu1 %2316 }
0x13e3   :  { %3454 = vrcp.f32 %v2317_v36 }
0x13e9   :  { %v3455_v15 = vpop.eup %3454 }
0x13ea   :  { %v2325_v63 = vmul.f32 %v3455_v15, %v3447_v32 }
0x13ec   :  { %v2329_v3 = vpack.c.bf16 %v2325_v63, %v2325_v63 }
0x13ee   :  { %3177 = vmatmul.msk.bf16.vlgmr.msra.gmra.mxu1 %vm216_vm14, %v2329_v3 }
0x13fa   :  { %v2484_v4 = vpop.permute.xlu1 %2483 }
0x13fe   :  { %3181 = vmatmul.msk.bf16.vlgmr.msrb.gmra.mxu1 %vm216_vm14, %v2484_v4 }
0x1420   :  { %v4320_v40 = vpop.f32.mrf.mxu0 }
0x1428   :  { %v2391_v7 = vpop.f32.mrf.mxu0 }
0x1442   :  { %v2347_v8 = vpop.f32.mrf.mxu2 }
0x144a   :  { %v2349_v24 = vpop.f32.mrf.mxu2  ;;  %v2368_v48 = vpop.f32.mrf.mxu3 }
0x144b   :  { %v3263_v51 = vpack.i.bf16 %v2368_v48, %v2347_v8 }
0x1451   :  { %v2479_v9 = vpop.f32.mrf.mxu0 }
0x1452   :  { %v2508_v10 = vmul.f32 0.35355338, %v2479_v9  ;;  %v2370_v56 = vpop.f32.mrf.mxu3  ;;  %v2433_v16 = vpop.f32.mrf.mxu2 }
0x1453   :  { %v2506_v20 = vmul.f32 0.35355338, %v2433_v16 }
0x1454   :  { %v2516_v1 = vsel %vm216_vm14, %v2508_v10, -inf }
0x1455   :  { %2517 = vmax.xlane.f32.xlu1 %v2516_v1  ;;  %v2510_v23 = vsel %vm216_vm14, %v2506_v20, -inf }
0x1456   :  { %2511 = vmax.xlane.f32.xlu2 %v2510_v23 }
0x1459   :  { %v2481_v62 = vpop.f32.mrf.mxu0 }
0x145a   :  { %v2435_v13 = vpop.f32.mrf.mxu2  ;;  %v2456_v26 = vpop.f32.mrf.mxu3 }
0x145b   :  { %v2507_v38 = vmul.f32 0.35355338, %v2456_v26 }
0x145d   :  { %v2513_v32 = vsel %vm216_vm14, %v2507_v38, -inf }
0x145e   :  { %2514 = vmax.xlane.f32.xlu0 %v2513_v32 }
0x1462   :  { %v2458_v33 = vpop.f32.mrf.mxu3 }
0x1463   :  { %v3188_v33 = vld [vmem:[%s4553_s4 + $0x30] sm:$0xff] }
0x146b   :  { %v2410_v37 = vpop.f32.mrf.mxu1 }
0x146c   :  { %v3278_v3 = vpack.i.bf16 %v2410_v37, %v4320_v40  ;;  %v3189_v37 = vld [vmem:[%s4553_s4 + $0x38] sm:$0xff] }
0x146e   :  { %2579 = vrot.lane.b32.xlu1 %v4138_v21, %s4570_s1 }
0x1473   :  { %v2412_v41 = vpop.f32.mrf.mxu1 }
0x1474   :  { %v2710_v41 = vpack.c.bf16 %v3189_v37, %v3188_v33 }
0x1476   :  { %3259 = vrot.lane.b32.xlu1 %v3258_v19, %s4571_s2 }
0x147b   :  { %v2502_v2 = vpop.f32.mrf.mxu1 }
0x147c   :  { %v2509_v17 = vmul.f32 0.35355338, %v2502_v2 }
0x147e   :  { %v2519_v44 = vsel %vm216_vm14, %v2509_v17, -inf }
0x147f   :  { %2520 = vmax.xlane.f32.xlu2 %v2519_v44 }
0x1483   :  { %v2504_v39 = vpop.f32.mrf.mxu1 }
0x1497   :  { %2558 = vrot.lane.b32.xlu2 %v4134_v11, %s4570_s1 }
0x14c8   :  { %v2518_v31 = vpop.xlane.xlu1 %2517 }
0x14c9   :  { %v2524_v53 = vsub.f32 %v2508_v10, %v2518_v31  ;;  %v2512_v18 = vpop.xlane.xlu2 %2511 }
0x14ca   :  { %v2522_v28 = vsub.f32 %v2506_v20, %v2512_v18 }
0x14cb   :  { %v2530_v21 = vmul.f32 1.442695, %v2524_v53 }
0x14cc   :  { %v2526_v45 = vmul.f32 1.442695, %v2522_v28 }
0x14cd   :  { %3456 = vpow2.f32 %v2530_v21  ;;  %v3186_v21 = vld [vmem:[%s4553_s4 + $0x20] sm:$0xff] }
0x14ce   :  { %3458 = vpow2.f32 %v2526_v45  ;;  %v3187_v45 = vld [vmem:[%s4553_s4 + $0x28] sm:$0xff] }
0x14d1   :  { %v2515_v11 = vpop.xlane.xlu0 %2514 }
0x14d2   :  { %v2523_v57 = vsub.f32 %v2507_v38, %v2515_v11 }
0x14d3   :  { %v3457_v43 = vpop.eup %3456 }
0x14d4   :  { %v3459_v34 = vpop.eup %3458  ;;  %v2540_v35 = vsel %vm216_vm14, %v3457_v43, 0.0  ;;  %v2528_v46 = vmul.f32 1.442695, %v2523_v57 }
0x14d5   :  { %2541 = vadd.xlane.f32.xlu0 %v2540_v35  ;;  %v2534_v19 = vsel %vm216_vm14, %v3459_v34, 0.0 }
0x14d6   :  { %2535 = vadd.xlane.f32.xlu2 %v2534_v19 }
0x14e0   :  { %v2580_v47 = vpop.permute.xlu1 %2579 }
0x14e1   :  { %v2585_v12 = vsel %vm365_vm15, %v2580_v47, 0 }
0x14e2   :  { %2594 = vmatpush.bf16.msra.mxu3 %v2585_v12 }
0x14ee   :  { %2621 = vrot.lane.b32.xlu2 %v4146_v27, %s4570_s1 }
0x14f2   :  { %v2521_v54 = vpop.xlane.xlu2 %2520 }
0x14f3   :  { %v2525_v55 = vsub.f32 %v2509_v17, %v2521_v54 }
0x14f5   :  { %v2532_v58 = vmul.f32 1.442695, %v2525_v55 }
0x14f6   :  { %3264 = vrot.lane.b32.xlu2 %v3263_v51, %s4572_s21 }
0x14f7   :  { %3460 = vpow2.f32 %v2532_v58 }
0x14f8   :  { %3462 = vpow2.f32 %v2528_v46 }
0x14fa   :  { %v2559_v60 = vpop.permute.xlu2 %2558 }
0x14fb   :  { %v2564_v61 = vsel %vm365_vm15, %v2559_v60, 0 }
0x14fc   :  { %2573 = vmatpush.bf16.msra.mxu2 %v2564_v61 }
0x14fd   :  { %v3461_v36 = vpop.eup %3460 }
0x14fe   :  { %3274 = vrot.lane.b32.xlu2 %v3273_v50, %s4571_s2  ;;  %v2543_v27 = vsel %vm216_vm14, %v3461_v36, 0.0  ;;  %v3463_v15 = vpop.eup %3462 }
0x14ff   :  { %2544 = vadd.xlane.f32.xlu0 %v2543_v27  ;;  %v2537_v63 = vsel %vm216_vm14, %v3463_v15, 0.0 }
0x1500   :  { %2723 = vmatpush.bf16.msrb.mxu2 %v2710_v41 }
0x1507   :  { %2538 = vadd.xlane.f32.xlu0 %v2537_v63 }
0x151b   :  { %2600 = vrot.lane.b32.xlu0 %v4142_v25, %s4570_s1 }
0x1523   :  { %3279 = vrot.lane.b32.xlu0 %v3278_v3, %s4572_s21 }
0x1548   :  { %v2542_v48 = vpop.xlane.xlu0 %2541 }
0x1549   :  { %v2536_v52 = vpop.xlane.xlu2 %2535 }
0x154a   :  { %3464 = vrcp.f32 %v2536_v52 }
0x1550   :  { %v3465_v22 = vpop.eup %3464 }
0x1551   :  { %v2550_v4 = vmul.f32 %v3465_v22, %v3459_v34  ;;  %v2622_v7 = vpop.permute.xlu2 %2621  ;;  %v3260_v34 = vpop.permute.xlu1 %3259 }
0x1552   :  { %v2627_v8 = vsel %vm365_vm15, %v2622_v7, 0  ;;  %v3262_v19 = vunpack.i.h.bf16 %v3260_v34  ;;  %v3261_v47 = vunpack.i.l.bf16 %v3260_v34 }
0x1553   :  { %v2554_v24 = vpack.c.bf16 %v2550_v4, %v2550_v4  ;;  %2636 = vmatpush.bf16.msra.mxu1 %v2627_v8 }
0x1554   :  { %v2691_v55 = vsel %vm216_vm14, %v4208_v59, %v3262_v19  ;;  %v2690_v57 = vsel %vm216_vm14, %v4210_v29, %v3261_v47 }
0x1555   :  { %3182 = vmatmul.msk.bf16.vlgmr.msra.gmra.mxu2 %vm216_vm14, %v2554_v24 }
0x1559   :  { %v3265_v35 = vpop.permute.xlu2 %3264 }
0x155a   :  { %v3267_v12 = vunpack.i.h.bf16 %v3265_v35  ;;  %v3266_v11 = vunpack.i.l.bf16 %v3265_v35 }
0x155c   :  { %v2694_v60 = vsel %vm1181_vm1, %v2690_v57, %v3266_v11  ;;  %v2695_v61 = vsel %vm1181_vm1, %v2691_v55, %v3267_v12  ;;  %v3198_v55 = vld [vmem:[%s4557_s8 + $0x38] sm:$0xff] }
0x1572   :  { %v2545_v51 = vpop.xlane.xlu0 %2544 }
0x1573   :  { %3466 = vrcp.f32 %v2545_v51 }
0x1579   :  { %v3467_v9 = vpop.eup %3466 }
0x157a   :  { %v2553_v25 = vmul.f32 %v3467_v9, %v3461_v36  ;;  %v2539_v10 = vpop.xlane.xlu0 %2538 }
0x157b   :  { %3468 = vrcp.f32 %v2539_v10 }
0x157c   :  { %v2557_v40 = vpack.c.bf16 %v2553_v25, %v2553_v25  ;;  %3470 = vrcp.f32 %v2542_v48 }
0x157e   :  { %3185 = vmatmul.msk.bf16.vlgmr.msra.gmra.mxu1 %vm216_vm14, %v2557_v40  ;;  %v3297_v40 = vld [vmem:[%s4554_s5 + $0x1] ss:$0 sm:$0xff] }
0x1581   :  { %v3469_v56 = vpop.eup %3468 }
0x1582   :  { %v2551_v16 = vmul.f32 %v3469_v56, %v3463_v15  ;;  %v3471_v1 = vpop.eup %3470  ;;  %v3275_v15 = vpop.permute.xlu2 %3274 }
0x1583   :  { %v2552_v23 = vmul.f32 %v3471_v1, %v3457_v43  ;;  %v2709_v43 = vpack.c.bf16 %v3187_v45, %v3186_v21  ;;  %v3277_v59 = vunpack.i.h.bf16 %v3275_v15  ;;  %v3276_v52 = vunpack.i.l.bf16 %v3275_v15 }
0x1584   :  { %v2555_v20 = vpack.c.bf16 %v2551_v16, %v2551_v16 }
0x1585   :  { %v2556_v26 = vpack.c.bf16 %v2552_v23, %v2552_v23  ;;  %2724 = vmatpush.bf16.msrb.mxu2 %v2709_v43  ;;  %v2693_v8 = vsel %vm216_vm14, %v4216_v5, %v3277_v59  ;;  %v2692_v24 = vsel %vm216_vm14, %v4218_v6, %v3276_v52 }
0x1586   :  { %3183 = vmatmul.msk.bf16.vlgmr.msra.gmra.mxu3 %vm216_vm14, %v2555_v20 }
0x158d   :  { %v2601_v62 = vpop.permute.xlu0 %2600 }
0x158e   :  { %v2606_v13 = vsel %vm365_vm15, %v2601_v62, 0 }
0x158f   :  { %2615 = vmatpush.bf16.msra.mxu0 %v2606_v13 }
0x1592   :  { %3184 = vmatmul.msk.bf16.vlgmr.msra.gmra.mxu0 %vm216_vm14, %v2556_v26 }
0x1595   :  { %v3280_v63 = vpop.permute.xlu0 %3279 }
0x1596   :  { %v3282_v22 = vunpack.i.h.bf16 %v3280_v63  ;;  %v3281_v29 = vunpack.i.l.bf16 %v3280_v63 }
0x1598   :  { %v2697_v48 = vsel %vm1181_vm1, %v2693_v8, %v3282_v22  ;;  %v2696_v51 = vsel %vm1181_vm1, %v2692_v24, %v3281_v29 }
0x15d8   :  { %v2575_v38 = vpop.f32.mrf.mxu2 }
0x15e0   :  { %v2577_v32 = vpop.f32.mrf.mxu2 }
0x15fb   :  { %v2638_v2 = vpop.f32.mrf.mxu1 }
0x1603   :  { %v2640_v17 = vpop.f32.mrf.mxu1 }
0x1609   :  { %v2596_v44 = vpop.f32.mrf.mxu3 }
0x160a   :  { %v3268_v39 = vpack.i.bf16 %v2596_v44, %v2575_v38 }
0x160c   :  { %3269 = vrot.lane.b32.xlu1 %v3268_v39, %s3542_s15 }
0x160f   :  { %v2617_v31 = vpop.f32.mrf.mxu0 }
0x1610   :  { %v3283_v18 = vpack.i.bf16 %v2638_v2, %v2617_v31 }
0x1611   :  { %v2598_v53 = vpop.f32.mrf.mxu3 }
0x1614   :  { %3284 = vrot.lane.b32.xlu1 %v3283_v18, %s3542_s15 }
0x1617   :  { %v2619_v28 = vpop.f32.mrf.mxu0 }
0x167e   :  { %v3270_v54 = vpop.permute.xlu1 %3269 }
0x167f   :  { %v3272_v58 = vunpack.i.h.bf16 %v3270_v54  ;;  %v3271_v46 = vunpack.i.l.bf16 %v3270_v54  ;;  %v3197_v54 = vld [vmem:[%s4557_s8 + $0x30] sm:$0xff] }
0x1681   :  { %v2698_v50 = vsel %vm1186_vm2, %v2694_v60, %v3271_v46  ;;  %v2699_v36 = vsel %vm1186_vm2, %v2695_v61, %v3272_v58  ;;  %v2863_v58 = vpack.c.bf16 %v3198_v55, %v3197_v54  ;;  %v3195_v61 = vld [vmem:[%s4557_s8 + $0x20] sm:$0xff] }
0x1682   :  { %v2707_v27 = vpack.c.bf16 %v2699_v36, %v2698_v50  ;;  %v3196_v50 = vld [vmem:[%s4557_s8 + $0x28] sm:$0xff] }
0x1683   :  { %2881 = vmatpush.bf16.msrb.mxu3 %v2863_v58  ;;  %v2862_v36 = vpack.c.bf16 %v3196_v50, %v3195_v61 }
0x1684   :  { %3190 = vmatmul.msk.bf16.vlgmr.msrb.gmra.mxu2 %vm64_vm0, %v2707_v27 }
0x1686   :  { %v3285_v3 = vpop.permute.xlu1 %3284 }
0x1687   :  { %v3287_v4 = vunpack.i.h.bf16 %v3285_v3  ;;  %v3286_v7 = vunpack.i.l.bf16 %v3285_v3  ;;  %2882 = vmatpush.bf16.msrb.mxu3 %v2862_v36 }
0x1689   :  { %v2701_v9 = vsel %vm1186_vm2, %v2697_v48, %v3287_v4  ;;  %v2700_v25 = vsel %vm1186_vm2, %v2696_v51, %v3286_v7 }
0x168a   :  { %v2708_v10 = vpack.c.bf16 %v2701_v9, %v2700_v25 }
0x1694   :  { %3191 = vmatmul.msk.bf16.gmra.mxu2 %vm64_vm0, %v2708_v10 }
0x1707   :  { %v2726_v56 = vpop.f32.mrf.mxu2 }
0x1708   :  { %v2736_v5 = vadd.f32 %v2726_v56, %v4081_v42 }
0x170a   :  { %v4392_v16 = vadd.f32 %v3297_v40, %v2736_v5 }
0x170c   :  { %v2753_v6 = vsel %vm64_vm0, %v4392_v16, 0.0 }
0x170d   :  { %2754 = vadd.xlane.f32.xlu2 %v2753_v6 }
0x170f   :  { %v2728_v20 = vpop.f32.mrf.mxu2 }
0x1710   :  { %v2737_v1 = vadd.f32 %v2728_v20, %v4086_v0  ;;  %v3298_v20 = vld [vmem:[%s4555_s6 + $0x1] ss:$0 sm:$0xff] }
0x1712   :  { %v4397_v23 = vadd.f32 %v3297_v40, %v2737_v1 }
0x1714   :  { %v2756_v62 = vsel %vm64_vm0, %v4397_v23, 0.0 }
0x1715   :  { %2757 = vadd.xlane.f32.xlu0 %v2756_v62 }
0x1717   :  { %v2731_v13 = vpop.f32.mrf.mxu2 }
0x1718   :  { %v2738_v26 = vadd.f32 %v2731_v13, %v4091_v30 }
0x171a   :  { %v4402_v38 = vadd.f32 %v3297_v40, %v2738_v26 }
0x171c   :  { %v2759_v42 = vsel %vm64_vm0, %v4402_v38, 0.0 }
0x171d   :  { %2760 = vadd.xlane.f32.xlu1 %v2759_v42 }
0x171f   :  { %v2733_v32 = vpop.f32.mrf.mxu2 }
0x1720   :  { %v2739_v33 = vadd.f32 %v2733_v32, %v4096_v49 }
0x1722   :  { %v4407_v37 = vadd.f32 %v3297_v40, %v2739_v33 }
0x1724   :  { %v2762_v0 = vsel %vm64_vm0, %v4407_v37, 0.0 }
0x1725   :  { %2763 = vadd.xlane.f32.xlu2 %v2762_v0 }
0x1780   :  { %v2755_v41 = vpop.xlane.xlu2 %2754 }
0x1781   :  { %v2765_v2 = vmul.f32 %v2755_v41, %v3628_v14 }
0x1783   :  { %v2769_v30 = vsub.f32 %v4392_v16, %v2765_v2 }
0x1785   :  { %v2773_v17 = vmul.f32 %v2769_v30, %v2769_v30 }
0x1787   :  { %v2777_v44 = vsel %vm64_vm0, %v2773_v17, 0.0 }
0x1788   :  { %2778 = vadd.xlane.f32.xlu0 %v2777_v44  ;;  %v2758_v39 = vpop.xlane.xlu0 %2757 }
0x1789   :  { %v2766_v31 = vmul.f32 %v2758_v39, %v3628_v14 }
0x178b   :  { %v4416_v49 = vsub.f32 %v4397_v23, %v2766_v31 }
0x178d   :  { %v2774_v53 = vmul.f32 %v4416_v49, %v4416_v49 }
0x178f   :  { %v2780_v18 = vsel %vm64_vm0, %v2774_v53, 0.0 }
0x1790   :  { %2781 = vadd.xlane.f32.xlu1 %v2780_v18  ;;  %v2761_v28 = vpop.xlane.xlu1 %2760 }
0x1791   :  { %v2767_v21 = vmul.f32 %v2761_v28, %v3628_v14 }
0x1793   :  { %v4423_v45 = vsub.f32 %v4402_v38, %v2767_v21 }
0x1795   :  { %v2775_v43 = vmul.f32 %v4423_v45, %v4423_v45 }
0x1797   :  { %v2783_v34 = vsel %vm64_vm0, %v2775_v43, 0.0 }
0x1798   :  { %2784 = vadd.xlane.f32.xlu2 %v2783_v34  ;;  %v2764_v35 = vpop.xlane.xlu2 %2763 }
0x1799   :  { %v2768_v19 = vmul.f32 %v2764_v35, %v3628_v14 }
0x179b   :  { %v4430_v47 = vsub.f32 %v4407_v37, %v2768_v19 }
0x179d   :  { %v2776_v12 = vmul.f32 %v4430_v47, %v4430_v47 }
0x179f   :  { %v2786_v11 = vsel %vm64_vm0, %v2776_v12, 0.0 }
0x17a0   :  { %2787 = vadd.xlane.f32.xlu0 %v2786_v11 }
0x17fb   :  { %v2779_v57 = vpop.xlane.xlu0 %2778 }
0x17fc   :  { %v2789_v46 = vmul.f32 %v2779_v57, %v3628_v14 }
0x17fe   :  { %v2793_v60 = vadd.f32 1e-05, %v2789_v46  ;;  %v3300_v46 = vld [vmem:[%s4558_s9 + $0x1] ss:$0 sm:$0xff] }
0x1800   :  { %3472 = vrsqrt.f32 %v2793_v60  ;;  %vm2803_vm15 = vweird.f32 %v2793_v60 }
0x1803   :  { %v2782_v27 = vpop.xlane.xlu1 %2781 }
0x1804   :  { %v2790_v15 = vmul.f32 %v2782_v27, %v3628_v14 }
0x1806   :  { %v3473_v63 = vpop.eup %3472  ;;  %v2794_v3 = vadd.f32 1e-05, %v2790_v15 }
0x1807   :  { %v2798_v59 = vmul.f32 %v3473_v63, %v2793_v60  ;;  %vm2804_vm14 = vweird.f32 %v3473_v63 }
0x1808   :  { %3474 = vrsqrt.f32 %v2794_v3  ;;  %vm2805_vm1 = vmor %vm2803_vm15, %vm2804_vm14  ;;  %vm2813_vm3 = vweird.f32 %v2794_v3 }
0x1809   :  { %v2799_v52 = vmul.f32 %v3473_v63, %v2798_v59 }
0x180b   :  { %v2800_v22 = vmul.f32 0.5, %v2799_v52  ;;  %v2785_v29 = vpop.xlane.xlu2 %2784 }
0x180c   :  { %v2791_v4 = vmul.f32 %v2785_v29, %v3628_v14 }
0x180d   :  { %v2801_v7 = vsub.f32 1.5, %v2800_v22 }
0x180e   :  { %v3475_v8 = vpop.eup %3474  ;;  %v2795_v24 = vadd.f32 1e-05, %v2791_v4 }
0x180f   :  { %v2802_v48 = vmul.f32 %v3473_v63, %v2801_v7  ;;  %v2808_v51 = vmul.f32 %v3475_v8, %v2794_v3  ;;  %vm2814_vm2 = vweird.f32 %v3475_v8 }
0x1810   :  { %3476 = vrsqrt.f32 %v2795_v24  ;;  %vm2815_vm4 = vmor %vm2813_vm3, %vm2814_vm2  ;;  %vm2823_vm6 = vweird.f32 %v2795_v24 }
0x1811   :  { %v2809_v9 = vmul.f32 %v3475_v8, %v2808_v51  ;;  %v2806_v25 = vsel %vm2805_vm1, %v3473_v63, %v2802_v48 }
0x1812   :  { %v2837_v1 = vmul.f32 %v2806_v25, %v2769_v30 }
0x1813   :  { %v2810_v10 = vmul.f32 0.5, %v2809_v9  ;;  %v2788_v40 = vpop.xlane.xlu0 %2787 }
0x1814   :  { %v2792_v56 = vmul.f32 %v2788_v40, %v3628_v14  ;;  %v3299_v14 = vld [vmem:[%s4556_s7 + $0x1] ss:$0 sm:$0xff]  ;;  %v2844_v33 = vmul.f32 %v3298_v20, %v2837_v1 }
0x1815   :  { %v2811_v5 = vsub.f32 1.5, %v2810_v10 }
0x1816   :  { %v3477_v6 = vpop.eup %3476  ;;  %v2796_v62 = vadd.f32 1e-05, %v2792_v56  ;;  %v2851_v30 = vadd.f32 %v3299_v14, %v2844_v33 }
0x1817   :  { %v2812_v13 = vmul.f32 %v3475_v8, %v2811_v5  ;;  %v2818_v26 = vmul.f32 %v3477_v6, %v2795_v24  ;;  %vm2824_vm5 = vweird.f32 %v3477_v6 }
0x1818   :  { %3478 = vrsqrt.f32 %v2796_v62  ;;  %vm2825_vm7 = vmor %vm2823_vm6, %vm2824_vm5  ;;  %vm2833_vm9 = vweird.f32 %v2796_v62 }
0x1819   :  { %v2816_v42 = vsel %vm2815_vm4, %v3475_v8, %v2812_v13  ;;  %v2819_v32 = vmul.f32 %v3477_v6, %v2818_v26 }
0x181a   :  { %v2838_v0 = vmul.f32 %v2816_v42, %v4416_v49 }
0x181b   :  { %v2820_v41 = vmul.f32 0.5, %v2819_v32 }
0x181c   :  { %v2845_v2 = vmul.f32 %v3298_v20, %v2838_v0 }
0x181d   :  { %v2821_v17 = vsub.f32 1.5, %v2820_v41  ;;  %v3204_v41 = vld [vmem:[%s4559_s10 + $0x30] sm:$0xff] }
0x181e   :  { %v3479_v44 = vpop.eup %3478  ;;  %v2852_v39 = vadd.f32 %v3299_v14, %v2845_v2 }
0x181f   :  { %v2822_v31 = vmul.f32 %v3477_v6, %v2821_v17  ;;  %v2828_v53 = vmul.f32 %v3479_v44, %v2796_v62  ;;  %vm2834_vm8 = vweird.f32 %v3479_v44 }
0x1820   :  { %v2860_v18 = vpack.c.bf16 %v2852_v39, %v2851_v30  ;;  %vm2835_vm10 = vmor %vm2833_vm9, %vm2834_vm8 }
0x1821   :  { %v2829_v28 = vmul.f32 %v3479_v44, %v2828_v53  ;;  %v2826_v21 = vsel %vm2825_vm7, %v3477_v6, %v2822_v31 }
0x1822   :  { %3200 = vmatmul.msk.bf16.vlgmr.msrb.gmra.mxu3 %vm64_vm0, %v2860_v18  ;;  %v2839_v49 = vmul.f32 %v2826_v21, %v4423_v45  ;;  %v3203_v21 = vld [vmem:[%s4559_s10 + $0x28] sm:$0xff] }
0x1823   :  { %v2830_v43 = vmul.f32 0.5, %v2829_v28  ;;  %v3202_v28 = vld [vmem:[%s4559_s10 + $0x20] sm:$0xff] }
0x1824   :  { %v2846_v11 = vmul.f32 %v3298_v20, %v2839_v49 }
0x1825   :  { %v2831_v34 = vsub.f32 1.5, %v2830_v43 }
0x1826   :  { %v2853_v55 = vadd.f32 %v3299_v14, %v2846_v11 }
0x1827   :  { %v2832_v35 = vmul.f32 %v3479_v44, %v2831_v34 }
0x1829   :  { %v2836_v19 = vsel %vm2835_vm10, %v3479_v44, %v2832_v35  ;;  %v3205_v44 = vld [vmem:[%s4559_s10 + $0x38] sm:$0xff] }
0x182a   :  { %v2840_v12 = vmul.f32 %v2836_v19, %v4430_v47  ;;  %v3062_v18 = vpack.c.bf16 %v3205_v44, %v3204_v41 }
0x182c   :  { %v2847_v54 = vmul.f32 %v3298_v20, %v2840_v12  ;;  %3075 = vmatpush.bf16.msrb.mxu0 %v3062_v18 }
0x182e   :  { %v2854_v57 = vadd.f32 %v3299_v14, %v2847_v54  ;;  %v3061_v54 = vpack.c.bf16 %v3203_v21, %v3202_v28 }
0x1830   :  { %v2861_v58 = vpack.c.bf16 %v2854_v57, %v2853_v55  ;;  %3076 = vmatpush.bf16.msrb.mxu0 %v3061_v54 }
0x1832   :  { %3201 = vmatmul.msk.bf16.gmra.mxu3 %vm64_vm0, %v2861_v58 }
0x18a5   :  { %v2884_v60 = vpop.f32.mrf.mxu3 }
0x18a6   :  { %v4465_v61 = vadd.f32 %v3300_v46, %v2884_v60 }
0x18a8   :  { %v4468_v45 = vmul.f32 0.70710677, %v4465_v61 }
0x18aa   :  { %v2902_v50 = vand.u32 2147483647, %v4468_v45 }
0x18ac   :  { %v2906_v47 = vmul.f32 0.3275911, %v2902_v50  ;;  %v3010_v6 = vsub.f32 0.0, %v2902_v50 }
0x18ad   :  { %v2886_v36 = vpop.f32.mrf.mxu3 }
0x18ae   :  { %v2910_v27 = vadd.f32 1.0, %v2906_v47  ;;  %v4471_v15 = vadd.f32 %v3300_v46, %v2886_v36  ;;  %v3014_v14 = vmul.f32 %v3010_v6, %v2902_v50 }
0x18b0   :  { %3480 = vrcp.f32 %v2910_v27  ;;  %v4474_v63 = vmul.f32 0.70710677, %v4471_v15  ;;  %v2925_v48 = vand.u32 2147483648, %v2910_v27  ;;  %v2923_v25 = vand.u32 2147483647, %v2910_v27 }
0x18b1   :  { %vm2919_vm12 = vweird.f32 %v2910_v27  ;;  %v3018_v34 = vmul.f32 1.442695, %v3014_v14 }
0x18b2   :  { %v4477_v3 = vand.u32 2147483647, %v4474_v63  ;;  %v2926_v5 = vor.u32 1.1754944e-38, %v2925_v48  ;;  %vm2924_vm14 = vcmp.eq.f32.partialorder %v2923_v25, 8.507059e+37 }
0x18b4   :  { %v2907_v59 = vmul.f32 0.3275911, %v4477_v3  ;;  %v3011_v57 = vsub.f32 0.0, %v4477_v3 }
0x18b5   :  { %v2889_v52 = vpop.f32.mrf.mxu3 }
0x18b6   :  { %v3481_v22 = vpop.eup %3480  ;;  %v4480_v29 = vadd.f32 %v3300_v46, %v2889_v52  ;;  %v2911_v7 = vadd.f32 1.0, %v2907_v59 }
0x18b7   :  { %v2915_v4 = vmul.f32 %v3481_v22, %v2910_v27  ;;  %vm2920_vm11 = vweird.f32 %v3481_v22 }
0x18b8   :  { %v4483_v8 = vmul.f32 0.70710677, %v4480_v29  ;;  %3482 = vrcp.f32 %v2911_v7  ;;  %vm2921_vm13 = vmor %vm2919_vm12, %vm2920_vm11  ;;  %v2940_v17 = vand.u32 2147483648, %v2911_v7  ;;  %v2938_v39 = vand.u32 2147483647, %v2911_v7 }
0x18b9   :  { %v2916_v24 = vsub.f32 1.0, %v2915_v4  ;;  %vm2934_vm1 = vweird.f32 %v2911_v7  ;;  %v3015_v4 = vmul.f32 %v3011_v57, %v4477_v3  ;;  %vm3034_vm12 = vcmp.lt.f32.partialorder %v4468_v45, 0.0 }
0x18ba   :  { %v4486_v51 = vand.u32 2147483647, %v4483_v8  ;;  %v2941_v12 = vor.u32 1.1754944e-38, %v2940_v17  ;;  %vm2939_vm3 = vcmp.eq.f32.partialorder %v2938_v39, 8.507059e+37  ;;  %v2895_v45 = vmul.f32 0.5, %v4471_v15 }
0x18bb   :  { %v2917_v9 = vmul.f32 %v3481_v22, %v2916_v24 }
0x18bc   :  { %v2908_v10 = vmul.f32 0.3275911, %v4486_v51 }
0x18bd   :  { %v2918_v40 = vadd.f32 %v3481_v22, %v2917_v9  ;;  %v2891_v56 = vpop.f32.mrf.mxu3 }
0x18be   :  { %v2912_v20 = vadd.f32 1.0, %v2908_v10  ;;  %v4489_v1 = vadd.f32 %v3300_v46, %v2891_v56  ;;  %v3483_v62 = vpop.eup %3482 }
0x18bf   :  { %v2922_v13 = vsel %vm2921_vm13, %v3481_v22, %v2918_v40  ;;  %v2930_v42 = vmul.f32 %v3483_v62, %v2911_v7  ;;  %vm2935_vm15 = vweird.f32 %v3483_v62  ;;  %vm3035_vm13 = vcmp.lt.f32.partialorder %v4474_v63, 0.0 }
0x18c0   :  { %v2927_v26 = vsel %vm2924_vm14, %v2926_v5, %v2922_v13  ;;  %3484 = vrcp.f32 %v2912_v20  ;;  %v4492_v0 = vmul.f32 0.70710677, %v4489_v1  ;;  %vm2936_vm2 = vmor %vm2934_vm1, %vm2935_vm15  ;;  %v2955_v36 = vand.u32 2147483648, %v2912_v20 }
0x18c1   :  { %v2974_v32 = vmul.f32 1.0614054, %v2927_v26  ;;  %v2931_v33 = vsub.f32 1.0, %v2930_v42  ;;  %v2953_v52 = vand.u32 2147483647, %v2912_v20  ;;  %vm2949_vm5 = vweird.f32 %v2912_v20 }
0x18c2   :  { %v4501_v31 = vand.u32 2147483647, %v4492_v0  ;;  %v2956_v9 = vor.u32 1.1754944e-38, %v2955_v36  ;;  %v3020_v5 = vmul.f32 1.442695, %v3015_v4  ;;  %vm3036_vm14 = vcmp.lt.f32.partialorder %v4483_v8, 0.0 }
0x18c3   :  { %v2978_v2 = vadd.f32 -1.4531521, %v2974_v32  ;;  %v2932_v30 = vmul.f32 %v3483_v62, %v2931_v33  ;;  %vm2954_vm7 = vcmp.eq.f32.partialorder %v2953_v52, 8.507059e+37  ;;  %vm3037_vm15 = vcmp.lt.f32.partialorder %v4492_v0, 0.0  ;;  %v3301_v8 = vld [vmem:[%s4560_s11 + $0x1] ss:$0 sm:$0xff] }
0x18c4   :  { %v2909_v35 = vmul.f32 0.3275911, %v4501_v31 }
0x18c5   :  { %v2982_v53 = vmul.f32 %v2978_v2, %v2927_v26  ;;  %v2933_v49 = vadd.f32 %v3483_v62, %v2932_v30 }
0x18c6   :  { %v3485_v43 = vpop.eup %3484  ;;  %v2913_v58 = vadd.f32 1.0, %v2909_v35 }
0x18c7   :  { %v2986_v19 = vadd.f32 1.4214138, %v2982_v53  ;;  %v2945_v11 = vmul.f32 %v3485_v43, %v2912_v20  ;;  %v2937_v55 = vsel %vm2936_vm2, %v3483_v62, %v2933_v49  ;;  %vm2950_vm4 = vweird.f32 %v3485_v43 }
0x18c8   :  { %v2942_v60 = vsel %vm2939_vm3, %v2941_v12, %v2937_v55  ;;  %3486 = vrcp.f32 %v2913_v58  ;;  %vm2951_vm6 = vmor %vm2949_vm5, %vm2950_vm4  ;;  %v3012_v62 = vsub.f32 0.0, %v4486_v51  ;;  %v2970_v44 = vand.u32 2147483648, %v2913_v58 }
0x18c9   :  { %v2990_v46 = vmul.f32 %v2986_v19, %v2927_v26  ;;  %v2946_v50 = vsub.f32 1.0, %v2945_v11  ;;  %v2975_v47 = vmul.f32 1.0614054, %v2942_v60  ;;  %3488 = vpow2.f32 %v3018_v34 }
0x18ca   :  { %3490 = vpow2.f32 %v3020_v5  ;;  %v3016_v17 = vmul.f32 %v3012_v62, %v4486_v51  ;;  %v2968_v53 = vand.u32 2147483647, %v2913_v58  ;;  %vm2964_vm9 = vweird.f32 %v2913_v58 }
0x18cb   :  { %v2994_v27 = vadd.f32 -0.28449672, %v2990_v46  ;;  %v2947_v59 = vmul.f32 %v3485_v43, %v2946_v50  ;;  %v2979_v22 = vadd.f32 -1.4531521, %v2975_v47  ;;  %v2971_v49 = vor.u32 1.1754944e-38, %v2970_v44 }
0x18cc   :  { %v3022_v34 = vmul.f32 1.442695, %v3016_v17  ;;  %vm2969_vm11 = vcmp.eq.f32.partialorder %v2968_v53, 8.507059e+37  ;;  %v3013_v55 = vsub.f32 0.0, %v4501_v31  ;;  %v2896_v44 = vmul.f32 0.5, %v4480_v29 }
0x18cd   :  { %v2998_v7 = vmul.f32 %v2994_v27, %v2927_v26  ;;  %v2948_v24 = vadd.f32 %v3485_v43, %v2947_v59  ;;  %v2983_v48 = vmul.f32 %v2979_v22, %v2942_v60 }
0x18ce   :  { %v3487_v40 = vpop.eup %3486  ;;  %3492 = vpow2.f32 %v3022_v34  ;;  %v3017_v59 = vmul.f32 %v3013_v55, %v4501_v31 }
0x18cf   :  { %v3002_v25 = vadd.f32 0.2548296, %v2998_v7  ;;  %v2952_v10 = vsel %vm2951_vm6, %v3485_v43, %v2948_v24  ;;  %v2987_v56 = vadd.f32 1.4214138, %v2983_v48  ;;  %v2960_v32 = vmul.f32 %v3487_v40, %v2913_v58  ;;  %v3489_v14 = vpop.eup %3488 }
0x18d0   :  { %v2957_v6 = vsel %vm2954_vm7, %v2956_v9, %v2952_v10  ;;  %vm2965_vm8 = vweird.f32 %v3487_v40  ;;  %v3491_v12 = vpop.eup %3490  ;;  %v2894_v9 = vmul.f32 0.5, %v4465_v61  ;;  %v3024_v10 = vmul.f32 1.442695, %v3017_v59 }
0x18d1   :  { %v3006_v13 = vmul.f32 %v3002_v25, %v2927_v26  ;;  %v2976_v42 = vmul.f32 1.0614054, %v2957_v6  ;;  %v2991_v3 = vmul.f32 %v2987_v56, %v2942_v60  ;;  %v2961_v20 = vsub.f32 1.0, %v2960_v32  ;;  %vm2966_vm10 = vmor %vm2964_vm9, %vm2965_vm8 }
0x18d2   :  { %3494 = vpow2.f32 %v3024_v10 }
0x18d3   :  { %v3026_v33 = vmul.f32 %v3489_v14, %v3006_v13  ;;  %v2980_v41 = vadd.f32 -1.4531521, %v2976_v42  ;;  %v2995_v2 = vadd.f32 -0.28449672, %v2991_v3  ;;  %v2962_v39 = vmul.f32 %v3487_v40, %v2961_v20 }
0x18d4   :  { %v3493_v48 = vpop.eup %3492 }
0x18d5   :  { %v2984_v30 = vmul.f32 %v2980_v41, %v2957_v6  ;;  %v3030_v18 = vsub.f32 1.0, %v3026_v33  ;;  %v2999_v28 = vmul.f32 %v2995_v2, %v2942_v60  ;;  %v2963_v26 = vadd.f32 %v3487_v40, %v2962_v39 }
0x18d7   :  { %v2988_v21 = vadd.f32 1.4214138, %v2984_v30  ;;  %v3003_v43 = vadd.f32 0.2548296, %v2999_v28  ;;  %v2967_v19 = vsel %vm2966_vm10, %v3487_v40, %v2963_v26  ;;  %v3038_v11 = vsub.f32 0.0, %v3030_v18 }
0x18d8   :  { %v2972_v54 = vsel %vm2969_vm11, %v2971_v49, %v2967_v19  ;;  %v3495_v61 = vpop.eup %3494  ;;  %v2897_v30 = vmul.f32 0.5, %v4489_v1 }
0x18d9   :  { %v2992_v35 = vmul.f32 %v2988_v21, %v2957_v6  ;;  %v3007_v51 = vmul.f32 %v3003_v43, %v2942_v60  ;;  %v2977_v46 = vmul.f32 1.0614054, %v2972_v54  ;;  %v3042_v36 = vsel %vm3034_vm12, %v3038_v11, %v3030_v18 }
0x18da   :  { %v3046_v7 = vadd.f32 1.0, %v3042_v36 }
0x18db   :  { %v2996_v57 = vadd.f32 -0.28449672, %v2992_v35  ;;  %v3027_v50 = vmul.f32 %v3491_v12, %v3007_v51  ;;  %v2981_v47 = vadd.f32 -1.4531521, %v2977_v46 }
0x18dc   :  { %v3050_v62 = vmul.f32 %v3046_v7, %v2894_v9 }
0x18dd   :  { %v3000_v58 = vmul.f32 %v2996_v57, %v2957_v6  ;;  %v3031_v27 = vsub.f32 1.0, %v3027_v50  ;;  %v2985_v22 = vmul.f32 %v2981_v47, %v2972_v54 }
0x18df   :  { %v3004_v52 = vadd.f32 0.2548296, %v3000_v58  ;;  %v3039_v4 = vsub.f32 0.0, %v3031_v27  ;;  %v2989_v24 = vadd.f32 1.4214138, %v2985_v22 }
0x18e1   :  { %v3008_v60 = vmul.f32 %v3004_v52, %v2957_v6  ;;  %v3043_v25 = vsel %vm3035_vm13, %v3039_v4, %v3031_v27  ;;  %v2993_v5 = vmul.f32 %v2989_v24, %v2972_v54 }
0x18e2   :  { %v3047_v40 = vadd.f32 1.0, %v3043_v25 }
0x18e3   :  { %v3028_v56 = vmul.f32 %v3493_v48, %v3008_v60  ;;  %v2997_v13 = vadd.f32 -0.28449672, %v2993_v5 }
0x18e4   :  { %v3051_v31 = vmul.f32 %v3047_v40, %v2895_v45 }
0x18e5   :  { %v3032_v32 = vsub.f32 1.0, %v3028_v56  ;;  %v3001_v14 = vmul.f32 %v2997_v13, %v2972_v54 }
0x18e6   :  { %v3059_v42 = vpack.c.bf16 %v3051_v31, %v3050_v62 }
0x18e7   :  { %v3005_v63 = vadd.f32 0.2548296, %v3001_v14  ;;  %v3040_v6 = vsub.f32 0.0, %v3032_v32 }
0x18e8   :  { %3206 = vmatmul.msk.bf16.vlgmr.msrb.gmra.mxu0 %vm64_vm0, %v3059_v42 }
0x18e9   :  { %v3009_v3 = vmul.f32 %v3005_v63, %v2972_v54  ;;  %v3044_v15 = vsel %vm3036_vm14, %v3040_v6, %v3032_v32 }
0x18ea   :  { %v3048_v2 = vadd.f32 1.0, %v3044_v15 }
0x18eb   :  { %v3029_v33 = vmul.f32 %v3495_v61, %v3009_v3 }
0x18ec   :  { %v3052_v53 = vmul.f32 %v3048_v2, %v2896_v44 }
0x18ed   :  { %v3033_v41 = vsub.f32 1.0, %v3029_v33 }
0x18ef   :  { %v3041_v20 = vsub.f32 0.0, %v3033_v41 }
0x18f1   :  { %v3045_v17 = vsel %vm3037_vm15, %v3041_v20, %v3033_v41 }
0x18f2   :  { %v3049_v39 = vadd.f32 1.0, %v3045_v17 }
0x18f4   :  { %v3053_v18 = vmul.f32 %v3049_v39, %v2897_v30 }
0x18f6   :  { %v3060_v28 = vpack.c.bf16 %v3053_v18, %v3052_v53 }
0x18f8   :  { %3207 = vmatmul.msk.bf16.gmra.mxu0 %vm64_vm0, %v3060_v28 }
0x1965   :  { %v3078_v21 = vpop.f32.mrf.mxu0 }
0x1966   :  { %v3088_v26 = vadd.f32 %v3078_v21, %v4392_v16 }
0x1968   :  { %v3097_v43 = vadd.f32 %v3301_v8, %v3088_v26 }
0x196a   :  { %3101 = vst.msk [vmem:[%s4561_s12] sm:$0xff] %vm64_vm0, %v3097_v43 }
0x196d   :  { %v3080_v29 = vpop.f32.mrf.mxu0 }
0x196e   :  { %v3089_v1 = vadd.f32 %v3080_v29, %v4397_v23 }
0x1970   :  { %v3098_v0 = vadd.f32 %v3301_v8, %v3089_v1 }
0x1972   :  { %3102 = vst.msk [vmem:[%s4561_s12 + $0x8] sm:$0xff] %vm64_vm0, %v3098_v0 }
0x1975   :  { %v3083_v34 = vpop.f32.mrf.mxu0 }
0x1976   :  { %v3090_v49 = vadd.f32 %v3083_v34, %v4402_v38 }
0x1978   :  { %v3099_v35 = vadd.f32 %v3301_v8, %v3090_v49 }
0x197a   :  { %3103 = vst.msk [vmem:[%s4561_s12 + $0x10] sm:$0xff] %vm64_vm0, %v3099_v35 }
0x197d   :  { %v3085_v16 = vpop.f32.mrf.mxu0 }
0x197e   :  { %v3091_v19 = vadd.f32 %v3085_v16, %v4407_v37 }
0x1980   :  { %v3100_v12 = vadd.f32 %v3301_v8, %v3091_v19 }
0x1982   :  { %3104 = vst.msk [vmem:[%s4561_s12 + $0x18] sm:$0xff] %vm64_vm0, %v3100_v12 }
0x1983   :  { %3109 = vsyncpa [#allocation3], 1 }

// kernel: aggregate_head_forward.6
= control target key start
LH: loop header
LB: loop body
LE: loop exit
PB: predicated region body
PF: predicated region fallthrough
CT: control target
= control target key end

     0   :  { %s2133_s0 = inlined_call_operand.vmem [shape: f32[6,448], index: 0, kind: input, shape index: {}]   ;;  %s2134_s1 = inlined_call_operand.vmem [shape: f32[4,448], index: 1, kind: output, shape index: {}]  }
   0x1   :  { %v1249_v0 = vld [vmem:[%s2133_s0] sm:$0x3f]  ;;  %v1254_v1 = vld [vmem:[%s2133_s0 + $0x8] sm:$0x3f]  ;;  %v1259_v2 = vld [vmem:[%s2133_s0 + $0x10] sm:$0x3f] }
   0x2   :  { %v1264_v3 = vld [vmem:[%s2133_s0 + $0x18] sm:$0x3f]  ;;  %v12_v4 = vmul.f32 %v1249_v0, %v1249_v0  ;;  %v13_v5 = vmul.f32 %v1254_v1, %v1254_v1  ;;  %v14_v6 = vmul.f32 %v1259_v2, %v1259_v2 }
   0x3   :  { %v15_v7 = vmul.f32 %v1264_v3, %v1264_v3 }
   0x4   :  { %v20_v8 = vrot.slane %v12_v4, 1  ;;  %v21_v9 = vrot.slane %v13_v5, 1  ;;  %v22_v10 = vrot.slane %v14_v6, 1  ;;  %v32_v11 = vrot.slane %v12_v4, 2 }
   0x5   :  { %v23_v12 = vrot.slane %v15_v7, 1  ;;  %v33_v13 = vrot.slane %v13_v5, 2  ;;  %v34_v14 = vrot.slane %v14_v6, 2  ;;  %v35_v15 = vrot.slane %v15_v7, 2 }
   0x6   :  { %v28_v16 = vadd.f32 %v20_v8, %v12_v4  ;;  %v29_v17 = vadd.f32 %v21_v9, %v13_v5  ;;  %v30_v18 = vadd.f32 %v22_v10, %v14_v6  ;;  %v136_v9 = vrot.slane %v1249_v0, 3 }
   0x7   :  { %v31_v19 = vadd.f32 %v23_v12, %v15_v7  ;;  %v137_v10 = vrot.slane %v1254_v1, 3 }
   0x8   :  { %v40_v20 = vadd.f32 %v32_v11, %v28_v16  ;;  %v41_v21 = vadd.f32 %v33_v13, %v29_v17  ;;  %v42_v22 = vadd.f32 %v34_v14, %v30_v18  ;;  %v138_v14 = vrot.slane %v1259_v2, 3 }
   0x9   :  { %v43_v23 = vadd.f32 %v35_v15, %v31_v19  ;;  %v139_v15 = vrot.slane %v1264_v3, 3 }
   0xa   :  { %1187 = vrsqrt.f32 %v40_v20  ;;  %vm51_vm0 = vcmp.eq.f32.partialorder %v40_v20, inf  ;;  %vm53_vm1 = vcmp.eq.f32.partialorder %v40_v20, 0.0  ;;  %v54_v43 = vand.u32 2147483648, %v40_v20 }
   0xb   :  { %1189 = vrsqrt.f32 %v41_v21  ;;  %vm63_vm2 = vcmp.eq.f32.partialorder %v41_v21, inf  ;;  %vm65_vm3 = vcmp.eq.f32.partialorder %v41_v21, 0.0  ;;  %v66_v48 = vand.u32 2147483648, %v41_v21 }
   0xc   :  { %1191 = vrsqrt.f32 %v42_v22  ;;  %vm75_vm4 = vcmp.eq.f32.partialorder %v42_v22, inf  ;;  %vm77_vm5 = vcmp.eq.f32.partialorder %v42_v22, 0.0  ;;  %v78_v51 = vand.u32 2147483648, %v42_v22 }
   0xd   :  { %1193 = vrsqrt.f32 %v43_v23  ;;  %vm87_vm6 = vcmp.eq.f32.partialorder %v43_v23, inf  ;;  %v90_v55 = vand.u32 2147483648, %v43_v23  ;;  %vm89_vm7 = vcmp.eq.f32.partialorder %v43_v23, 0.0 }
  0x10   :  { %v1188_v24 = vpop.eup %1187 }
  0x11   :  { %v1190_v25 = vpop.eup %1189  ;;  %v45_v26 = vmul.f32 %v1188_v24, %v40_v20 }
  0x12   :  { %v1192_v27 = vpop.eup %1191  ;;  %v57_v28 = vmul.f32 %v1190_v25, %v41_v21 }
  0x13   :  { %v1194_v29 = vpop.eup %1193  ;;  %v46_v30 = vmul.f32 %v1188_v24, %v45_v26  ;;  %v69_v31 = vmul.f32 %v1192_v27, %v42_v22 }
  0x14   :  { %v58_v32 = vmul.f32 %v1190_v25, %v57_v28  ;;  %v81_v33 = vmul.f32 %v1194_v29, %v43_v23 }
  0x15   :  { %v47_v34 = vmul.f32 0.5, %v46_v30  ;;  %v70_v35 = vmul.f32 %v1192_v27, %v69_v31 }
  0x16   :  { %v59_v36 = vmul.f32 0.5, %v58_v32  ;;  %v82_v37 = vmul.f32 %v1194_v29, %v81_v33 }
  0x17   :  { %v48_v38 = vsub.f32 1.5, %v47_v34  ;;  %v71_v39 = vmul.f32 0.5, %v70_v35 }
  0x18   :  { %v60_v40 = vsub.f32 1.5, %v59_v36  ;;  %v83_v41 = vmul.f32 0.5, %v82_v37 }
  0x19   :  { %v49_v42 = vmul.f32 %v1188_v24, %v48_v38  ;;  %v72_v44 = vsub.f32 1.5, %v71_v39 }
  0x1a   :  { %v61_v45 = vmul.f32 %v1190_v25, %v60_v40  ;;  %v84_v46 = vsub.f32 1.5, %v83_v41 }
  0x1b   :  { %v50_v47 = vmul.f32 %v49_v42, %v40_v20  ;;  %v73_v49 = vmul.f32 %v1192_v27, %v72_v44 }
  0x1c   :  { %v62_v50 = vmul.f32 %v61_v45, %v41_v21  ;;  %v85_v52 = vmul.f32 %v1194_v29, %v84_v46 }
  0x1d   :  { %v52_v53 = vsel %vm51_vm0, %v40_v20, %v50_v47  ;;  %v74_v54 = vmul.f32 %v73_v49, %v42_v22 }
  0x1e   :  { %v55_v56 = vsel %vm53_vm1, %v54_v43, %v52_v53  ;;  %v64_v57 = vsel %vm63_vm2, %v41_v21, %v62_v50  ;;  %v86_v58 = vmul.f32 %v85_v52, %v43_v23 }
  0x1f   :  { %v67_v59 = vsel %vm65_vm3, %v66_v48, %v64_v57  ;;  %v76_v60 = vsel %vm75_vm4, %v42_v22, %v74_v54  ;;  %v92_v61 = vmax.f32 %v55_v56, 1e-12 }
  0x20   :  { %v79_v62 = vsel %vm77_vm5, %v78_v51, %v76_v60  ;;  %v88_v63 = vsel %vm87_vm6, %v43_v23, %v86_v58  ;;  %v93_v4 = vmax.f32 %v67_v59, 1e-12 }
  0x21   :  { %v91_v5 = vsel %vm89_vm7, %v90_v55, %v88_v63  ;;  %v94_v6 = vmax.f32 %v79_v62, 1e-12  ;;  %1195 = vrcp.f32 %v92_v61 }
  0x22   :  { %v95_v7 = vmax.f32 %v91_v5, 1e-12  ;;  %1197 = vrcp.f32 %v93_v4 }
  0x23   :  { %1199 = vrcp.f32 %v94_v6 }
  0x24   :  { %1201 = vrcp.f32 %v95_v7 }
  0x27   :  { %v1196_v8 = vpop.eup %1195 }
  0x28   :  { %v1198_v11 = vpop.eup %1197  ;;  %v108_v12 = vrot.slane %v1196_v8, 7  ;;  %v120_v13 = vrot.slane %v1196_v8, 6  ;;  %v1283_v17 = vmul.f32 %v1196_v8, %v1249_v0 }
  0x29   :  { %v1200_v16 = vpop.eup %1199  ;;  %v1286_v18 = vmul.f32 %v1198_v11, %v1254_v1  ;;  %v109_v19 = vrot.slane %v1198_v11, 7  ;;  %v121_v20 = vrot.slane %v1198_v11, 6 }
  0x2a   :  { %v1202_v21 = vpop.eup %1201  ;;  %v1289_v22 = vmul.f32 %v1200_v16, %v1259_v2  ;;  %v110_v23 = vrot.slane %v1200_v16, 7  ;;  %v1292_v24 = vmul.f32 %v108_v12, %v1249_v0  ;;  %v122_v25 = vrot.slane %v1200_v16, 6 }
  0x2b   :  { %v1295_v26 = vmul.f32 %v1202_v21, %v1264_v3  ;;  %v111_v27 = vrot.slane %v1202_v21, 7  ;;  %v1298_v28 = vmul.f32 %v109_v19, %v1254_v1  ;;  %v123_v29 = vrot.slane %v1202_v21, 6 }
  0x2c   :  { %v1301_v30 = vmul.f32 %v110_v23, %v1259_v2  ;;  %v1304_v31 = vmul.f32 %v120_v13, %v1249_v0  ;;  %v1307_v32 = vmul.f32 %v121_v20, %v1254_v1  ;;  %v1310_v33 = vmul.f32 %v122_v25, %v1259_v2 }
  0x2d   :  { %2210 = vst [vmem:[#allocation2_spill] sm:$0xff] %v1298_v28  ;;  %v1313_v34 = vmul.f32 %v111_v27, %v1264_v3  ;;  %v1316_v35 = vmul.f32 %v123_v29, %v1264_v3  ;;  %v144_v36 = vmul.f32 %v136_v9, %v1283_v17  ;;  %v145_v37 = vmul.f32 %v137_v10, %v1286_v18 }
  0x2e   :  { %2211 = vst [vmem:[#allocation3_spill] sm:$0xff] %v1301_v30  ;;  %v146_v38 = vmul.f32 %v138_v14, %v1289_v22  ;;  %v147_v39 = vmul.f32 %v139_v15, %v1295_v26  ;;  %v148_v40 = vmul.f32 %v136_v9, %v1292_v24  ;;  %v149_v41 = vmul.f32 %v137_v10, %v1298_v28 }
  0x2f   :  { %2212 = vst [vmem:[#allocation4_spill] sm:$0xff] %v1313_v34  ;;  %v150_v42 = vmul.f32 %v138_v14, %v1301_v30  ;;  %v151_v43 = vmul.f32 %v139_v15, %v1313_v34  ;;  %v168_v44 = vmul.f32 %v136_v9, %v1304_v31  ;;  %v169_v45 = vmul.f32 %v137_v10, %v1307_v32 }
  0x30   :  { %v156_v46 = vrot.slane %v148_v40, 1  ;;  %v157_v47 = vrot.slane %v149_v41, 1  ;;  %v170_v48 = vmul.f32 %v138_v14, %v1310_v33  ;;  %v171_v49 = vmul.f32 %v139_v15, %v1316_v35 }
  0x31   :  { %v158_v50 = vrot.slane %v150_v42, 1  ;;  %v159_v51 = vrot.slane %v151_v43, 1  ;;  %v176_v52 = vrot.slane %v168_v44, 2  ;;  %v177_v53 = vrot.slane %v169_v45, 2 }
  0x32   :  { %v164_v54 = vadd.f32 %v156_v46, %v144_v36  ;;  %v165_v55 = vadd.f32 %v157_v47, %v145_v37  ;;  %v178_v56 = vrot.slane %v170_v48, 2  ;;  %v179_v57 = vrot.slane %v171_v49, 2 }
  0x33   :  { %v166_v58 = vadd.f32 %v158_v50, %v146_v38  ;;  %v167_v59 = vadd.f32 %v159_v51, %v147_v39  ;;  %v212_v60 = vrot.slane %v1292_v24, 1  ;;  %v213_v61 = vrot.slane %v1298_v28, 1 }
  0x34   :  { %v184_v62 = vadd.f32 %v176_v52, %v164_v54  ;;  %v185_v63 = vadd.f32 %v177_v53, %v165_v55  ;;  %v214_v4 = vrot.slane %v1301_v30, 1  ;;  %v215_v5 = vrot.slane %v1313_v34, 1 }
  0x35   :  { %v186_v6 = vadd.f32 %v178_v56, %v166_v58  ;;  %v187_v7 = vadd.f32 %v179_v57, %v167_v59  ;;  %v244_v8 = vrot.slane %v1304_v31, 2  ;;  %v245_v9 = vrot.slane %v1307_v32, 2 }
  0x36   :  { %v188_v10 = vmul.f32 %v184_v62, %v1283_v17  ;;  %v189_v11 = vmul.f32 %v185_v63, %v1286_v18  ;;  %v220_v12 = vmul.f32 %v212_v60, %v184_v62  ;;  %v221_v13 = vmul.f32 %v213_v61, %v185_v63 }
  0x37   :  { %v190_v14 = vmul.f32 %v186_v6, %v1289_v22  ;;  %v191_v15 = vmul.f32 %v187_v7, %v1295_v26  ;;  %v222_v16 = vmul.f32 %v214_v4, %v186_v6  ;;  %v223_v19 = vmul.f32 %v215_v5, %v187_v7 }
  0x38   :  { %v196_v20 = vrot.slane %v188_v10, 5  ;;  %v197_v21 = vrot.slane %v189_v11, 5  ;;  %v228_v23 = vrot.slane %v220_v12, 4  ;;  %v229_v25 = vrot.slane %v221_v13, 4 }
  0x39   :  { %v198_v27 = vrot.slane %v190_v14, 5  ;;  %v199_v29 = vrot.slane %v191_v15, 5  ;;  %v230_v36 = vrot.slane %v222_v16, 4  ;;  %v231_v37 = vrot.slane %v223_v19, 4 }
  0x3a   :  { %v1341_v38 = vsub.f32 %v1249_v0, %v196_v20  ;;  %v1344_v39 = vsub.f32 %v1254_v1, %v197_v21  ;;  %v1347_v40 = vsub.f32 %v1249_v0, %v228_v23  ;;  %v1350_v41 = vsub.f32 %v1254_v1, %v229_v25 }
  0x3b   :  { %v1353_v42 = vsub.f32 %v1259_v2, %v198_v27  ;;  %v1356_v43 = vsub.f32 %v1264_v3, %v199_v29  ;;  %v1359_v44 = vsub.f32 %v1259_v2, %v230_v36  ;;  %v1362_v45 = vsub.f32 %v1264_v3, %v231_v37 }
  0x3c   :  { %v246_v46 = vrot.slane %v1310_v33, 2  ;;  %v247_v47 = vrot.slane %v1316_v35, 2  ;;  %v252_v48 = vmul.f32 %v244_v8, %v184_v62  ;;  %v253_v49 = vmul.f32 %v245_v9, %v185_v63 }
  0x3d   :  { %v272_v50 = vmul.f32 %v1341_v38, %v1341_v38  ;;  %v273_v51 = vmul.f32 %v1344_v39, %v1344_v39  ;;  %v274_v52 = vmul.f32 %v1353_v42, %v1353_v42  ;;  %v275_v53 = vmul.f32 %v1356_v43, %v1356_v43 }
  0x3e   :  { %v254_v54 = vmul.f32 %v246_v46, %v186_v6  ;;  %v255_v55 = vmul.f32 %v247_v47, %v187_v7  ;;  %v260_v56 = vrot.slane %v252_v48, 3  ;;  %v261_v57 = vrot.slane %v253_v49, 3 }
  0x3f   :  { %v276_v58 = vmul.f32 %v1347_v40, %v1347_v40  ;;  %v277_v59 = vmul.f32 %v1350_v41, %v1350_v41  ;;  %v278_v60 = vmul.f32 %v1359_v44, %v1359_v44  ;;  %v279_v61 = vmul.f32 %v1362_v45, %v1362_v45 }
  0x40   :  { %v262_v62 = vrot.slane %v254_v54, 3  ;;  %v263_v63 = vrot.slane %v255_v55, 3  ;;  %v1383_v4 = vsub.f32 %v1249_v0, %v260_v56  ;;  %v1386_v5 = vsub.f32 %v1254_v1, %v261_v57 }
  0x41   :  { %v284_v6 = vrot.slane %v276_v58, 1  ;;  %v285_v7 = vrot.slane %v277_v59, 1  ;;  %v286_v8 = vrot.slane %v278_v60, 1  ;;  %v287_v9 = vrot.slane %v279_v61, 1 }
  0x42   :  { %v1389_v10 = vsub.f32 %v1259_v2, %v262_v62  ;;  %v1392_v11 = vsub.f32 %v1264_v3, %v263_v63  ;;  %v296_v12 = vmul.f32 %v1383_v4, %v1383_v4  ;;  %v297_v0 = vmul.f32 %v1386_v5, %v1386_v5 }
  0x43   :  { %v292_v13 = vadd.f32 %v284_v6, %v272_v50  ;;  %v293_v14 = vadd.f32 %v285_v7, %v273_v51  ;;  %v294_v1 = vadd.f32 %v286_v8, %v274_v52  ;;  %v295_v15 = vadd.f32 %v287_v9, %v275_v53 }
  0x44   :  { %v298_v16 = vmul.f32 %v1389_v10, %v1389_v10  ;;  %v299_v2 = vmul.f32 %v1392_v11, %v1392_v11  ;;  %v304_v19 = vrot.slane %v296_v12, 2  ;;  %v305_v20 = vrot.slane %v297_v0, 2 }
  0x46   :  { %v306_v3 = vrot.slane %v298_v16, 2  ;;  %v307_v21 = vrot.slane %v299_v2, 2  ;;  %v312_v23 = vadd.f32 %v304_v19, %v292_v13  ;;  %v313_v25 = vadd.f32 %v305_v20, %v293_v14 }
  0x48   :  { %v314_v27 = vadd.f32 %v306_v3, %v294_v1  ;;  %v315_v29 = vadd.f32 %v307_v21, %v295_v15  ;;  %1203 = vrsqrt.f32 %v312_v23  ;;  %vm323_vm8 = vcmp.eq.f32.partialorder %v312_v23, inf }
  0x49   :  { %1205 = vrsqrt.f32 %v313_v25  ;;  %vm325_vm9 = vcmp.eq.f32.partialorder %v312_v23, 0.0  ;;  %v326_v63 = vand.u32 2147483648, %v312_v23  ;;  %vm335_vm10 = vcmp.eq.f32.partialorder %v313_v25, inf }
  0x4a   :  { %1207 = vrsqrt.f32 %v314_v27  ;;  %vm337_vm11 = vcmp.eq.f32.partialorder %v313_v25, 0.0  ;;  %v338_v12 = vand.u32 2147483648, %v313_v25  ;;  %vm347_vm12 = vcmp.eq.f32.partialorder %v314_v27, inf }
  0x4b   :  { %1209 = vrsqrt.f32 %v315_v29  ;;  %vm349_vm13 = vcmp.eq.f32.partialorder %v314_v27, 0.0  ;;  %v350_v14 = vand.u32 2147483648, %v314_v27  ;;  %vm359_vm14 = vcmp.eq.f32.partialorder %v315_v29, inf }
  0x4c   :  { %v362_v2 = vand.u32 2147483648, %v315_v29  ;;  %vm361_vm15 = vcmp.eq.f32.partialorder %v315_v29, 0.0 }
  0x4e   :  { %v1204_v36 = vpop.eup %1203 }
  0x4f   :  { %v1206_v37 = vpop.eup %1205  ;;  %v317_v46 = vmul.f32 %v1204_v36, %v312_v23 }
  0x50   :  { %v1208_v47 = vpop.eup %1207  ;;  %v329_v48 = vmul.f32 %v1206_v37, %v313_v25 }
  0x51   :  { %v1210_v49 = vpop.eup %1209  ;;  %v318_v50 = vmul.f32 %v1204_v36, %v317_v46  ;;  %v341_v51 = vmul.f32 %v1208_v47, %v314_v27 }
  0x52   :  { %v330_v52 = vmul.f32 %v1206_v37, %v329_v48  ;;  %v353_v53 = vmul.f32 %v1210_v49, %v315_v29 }
  0x53   :  { %v319_v54 = vmul.f32 0.5, %v318_v50  ;;  %v342_v55 = vmul.f32 %v1208_v47, %v341_v51 }
  0x54   :  { %v331_v56 = vmul.f32 0.5, %v330_v52  ;;  %v354_v57 = vmul.f32 %v1210_v49, %v353_v53 }
  0x55   :  { %v320_v58 = vsub.f32 1.5, %v319_v54  ;;  %v343_v59 = vmul.f32 0.5, %v342_v55 }
  0x56   :  { %v332_v60 = vsub.f32 1.5, %v331_v56  ;;  %v355_v61 = vmul.f32 0.5, %v354_v57 }
  0x57   :  { %v321_v62 = vmul.f32 %v1204_v36, %v320_v58  ;;  %v344_v6 = vsub.f32 1.5, %v343_v59 }
  0x58   :  { %v333_v7 = vmul.f32 %v1206_v37, %v332_v60  ;;  %v356_v8 = vsub.f32 1.5, %v355_v61 }
  0x59   :  { %v322_v9 = vmul.f32 %v321_v62, %v312_v23  ;;  %v345_v0 = vmul.f32 %v1208_v47, %v344_v6  ;;  %v1417_v6 = vadd.f32 1.0, %v1286_v18 }
  0x5a   :  { %v334_v13 = vmul.f32 %v333_v7, %v313_v25  ;;  %v357_v1 = vmul.f32 %v1210_v49, %v356_v8  ;;  %v1420_v7 = vadd.f32 1.0, %v1295_v26 }
  0x5b   :  { %v324_v15 = vsel %vm323_vm8, %v312_v23, %v322_v9  ;;  %v346_v16 = vmul.f32 %v345_v0, %v314_v27  ;;  %v1430_v9 = vadd.f32 1.0, %v1283_v17 }
  0x5c   :  { %v327_v19 = vsel %vm325_vm9, %v326_v63, %v324_v15  ;;  %v336_v20 = vsel %vm335_vm10, %v313_v25, %v334_v13  ;;  %v358_v3 = vmul.f32 %v357_v1, %v315_v29  ;;  %v1440_v13 = vadd.f32 1.0, %v1289_v22 }
  0x5d   :  { %v339_v21 = vsel %vm337_vm11, %v338_v12, %v336_v20  ;;  %v348_v36 = vsel %vm347_vm12, %v314_v27, %v346_v16  ;;  %v364_v37 = vmax.f32 %v327_v19, 1e-12 }
  0x5e   :  { %v351_v46 = vsel %vm349_vm13, %v350_v14, %v348_v36  ;;  %v360_v47 = vsel %vm359_vm14, %v315_v29, %v358_v3  ;;  %v365_v50 = vmax.f32 %v339_v21, 1e-12 }
  0x5f   :  { %v363_v48 = vsel %vm361_vm15, %v362_v2, %v360_v47  ;;  %v366_v49 = vmax.f32 %v351_v46, 1e-12  ;;  %1211 = vrcp.f32 %v364_v37 }
  0x60   :  { %v367_v51 = vmax.f32 %v363_v48, 1e-12  ;;  %1213 = vrcp.f32 %v365_v50 }
  0x61   :  { %1215 = vrcp.f32 %v366_v49 }
  0x62   :  { %1217 = vrcp.f32 %v367_v51 }
  0x65   :  { %v1212_v23 = vpop.eup %1211 }
  0x66   :  { %v1214_v52 = vpop.eup %1213  ;;  %v380_v54 = vrot.slane %v1212_v23, 7  ;;  %v392_v29 = vrot.slane %v1212_v23, 6 }
  0x67   :  { %v1216_v53 = vpop.eup %1215  ;;  %v381_v56 = vrot.slane %v1214_v52, 7  ;;  %v393_v58 = vrot.slane %v1214_v52, 6  ;;  %v373_v15 = vmul.f32 %v1214_v52, %v1344_v39 }
  0x68   :  { %v1218_v55 = vpop.eup %1217  ;;  %v382_v25 = vrot.slane %v1216_v53, 7  ;;  %v1407_v27 = vmul.f32 %v380_v54, %v1347_v40  ;;  %v394_v59 = vrot.slane %v1216_v53, 6  ;;  %v1426_v8 = vmul.f32 %v392_v29, %v1383_v4 }
  0x69   :  { %v383_v57 = vrot.slane %v1218_v55, 7  ;;  %v1410_v60 = vmul.f32 %v381_v56, %v1350_v41  ;;  %v395_v61 = vrot.slane %v1218_v55, 6  ;;  %v374_v2 = vmul.f32 %v1216_v53, %v1353_v42 }
  0x6a   :  { %v424_v62 = vrot.slane %v1407_v27, 2  ;;  %v1414_v63 = vmul.f32 %v382_v25, %v1359_v44  ;;  %2213 = vst [vmem:[#allocation5_spill] sm:$0xff] %v1426_v8  ;;  %v1433_v44 = vmul.f32 %v393_v58, %v1386_v5  ;;  %v1436_v12 = vmul.f32 %v394_v59, %v1389_v10 }
  0x6b   :  { %v1423_v40 = vmul.f32 %v383_v57, %v1362_v45  ;;  %v425_v41 = vrot.slane %v1410_v60, 2  ;;  %v1443_v45 = vmul.f32 %v395_v61, %v1392_v11  ;;  %v408_v4 = vrot.slane %v1426_v8, 4 }
  0x6c   :  { %2214 = vst [vmem:[#allocation6_spill] sm:$0xff] %v1433_v44  ;;  %v426_v0 = vrot.slane %v1414_v63, 2  ;;  %v432_v1 = vmul.f32 %v424_v62, %v1304_v31  ;;  %v372_v5 = vmul.f32 %v1212_v23, %v1341_v38  ;;  %v409_v10 = vrot.slane %v1433_v44, 4 }
  0x6d   :  { %2215 = vst [vmem:[#allocation7_spill] sm:$0xff] %v1436_v12  ;;  %v427_v14 = vrot.slane %v1423_v40, 2  ;;  %v410_v16 = vrot.slane %v1436_v12, 4  ;;  %v375_v19 = vmul.f32 %v1218_v55, %v1356_v43  ;;  %v411_v11 = vrot.slane %v1443_v45, 4 }
  0x6e   :  { %2216 = vst [vmem:[#allocation8_spill] sm:$0xff] %v1443_v45  ;;  %v433_v20 = vmul.f32 %v425_v41, %v1307_v32  ;;  %v434_v3 = vmul.f32 %v426_v0, %v1310_v33  ;;  %v416_v36 = vmul.f32 %v408_v4, %v1292_v24  ;;  %v440_v46 = vrot.slane %v432_v1, 1 }
  0x6f   :  { %v435_v37 = vmul.f32 %v427_v14, %v1316_v35  ;;  %v417_v43 = vmul.f32 %v409_v10, %v1298_v28  ;;  %v418_v47 = vmul.f32 %v410_v16, %v1301_v30  ;;  %v1465_v48 = vrot.slane %v372_v5, 2 }
  0x70   :  { %v1467_v50 = vrot.slane %v373_v15, 2  ;;  %v419_v49 = vmul.f32 %v411_v11, %v1313_v34  ;;  %v441_v51 = vrot.slane %v433_v20, 1  ;;  %v1470_v23 = vrot.slane %v374_v2, 2 }
  0x71   :  { %v1472_v52 = vrot.slane %v375_v19, 2  ;;  %v442_v53 = vrot.slane %v434_v3, 1  ;;  %v456_v54 = vrot.slane %v372_v5, 1  ;;  %v468_v55 = vrot.slane %v1426_v8, 5 }
  0x72   :  { %2217 = vst [vmem:[#allocation9_spill] sm:$0xff] %v1467_v50  ;;  %v469_v56 = vrot.slane %v1433_v44, 5  ;;  %v443_v25 = vrot.slane %v435_v37, 1  ;;  %v1476_v57 = vsub.f32 %v416_v36, %v440_v46  ;;  %v457_v29 = vrot.slane %v373_v15, 1 }
  0x73   :  { %2218 = vst [vmem:[#allocation10_spill] sm:$0xff] %v1470_v23  ;;  %v458_v58 = vrot.slane %v374_v2, 1  ;;  %v1479_v59 = vrot.slane %v1407_v27, 4  ;;  %v1482_v61 = vrot.slane %v1410_v60, 4  ;;  %v516_v62 = vmul.f32 %v1465_v48, %v1292_v24 }
  0x74   :  { %2219 = vst [vmem:[#allocation11_spill] sm:$0xff] %v1472_v52  ;;  %v517_v41 = vmul.f32 %v1467_v50, %v1298_v28  ;;  %v1489_v0 = vrot.slane %v1414_v63, 4  ;;  %v1492_v4 = vrot.slane %v1423_v40, 4  ;;  %v518_v14 = vmul.f32 %v1470_v23, %v1301_v30 }
  0x75   :  { %v519_v1 = vmul.f32 %v1472_v52, %v1313_v34  ;;  %v470_v5 = vrot.slane %v1436_v12, 5  ;;  %v471_v15 = vrot.slane %v1443_v45, 5  ;;  %v476_v10 = vmul.f32 %v468_v55, %v1283_v17 }
  0x76   :  { %v477_v16 = vmul.f32 %v469_v56, %v1286_v18  ;;  %v1502_v2 = vsub.f32 %v417_v43, %v441_v51  ;;  %v459_v11 = vrot.slane %v375_v19, 1  ;;  %v464_v20 = vmul.f32 %v456_v54, %v1304_v31 }
  0x77   :  { %v465_v3 = vmul.f32 %v457_v29, %v1307_v32  ;;  %v504_v36 = vmul.f32 %v1479_v59, %v1283_v17  ;;  %v505_v37 = vmul.f32 %v1482_v61, %v1286_v18  ;;  %v524_v46 = vrot.slane %v516_v62, 1 }
  0x78   :  { %v525_v39 = vrot.slane %v517_v41, 1  ;;  %v506_v55 = vmul.f32 %v1489_v0, %v1289_v22  ;;  %v507_v43 = vmul.f32 %v1492_v4, %v1295_v26  ;;  %v526_v51 = vrot.slane %v518_v14, 1 }
  0x79   :  { %v527_v19 = vrot.slane %v519_v1, 1  ;;  %v478_v54 = vmul.f32 %v470_v5, %v1289_v22  ;;  %v479_v56 = vmul.f32 %v471_v15, %v1295_v26  ;;  %v484_v29 = vrot.slane %v476_v10, 6 }
  0x7a   :  { %v485_v42 = vrot.slane %v477_v16, 6  ;;  %v1516_v38 = vsub.f32 %v418_v47, %v442_v53  ;;  %v1518_v21 = vsub.f32 %v419_v49, %v443_v25  ;;  %v466_v62 = vmul.f32 %v458_v58, %v1310_v33 }
  0x7b   :  { %v467_v41 = vmul.f32 %v459_v11, %v1316_v35  ;;  %v1522_v34 = vsub.f32 %v504_v36, %v524_v46  ;;  %v1524_v52 = vsub.f32 %v505_v37, %v525_v39  ;;  %v560_v14 = vsub.f32 0.0, %v1407_v27 }
  0x7c   :  { %v561_v1 = vsub.f32 0.0, %v1410_v60  ;;  %v1528_v5 = vsub.f32 %v506_v55, %v526_v51  ;;  %v1530_v15 = vsub.f32 %v507_v43, %v527_v19  ;;  %v562_v47 = vsub.f32 0.0, %v1414_v63 }
  0x7d   :  { %2220 = vst [vmem:[#allocation12_spill] sm:$0xff] %v1522_v34  ;;  %v563_v49 = vsub.f32 0.0, %v1423_v40  ;;  %v486_v53 = vrot.slane %v478_v54, 6  ;;  %v487_v25 = vrot.slane %v479_v56, 6  ;;  %v1534_v58 = vsub.f32 %v464_v20, %v484_v29 }
  0x7e   :  { %2221 = vst [vmem:[#allocation13_spill] sm:$0xff] %v1524_v52  ;;  %v1536_v10 = vsub.f32 %v465_v3, %v485_v42  ;;  %vm548_vm0 = vcmp.gt.f32.partialorder %v1283_v17, %v1479_v59  ;;  %vm549_vm1 = vcmp.gt.f32.partialorder %v1286_v18, %v1482_v61  ;;  %vm550_vm2 = vcmp.gt.f32.partialorder %v1289_v22, %v1489_v0 }
  0x7f   :  { %2222 = vst [vmem:[#allocation14_spill] sm:$0xff] %v1528_v5  ;;  %vm551_vm3 = vcmp.gt.f32.partialorder %v1295_v26, %v1492_v4  ;;  %vm536_vm4 = vcmp.lt.f32.partialorder %v1522_v34, 1e-06  ;;  %vm537_vm5 = vcmp.lt.f32.partialorder %v1524_v52, 1e-06  ;;  %v568_v27 = vrot.slane %v560_v14, 4 }
  0x80   :  { %2223 = vst [vmem:[#allocation15_spill] sm:$0xff] %v1530_v15  ;;  %v569_v60 = vrot.slane %v561_v1, 4  ;;  %vm538_vm6 = vcmp.lt.f32.partialorder %v1528_v5, 1e-06  ;;  %vm539_vm7 = vcmp.lt.f32.partialorder %v1530_v15, 1e-06  ;;  %v1550_v39 = vsub.f32 %v466_v62, %v486_v53 }
  0x81   :  { %2224 = vst [vmem:[#allocation16_spill] sm:$0xff] %v1534_v58  ;;  %v570_v63 = vrot.slane %v562_v47, 4  ;;  %v571_v40 = vrot.slane %v563_v49, 4  ;;  %v1552_v42 = vsub.f32 %v467_v41, %v487_v25  ;;  %v1235_v16 = vmov 0.0  }
  0x82   :  { %2225 = vst [vmem:[#allocation17_spill] sm:$0xff] %v1536_v10  ;;  %v1178_v11 = vsel %vm548_vm0, 1.0, %v1235_v16  ;;  %v1179_v20 = vsel %vm549_vm1, 1.0, %v1235_v16  ;;  %v1554_v3 = vsel %vm536_vm4, 1.0, %v1235_v16  ;;  %v1556_v36 = vsel %vm537_vm5, 1.0, %v1235_v16 }
  0x83   :  { %2226 = vst [vmem:[#allocation18_spill] sm:$0xff] %v1550_v39  ;;  %v1180_v37 = vsel %vm550_vm2, 1.0, %v1235_v16  ;;  %v1181_v46 = vsel %vm551_vm3, 1.0, %v1235_v16  ;;  %v1564_v55 = vsel %vm538_vm6, 1.0, %v1235_v16  ;;  %v1566_v43 = vsel %vm539_vm7, 1.0, %v1235_v16 }
  0x84   :  { %2227 = vst [vmem:[#allocation19_spill] sm:$0xff] %v1552_v42  ;;  %vm576_vm8 = vcmp.lt.f32.partialorder %v1283_v17, %v568_v27  ;;  %vm577_vm9 = vcmp.lt.f32.partialorder %v1286_v18, %v569_v60  ;;  %vm578_vm10 = vcmp.lt.f32.partialorder %v1289_v22, %v570_v63  ;;  %vm579_vm11 = vcmp.lt.f32.partialorder %v1295_v26, %v571_v40 }
  0x85   :  { %v592_v51 = vsub.f32 %v1430_v9, %v1479_v59  ;;  %v593_v19 = vsub.f32 %v1417_v6, %v1482_v61  ;;  %v594_v54 = vsub.f32 %v1440_v13, %v1489_v0  ;;  %v595_v56 = vsub.f32 %v1420_v7, %v1492_v4 }
  0x86   :  { %v2228_v29 = vsub.f32 1.0, %v1283_v17  ;;  %v2230_v41 = vsub.f32 1.0, %v1286_v18  ;;  %v1590_v1 = vsel %vm576_vm8, 1.0, %v1235_v16  ;;  %v1592_v47 = vsel %vm577_vm9, 1.0, %v1235_v16 }
  0x87   :  { %v2232_v49 = vsub.f32 1.0, %v1289_v22  ;;  %v2234_v25 = vsub.f32 1.0, %v1295_v26  ;;  %v1604_v60 = vsel %vm578_vm10, 1.0, %v1235_v16  ;;  %v1606_v63 = vsel %vm579_vm11, 1.0, %v1235_v16 }
  0x88   :  { %v1583_v62 = vadd.f32 %v2228_v29, %v1479_v59  ;;  %v1588_v14 = vadd.f32 %v2230_v41, %v1482_v61  ;;  %v2236_v40 = vmov %v2228_v29  ;;  %v613_v30 = vsub.f32 %v2230_v41, %v1482_v61 }
  0x89   :  { %v1597_v53 = vadd.f32 %v2232_v49, %v1489_v0  ;;  %v1602_v27 = vadd.f32 %v2234_v25, %v1492_v4  ;;  %v612_v29 = vsub.f32 %v2236_v40, %v1479_v59  ;;  %v1615_v49 = vsub.f32 %v592_v51, %v1522_v34 }
  0x8a   :  { %2229 = vst [vmem:[#allocation20_spill] sm:$0xff] %v1583_v62  ;;  %v1618_v23 = vsub.f32 %v593_v19, %v1524_v52  ;;  %v2239_v25 = vsub.f32 1.0, %v1289_v22  ;;  %v2240_v16 = vsub.f32 1.0, %v1295_v26  ;;  %v1627_v17 = vsub.f32 %v594_v54, %v1528_v5 }
  0x8b   :  { %2231 = vst [vmem:[#allocation21_spill] sm:$0xff] %v1588_v14  ;;  %v1630_v18 = vsub.f32 %v595_v56, %v1530_v15  ;;  %v620_v26 = vadd.f32 %v1430_v9, %v1479_v59  ;;  %v621_v54 = vadd.f32 %v1417_v6, %v1482_v61  ;;  %v1645_v56 = vadd.f32 %v612_v29, %v1522_v34  ;;  %v2276_v14 = vld [vmem:[#allocation10_spill] sm:$0xff] }
  0x8c   :  { %2233 = vst [vmem:[#allocation22_spill] sm:$0xff] %v1597_v53  ;;  %v614_v28 = vsub.f32 %v2239_v25, %v1489_v0  ;;  %v615_v50 = vsub.f32 %v2240_v16, %v1492_v4  ;;  %v1648_v41 = vadd.f32 %v613_v30, %v1524_v52  ;;  %v622_v25 = vadd.f32 %v1440_v13, %v1489_v0 }
  0x8d   :  { %2235 = vst [vmem:[#allocation23_spill] sm:$0xff] %v1602_v27  ;;  %v623_v16 = vadd.f32 %v1420_v7, %v1492_v4  ;;  %v632_v59 = vsub.f32 1.0, %v1178_v11  ;;  %v633_v6 = vsub.f32 1.0, %v1179_v20  ;;  %v1661_v61 = vmul.f32 %v1178_v11, %v1554_v3 }
  0x8e   :  { %2237 = vst [vmem:[#allocation24_spill] sm:$0xff] %v1615_v49  ;;  %v1655_v40 = vadd.f32 %v614_v28, %v1528_v5  ;;  %v1658_v9 = vadd.f32 %v615_v50, %v1530_v15  ;;  %v1664_v30 = vmul.f32 %v1179_v20, %v1556_v36  ;;  %v634_v29 = vsub.f32 1.0, %v1180_v37 }
  0x8f   :  { %2238 = vst [vmem:[#allocation25_spill] sm:$0xff] %v1618_v23  ;;  %v635_v22 = vsub.f32 1.0, %v1181_v46  ;;  %v1667_v13 = vadd.f32 %v620_v26, %v1522_v34  ;;  %v1670_v7 = vadd.f32 %v621_v54, %v1524_v52  ;;  %v2147_v28 = vsub.f32 1.0, %v1554_v3  ;;  %v2280_v34 = vld [vmem:[#allocation4_spill] sm:$0xff] }
  0x90   :  { %2241 = vst [vmem:[#allocation26_spill] sm:$0xff] %v1627_v17  ;;  %v2148_v50 = vsub.f32 1.0, %v1556_v36  ;;  %v1675_v0 = vadd.f32 %v622_v25, %v1528_v5  ;;  %v1678_v4 = vadd.f32 %v623_v16, %v1530_v15  ;;  %v1681_v11 = vmul.f32 %v1180_v37, %v1564_v55 }
  0x91   :  { %2242 = vst [vmem:[#allocation27_spill] sm:$0xff] %v1630_v18  ;;  %v1684_v20 = vmul.f32 %v1181_v46, %v1566_v43  ;;  %v1687_v26 = vmul.f32 %v1554_v3, %v632_v59  ;;  %v1690_v54 = vmul.f32 %v1556_v36, %v633_v6  ;;  %v642_v19 = vsub.f32 1.0, %v1564_v55 }
  0x92   :  { %2243 = vst [vmem:[#allocation28_spill] sm:$0xff] %v1645_v56  ;;  %v643_v25 = vsub.f32 1.0, %v1566_v43  ;;  %v1695_v51 = vmul.f32 %v1564_v55, %v634_v29  ;;  %v1698_v16 = vmul.f32 %v1566_v43, %v635_v22  ;;  %v1705_v59 = vmul.f32 %v1590_v1, %v2147_v28 }
  0x93   :  { %2244 = vst [vmem:[#allocation29_spill] sm:$0xff] %v1648_v41  ;;  %v1710_v6 = vmul.f32 %v1592_v47, %v2148_v50  ;;  %v1719_v28 = vmul.f32 %v1604_v60, %v642_v19  ;;  %v648_v50 = vsub.f32 1.0, %v1590_v1  ;;  %v649_v55 = vsub.f32 1.0, %v1592_v47 }
  0x94   :  { %2245 = vst [vmem:[#allocation30_spill] sm:$0xff] %v1655_v40  ;;  %v2260_v29 = vrot.slane %v1304_v31, 1  ;;  %v2262_v22 = vrot.slane %v1307_v32, 1  ;;  %v704_v37 = vrot.slane %v1687_v26, 7  ;;  %v705_v40 = vrot.slane %v1690_v54, 7 }
  0x95   :  { %2246 = vst [vmem:[#allocation31_spill] sm:$0xff] %v1658_v9  ;;  %v1722_v9 = vmul.f32 %v1606_v63, %v643_v25  ;;  %v2264_v41 = vrot.slane %v1310_v33, 1  ;;  %v2266_v47 = vrot.slane %v1316_v35, 1  ;;  %v707_v15 = vrot.slane %v1698_v16, 7 }
  0x96   :  { %2247 = vst [vmem:[#allocation32_spill] sm:$0xff] %v1661_v61  ;;  %v1729_v43 = vsub.f32 %v1476_v57, %v2260_v29  ;;  %v1734_v46 = vsub.f32 %v1502_v2, %v2262_v22  ;;  %v706_v29 = vrot.slane %v1695_v51, 7  ;;  %v2268_v22 = vrot.slane %v1534_v58, 5 }
  0x97   :  { %2248 = vst [vmem:[#allocation33_spill] sm:$0xff] %v1664_v30  ;;  %v1741_v1 = vsub.f32 %v1516_v38, %v2264_v41  ;;  %v1746_v56 = vsub.f32 %v1518_v21, %v2266_v47  ;;  %v2269_v5 = vrot.slane %v1536_v10, 5  ;;  %v2270_v41 = vrot.slane %v1550_v39, 5 }
  0x98   :  { %2249 = vst [vmem:[#allocation34_spill] sm:$0xff] %v1678_v4  ;;  %v1753_v27 = vsub.f32 %v1426_v8, %v2268_v22  ;;  %v2271_v47 = vrot.slane %v1552_v42, 5  ;;  %v676_v58 = vrot.slane %v1661_v61, 3  ;;  %v677_v22 = vrot.slane %v1664_v30, 3  ;;  %v2273_v42 = vld [vmem:[#allocation9_spill] sm:$0xff] }
  0x99   :  { %2250 = vst [vmem:[#allocation35_spill] sm:$0xff] %v1681_v11  ;;  %v1758_v53 = vsub.f32 %v1433_v44, %v2269_v5  ;;  %v678_v8 = vrot.slane %v1681_v11, 3  ;;  %v679_v10 = vrot.slane %v1684_v20, 3  ;;  %v712_v5 = vmul.f32 %v704_v37, %v1729_v43 }
  0x9a   :  { %2251 = vst [vmem:[#allocation36_spill] sm:$0xff] %v1684_v20  ;;  %v713_v39 = vmul.f32 %v705_v40, %v1734_v46  ;;  %v715_v44 = vmul.f32 %v707_v15, %v1746_v56  ;;  %v741_v52 = vrot.slane %v1710_v6, 7  ;;  %v742_v20 = vrot.slane %v1719_v28, 7 }
  0x9b   :  { %2252 = vst [vmem:[#allocation37_spill] sm:$0xff] %v1687_v26  ;;  %v743_v18 = vrot.slane %v1722_v9, 7  ;;  %v720_v30 = vrot.slane %v712_v5, 4  ;;  %vm1132_vm4 = vcmask 1040384   ;;  %vm1137_vm5 = vcmask 1041408  }
  0x9c   :  { %2253 = vst [vmem:[#allocation38_spill] sm:$0xff] %v1690_v54  ;;  %v1763_v54 = vsub.f32 %v1436_v12, %v2270_v41  ;;  %v1778_v41 = vsub.f32 %v1292_v24, %v1465_v48  ;;  %v2274_v12 = vld [vmem:[#allocation2_spill] sm:$0xff]  ;;  %v721_v23 = vrot.slane %v713_v39, 4  ;;  %v723_v49 = vrot.slane %v715_v44, 4 }
  0x9d   :  { %2254 = vst [vmem:[#allocation39_spill] sm:$0xff] %v1695_v51  ;;  %v1768_v51 = vsub.f32 %v1443_v45, %v2271_v47  ;;  %v1782_v47 = vsub.f32 %v2274_v12, %v2273_v42  ;;  %v714_v45 = vmul.f32 %v706_v29, %v1741_v1  ;;  %v1822_v44 = vadd.f32 %v1465_v48, %v1292_v24 }
  0x9e   :  { %2255 = vst [vmem:[#allocation40_spill] sm:$0xff] %v1698_v16  ;;  %v740_v16 = vrot.slane %v1705_v59, 7  ;;  %v686_v11 = vmul.f32 %v678_v8, %v1763_v54  ;;  %v1826_v39 = vadd.f32 %v2273_v42, %v2274_v12  ;;  %vm1142_vm6 = vcmask 1042432  }
  0x9f   :  { %2256 = vst [vmem:[#allocation41_spill] sm:$0xff] %v1705_v59  ;;  %v684_v59 = vmul.f32 %v676_v58, %v1753_v27  ;;  %v687_v17 = vmul.f32 %v679_v10, %v1768_v51  ;;  %v722_v61 = vrot.slane %v714_v45, 4  ;;  %v2283_v58 = vsub.f32 1.0, %v1556_v36 }
  0xa0   :  { %2257 = vst [vmem:[#allocation42_spill] sm:$0xff] %v1710_v6  ;;  %v685_v6 = vmul.f32 %v677_v22, %v1758_v53  ;;  %v796_v42 = vmul.f32 %v1822_v44, %v704_v37  ;;  %v2296_v37 = vld [vmem:[#allocation32_spill] sm:$0xff]  ;;  %vm1161_vm7 = vcmask 1043456   ;;  %vm1167_vm8 = vcmask 523268  }
  0xa1   :  { %2258 = vst [vmem:[#allocation43_spill] sm:$0xff] %v1719_v28  ;;  %v748_v28 = vmul.f32 %v740_v16, %v1778_v41  ;;  %vm1168_vm9 = vmor %vm1167_vm8, %vm1161_vm7 }
  0xa2   :  { %2259 = vst [vmem:[#allocation44_spill] sm:$0xff] %v1722_v9  ;;  %v749_v9 = vmul.f32 %v741_v52, %v1782_v47  ;;  %v729_v36 = vadd.f32 %v721_v23, %v685_v6  ;;  %v804_v6 = vrot.slane %v796_v42, 1 }
  0xa3   :  { %2261 = vst [vmem:[#allocation45_spill] sm:$0xff] %v1729_v43  ;;  %v2277_v43 = vld [vmem:[#allocation3_spill] sm:$0xff] }
  0xa4   :  { %2263 = vst [vmem:[#allocation46_spill] sm:$0xff] %v1734_v46  ;;  %v1790_v26 = vsub.f32 %v2277_v43, %v2276_v14  ;;  %v2279_v46 = vld [vmem:[#allocation11_spill] sm:$0xff] }
  0xa5   :  { %2265 = vst [vmem:[#allocation47_spill] sm:$0xff] %v1741_v1  ;;  %v1794_v62 = vsub.f32 %v2280_v34, %v2279_v46  ;;  %v650_v1 = vsub.f32 1.0, %v1604_v60  ;;  %v2282_v60 = vsub.f32 1.0, %v1554_v3  ;;  %v728_v3 = vadd.f32 %v720_v30, %v684_v59 }
  0xa6   :  { %2267 = vst [vmem:[#allocation48_spill] sm:$0xff] %v1746_v56  ;;  %v651_v56 = vsub.f32 1.0, %v1606_v63  ;;  %v1812_v63 = vmul.f32 %v649_v55, %v2283_v58  ;;  %v750_v8 = vmul.f32 %v742_v20, %v1790_v26  ;;  %v756_v55 = vrot.slane %v748_v28, 4 }
  0xa7   :  { %2272 = vst [vmem:[#allocation49_spill] sm:$0xff] %v1778_v41  ;;  %v1808_v4 = vmul.f32 %v648_v50, %v2282_v60  ;;  %v751_v10 = vmul.f32 %v743_v18, %v1794_v62  ;;  %v1816_v22 = vmul.f32 %v650_v1, %v642_v19  ;;  %v1830_v50 = vadd.f32 %v2276_v14, %v2277_v43  ;;  %v2329_v41 = vld [vmem:[#allocation7_spill] sm:$0xff] }
  0xa8   :  { %2275 = vst [vmem:[#allocation9_spill] sm:$0xff] %v1782_v47  ;;  %v1818_v45 = vmul.f32 %v651_v56, %v643_v25  ;;  %v1834_v19 = vadd.f32 %v2279_v46, %v2280_v34  ;;  %v730_v56 = vadd.f32 %v722_v61, %v686_v11  ;;  %v731_v25 = vadd.f32 %v723_v49, %v687_v17 }
  0xa9   :  { %2278 = vst [vmem:[#allocation2_spill] sm:$0xff] %v1790_v26  ;;  %v757_v1 = vrot.slane %v749_v9, 4  ;;  %v758_v24 = vrot.slane %v750_v8, 4  ;;  %v759_v48 = vrot.slane %v751_v10, 4  ;;  %v1838_v12 = vmul.f32 %v1808_v4, %v1667_v13 }
  0xaa   :  { %2281 = vst [vmem:[#allocation10_spill] sm:$0xff] %v1794_v62  ;;  %v1842_v23 = vmul.f32 %v1812_v63, %v1670_v7  ;;  %v797_v14 = vmul.f32 %v1826_v39, %v705_v40  ;;  %v2286_v34 = vrot.slane %v1304_v31, 1  ;;  %v2287_v17 = vrot.slane %v1307_v32, 1 }
  0xab   :  { %2284 = vst [vmem:[#allocation3_spill] sm:$0xff] %v1838_v12  ;;  %v798_v61 = vmul.f32 %v1830_v50, %v706_v29  ;;  %v799_v30 = vmul.f32 %v1834_v19, %v707_v15  ;;  %v2288_v13 = vrot.slane %v1310_v33, 1  ;;  %v2290_v40 = vrot.slane %v1316_v35, 1  ;;  %v2297_v35 = vld [vmem:[#allocation25_spill] sm:$0xff] }
  0xac   :  { %2285 = vst [vmem:[#allocation11_spill] sm:$0xff] %v1842_v23  ;;  %v1849_v49 = vadd.f32 %v2286_v34, %v1476_v57  ;;  %v1854_v9 = vadd.f32 %v2287_v17, %v1502_v2  ;;  %v764_v57 = vadd.f32 %v756_v55, %v728_v3  ;;  %v765_v28 = vadd.f32 %v757_v1, %v729_v36  ;;  %v2293_v2 = vld [vmem:[#allocation34_spill] sm:$0xff] }
  0xad   :  { %v1861_v7 = vadd.f32 %v2288_v13, %v1516_v38  ;;  %v1866_v31 = vadd.f32 %v2290_v40, %v1518_v21  ;;  %v1870_v32 = vmul.f32 %v1816_v22, %v1675_v0  ;;  %v1874_v11 = vmul.f32 %v1818_v45, %v2293_v2  ;;  %v2295_v38 = vld [vmem:[#allocation24_spill] sm:$0xff]  ;;  %v2298_v21 = vld [vmem:[#allocation33_spill] sm:$0xff]  ;;  %v2299_v55 = vld [vmem:[#allocation26_spill] sm:$0xff] }
  0xae   :  { %v1876_v15 = vadd.f32 %v758_v24, %v730_v56  ;;  %v1878_v33 = vadd.f32 %v759_v48, %v731_v25  ;;  %v1882_v46 = vmul.f32 %v2296_v37, %v2295_v38  ;;  %v1886_v59 = vmul.f32 %v2298_v21, %v2297_v35  ;;  %v2301_v24 = vld [vmem:[#allocation27_spill] sm:$0xff] }
  0xaf   :  { %2289 = vst [vmem:[#allocation4_spill] sm:$0xff] %v1861_v7  ;;  %v805_v43 = vrot.slane %v797_v14, 1  ;;  %v820_v0 = vmul.f32 %v1849_v49, %v740_v16  ;;  %v821_v29 = vmul.f32 %v1854_v9, %v741_v52  ;;  %v806_v5 = vrot.slane %v798_v61, 1  ;;  %v2300_v52 = vld [vmem:[#allocation35_spill] sm:$0xff] }
  0xb0   :  { %2291 = vst [vmem:[#allocation50_spill] sm:$0xff] %v1866_v31  ;;  %v807_v60 = vrot.slane %v799_v30, 1  ;;  %v822_v58 = vmul.f32 %v1861_v7, %v742_v20  ;;  %v823_v8 = vmul.f32 %v1866_v31, %v743_v18  ;;  %v844_v10 = vrot.slane %v1808_v4, 3  ;;  %v2302_v20 = vld [vmem:[#allocation36_spill] sm:$0xff]  ;;  %v2333_v31 = vld [vmem:[#allocation19_spill] sm:$0xff] }
  0xb1   :  { %2292 = vst [vmem:[#allocation51_spill] sm:$0xff] %v1870_v32  ;;  %v845_v3 = vrot.slane %v1812_v63, 3  ;;  %v846_v36 = vrot.slane %v1816_v22, 3  ;;  %v847_v56 = vrot.slane %v1818_v45, 3  ;;  %v776_v25 = vrot.slane %v1838_v12, 3  ;;  %v2336_v7 = vld [vmem:[#allocation44_spill] sm:$0xff] }
  0xb2   :  { %2294 = vst [vmem:[#allocation34_spill] sm:$0xff] %v1874_v11  ;;  %v777_v16 = vrot.slane %v1842_v23, 3  ;;  %v1900_v1 = vmul.f32 %v2300_v52, %v2299_v55  ;;  %v1904_v48 = vmul.f32 %v2302_v20, %v2301_v24  ;;  %v812_v18 = vadd.f32 %v804_v6, %v1882_v46 }
  0xb3   :  { %v813_v42 = vadd.f32 %v805_v43, %v1886_v59  ;;  %v828_v14 = vrot.slane %v820_v0, 1  ;;  %v829_v34 = vrot.slane %v821_v29, 1  ;;  %v830_v30 = vrot.slane %v822_v58, 1 }
  0xb4   :  { %v814_v17 = vadd.f32 %v806_v5, %v1900_v1  ;;  %v815_v61 = vadd.f32 %v807_v60, %v1904_v48  ;;  %v831_v13 = vrot.slane %v823_v8, 1  ;;  %v852_v40 = vmul.f32 %v844_v10, %v1753_v27 }
  0xb5   :  { %v853_v2 = vmul.f32 %v845_v3, %v1758_v53  ;;  %v854_v38 = vmul.f32 %v846_v36, %v1763_v54  ;;  %v855_v35 = vmul.f32 %v847_v56, %v1768_v51  ;;  %v778_v6 = vrot.slane %v1870_v32, 3 }
  0xb6   :  { %v2195_v43 = vrot.slane %v2296_v37, 7  ;;  %v2194_v0 = vrot.slane %v2298_v21, 7  ;;  %v2193_v29 = vrot.slane %v2300_v52, 7  ;;  %v779_v5 = vrot.slane %v1874_v11, 3 }
  0xb7   :  { %v1919_v60 = vadd.f32 %v776_v25, %v764_v57  ;;  %v1921_v58 = vadd.f32 %v777_v16, %v765_v28  ;;  %v2196_v53 = vrot.slane %v2302_v20, 7  ;;  %v836_v27 = vadd.f32 %v828_v14, %v812_v18  ;;  %v2305_v25 = vld [vmem:[#allocation20_spill] sm:$0xff]  ;;  %v2308_v18 = vld [vmem:[#allocation37_spill] sm:$0xff] }
  0xb8   :  { %v837_v54 = vadd.f32 %v829_v34, %v813_v42  ;;  %v838_v8 = vadd.f32 %v830_v30, %v814_v17  ;;  %v839_v51 = vadd.f32 %v831_v13, %v815_v61  ;;  %v860_v10 = vrot.slane %v852_v40, 5  ;;  %v2306_v16 = vld [vmem:[#allocation12_spill] sm:$0xff]  ;;  %v2309_v34 = vld [vmem:[#allocation21_spill] sm:$0xff]  ;;  %v2312_v61 = vld [vmem:[#allocation38_spill] sm:$0xff] }
  0xb9   :  { %2303 = vst [vmem:[#allocation24_spill] sm:$0xff] %v1919_v60  ;;  %v861_v3 = vrot.slane %v853_v2, 5  ;;  %v862_v36 = vrot.slane %v854_v38, 5  ;;  %v863_v56 = vrot.slane %v855_v35, 5  ;;  %v880_v55 = vmul.f32 %v2195_v43, %v1822_v44  ;;  %v2310_v17 = vld [vmem:[#allocation13_spill] sm:$0xff]  ;;  %v2313_v13 = vld [vmem:[#allocation22_spill] sm:$0xff] }
  0xba   :  { %2304 = vst [vmem:[#allocation32_spill] sm:$0xff] %v1921_v58  ;;  %v881_v57 = vmul.f32 %v2194_v0, %v1826_v39  ;;  %v882_v28 = vmul.f32 %v2193_v29, %v1830_v50  ;;  %v2307_v24 = vsub.f32 %v2305_v25, %v2306_v16  ;;  %v883_v14 = vmul.f32 %v2196_v53, %v1834_v19  ;;  %v2314_v39 = vld [vmem:[#allocation14_spill] sm:$0xff]  ;;  %v2316_v2 = vld [vmem:[#allocation39_spill] sm:$0xff]  ;;  %v2320_v25 = vld [vmem:[#allocation40_spill] sm:$0xff] }
  0xbb   :  { %v2311_v44 = vsub.f32 %v2309_v34, %v2310_v17  ;;  %v2315_v40 = vsub.f32 %v2313_v13, %v2314_v39  ;;  %v2317_v50 = vld [vmem:[#allocation23_spill] sm:$0xff]  ;;  %v2321_v0 = vld [vmem:[#allocation5_spill] sm:$0xff]  ;;  %v2322_v43 = vld [vmem:[#allocation16_spill] sm:$0xff]  ;;  %v2334_v52 = vrot.slane %v2333_v31, 5  ;;  %v1974_v11 = vadd.f32 %v860_v10, %v836_v27 }
  0xbc   :  { %v884_v42 = vmul.f32 %v2308_v18, %v2307_v24  ;;  %v2318_v35 = vld [vmem:[#allocation15_spill] sm:$0xff]  ;;  %v2323_v58 = vrot.slane %v2322_v43, 5  ;;  %v2324_v53 = vld [vmem:[#allocation6_spill] sm:$0xff]  ;;  %v2325_v60 = vld [vmem:[#allocation17_spill] sm:$0xff]  ;;  %v1976_v32 = vadd.f32 %v861_v3, %v837_v54  ;;  %v958_v27 = vrot.slane %v2316_v2, 3 }
  0xbd   :  { %v885_v30 = vmul.f32 %v2312_v61, %v2311_v44  ;;  %v886_v38 = vmul.f32 %v2316_v2, %v2315_v40  ;;  %v2319_v29 = vsub.f32 %v2317_v50, %v2318_v35  ;;  %v2326_v34 = vrot.slane %v2325_v60, 5  ;;  %v2327_v44 = vld [vmem:[#allocation41_spill] sm:$0xff]  ;;  %v2328_v40 = vld [vmem:[#allocation42_spill] sm:$0xff]  ;;  %v2332_v20 = vld [vmem:[#allocation8_spill] sm:$0xff] }
  0xbe   :  { %v892_v24 = vrot.slane %v884_v42, 7  ;;  %v904_v19 = vadd.f32 %v2323_v58, %v2321_v0  ;;  %v908_v62 = vrot.slane %v2327_v44, 3  ;;  %v909_v47 = vrot.slane %v2328_v40, 3  ;;  %v2330_v50 = vld [vmem:[#allocation18_spill] sm:$0xff]  ;;  %v2335_v0 = vld [vmem:[#allocation43_spill] sm:$0xff]  ;;  %v2337_v54 = vld [vmem:[#allocation28_spill] sm:$0xff] }
  0xbf   :  { %v887_v16 = vmul.f32 %v2320_v25, %v2319_v29  ;;  %v905_v17 = vadd.f32 %v2326_v34, %v2324_v53  ;;  %v893_v26 = vrot.slane %v885_v30, 7  ;;  %v894_v13 = vrot.slane %v886_v38, 7 }
  0xc0   :  { %v2331_v35 = vrot.slane %v2330_v50, 5  ;;  %v907_v43 = vadd.f32 %v2334_v52, %v2332_v20  ;;  %v910_v58 = vrot.slane %v2335_v0, 3  ;;  %v911_v60 = vrot.slane %v2336_v7, 3 }
  0xc1   :  { %v895_v39 = vrot.slane %v887_v16, 7  ;;  %v1969_v53 = vadd.f32 %v778_v6, %v1876_v15  ;;  %v1972_v34 = vadd.f32 %v779_v5, %v1878_v33  ;;  %v1978_v50 = vadd.f32 %v862_v36, %v838_v8  ;;  %v2340_v36 = vld [vmem:[#allocation31_spill] sm:$0xff] }
  0xc2   :  { %v906_v29 = vadd.f32 %v2331_v35, %v2329_v41  ;;  %v1980_v41 = vadd.f32 %v863_v56, %v839_v51  ;;  %v900_v31 = vadd.f32 %v892_v24, %v880_v55  ;;  %v916_v52 = vmul.f32 %v908_v62, %v904_v19  ;;  %v2338_v51 = vld [vmem:[#allocation29_spill] sm:$0xff] }
  0xc3   :  { %v901_v20 = vadd.f32 %v893_v26, %v881_v57  ;;  %v902_v35 = vadd.f32 %v894_v13, %v882_v28  ;;  %v903_v23 = vadd.f32 %v895_v39, %v883_v14  ;;  %v917_v12 = vmul.f32 %v909_v47, %v905_v17  ;;  %v2339_v47 = vld [vmem:[#allocation30_spill] sm:$0xff]  ;;  %v2346_v39 = vld [vmem:[#allocation51_spill] sm:$0xff] }
  0xc4   :  { %v918_v21 = vmul.f32 %v910_v58, %v906_v29  ;;  %v919_v15 = vmul.f32 %v911_v60, %v907_v43  ;;  %v956_v6 = vrot.slane %v2308_v18, 3  ;;  %v957_v33 = vrot.slane %v2312_v61, 3  ;;  %v2349_v58 = vld [vmem:[#allocation35_spill] sm:$0xff] }
  0xc5   :  { %v936_v5 = vrot.slane %v1808_v4, 7  ;;  %v984_v8 = vmul.f32 %v2327_v44, %v2337_v54  ;;  %v985_v62 = vmul.f32 %v2328_v40, %v2338_v51  ;;  %v924_v26 = vrot.slane %v916_v52, 4  ;;  %v2352_v54 = vld [vmem:[#allocation50_spill] sm:$0xff]  ;;  %v2353_v51 = vld [vmem:[#allocation36_spill] sm:$0xff] }
  0xc6   :  { %v937_v10 = vrot.slane %v1812_v63, 7  ;;  %v1993_v3 = vmul.f32 %v2335_v0, %v2339_v47  ;;  %v1997_v56 = vmul.f32 %v2336_v7, %v2340_v36  ;;  %v925_v4 = vrot.slane %v917_v12, 4  ;;  %v2348_v0 = vld [vmem:[#allocation4_spill] sm:$0xff] }
  0xc7   :  { %v959_v55 = vrot.slane %v2320_v25, 3  ;;  %v1012_v57 = vadd.f32 %v884_v42, %v1882_v46  ;;  %v1013_v28 = vadd.f32 %v885_v30, %v1886_v59  ;;  %v964_v18 = vmul.f32 %v956_v6, %v904_v19  ;;  %v2342_v42 = vld [vmem:[#allocation33_spill] sm:$0xff] }
  0xc8   :  { %v965_v14 = vmul.f32 %v957_v33, %v905_v17  ;;  %v1014_v61 = vadd.f32 %v886_v38, %v1900_v1  ;;  %v1015_v63 = vadd.f32 %v887_v16, %v1904_v48  ;;  %v938_v2 = vrot.slane %v1816_v22, 7  ;;  %v2344_v38 = vld [vmem:[#allocation3_spill] sm:$0xff]  ;;  %v2351_v33 = vld [vmem:[#allocation45_spill] sm:$0xff] }
  0xc9   :  { %v966_v24 = vmul.f32 %v958_v27, %v906_v29  ;;  %v1016_v44 = vadd.f32 %v1012_v57, %v984_v8  ;;  %v1017_v13 = vadd.f32 %v1013_v28, %v985_v62  ;;  %v939_v7 = vrot.slane %v1818_v45, 7  ;;  %v2345_v16 = vld [vmem:[#allocation11_spill] sm:$0xff] }
  0xca   :  { %v2341_v12 = vrot.slane %v2296_v37, 7  ;;  %v1018_v46 = vadd.f32 %v1014_v61, %v1993_v3  ;;  %v1019_v59 = vadd.f32 %v1015_v63, %v1997_v56  ;;  %v2343_v1 = vrot.slane %v2342_v42, 7  ;;  %v2358_v42 = vld [vmem:[#allocation49_spill] sm:$0xff] }
  0xcb   :  { %v967_v48 = vmul.f32 %v959_v55, %v907_v43  ;;  %v2015_v22 = vadd.f32 %v1016_v44, %v2344_v38  ;;  %v2018_v19 = vadd.f32 %v1017_v13, %v2345_v16  ;;  %v972_v45 = vrot.slane %v964_v18, 4  ;;  %v2356_v44 = vld [vmem:[#allocation47_spill] sm:$0xff] }
  0xcc   :  { %v952_v25 = vmul.f32 %v2341_v12, %v1849_v49  ;;  %v953_v30 = vmul.f32 %v2343_v1, %v1854_v9  ;;  %v973_v17 = vrot.slane %v965_v14, 4  ;;  %v2021_v37 = vadd.f32 %v1018_v46, %v2346_v39  ;;  %v2347_v49 = vld [vmem:[#allocation34_spill] sm:$0xff]  ;;  %v2357_v12 = vld [vmem:[#allocation48_spill] sm:$0xff] }
  0xcd   :  { %v2024_v40 = vadd.f32 %v1019_v59, %v2347_v49  ;;  %v926_v29 = vrot.slane %v918_v21, 4  ;;  %v2350_v60 = vrot.slane %v2349_v58, 7  ;;  %v974_v43 = vrot.slane %v966_v24, 4 }
  0xce   :  { %1219 = vrsqrt.f32 %v2015_v22  ;;  %v927_v52 = vrot.slane %v919_v15, 4  ;;  %v932_v6 = vadd.f32 %v924_v26, %v900_v31  ;;  %v944_v27 = vmul.f32 %v936_v5, %v2351_v33  ;;  %v2355_v15 = vld [vmem:[#allocation46_spill] sm:$0xff] }
  0xcf   :  { %v954_v9 = vmul.f32 %v2350_v60, %v2348_v0  ;;  %1221 = vrsqrt.f32 %v2018_v19  ;;  %v2354_v47 = vrot.slane %v2353_v51, 7  ;;  %v975_v55 = vrot.slane %v967_v48, 4  ;;  %v2359_v48 = vld [vmem:[#allocation9_spill] sm:$0xff] }
  0xd0   :  { %v992_v57 = vrot.slane %v984_v8, 7  ;;  %1223 = vrsqrt.f32 %v2021_v37  ;;  %v980_v21 = vadd.f32 %v972_v45, %v952_v25  ;;  %v981_v28 = vadd.f32 %v973_v17, %v953_v30  ;;  %v2360_v45 = vld [vmem:[#allocation2_spill] sm:$0xff] }
  0xd1   :  { %v955_v36 = vmul.f32 %v2354_v47, %v2352_v54  ;;  %v993_v18 = vrot.slane %v985_v62, 7  ;;  %1225 = vrsqrt.f32 %v2024_v40  ;;  %v933_v14 = vadd.f32 %v925_v4, %v901_v20 }
  0xd2   :  { %v945_v31 = vmul.f32 %v937_v10, %v2355_v15  ;;  %v982_v26 = vadd.f32 %v974_v43, %v954_v9  ;;  %v994_v61 = vrot.slane %v1993_v3, 7  ;;  %v934_v63 = vadd.f32 %v926_v29, %v902_v35 }
  0xd3   :  { %v935_v24 = vadd.f32 %v927_v52, %v903_v23  ;;  %v946_v13 = vmul.f32 %v938_v2, %v2356_v44  ;;  %v947_v46 = vmul.f32 %v939_v7, %v2357_v12  ;;  %v2041_v59 = vadd.f32 %v944_v27, %v932_v6 }
  0xd4   :  { %v1220_v8 = vpop.eup %1219  ;;  %v983_v25 = vadd.f32 %v975_v55, %v955_v36  ;;  %v995_v62 = vrot.slane %v1997_v56, 7  ;;  %v1004_v1 = vmul.f32 %v936_v5, %v2358_v42  ;;  %v1000_v4 = vadd.f32 %v992_v57, %v980_v21 }
  0xd5   :  { %v1222_v20 = vpop.eup %1221  ;;  %v1001_v30 = vadd.f32 %v993_v18, %v981_v28  ;;  %v1005_v38 = vmul.f32 %v937_v10, %v2359_v48  ;;  %v1025_v35 = vmul.f32 %v1220_v8, %v2015_v22  ;;  %v2047_v3 = vadd.f32 %v945_v31, %v933_v14  ;;  %v2361_v10 = vld [vmem:[#allocation10_spill] sm:$0xff] }
  0xd6   :  { %v1224_v23 = vpop.eup %1223  ;;  %v1002_v16 = vadd.f32 %v994_v61, %v982_v26  ;;  %v1006_v17 = vmul.f32 %v938_v2, %v2360_v45  ;;  %v1037_v39 = vmul.f32 %v1222_v20, %v2018_v19  ;;  %v2051_v29 = vadd.f32 %v946_v13, %v934_v63  ;;  %v2362_v13 = vld [vmem:[#allocation24_spill] sm:$0xff] }
  0xd7   :  { %v1226_v49 = vpop.eup %1225  ;;  %v2053_v56 = vadd.f32 %v947_v46, %v935_v24  ;;  %v1026_v5 = vmul.f32 %v1220_v8, %v1025_v35  ;;  %v1049_v0 = vmul.f32 %v1224_v23, %v2021_v37  ;;  %v1003_v58 = vadd.f32 %v995_v62, %v983_v25  ;;  %v2363_v25 = vld [vmem:[#allocation32_spill] sm:$0xff] }
  0xd8   :  { %v1007_v60 = vmul.f32 %v939_v7, %v2361_v10  ;;  %v1038_v9 = vmul.f32 %v1222_v20, %v1037_v39  ;;  %v1061_v43 = vmul.f32 %v1226_v49, %v2024_v40  ;;  %v2058_v52 = vadd.f32 %v1004_v1, %v1000_v4 }
  0xd9   :  { %v2060_v6 = vadd.f32 %v1005_v38, %v1001_v30  ;;  %v1027_v2 = vmul.f32 0.5, %v1026_v5  ;;  %v1050_v33 = vmul.f32 %v1224_v23, %v1049_v0  ;;  %v2062_v27 = vadd.f32 %v1006_v17, %v1002_v16 }
  0xda   :  { %vm1031_vm12 = vcmp.eq.f32.partialorder %v2015_v22, inf  ;;  %v1039_v54 = vmul.f32 0.5, %v1038_v9  ;;  %v1062_v51 = vmul.f32 %v1226_v49, %v1061_v43  ;;  %vm1033_vm13 = vcmp.eq.f32.partialorder %v2015_v22, 0.0 }
  0xdb   :  { %v1028_v47 = vsub.f32 1.5, %v1027_v2  ;;  %v1034_v7 = vand.u32 2147483648, %v2015_v22  ;;  %v1051_v36 = vmul.f32 0.5, %v1050_v33  ;;  %vm1043_vm14 = vcmp.eq.f32.partialorder %v2018_v19, inf }
  0xdc   :  { %v1040_v55 = vsub.f32 1.5, %v1039_v54  ;;  %vm1045_vm15 = vcmp.eq.f32.partialorder %v2018_v19, 0.0  ;;  %v1063_v57 = vmul.f32 0.5, %v1062_v51  ;;  %v1046_v28 = vand.u32 2147483648, %v2018_v19 }
  0xdd   :  { %v1029_v21 = vmul.f32 %v1220_v8, %v1028_v47  ;;  %v1052_v18 = vsub.f32 1.5, %v1051_v36  ;;  %vm1055_vm0 = vcmp.eq.f32.partialorder %v2021_v37, inf  ;;  %vm1057_vm1 = vcmp.eq.f32.partialorder %v2021_v37, 0.0 }
  0xde   :  { %v1041_v14 = vmul.f32 %v1222_v20, %v1040_v55  ;;  %v1058_v15 = vand.u32 2147483648, %v2021_v37  ;;  %v1064_v31 = vsub.f32 1.5, %v1063_v57  ;;  %vm1067_vm2 = vcmp.eq.f32.partialorder %v2024_v40, inf }
  0xdf   :  { %v1030_v26 = vmul.f32 %v1029_v21, %v2015_v22  ;;  %v1053_v61 = vmul.f32 %v1224_v23, %v1052_v18  ;;  %vm1069_vm3 = vcmp.eq.f32.partialorder %v2024_v40, 0.0  ;;  %v1070_v44 = vand.u32 2147483648, %v2024_v40 }
  0xe0   :  { %v1042_v63 = vmul.f32 %v1041_v14, %v2018_v19  ;;  %v1065_v24 = vmul.f32 %v1226_v49, %v1064_v31  ;;  %v1088_v12 = vrot.slane %v2362_v13, 5  ;;  %v1089_v62 = vrot.slane %v2363_v25, 5 }
  0xe1   :  { %v1032_v46 = vsel %vm1031_vm12, %v2015_v22, %v1030_v26  ;;  %v1054_v8 = vmul.f32 %v1053_v61, %v2021_v37  ;;  %v1090_v42 = vrot.slane %v1969_v53, 5  ;;  %v1091_v30 = vrot.slane %v1972_v34, 5 }
  0xe2   :  { %v1035_v1 = vsel %vm1033_vm13, %v1034_v7, %v1032_v46  ;;  %v1044_v20 = vsel %vm1043_vm14, %v2018_v19, %v1042_v63  ;;  %v1066_v4 = vmul.f32 %v1065_v24, %v2024_v40  ;;  %v1100_v53 = vrot.slane %v1974_v11, 7 }
  0xe3   :  { %v1047_v48 = vsel %vm1045_vm15, %v1046_v28, %v1044_v20  ;;  %v1056_v38 = vsel %vm1055_vm0, %v2021_v37, %v1054_v8  ;;  %v1072_v35 = vmax.f32 %v1035_v1, 1e-12  ;;  %v1101_v34 = vrot.slane %v1976_v32, 7 }
  0xe4   :  { %v1059_v22 = vsel %vm1057_vm1, %v1058_v15, %v1056_v38  ;;  %v1068_v23 = vsel %vm1067_vm2, %v2024_v40, %v1066_v4  ;;  %v1073_v16 = vmax.f32 %v1047_v48, 1e-12  ;;  %v1102_v11 = vrot.slane %v1978_v50, 7 }
  0xe5   :  { %v1071_v19 = vsel %vm1069_vm3, %v1070_v44, %v1068_v23  ;;  %v1074_v45 = vmax.f32 %v1059_v22, 1e-12  ;;  %1227 = vrcp.f32 %v1072_v35  ;;  %v1103_v37 = vrot.slane %v1980_v41, 7 }
  0xe6   :  { %v1075_v17 = vmax.f32 %v1071_v19, 1e-12  ;;  %1229 = vrcp.f32 %v1073_v16  ;;  %v1011_v39 = vadd.f32 %v1007_v60, %v1003_v58  ;;  %v1112_v49 = vrot.slane %v2041_v59, 7 }
  0xe7   :  { %1231 = vrcp.f32 %v1074_v45  ;;  %v1113_v5 = vrot.slane %v2047_v3, 7  ;;  %v1133_v32 = vsel %vm1132_vm4, %v1088_v12, %v1100_v53  ;;  %v1134_v40 = vsel %vm1132_vm4, %v1089_v62, %v1101_v34 }
  0xe8   :  { %1233 = vrcp.f32 %v1075_v17  ;;  %v1114_v0 = vrot.slane %v2051_v29, 7  ;;  %v1115_v10 = vrot.slane %v2053_v56, 7  ;;  %v1124_v50 = vrot.slane %v2058_v52, 6 }
  0xe9   :  { %v1125_v41 = vrot.slane %v2060_v6, 6  ;;  %v1135_v58 = vsel %vm1132_vm4, %v1090_v42, %v1102_v11  ;;  %v1136_v59 = vsel %vm1132_vm4, %v1091_v30, %v1103_v37  ;;  %v1138_v3 = vsel %vm1137_vm5, %v1133_v32, %v1112_v49 }
  0xea   :  { %v1139_v9 = vsel %vm1137_vm5, %v1134_v40, %v1113_v5  ;;  %v1126_v29 = vrot.slane %v2062_v27, 6  ;;  %v1127_v33 = vrot.slane %v1011_v39, 6  ;;  %v1140_v52 = vsel %vm1137_vm5, %v1135_v58, %v1114_v0 }
  0xeb   :  { %v1228_v60 = vpop.eup %1227  ;;  %v1141_v6 = vsel %vm1137_vm5, %v1136_v59, %v1115_v10  ;;  %v1143_v7 = vsel %vm1142_vm6, %v1138_v3, %v1124_v50  ;;  %v1144_v36 = vsel %vm1142_vm6, %v1139_v9, %v1125_v41 }
  0xec   :  { %v1230_v43 = vpop.eup %1229  ;;  %v1080_v2 = vmul.f32 0.5, %v1228_v60  ;;  %v1145_v28 = vsel %vm1142_vm6, %v1140_v52, %v1126_v29  ;;  %v1146_v27 = vsel %vm1142_vm6, %v1141_v6, %v1127_v33 }
  0xed   :  { %v1232_v56 = vpop.eup %1231  ;;  %v1081_v54 = vmul.f32 0.5, %v1230_v43 }
  0xee   :  { %v1234_v51 = vpop.eup %1233  ;;  %v1082_v47 = vmul.f32 0.5, %v1232_v56  ;;  %v1147_v55 = vperm.slane %v1080_v2, 0 }
  0xef   :  { %v1083_v57 = vmul.f32 0.5, %v1234_v51  ;;  %v1148_v21 = vperm.slane %v1081_v54, 0 }
  0xf0   :  { %v1149_v18 = vperm.slane %v1082_v47, 0  ;;  %v1151_v15 = vmul.f32 %v1147_v55, %v1143_v7 }
  0xf1   :  { %v1150_v14 = vperm.slane %v1083_v57, 0  ;;  %v1152_v31 = vmul.f32 %v1148_v21, %v1144_v36 }
  0xf2   :  { %v1153_v26 = vmul.f32 %v1149_v18, %v1145_v28 }
  0xf3   :  { %v1154_v61 = vmul.f32 %v1150_v14, %v1146_v27  ;;  %v1159_v63 = vrot.slane %v1152_v31, 4 }
  0xf5   :  { %v1160_v24 = vrot.slane %v1154_v61, 4  ;;  %v1162_v44 = vsel %vm1161_vm7, %v1151_v15, %v1159_v63 }
  0xf6   :  { %1166 = vst [vmem:[%s2134_s1] sm:$0xff] %v1162_v44 }
  0xf7   :  { %v1163_v13 = vsel %vm1161_vm7, %v1153_v26, %v1160_v24 }
  0xf8   :  { %1169 = vst.msk [vmem:[%s2134_s1 + $0x8] sm:$0xff] %vm1168_vm9, %v1163_v13 }

// kernel: squeeze.36
= control target key start
LH: loop header
LB: loop body
LE: loop exit
PB: predicated region body
PF: predicated region fallthrough
CT: control target
= control target key end

     0   :  { %vm3_vm0 = vcmask 113664   ;;  %s352_s0 = inlined_call_operand.vmem [shape: f32[14,63], index: 0, kind: input, shape index: {}]   ;;  %s353_s1 = inlined_call_operand.vmem [shape: f32[14,21,3], index: 1, kind: output, shape index: {}]  }
   0x1   :  { %v2_v0 = vld [vmem:[%s352_s0] sm:$0xff]   ;;  %v202_v1 = vld [vmem:[%s352_s0 + $0x8] sm:$0xff]   ;;  %v203_v2 = vld [vmem:[%s352_s0 + $0x10] sm:$0xff]  }
   0x2   :  { %4 = vst.msk [vmem:[#allocation0] sm:$0x7] %vm3_vm0, %v2_v0   ;;  %v204_v3 = vld [vmem:[%s352_s0 + $0x18] sm:$0xff]   ;;  %v205_v4 = vld [vmem:[%s352_s0 + $0x20] sm:$0xff]   ;;  %v206_v5 = vld [vmem:[%s352_s0 + $0x28] sm:$0xff]  }
   0x3   :  { %6 = vst.msk [vmem:[#allocation0 + $0x5] sm:$0x38] %vm3_vm0, %v2_v0   ;;  %v207_v6 = vld [vmem:[%s352_s0 + $0x30] sm:$0xff]   ;;  %v208_v7 = vld [vmem:[%s352_s0 + $0x38] sm:$0x7f]  }
   0x4   :  { %8 = vst.msk [vmem:[#allocation0 + $0xa] sm:$0xc0] %vm3_vm0, %v2_v0  }
   0x5   :  { %13 = vst.msk [vmem:[#allocation0 + $0x12] ss:$6 sm:$0x3] %vm3_vm0, %v202_v1  }
   0x6   :  { %15 = vst.msk [vmem:[#allocation0 + $0x17] sm:$0xc] %vm3_vm0, %v202_v1  }
   0x7   :  { %17 = vst.msk [vmem:[#allocation0 + $0x1c] sm:$0x70] %vm3_vm0, %v202_v1  }
   0x8   :  { %19 = vst.msk [vmem:[#allocation0 + $0x21] sm:$0x80] %vm3_vm0, %v202_v1  }
   0x9   :  { %24 = vst.msk [vmem:[#allocation0 + $0x29] sm:$0x3] %vm3_vm0, %v203_v2   ;;  %v78_v8 = vld [vmem:[#allocation0] sm:$0xf] }
   0xa   :  { %26 = vst.msk [vmem:[#allocation0 + $0x2e] sm:$0x1c] %vm3_vm0, %v203_v2   ;;  %v83_v9 = vld [vmem:[#allocation0 + $0x8] sm:$0xf] }
   0xb   :  { %28 = vst.msk [vmem:[#allocation0 + $0x33] sm:$0xe0] %vm3_vm0, %v203_v2  }
   0xc   :  { %33 = vst.msk [vmem:[#allocation0 + $0x40] sm:$0x7] %vm3_vm0, %v204_v3   ;;  %v89_v10 = vld [vmem:[#allocation0 + $0x10] sm:$0xf] }
   0xd   :  { %35 = vst.msk [vmem:[#allocation0 + $0x45] sm:$0x38] %vm3_vm0, %v204_v3   ;;  %v95_v11 = vld [vmem:[#allocation0 + $0x18] sm:$0xf] }
   0xe   :  { %37 = vst.msk [vmem:[#allocation0 + $0x4a] sm:$0xc0] %vm3_vm0, %v204_v3   ;;  %v101_v12 = vld [vmem:[#allocation0 + $0x20] sm:$0xf] }
   0xf   :  { %42 = vst.msk [vmem:[#allocation0 + $0x52] ss:$6 sm:$0x3] %vm3_vm0, %v205_v4  }
  0x10   :  { %44 = vst.msk [vmem:[#allocation0 + $0x57] sm:$0xc] %vm3_vm0, %v205_v4   ;;  %v107_v13 = vld [vmem:[#allocation0 + $0x28] sm:$0xf] }
  0x11   :  { %46 = vst.msk [vmem:[#allocation0 + $0x5c] sm:$0x70] %vm3_vm0, %v205_v4   ;;  %v113_v14 = vld [vmem:[#allocation0 + $0x30] sm:$0xf] }
  0x12   :  { %48 = vst.msk [vmem:[#allocation0 + $0x61] sm:$0x80] %vm3_vm0, %v205_v4   ;;  %v119_v15 = vld [vmem:[#allocation0 + $0x38] sm:$0xf] }
  0x13   :  { %53 = vst.msk [vmem:[#allocation0 + $0x69] sm:$0x3] %vm3_vm0, %v206_v5   ;;  %v125_v16 = vld [vmem:[#allocation0 + $0x40] sm:$0xf] }
  0x14   :  { %55 = vst.msk [vmem:[#allocation0 + $0x6e] sm:$0x1c] %vm3_vm0, %v206_v5   ;;  %v131_v17 = vld [vmem:[#allocation0 + $0x48] sm:$0xf] }
  0x15   :  { %57 = vst.msk [vmem:[#allocation0 + $0x73] sm:$0xe0] %vm3_vm0, %v206_v5  }
  0x16   :  { %62 = vst.msk [vmem:[#allocation0 + $0x80] sm:$0x7] %vm3_vm0, %v207_v6   ;;  %v137_v18 = vld [vmem:[#allocation0 + $0x50] sm:$0xf] }
  0x17   :  { %64 = vst.msk [vmem:[#allocation0 + $0x85] sm:$0x38] %vm3_vm0, %v207_v6   ;;  %v143_v19 = vld [vmem:[#allocation0 + $0x58] sm:$0xf] }
  0x18   :  { %66 = vst.msk [vmem:[#allocation0 + $0x8a] sm:$0xc0] %vm3_vm0, %v207_v6   ;;  %v149_v20 = vld [vmem:[#allocation0 + $0x60] sm:$0xf] }
  0x19   :  { %71 = vst.msk [vmem:[#allocation0 + $0x92] ss:$6 sm:$0x3] %vm3_vm0, %v208_v7  }
  0x1a   :  { %73 = vst.msk [vmem:[#allocation0 + $0x97] sm:$0xc] %vm3_vm0, %v208_v7   ;;  %v155_v21 = vld [vmem:[#allocation0 + $0x68] sm:$0xf] }
  0x1b   :  { %75 = vst.msk [vmem:[#allocation0 + $0x9c] sm:$0x70] %vm3_vm0, %v208_v7   ;;  %v161_v22 = vld [vmem:[#allocation0 + $0x70] sm:$0xf] }
  0x1c   :  { %81 = vst [vmem:[%s353_s1] sm:$0xf] %v78_v8  ;;  %v167_v23 = vld [vmem:[#allocation0 + $0x78] sm:$0xf] }
  0x1d   :  { %209 = vst [vmem:[%s353_s1 + $0x4] sm:$0xf] %v83_v9  ;;  %v173_v24 = vld [vmem:[#allocation0 + $0x80] sm:$0xf] }
  0x1e   :  { %210 = vst [vmem:[%s353_s1 + $0x8] sm:$0xf] %v89_v10  ;;  %v179_v25 = vld [vmem:[#allocation0 + $0x88] sm:$0xf] }
  0x1f   :  { %211 = vst [vmem:[%s353_s1 + $0xc] sm:$0xf] %v95_v11 }
  0x20   :  { %212 = vst [vmem:[%s353_s1 + $0x10] sm:$0xf] %v101_v12  ;;  %v185_v26 = vld [vmem:[#allocation0 + $0x90] sm:$0xf] }
  0x21   :  { %213 = vst [vmem:[%s353_s1 + $0x14] sm:$0xf] %v107_v13  ;;  %v191_v27 = vld [vmem:[#allocation0 + $0x98] sm:$0xf] }
  0x22   :  { %214 = vst [vmem:[%s353_s1 + $0x18] sm:$0xf] %v113_v14  ;;  %v197_v28 = vld [vmem:[#allocation0 + $0xa0] sm:$0xf] }
  0x23   :  { %215 = vst [vmem:[%s353_s1 + $0x1c] sm:$0xf] %v119_v15 }
  0x24   :  { %216 = vst [vmem:[%s353_s1 + $0x20] sm:$0xf] %v125_v16 }
  0x25   :  { %217 = vst [vmem:[%s353_s1 + $0x24] sm:$0xf] %v131_v17 }
  0x26   :  { %218 = vst [vmem:[%s353_s1 + $0x28] sm:$0xf] %v137_v18 }
  0x27   :  { %219 = vst [vmem:[%s353_s1 + $0x2c] sm:$0xf] %v143_v19 }
  0x28   :  { %220 = vst [vmem:[%s353_s1 + $0x30] sm:$0xf] %v149_v20 }
  0x29   :  { %221 = vst [vmem:[%s353_s1 + $0x34] sm:$0xf] %v155_v21 }
  0x2a   :  { %222 = vst [vmem:[%s353_s1 + $0x38] sm:$0xf] %v161_v22 }
  0x2b   :  { %223 = vst [vmem:[%s353_s1 + $0x3c] sm:$0xf] %v167_v23 }
  0x2c   :  { %224 = vst [vmem:[%s353_s1 + $0x40] sm:$0xf] %v173_v24 }
  0x2d   :  { %225 = vst [vmem:[%s353_s1 + $0x44] sm:$0xf] %v179_v25 }
  0x2e   :  { %226 = vst [vmem:[%s353_s1 + $0x48] sm:$0xf] %v185_v26 }
  0x2f   :  { %227 = vst [vmem:[%s353_s1 + $0x4c] sm:$0xf] %v191_v27 }
  0x30   :  { %228 = vst [vmem:[%s353_s1 + $0x50] sm:$0xf] %v197_v28 }

// kernel: squeeze.34
= control target key start
LH: loop header
LB: loop body
LE: loop exit
PB: predicated region body
PF: predicated region fallthrough
CT: control target
= control target key end

     0   :  { %vm3_vm0 = vcmask 113664   ;;  %s401_s0 = inlined_call_operand.vmem [shape: f32[14,72], index: 0, kind: input, shape index: {}]   ;;  %s402_s1 = inlined_call_operand.vmem [shape: f32[14,24,3], index: 1, kind: output, shape index: {}]  }
   0x1   :  { %v2_v0 = vld [vmem:[%s401_s0] sm:$0xff]   ;;  %v231_v1 = vld [vmem:[%s401_s0 + $0x8] sm:$0xff]   ;;  %v232_v2 = vld [vmem:[%s401_s0 + $0x10] sm:$0xff]  }
   0x2   :  { %4 = vst.msk [vmem:[#allocation0] sm:$0x7] %vm3_vm0, %v2_v0   ;;  %v233_v3 = vld [vmem:[%s401_s0 + $0x18] sm:$0xff]   ;;  %v234_v4 = vld [vmem:[%s401_s0 + $0x20] sm:$0xff]   ;;  %v235_v5 = vld [vmem:[%s401_s0 + $0x28] sm:$0xff]  }
   0x3   :  { %6 = vst.msk [vmem:[#allocation0 + $0x5] sm:$0x38] %vm3_vm0, %v2_v0   ;;  %v236_v6 = vld [vmem:[%s401_s0 + $0x30] sm:$0xff]   ;;  %v237_v7 = vld [vmem:[%s401_s0 + $0x38] sm:$0xff]   ;;  %v238_v8 = vld [vmem:[%s401_s0 + $0x40] sm:$0xff]  }
   0x4   :  { %8 = vst.msk [vmem:[#allocation0 + $0xa] sm:$0xc0] %vm3_vm0, %v2_v0  }
   0x5   :  { %13 = vst.msk [vmem:[#allocation0 + $0x12] ss:$6 sm:$0x3] %vm3_vm0, %v231_v1  }
   0x6   :  { %15 = vst.msk [vmem:[#allocation0 + $0x17] sm:$0xc] %vm3_vm0, %v231_v1  }
   0x7   :  { %17 = vst.msk [vmem:[#allocation0 + $0x1c] sm:$0x70] %vm3_vm0, %v231_v1  }
   0x8   :  { %19 = vst.msk [vmem:[#allocation0 + $0x21] sm:$0x80] %vm3_vm0, %v231_v1  }
   0x9   :  { %24 = vst.msk [vmem:[#allocation0 + $0x29] sm:$0x3] %vm3_vm0, %v232_v2   ;;  %v89_v9 = vld [vmem:[#allocation0] sm:$0xf] }
   0xa   :  { %26 = vst.msk [vmem:[#allocation0 + $0x2e] sm:$0x1c] %vm3_vm0, %v232_v2   ;;  %v94_v10 = vld [vmem:[#allocation0 + $0x8] sm:$0xf] }
   0xb   :  { %28 = vst.msk [vmem:[#allocation0 + $0x33] sm:$0xe0] %vm3_vm0, %v232_v2  }
   0xc   :  { %33 = vst.msk [vmem:[#allocation0 + $0x40] sm:$0x7] %vm3_vm0, %v233_v3   ;;  %v100_v11 = vld [vmem:[#allocation0 + $0x10] sm:$0xf] }
   0xd   :  { %35 = vst.msk [vmem:[#allocation0 + $0x45] sm:$0x38] %vm3_vm0, %v233_v3   ;;  %v106_v12 = vld [vmem:[#allocation0 + $0x18] sm:$0xf] }
   0xe   :  { %37 = vst.msk [vmem:[#allocation0 + $0x4a] sm:$0xc0] %vm3_vm0, %v233_v3   ;;  %v112_v13 = vld [vmem:[#allocation0 + $0x20] sm:$0xf] }
   0xf   :  { %42 = vst.msk [vmem:[#allocation0 + $0x52] ss:$6 sm:$0x3] %vm3_vm0, %v234_v4  }
  0x10   :  { %44 = vst.msk [vmem:[#allocation0 + $0x57] sm:$0xc] %vm3_vm0, %v234_v4   ;;  %v118_v14 = vld [vmem:[#allocation0 + $0x28] sm:$0xf] }
  0x11   :  { %46 = vst.msk [vmem:[#allocation0 + $0x5c] sm:$0x70] %vm3_vm0, %v234_v4   ;;  %v124_v15 = vld [vmem:[#allocation0 + $0x30] sm:$0xf] }
  0x12   :  { %48 = vst.msk [vmem:[#allocation0 + $0x61] sm:$0x80] %vm3_vm0, %v234_v4   ;;  %v130_v16 = vld [vmem:[#allocation0 + $0x38] sm:$0xf] }
  0x13   :  { %53 = vst.msk [vmem:[#allocation0 + $0x69] sm:$0x3] %vm3_vm0, %v235_v5   ;;  %v136_v17 = vld [vmem:[#allocation0 + $0x40] sm:$0xf] }
  0x14   :  { %55 = vst.msk [vmem:[#allocation0 + $0x6e] sm:$0x1c] %vm3_vm0, %v235_v5   ;;  %v142_v18 = vld [vmem:[#allocation0 + $0x48] sm:$0xf] }
  0x15   :  { %57 = vst.msk [vmem:[#allocation0 + $0x73] sm:$0xe0] %vm3_vm0, %v235_v5  }
  0x16   :  { %62 = vst.msk [vmem:[#allocation0 + $0x80] sm:$0x7] %vm3_vm0, %v236_v6   ;;  %v148_v19 = vld [vmem:[#allocation0 + $0x50] sm:$0xf] }
  0x17   :  { %64 = vst.msk [vmem:[#allocation0 + $0x85] sm:$0x38] %vm3_vm0, %v236_v6   ;;  %v154_v20 = vld [vmem:[#allocation0 + $0x58] sm:$0xf] }
  0x18   :  { %66 = vst.msk [vmem:[#allocation0 + $0x8a] sm:$0xc0] %vm3_vm0, %v236_v6   ;;  %v160_v21 = vld [vmem:[#allocation0 + $0x60] sm:$0xf] }
  0x19   :  { %71 = vst.msk [vmem:[#allocation0 + $0x92] ss:$6 sm:$0x3] %vm3_vm0, %v237_v7  }
  0x1a   :  { %73 = vst.msk [vmem:[#allocation0 + $0x97] sm:$0xc] %vm3_vm0, %v237_v7   ;;  %v166_v22 = vld [vmem:[#allocation0 + $0x68] sm:$0xf] }
  0x1b   :  { %75 = vst.msk [vmem:[#allocation0 + $0x9c] sm:$0x70] %vm3_vm0, %v237_v7   ;;  %v172_v23 = vld [vmem:[#allocation0 + $0x70] sm:$0xf] }
  0x1c   :  { %77 = vst.msk [vmem:[#allocation0 + $0xa1] sm:$0x80] %vm3_vm0, %v237_v7   ;;  %v178_v24 = vld [vmem:[#allocation0 + $0x78] sm:$0xf] }
  0x1d   :  { %82 = vst.msk [vmem:[#allocation0 + $0xa9] sm:$0x3] %vm3_vm0, %v238_v8   ;;  %v184_v25 = vld [vmem:[#allocation0 + $0x80] sm:$0xf] }
  0x1e   :  { %84 = vst.msk [vmem:[#allocation0 + $0xae] sm:$0x1c] %vm3_vm0, %v238_v8   ;;  %v190_v26 = vld [vmem:[#allocation0 + $0x88] sm:$0xf] }
  0x1f   :  { %86 = vst.msk [vmem:[#allocation0 + $0xb3] sm:$0xe0] %vm3_vm0, %v238_v8  }
  0x20   :  { %92 = vst [vmem:[%s402_s1] sm:$0xf] %v89_v9  ;;  %v196_v27 = vld [vmem:[#allocation0 + $0x90] sm:$0xf] }
  0x21   :  { %239 = vst [vmem:[%s402_s1 + $0x4] sm:$0xf] %v94_v10  ;;  %v202_v28 = vld [vmem:[#allocation0 + $0x98] sm:$0xf] }
  0x22   :  { %240 = vst [vmem:[%s402_s1 + $0x8] sm:$0xf] %v100_v11  ;;  %v208_v29 = vld [vmem:[#allocation0 + $0xa0] sm:$0xf] }
  0x23   :  { %241 = vst [vmem:[%s402_s1 + $0xc] sm:$0xf] %v106_v12 }
  0x24   :  { %242 = vst [vmem:[%s402_s1 + $0x10] sm:$0xf] %v112_v13  ;;  %v214_v30 = vld [vmem:[#allocation0 + $0xa8] sm:$0xf] }
  0x25   :  { %243 = vst [vmem:[%s402_s1 + $0x14] sm:$0xf] %v118_v14  ;;  %v220_v31 = vld [vmem:[#allocation0 + $0xb0] sm:$0xf] }
  0x26   :  { %244 = vst [vmem:[%s402_s1 + $0x18] sm:$0xf] %v124_v15  ;;  %v226_v32 = vld [vmem:[#allocation0 + $0xb8] sm:$0xf] }
  0x27   :  { %245 = vst [vmem:[%s402_s1 + $0x1c] sm:$0xf] %v130_v16 }
  0x28   :  { %246 = vst [vmem:[%s402_s1 + $0x20] sm:$0xf] %v136_v17 }
  0x29   :  { %247 = vst [vmem:[%s402_s1 + $0x24] sm:$0xf] %v142_v18 }
  0x2a   :  { %248 = vst [vmem:[%s402_s1 + $0x28] sm:$0xf] %v148_v19 }
  0x2b   :  { %249 = vst [vmem:[%s402_s1 + $0x2c] sm:$0xf] %v154_v20 }
  0x2c   :  { %250 = vst [vmem:[%s402_s1 + $0x30] sm:$0xf] %v160_v21 }
  0x2d   :  { %251 = vst [vmem:[%s402_s1 + $0x34] sm:$0xf] %v166_v22 }
  0x2e   :  { %252 = vst [vmem:[%s402_s1 + $0x38] sm:$0xf] %v172_v23 }
  0x2f   :  { %253 = vst [vmem:[%s402_s1 + $0x3c] sm:$0xf] %v178_v24 }
  0x30   :  { %254 = vst [vmem:[%s402_s1 + $0x40] sm:$0xf] %v184_v25 }
  0x31   :  { %255 = vst [vmem:[%s402_s1 + $0x44] sm:$0xf] %v190_v26 }
  0x32   :  { %256 = vst [vmem:[%s402_s1 + $0x48] sm:$0xf] %v196_v27 }
  0x33   :  { %257 = vst [vmem:[%s402_s1 + $0x4c] sm:$0xf] %v202_v28 }
  0x34   :  { %258 = vst [vmem:[%s402_s1 + $0x50] sm:$0xf] %v208_v29 }
  0x35   :  { %259 = vst [vmem:[%s402_s1 + $0x54] sm:$0xf] %v214_v30 }
  0x36   :  { %260 = vst [vmem:[%s402_s1 + $0x58] sm:$0xf] %v220_v31 }
  0x37   :  { %261 = vst [vmem:[%s402_s1 + $0x5c] sm:$0xf] %v226_v32 }

// kernel: aggregate_head_forward.7
= control target key start
LH: loop header
LB: loop body
LE: loop exit
PB: predicated region body
PF: predicated region fallthrough
CT: control target
= control target key end

     0   :  { %vm58_vm0 = vcmask 1044480   ;;  %vm51_vm1 = vcmask 474112   ;;  %s234_s1 = inlined_call_operand.vmem [shape: f32[58,256], index: 1, kind: input, shape index: {}]   ;;  %s235_s0 = inlined_call_operand.vmem [shape: f32[32,58], index: 0, kind: input, shape index: {}]   ;;  %s236_s2 = inlined_call_operand.vmem [shape: f32[1,256], index: 2, kind: input, shape index: {}]   ;;  %s237_s3 = inlined_call_operand.vmem [shape: f32[32,256], index: 3, kind: output, shape index: {}]  }
   0x1   :  { %v31_v0 = vld [vmem:[%s234_s1 + $0x60] sm:$0xff]  ;;  %v33_v1 = vld [vmem:[%s234_s1 + $0x70] sm:$0x3]  ;;  %v32_v2 = vld [vmem:[%s234_s1 + $0x68] sm:$0xff] }
   0x2   :  { %v43_v3 = vpack.c.bf16 %v33_v1, %v31_v0  ;;  %v34_v4 = vld [vmem:[%s234_s1 + $0x78] sm:$0x3]  ;;  %v27_v5 = vld [vmem:[%s234_s1 + $0x40] sm:$0xff]  ;;  %v29_v6 = vld [vmem:[%s234_s1 + $0x50] sm:$0xff] }
   0x3   :  { %v44_v7 = vpack.c.bf16 %v34_v4, %v32_v2  ;;  %v28_v8 = vld [vmem:[%s234_s1 + $0x48] sm:$0xff]  ;;  %v30_v9 = vld [vmem:[%s234_s1 + $0x58] sm:$0xff]  ;;  %v41_v12 = vpack.c.bf16 %v29_v6, %v27_v5  ;;  %v23_v14 = vld [vmem:[%s234_s1 + $0x20] sm:$0xff] }
   0x4   :  { %v60_v10 = vsel %vm58_vm0, %v43_v3, 0  ;;  %v42_v13 = vpack.c.bf16 %v30_v9, %v28_v8  ;;  %v25_v15 = vld [vmem:[%s234_s1 + $0x30] sm:$0xff]  ;;  %v24_v16 = vld [vmem:[%s234_s1 + $0x28] sm:$0xff]  ;;  %v26_v17 = vld [vmem:[%s234_s1 + $0x38] sm:$0xff] }
   0x5   :  { %69 = vmatpush.bf16.msra.mxu0 %v60_v10  ;;  %119 = vmatpush.bf16.msra.mxu2 %v60_v10  ;;  %v63_v11 = vsel %vm58_vm0, %v44_v7, 0  ;;  %v39_v18 = vpack.c.bf16 %v25_v15, %v23_v14  ;;  %v40_v19 = vpack.c.bf16 %v26_v17, %v24_v16  ;;  %v19_v20 = vld [vmem:[%s234_s1] sm:$0xff]  ;;  %v21_v21 = vld [vmem:[%s234_s1 + $0x10] sm:$0xff]  ;;  %v20_v22 = vld [vmem:[%s234_s1 + $0x8] sm:$0xff] }
   0x6   :  { %88 = vmatpush.bf16.msra.mxu1 %v63_v11  ;;  %123 = vmatpush.bf16.msra.mxu3 %v63_v11  ;;  %v22_v23 = vld [vmem:[%s234_s1 + $0x18] sm:$0xff]  ;;  %v15_v24 = vld [vmem:[%s235_s0] sm:$0xff]  ;;  %v37_v25 = vpack.c.bf16 %v21_v21, %v19_v20  ;;  %v16_v26 = vld [vmem:[%s235_s0 + $0x8] sm:$0xff] }
   0x7   :  { %v17_v27 = vld [vmem:[%s235_s0 + $0x10] sm:$0xff]  ;;  %v18_v28 = vld [vmem:[%s235_s0 + $0x18] sm:$0xff]  ;;  %v38_v29 = vpack.c.bf16 %v22_v23, %v20_v22  ;;  %v35_v30 = vpack.c.bf16 %v16_v26, %v15_v24  ;;  %v45_v32 = vld [vmem:[%s236_s2] sm:$0x3] }
   0x8   :  { %v36_v31 = vpack.c.bf16 %v18_v28, %v17_v27  ;;  %v47_v33 = vperm.slane %v45_v32, 0  ;;  %v48_v34 = vperm.slane %v45_v32, 1 }
   0x9   :  { %70 = vmatpush.bf16.msra.mxu0 %v41_v12  ;;  %120 = vmatpush.bf16.msra.mxu2 %v41_v12 }
   0xa   :  { %89 = vmatpush.bf16.msra.mxu1 %v42_v13  ;;  %124 = vmatpush.bf16.msra.mxu3 %v42_v13 }
   0xd   :  { %71 = vmatpush.bf16.msra.mxu0 %v39_v18  ;;  %121 = vmatpush.bf16.msra.mxu2 %v39_v18 }
   0xe   :  { %90 = vmatpush.bf16.msra.mxu1 %v40_v19  ;;  %125 = vmatpush.bf16.msra.mxu3 %v40_v19 }
  0x11   :  { %72 = vmatpush.bf16.msra.mxu0 %v37_v25  ;;  %122 = vmatpush.bf16.msra.mxu2 %v37_v25 }
  0x12   :  { %91 = vmatpush.bf16.msra.mxu1 %v38_v29  ;;  %126 = vmatpush.bf16.msra.mxu3 %v38_v29 }
  0x14   :  { %115 = vmatmul.msk.bf16.vlgmr.msra.gmra.mxu0 %vm51_vm1, %v35_v30  ;;  %116 = vmatmul.msk.bf16.vlgmr.msra.gmra.mxu2 %vm51_vm1, %v36_v31 }
  0x15   :  { %117 = vmatmul.msk.bf16.vlgmr.msra.gmra.mxu1 %vm51_vm1, %v35_v30  ;;  %118 = vmatmul.msk.bf16.vlgmr.msra.gmra.mxu3 %vm51_vm1, %v36_v31 }
  0x91   :  { %v74_v35 = vpop.f32.mrf.mxu0 }
  0x92   :  { %v75_v36 = vadd.f32 %v74_v35, %v47_v33  ;;  %v93_v37 = vpop.f32.mrf.mxu1 }
  0x93   :  { %v94_v38 = vadd.f32 %v93_v37, %v48_v34 }
  0x94   :  { %103 = vst [vmem:[%s237_s3] sm:$0xff] %v75_v36 }
  0x95   :  { %104 = vst [vmem:[%s237_s3 + $0x8] sm:$0xff] %v94_v38 }
  0x97   :  { %v79_v39 = vpop.f32.mrf.mxu2 }
  0x98   :  { %v80_v40 = vadd.f32 %v79_v39, %v47_v33  ;;  %v98_v41 = vpop.f32.mrf.mxu3 }
  0x99   :  { %v99_v42 = vadd.f32 %v98_v41, %v48_v34  ;;  %v76_v43 = vpop.f32.mrf.mxu0 }
  0x9a   :  { %107 = vst [vmem:[%s237_s3 + $0x20] sm:$0xff] %v80_v40  ;;  %v77_v44 = vadd.f32 %v76_v43, %v47_v33  ;;  %v95_v45 = vpop.f32.mrf.mxu1 }
  0x9b   :  { %108 = vst [vmem:[%s237_s3 + $0x28] sm:$0xff] %v99_v42  ;;  %v96_v46 = vadd.f32 %v95_v45, %v48_v34 }
  0x9c   :  { %105 = vst [vmem:[%s237_s3 + $0x10] sm:$0xff] %v77_v44 }
  0x9d   :  { %106 = vst [vmem:[%s237_s3 + $0x18] sm:$0xff] %v96_v46 }
  0x9f   :  { %v81_v47 = vpop.f32.mrf.mxu2 }
  0xa0   :  { %v82_v48 = vadd.f32 %v81_v47, %v47_v33  ;;  %v100_v49 = vpop.f32.mrf.mxu3 }
  0xa1   :  { %v101_v50 = vadd.f32 %v100_v49, %v48_v34 }
  0xa2   :  { %109 = vst [vmem:[%s237_s3 + $0x30] sm:$0xff] %v82_v48 }
  0xa3   :  { %110 = vst [vmem:[%s237_s3 + $0x38] sm:$0xff] %v101_v50 }

</bundles_post_ra>
